<compile_context>
chip_gen: v5e
topology: v5e:2x2
jax: 0.10.0
libtpu: 0.0.40
codegen_flags: <defaults>
</compile_context>

<pallas_src>
import math

import jax
import jax.numpy as jnp
import numpy as np
from jax.experimental import pallas as pl
from jax.experimental.pallas import tpu as pltpu

LEAKY_SLOPE = 0.01            # PyTorch F.leaky_relu default negative_slope
_MIN_CIN = 8                  # zero-pad layer-0 input channels up to this
_STRIDE_PAD = ((1, 0), (1, 0), (2, 0), (2, 1))   # (stride, padding) per conv


# ----------------------------------------------------------------------------
# Fused Pallas kernel: 4 x (conv -> bias -> leaky_relu), one batch image/step
# ----------------------------------------------------------------------------
def _encoder_kernel(x_ref,
                    s0_ref, w0_ref, b0_ref,
                    s1_ref, w1_ref, b1_ref,
                    s2_ref, w2_ref, b2_ref,
                    s3_ref, w3_ref, b3_ref,
                    o_ref):
    def conv_leaky(x_f32, s_ref, w_ref, b_ref):
        kk, mo, _ = s_ref.shape
        cout = w_ref.shape[-1]
        x_bf = x_f32.astype(jnp.bfloat16)
        acc = jnp.zeros((mo, cout), jnp.float32)
        for t in range(kk):                     # static unroll over KHxKW taps
            gathered = jnp.dot(s_ref[t], x_bf,
                               preferred_element_type=jnp.float32)
            # gathered holds exact bf16 values of x (one-hot rows) -> lossless cast
            acc = acc + jnp.dot(gathered.astype(jnp.bfloat16), w_ref[t],
                                preferred_element_type=jnp.float32)
        acc = acc + b_ref[...]
        return jnp.where(acc >= 0, acc, LEAKY_SLOPE * acc)

    x = x_ref[0]                                 # (Hin*Win, Cin), f32
    x = conv_leaky(x, s0_ref, w0_ref, b0_ref)
    # TODO(synk): nn.Dropout implemented as eval-mode identity (training-mode
    # stochastic Bernoulli mask intentionally omitted).
    x = conv_leaky(x, s1_ref, w1_ref, b1_ref)
    x = conv_leaky(x, s2_ref, w2_ref, b2_ref)
    x = conv_leaky(x, s3_ref, w3_ref, b3_ref)
    o_ref[0] = x                                 # (Ho*Wo, 128), lane-dense


# ----------------------------------------------------------------------------
# Host-side constants: selection matrices + flattened filter taps
# ----------------------------------------------------------------------------
def _selection_matrices(hin, win, k, stride, pad):
    """S[t, ho*Wo+wo, h*Win+w] = 1 iff unpadded input pixel (h, w) is tap
    t = i*k + j of output pixel (ho, wo); padded taps give all-zero rows."""
    ho = (hin + 2 * pad - k) // stride + 1
    wo = (win + 2 * pad - k) // stride + 1
    sel = np.zeros((k * k, ho * wo, hin * win), np.float32)
    for i in range(k):
        for j in range(k):
            t = i * k + j
            for a in range(ho):
                h = a * stride + i - pad
                if h < 0 or h >= hin:
                    continue
                for b in range(wo):
                    w = b * stride + j - pad
                    if 0 <= w < win:
                        sel[t, a * wo + b, h * win + w] = 1.0
    return sel, ho, wo


def _prepare_layer_constants(params, hin, win, cin):
    """Per layer: (S (KK,Mo,Min) bf16, W (KK,Cin,Cout) bf16, b (1,Cout) f32)."""
    consts = []
    h, w, c = hin, win, max(cin, _MIN_CIN)
    for (weight, bias), (stride, pad) in zip(params, _STRIDE_PAD):
        cout, cin_l, k, _ = weight.shape
        sel_np, ho, wo = _selection_matrices(h, w, k, stride, pad)
        sel = jnp.asarray(sel_np, dtype=jnp.bfloat16)      # 0/1 -> exact in bf16
        wmat = jnp.transpose(weight, (2, 3, 1, 0)).reshape(k * k, cin_l, cout)
        if cin_l < c:                                      # layer-0 Cin zero-pad
            wmat = jnp.pad(wmat, ((0, 0), (0, c - cin_l), (0, 0)))
        consts.append((sel, wmat.astype(jnp.bfloat16),
                       bias.reshape(1, cout).astype(jnp.float32)))
        h, w, c = ho, wo, cout
    return consts, (h, w, c)


def _const_spec(arr):
    zeros = (0,) * arr.ndim
    return pl.BlockSpec(arr.shape, lambda i: zeros)        # VMEM-resident block


# ----------------------------------------------------------------------------
# Forward pass (matches PyTorch ConvolutionalEncoder.forward, eval mode)
# ----------------------------------------------------------------------------
def convolutional_encoder(x, params):
    n, cin, hin, win = x.shape
    cin_pad = max(cin, _MIN_CIN)
    consts, (ho_f, wo_f, c_f) = _prepare_layer_constants(params, hin, win, cin)
    mo_f = ho_f * wo_f

    # NCHW -> channel-last (N, Hin*Win, Cin_pad); the only host-side layout op.
    xp = jnp.transpose(x, (0, 2, 3, 1)).reshape(n, hin * win, cin)
    if cin < cin_pad:
        xp = jnp.pad(xp, ((0, 0), (0, 0), (0, cin_pad - cin)))
    xp = xp.astype(jnp.float32)

    flat_consts = [a for layer in consts for a in layer]

    # Advisory cost estimate for the XLA scheduler around the custom call.
    flops = 0
    bytes_accessed = xp.size * 4 + n * mo_f * c_f * 4
    for sel, wmat, brow in consts:
        kk, mo, mi = sel.shape
        ci, co = wmat.shape[1], wmat.shape[2]
        flops += 2 * n * kk * (mo * mi * ci + mo * ci * co)
        bytes_accessed += sel.size * 2 + wmat.size * 2 + brow.size * 4
    cost = pl.CostEstimate(flops=int(flops), transcendentals=0,
                           bytes_accessed=int(bytes_accessed))

    out = pl.pallas_call(
        _encoder_kernel,
        out_shape=jax.ShapeDtypeStruct((n, mo_f, c_f), jnp.float32),
        grid=(n,),
        in_specs=([pl.BlockSpec((1, hin * win, cin_pad), lambda i: (i, 0, 0))]
                  + [_const_spec(a) for a in flat_consts]),
        out_specs=pl.BlockSpec((1, mo_f, c_f), lambda i: (i, 0, 0)),
        compiler_params=pltpu.CompilerParams(
            dimension_semantics=("parallel",)),
        cost_estimate=cost,
    )(xp, *flat_consts)

    # PyTorch `x.view(N, -1)` flattens NCHW; kernel output is (N, Ho*Wo, C).
    # (Identity reorder here since the final spatial size is 1x1.)
    return out.reshape(n, ho_f, wo_f, c_f).transpose(0, 3, 1, 2).reshape(n, -1)


# ----------------------------------------------------------------------------
# Parameter init (deterministic, PyTorch-style uniform bounds)
# ----------------------------------------------------------------------------
def init_conv_params(key, cout, cin, k):
    fan_in = cin * k * k
    bound = 1.0 / math.sqrt(fan_in)
    kw_, kb_ = jax.random.split(key)
    w = jax.random.uniform(kw_, (cout, cin, k, k), jnp.float32, -bound, bound)
    b = jax.random.uniform(kb_, (cout,), jnp.float32, -bound, bound)
    return w, b


def make_params(key, in_channels=1):
    k0, k1, k2, k3 = jax.random.split(key, 4)
    return (
        init_conv_params(k0, 16, in_channels, 3),   # conv0: 3x3, s1
        init_conv_params(k1, 32, 16, 3),            # conv1: 3x3, s1
        init_conv_params(k2, 64, 32, 3),            # conv2: 3x3, s2
        init_conv_params(k3, 128, 64, 6),           # conv3: 6x6, s2, p1
    )


# ----------------------------------------------------------------------------
# Pure-JAX reference for correctness
# ----------------------------------------------------------------------------
def reference_encoder(x, params):
    def conv(x, w, b, s, p):
        y = jax.lax.conv_general_dilated(
            x, w, window_strides=(s, s), padding=[(p, p), (p, p)],
            dimension_numbers=("NCHW", "OIHW", "NCHW"),
            precision=jax.lax.Precision.HIGHEST)
        y = y + b[None, :, None, None]
        return jnp.where(y >= 0, y, LEAKY_SLOPE * y)

    (w0, b0), (w1, b1), (w2, b2), (w3, b3) = params
    x = conv(x, w0, b0, 1, 0)
    x = conv(x, w1, b1, 1, 0)
    x = conv(x, w2, b2, 2, 0)
    x = conv(x, w3, b3, 2, 1)
    return x.reshape(x.shape[0], -1)


if __name__ == "__main__":
    key = jax.random.PRNGKey(0)
    kx, kp = jax.random.split(key)

    # Small shapes: batch=2, in_channels=1, spatial 16x16.
    x = jax.random.normal(kx, (2, 1, 16, 16), jnp.float32)
    params = make_params(kp, in_channels=1)

    fwd = jax.jit(convolutional_encoder)
    out = jax.block_until_ready(fwd(x, params))
    assert out.shape == (2, 128), out.shape   # 16->14->12->5->1 spatial, 128 ch

    ref = jax.block_until_ready(reference_encoder(x, params))
    np.testing.assert_allclose(np.asarray(out), np.asarray(ref),
                               rtol=5e-2, atol=1e-2)

    print("KERNEL_OK")
</pallas_src>

<mosaic_0001>
module attributes {stable_mosaic.version = 11 : i64} {
  func.func @_encoder_kernel(%arg0: i32, %arg1: memref<1x256x8xf32, #tpu.memory_space<vmem>>, %arg2: memref<9x196x256xbf16, #tpu.memory_space<vmem>>, %arg3: memref<9x8x16xbf16, #tpu.memory_space<vmem>>, %arg4: memref<1x16xf32, #tpu.memory_space<vmem>>, %arg5: memref<9x144x196xbf16, #tpu.memory_space<vmem>>, %arg6: memref<9x16x32xbf16, #tpu.memory_space<vmem>>, %arg7: memref<1x32xf32, #tpu.memory_space<vmem>>, %arg8: memref<9x25x144xbf16, #tpu.memory_space<vmem>>, %arg9: memref<9x32x64xbf16, #tpu.memory_space<vmem>>, %arg10: memref<1x64xf32, #tpu.memory_space<vmem>>, %arg11: memref<36x1x25xbf16, #tpu.memory_space<vmem>>, %arg12: memref<36x64x128xbf16, #tpu.memory_space<vmem>>, %arg13: memref<1x128xf32, #tpu.memory_space<vmem>>, %arg14: memref<1x1x128xf32, #tpu.memory_space<vmem>>) attributes {dimension_semantics = [#tpu.dimension_semantics<parallel>], iteration_bounds = array<i64: 2>, scalar_prefetch = 0 : i64, scratch_operands = 0 : i64, tpu.core_type = #tpu.core_type<tc>, window_params = [{transform_indices = @transform_0, window_bounds = array<i64: 1, 256, 8>}, {pipeline_mode = #tpu.pipeline_mode<synchronous>, transform_indices = @transform_1, window_bounds = array<i64: 9, 196, 256>}, {pipeline_mode = #tpu.pipeline_mode<synchronous>, transform_indices = @transform_2, window_bounds = array<i64: 9, 8, 16>}, {pipeline_mode = #tpu.pipeline_mode<synchronous>, transform_indices = @transform_3, window_bounds = array<i64: 1, 16>}, {pipeline_mode = #tpu.pipeline_mode<synchronous>, transform_indices = @transform_4, window_bounds = array<i64: 9, 144, 196>}, {pipeline_mode = #tpu.pipeline_mode<synchronous>, transform_indices = @transform_5, window_bounds = array<i64: 9, 16, 32>}, {pipeline_mode = #tpu.pipeline_mode<synchronous>, transform_indices = @transform_6, window_bounds = array<i64: 1, 32>}, {pipeline_mode = #tpu.pipeline_mode<synchronous>, transform_indices = @transform_7, window_bounds = array<i64: 9, 25, 144>}, {pipeline_mode = #tpu.pipeline_mode<synchronous>, transform_indices = @transform_8, window_bounds = array<i64: 9, 32, 64>}, {pipeline_mode = #tpu.pipeline_mode<synchronous>, transform_indices = @transform_9, window_bounds = array<i64: 1, 64>}, {pipeline_mode = #tpu.pipeline_mode<synchronous>, transform_indices = @transform_10, window_bounds = array<i64: 36, 1, 25>}, {pipeline_mode = #tpu.pipeline_mode<synchronous>, transform_indices = @transform_11, window_bounds = array<i64: 36, 64, 128>}, {pipeline_mode = #tpu.pipeline_mode<synchronous>, transform_indices = @transform_12, window_bounds = array<i64: 1, 128>}, {transform_indices = @transform_13, window_bounds = array<i64: 1, 1, 128>}]} {
    %c0 = arith.constant 0 : index
    %c0_0 = arith.constant 0 : index
    %c0_1 = arith.constant 0 : index
    %0 = vector.load %arg1[%c0, %c0_0, %c0_1] : memref<1x256x8xf32, #tpu.memory_space<vmem>>, vector<1x256x8xf32>
    %1 = vector.shape_cast %0 : vector<1x256x8xf32> to vector<256x8xf32>
    %2 = arith.truncf %1 : vector<256x8xf32> to vector<256x8xbf16>
    %cst = arith.constant 0.000000e+00 : f32
    %3 = vector.broadcast %cst : f32 to vector<196x16xf32>
    %c0_2 = arith.constant 0 : index
    %c0_3 = arith.constant 0 : index
    %c0_4 = arith.constant 0 : index
    %4 = vector.load %arg2[%c0_2, %c0_3, %c0_4] : memref<9x196x256xbf16, #tpu.memory_space<vmem>>, vector<1x196x256xbf16>
    %5 = vector.shape_cast %4 : vector<1x196x256xbf16> to vector<196x256xbf16>
    %cst_5 = arith.constant dense<0.000000e+00> : vector<196x8xf32>
    %6 = tpu.matmul %5, %2, %cst_5 {dimension_numbers = #tpu.dot_dimension_numbers<[1], [0], [0], [1], [0, 0, 1, 1], [], []>} : vector<196x256xbf16>, vector<256x8xbf16>, vector<196x8xf32> -> vector<196x8xf32>
    %7 = arith.truncf %6 : vector<196x8xf32> to vector<196x8xbf16>
    %c0_6 = arith.constant 0 : index
    %c0_7 = arith.constant 0 : index
    %c0_8 = arith.constant 0 : index
    %8 = vector.load %arg3[%c0_6, %c0_7, %c0_8] : memref<9x8x16xbf16, #tpu.memory_space<vmem>>, vector<1x8x16xbf16>
    %9 = vector.shape_cast %8 : vector<1x8x16xbf16> to vector<8x16xbf16>
    %cst_9 = arith.constant dense<0.000000e+00> : vector<196x16xf32>
    %10 = tpu.matmul %7, %9, %cst_9 {dimension_numbers = #tpu.dot_dimension_numbers<[1], [0], [0], [1], [0, 0, 1, 1], [], []>} : vector<196x8xbf16>, vector<8x16xbf16>, vector<196x16xf32> -> vector<196x16xf32>
    %11 = arith.addf %3, %10 : vector<196x16xf32>
    %c1 = arith.constant 1 : index
    %c0_10 = arith.constant 0 : index
    %c0_11 = arith.constant 0 : index
    %12 = vector.load %arg2[%c1, %c0_10, %c0_11] : memref<9x196x256xbf16, #tpu.memory_space<vmem>>, vector<1x196x256xbf16>
    %13 = vector.shape_cast %12 : vector<1x196x256xbf16> to vector<196x256xbf16>
    %cst_12 = arith.constant dense<0.000000e+00> : vector<196x8xf32>
    %14 = tpu.matmul %13, %2, %cst_12 {dimension_numbers = #tpu.dot_dimension_numbers<[1], [0], [0], [1], [0, 0, 1, 1], [], []>} : vector<196x256xbf16>, vector<256x8xbf16>, vector<196x8xf32> -> vector<196x8xf32>
    %15 = arith.truncf %14 : vector<196x8xf32> to vector<196x8xbf16>
    %c1_13 = arith.constant 1 : index
    %c0_14 = arith.constant 0 : index
    %c0_15 = arith.constant 0 : index
    %16 = vector.load %arg3[%c1_13, %c0_14, %c0_15] : memref<9x8x16xbf16, #tpu.memory_space<vmem>>, vector<1x8x16xbf16>
    %17 = vector.shape_cast %16 : vector<1x8x16xbf16> to vector<8x16xbf16>
    %cst_16 = arith.constant dense<0.000000e+00> : vector<196x16xf32>
    %18 = tpu.matmul %15, %17, %cst_16 {dimension_numbers = #tpu.dot_dimension_numbers<[1], [0], [0], [1], [0, 0, 1, 1], [], []>} : vector<196x8xbf16>, vector<8x16xbf16>, vector<196x16xf32> -> vector<196x16xf32>
    %19 = arith.addf %11, %18 : vector<196x16xf32>
    %c2 = arith.constant 2 : index
    %c0_17 = arith.constant 0 : index
    %c0_18 = arith.constant 0 : index
    %20 = vector.load %arg2[%c2, %c0_17, %c0_18] : memref<9x196x256xbf16, #tpu.memory_space<vmem>>, vector<1x196x256xbf16>
    %21 = vector.shape_cast %20 : vector<1x196x256xbf16> to vector<196x256xbf16>
    %cst_19 = arith.constant dense<0.000000e+00> : vector<196x8xf32>
    %22 = tpu.matmul %21, %2, %cst_19 {dimension_numbers = #tpu.dot_dimension_numbers<[1], [0], [0], [1], [0, 0, 1, 1], [], []>} : vector<196x256xbf16>, vector<256x8xbf16>, vector<196x8xf32> -> vector<196x8xf32>
    %23 = arith.truncf %22 : vector<196x8xf32> to vector<196x8xbf16>
    %c2_20 = arith.constant 2 : index
    %c0_21 = arith.constant 0 : index
    %c0_22 = arith.constant 0 : index
    %24 = vector.load %arg3[%c2_20, %c0_21, %c0_22] : memref<9x8x16xbf16, #tpu.memory_space<vmem>>, vector<1x8x16xbf16>
    %25 = vector.shape_cast %24 : vector<1x8x16xbf16> to vector<8x16xbf16>
    %cst_23 = arith.constant dense<0.000000e+00> : vector<196x16xf32>
    %26 = tpu.matmul %23, %25, %cst_23 {dimension_numbers = #tpu.dot_dimension_numbers<[1], [0], [0], [1], [0, 0, 1, 1], [], []>} : vector<196x8xbf16>, vector<8x16xbf16>, vector<196x16xf32> -> vector<196x16xf32>
    %27 = arith.addf %19, %26 : vector<196x16xf32>
    %c3 = arith.constant 3 : index
    %c0_24 = arith.constant 0 : index
    %c0_25 = arith.constant 0 : index
    %28 = vector.load %arg2[%c3, %c0_24, %c0_25] : memref<9x196x256xbf16, #tpu.memory_space<vmem>>, vector<1x196x256xbf16>
    %29 = vector.shape_cast %28 : vector<1x196x256xbf16> to vector<196x256xbf16>
    %cst_26 = arith.constant dense<0.000000e+00> : vector<196x8xf32>
    %30 = tpu.matmul %29, %2, %cst_26 {dimension_numbers = #tpu.dot_dimension_numbers<[1], [0], [0], [1], [0, 0, 1, 1], [], []>} : vector<196x256xbf16>, vector<256x8xbf16>, vector<196x8xf32> -> vector<196x8xf32>
    %31 = arith.truncf %30 : vector<196x8xf32> to vector<196x8xbf16>
    %c3_27 = arith.constant 3 : index
    %c0_28 = arith.constant 0 : index
    %c0_29 = arith.constant 0 : index
    %32 = vector.load %arg3[%c3_27, %c0_28, %c0_29] : memref<9x8x16xbf16, #tpu.memory_space<vmem>>, vector<1x8x16xbf16>
    %33 = vector.shape_cast %32 : vector<1x8x16xbf16> to vector<8x16xbf16>
    %cst_30 = arith.constant dense<0.000000e+00> : vector<196x16xf32>
    %34 = tpu.matmul %31, %33, %cst_30 {dimension_numbers = #tpu.dot_dimension_numbers<[1], [0], [0], [1], [0, 0, 1, 1], [], []>} : vector<196x8xbf16>, vector<8x16xbf16>, vector<196x16xf32> -> vector<196x16xf32>
    %35 = arith.addf %27, %34 : vector<196x16xf32>
    %c4 = arith.constant 4 : index
    %c0_31 = arith.constant 0 : index
    %c0_32 = arith.constant 0 : index
    %36 = vector.load %arg2[%c4, %c0_31, %c0_32] : memref<9x196x256xbf16, #tpu.memory_space<vmem>>, vector<1x196x256xbf16>
    %37 = vector.shape_cast %36 : vector<1x196x256xbf16> to vector<196x256xbf16>
    %cst_33 = arith.constant dense<0.000000e+00> : vector<196x8xf32>
    %38 = tpu.matmul %37, %2, %cst_33 {dimension_numbers = #tpu.dot_dimension_numbers<[1], [0], [0], [1], [0, 0, 1, 1], [], []>} : vector<196x256xbf16>, vector<256x8xbf16>, vector<196x8xf32> -> vector<196x8xf32>
    %39 = arith.truncf %38 : vector<196x8xf32> to vector<196x8xbf16>
    %c4_34 = arith.constant 4 : index
    %c0_35 = arith.constant 0 : index
    %c0_36 = arith.constant 0 : index
    %40 = vector.load %arg3[%c4_34, %c0_35, %c0_36] : memref<9x8x16xbf16, #tpu.memory_space<vmem>>, vector<1x8x16xbf16>
    %41 = vector.shape_cast %40 : vector<1x8x16xbf16> to vector<8x16xbf16>
    %cst_37 = arith.constant dense<0.000000e+00> : vector<196x16xf32>
    %42 = tpu.matmul %39, %41, %cst_37 {dimension_numbers = #tpu.dot_dimension_numbers<[1], [0], [0], [1], [0, 0, 1, 1], [], []>} : vector<196x8xbf16>, vector<8x16xbf16>, vector<196x16xf32> -> vector<196x16xf32>
    %43 = arith.addf %35, %42 : vector<196x16xf32>
    %c5 = arith.constant 5 : index
    %c0_38 = arith.constant 0 : index
    %c0_39 = arith.constant 0 : index
    %44 = vector.load %arg2[%c5, %c0_38, %c0_39] : memref<9x196x256xbf16, #tpu.memory_space<vmem>>, vector<1x196x256xbf16>
    %45 = vector.shape_cast %44 : vector<1x196x256xbf16> to vector<196x256xbf16>
    %cst_40 = arith.constant dense<0.000000e+00> : vector<196x8xf32>
    %46 = tpu.matmul %45, %2, %cst_40 {dimension_numbers = #tpu.dot_dimension_numbers<[1], [0], [0], [1], [0, 0, 1, 1], [], []>} : vector<196x256xbf16>, vector<256x8xbf16>, vector<196x8xf32> -> vector<196x8xf32>
    %47 = arith.truncf %46 : vector<196x8xf32> to vector<196x8xbf16>
    %c5_41 = arith.constant 5 : index
    %c0_42 = arith.constant 0 : index
    %c0_43 = arith.constant 0 : index
    %48 = vector.load %arg3[%c5_41, %c0_42, %c0_43] : memref<9x8x16xbf16, #tpu.memory_space<vmem>>, vector<1x8x16xbf16>
    %49 = vector.shape_cast %48 : vector<1x8x16xbf16> to vector<8x16xbf16>
    %cst_44 = arith.constant dense<0.000000e+00> : vector<196x16xf32>
    %50 = tpu.matmul %47, %49, %cst_44 {dimension_numbers = #tpu.dot_dimension_numbers<[1], [0], [0], [1], [0, 0, 1, 1], [], []>} : vector<196x8xbf16>, vector<8x16xbf16>, vector<196x16xf32> -> vector<196x16xf32>
    %51 = arith.addf %43, %50 : vector<196x16xf32>
    %c6 = arith.constant 6 : index
    %c0_45 = arith.constant 0 : index
    %c0_46 = arith.constant 0 : index
    %52 = vector.load %arg2[%c6, %c0_45, %c0_46] : memref<9x196x256xbf16, #tpu.memory_space<vmem>>, vector<1x196x256xbf16>
    %53 = vector.shape_cast %52 : vector<1x196x256xbf16> to vector<196x256xbf16>
    %cst_47 = arith.constant dense<0.000000e+00> : vector<196x8xf32>
    %54 = tpu.matmul %53, %2, %cst_47 {dimension_numbers = #tpu.dot_dimension_numbers<[1], [0], [0], [1], [0, 0, 1, 1], [], []>} : vector<196x256xbf16>, vector<256x8xbf16>, vector<196x8xf32> -> vector<196x8xf32>
    %55 = arith.truncf %54 : vector<196x8xf32> to vector<196x8xbf16>
    %c6_48 = arith.constant 6 : index
    %c0_49 = arith.constant 0 : index
    %c0_50 = arith.constant 0 : index
    %56 = vector.load %arg3[%c6_48, %c0_49, %c0_50] : memref<9x8x16xbf16, #tpu.memory_space<vmem>>, vector<1x8x16xbf16>
    %57 = vector.shape_cast %56 : vector<1x8x16xbf16> to vector<8x16xbf16>
    %cst_51 = arith.constant dense<0.000000e+00> : vector<196x16xf32>
    %58 = tpu.matmul %55, %57, %cst_51 {dimension_numbers = #tpu.dot_dimension_numbers<[1], [0], [0], [1], [0, 0, 1, 1], [], []>} : vector<196x8xbf16>, vector<8x16xbf16>, vector<196x16xf32> -> vector<196x16xf32>
    %59 = arith.addf %51, %58 : vector<196x16xf32>
    %c7 = arith.constant 7 : index
    %c0_52 = arith.constant 0 : index
    %c0_53 = arith.constant 0 : index
    %60 = vector.load %arg2[%c7, %c0_52, %c0_53] : memref<9x196x256xbf16, #tpu.memory_space<vmem>>, vector<1x196x256xbf16>
    %61 = vector.shape_cast %60 : vector<1x196x256xbf16> to vector<196x256xbf16>
    %cst_54 = arith.constant dense<0.000000e+00> : vector<196x8xf32>
    %62 = tpu.matmul %61, %2, %cst_54 {dimension_numbers = #tpu.dot_dimension_numbers<[1], [0], [0], [1], [0, 0, 1, 1], [], []>} : vector<196x256xbf16>, vector<256x8xbf16>, vector<196x8xf32> -> vector<196x8xf32>
    %63 = arith.truncf %62 : vector<196x8xf32> to vector<196x8xbf16>
    %c7_55 = arith.constant 7 : index
    %c0_56 = arith.constant 0 : index
    %c0_57 = arith.constant 0 : index
    %64 = vector.load %arg3[%c7_55, %c0_56, %c0_57] : memref<9x8x16xbf16, #tpu.memory_space<vmem>>, vector<1x8x16xbf16>
    %65 = vector.shape_cast %64 : vector<1x8x16xbf16> to vector<8x16xbf16>
    %cst_58 = arith.constant dense<0.000000e+00> : vector<196x16xf32>
    %66 = tpu.matmul %63, %65, %cst_58 {dimension_numbers = #tpu.dot_dimension_numbers<[1], [0], [0], [1], [0, 0, 1, 1], [], []>} : vector<196x8xbf16>, vector<8x16xbf16>, vector<196x16xf32> -> vector<196x16xf32>
    %67 = arith.addf %59, %66 : vector<196x16xf32>
    %c8 = arith.constant 8 : index
    %c0_59 = arith.constant 0 : index
    %c0_60 = arith.constant 0 : index
    %68 = vector.load %arg2[%c8, %c0_59, %c0_60] : memref<9x196x256xbf16, #tpu.memory_space<vmem>>, vector<1x196x256xbf16>
    %69 = vector.shape_cast %68 : vector<1x196x256xbf16> to vector<196x256xbf16>
    %cst_61 = arith.constant dense<0.000000e+00> : vector<196x8xf32>
    %70 = tpu.matmul %69, %2, %cst_61 {dimension_numbers = #tpu.dot_dimension_numbers<[1], [0], [0], [1], [0, 0, 1, 1], [], []>} : vector<196x256xbf16>, vector<256x8xbf16>, vector<196x8xf32> -> vector<196x8xf32>
    %71 = arith.truncf %70 : vector<196x8xf32> to vector<196x8xbf16>
    %c8_62 = arith.constant 8 : index
    %c0_63 = arith.constant 0 : index
    %c0_64 = arith.constant 0 : index
    %72 = vector.load %arg3[%c8_62, %c0_63, %c0_64] : memref<9x8x16xbf16, #tpu.memory_space<vmem>>, vector<1x8x16xbf16>
    %73 = vector.shape_cast %72 : vector<1x8x16xbf16> to vector<8x16xbf16>
    %cst_65 = arith.constant dense<0.000000e+00> : vector<196x16xf32>
    %74 = tpu.matmul %71, %73, %cst_65 {dimension_numbers = #tpu.dot_dimension_numbers<[1], [0], [0], [1], [0, 0, 1, 1], [], []>} : vector<196x8xbf16>, vector<8x16xbf16>, vector<196x16xf32> -> vector<196x16xf32>
    %75 = arith.addf %67, %74 : vector<196x16xf32>
    %c0_66 = arith.constant 0 : index
    %c0_67 = arith.constant 0 : index
    %76 = vector.load %arg4[%c0_66, %c0_67] : memref<1x16xf32, #tpu.memory_space<vmem>>, vector<1x16xf32>
    %77 = vector.broadcast %76 : vector<1x16xf32> to vector<196x16xf32>
    %78 = arith.addf %75, %77 : vector<196x16xf32>
    %cst_68 = arith.constant 0.000000e+00 : f32
    %79 = vector.broadcast %cst_68 : f32 to vector<196x16xf32>
    %80 = arith.cmpf oge, %78, %79 : vector<196x16xf32>
    %cst_69 = arith.constant 0.00999999977 : f32
    %81 = vector.broadcast %cst_69 : f32 to vector<196x16xf32>
    %82 = arith.mulf %81, %78 : vector<196x16xf32>
    %83 = arith.select %80, %78, %82 : vector<196x16xi1>, vector<196x16xf32>
    %84 = arith.truncf %83 : vector<196x16xf32> to vector<196x16xbf16>
    %cst_70 = arith.constant 0.000000e+00 : f32
    %85 = vector.broadcast %cst_70 : f32 to vector<144x32xf32>
    %c0_71 = arith.constant 0 : index
    %c0_72 = arith.constant 0 : index
    %c0_73 = arith.constant 0 : index
    %86 = vector.load %arg5[%c0_71, %c0_72, %c0_73] : memref<9x144x196xbf16, #tpu.memory_space<vmem>>, vector<1x144x196xbf16>
    %87 = vector.shape_cast %86 : vector<1x144x196xbf16> to vector<144x196xbf16>
    %cst_74 = arith.constant dense<0.000000e+00> : vector<144x16xf32>
    %88 = tpu.matmul %87, %84, %cst_74 {dimension_numbers = #tpu.dot_dimension_numbers<[1], [0], [0], [1], [0, 0, 1, 1], [], []>} : vector<144x196xbf16>, vector<196x16xbf16>, vector<144x16xf32> -> vector<144x16xf32>
    %89 = arith.truncf %88 : vector<144x16xf32> to vector<144x16xbf16>
    %c0_75 = arith.constant 0 : index
    %c0_76 = arith.constant 0 : index
    %c0_77 = arith.constant 0 : index
    %90 = vector.load %arg6[%c0_75, %c0_76, %c0_77] : memref<9x16x32xbf16, #tpu.memory_space<vmem>>, vector<1x16x32xbf16>
    %91 = vector.shape_cast %90 : vector<1x16x32xbf16> to vector<16x32xbf16>
    %cst_78 = arith.constant dense<0.000000e+00> : vector<144x32xf32>
    %92 = tpu.matmul %89, %91, %cst_78 {dimension_numbers = #tpu.dot_dimension_numbers<[1], [0], [0], [1], [0, 0, 1, 1], [], []>} : vector<144x16xbf16>, vector<16x32xbf16>, vector<144x32xf32> -> vector<144x32xf32>
    %93 = arith.addf %85, %92 : vector<144x32xf32>
    %c1_79 = arith.constant 1 : index
    %c0_80 = arith.constant 0 : index
    %c0_81 = arith.constant 0 : index
    %94 = vector.load %arg5[%c1_79, %c0_80, %c0_81] : memref<9x144x196xbf16, #tpu.memory_space<vmem>>, vector<1x144x196xbf16>
    %95 = vector.shape_cast %94 : vector<1x144x196xbf16> to vector<144x196xbf16>
    %cst_82 = arith.constant dense<0.000000e+00> : vector<144x16xf32>
    %96 = tpu.matmul %95, %84, %cst_82 {dimension_numbers = #tpu.dot_dimension_numbers<[1], [0], [0], [1], [0, 0, 1, 1], [], []>} : vector<144x196xbf16>, vector<196x16xbf16>, vector<144x16xf32> -> vector<144x16xf32>
    %97 = arith.truncf %96 : vector<144x16xf32> to vector<144x16xbf16>
    %c1_83 = arith.constant 1 : index
    %c0_84 = arith.constant 0 : index
    %c0_85 = arith.constant 0 : index
    %98 = vector.load %arg6[%c1_83, %c0_84, %c0_85] : memref<9x16x32xbf16, #tpu.memory_space<vmem>>, vector<1x16x32xbf16>
    %99 = vector.shape_cast %98 : vector<1x16x32xbf16> to vector<16x32xbf16>
    %cst_86 = arith.constant dense<0.000000e+00> : vector<144x32xf32>
    %100 = tpu.matmul %97, %99, %cst_86 {dimension_numbers = #tpu.dot_dimension_numbers<[1], [0], [0], [1], [0, 0, 1, 1], [], []>} : vector<144x16xbf16>, vector<16x32xbf16>, vector<144x32xf32> -> vector<144x32xf32>
    %101 = arith.addf %93, %100 : vector<144x32xf32>
    %c2_87 = arith.constant 2 : index
    %c0_88 = arith.constant 0 : index
    %c0_89 = arith.constant 0 : index
    %102 = vector.load %arg5[%c2_87, %c0_88, %c0_89] : memref<9x144x196xbf16, #tpu.memory_space<vmem>>, vector<1x144x196xbf16>
    %103 = vector.shape_cast %102 : vector<1x144x196xbf16> to vector<144x196xbf16>
    %cst_90 = arith.constant dense<0.000000e+00> : vector<144x16xf32>
    %104 = tpu.matmul %103, %84, %cst_90 {dimension_numbers = #tpu.dot_dimension_numbers<[1], [0], [0], [1], [0, 0, 1, 1], [], []>} : vector<144x196xbf16>, vector<196x16xbf16>, vector<144x16xf32> -> vector<144x16xf32>
    %105 = arith.truncf %104 : vector<144x16xf32> to vector<144x16xbf16>
    %c2_91 = arith.constant 2 : index
    %c0_92 = arith.constant 0 : index
    %c0_93 = arith.constant 0 : index
    %106 = vector.load %arg6[%c2_91, %c0_92, %c0_93] : memref<9x16x32xbf16, #tpu.memory_space<vmem>>, vector<1x16x32xbf16>
    %107 = vector.shape_cast %106 : vector<1x16x32xbf16> to vector<16x32xbf16>
    %cst_94 = arith.constant dense<0.000000e+00> : vector<144x32xf32>
    %108 = tpu.matmul %105, %107, %cst_94 {dimension_numbers = #tpu.dot_dimension_numbers<[1], [0], [0], [1], [0, 0, 1, 1], [], []>} : vector<144x16xbf16>, vector<16x32xbf16>, vector<144x32xf32> -> vector<144x32xf32>
    %109 = arith.addf %101, %108 : vector<144x32xf32>
    %c3_95 = arith.constant 3 : index
    %c0_96 = arith.constant 0 : index
    %c0_97 = arith.constant 0 : index
    %110 = vector.load %arg5[%c3_95, %c0_96, %c0_97] : memref<9x144x196xbf16, #tpu.memory_space<vmem>>, vector<1x144x196xbf16>
    %111 = vector.shape_cast %110 : vector<1x144x196xbf16> to vector<144x196xbf16>
    %cst_98 = arith.constant dense<0.000000e+00> : vector<144x16xf32>
    %112 = tpu.matmul %111, %84, %cst_98 {dimension_numbers = #tpu.dot_dimension_numbers<[1], [0], [0], [1], [0, 0, 1, 1], [], []>} : vector<144x196xbf16>, vector<196x16xbf16>, vector<144x16xf32> -> vector<144x16xf32>
    %113 = arith.truncf %112 : vector<144x16xf32> to vector<144x16xbf16>
    %c3_99 = arith.constant 3 : index
    %c0_100 = arith.constant 0 : index
    %c0_101 = arith.constant 0 : index
    %114 = vector.load %arg6[%c3_99, %c0_100, %c0_101] : memref<9x16x32xbf16, #tpu.memory_space<vmem>>, vector<1x16x32xbf16>
    %115 = vector.shape_cast %114 : vector<1x16x32xbf16> to vector<16x32xbf16>
    %cst_102 = arith.constant dense<0.000000e+00> : vector<144x32xf32>
    %116 = tpu.matmul %113, %115, %cst_102 {dimension_numbers = #tpu.dot_dimension_numbers<[1], [0], [0], [1], [0, 0, 1, 1], [], []>} : vector<144x16xbf16>, vector<16x32xbf16>, vector<144x32xf32> -> vector<144x32xf32>
    %117 = arith.addf %109, %116 : vector<144x32xf32>
    %c4_103 = arith.constant 4 : index
    %c0_104 = arith.constant 0 : index
    %c0_105 = arith.constant 0 : index
    %118 = vector.load %arg5[%c4_103, %c0_104, %c0_105] : memref<9x144x196xbf16, #tpu.memory_space<vmem>>, vector<1x144x196xbf16>
    %119 = vector.shape_cast %118 : vector<1x144x196xbf16> to vector<144x196xbf16>
    %cst_106 = arith.constant dense<0.000000e+00> : vector<144x16xf32>
    %120 = tpu.matmul %119, %84, %cst_106 {dimension_numbers = #tpu.dot_dimension_numbers<[1], [0], [0], [1], [0, 0, 1, 1], [], []>} : vector<144x196xbf16>, vector<196x16xbf16>, vector<144x16xf32> -> vector<144x16xf32>
    %121 = arith.truncf %120 : vector<144x16xf32> to vector<144x16xbf16>
    %c4_107 = arith.constant 4 : index
    %c0_108 = arith.constant 0 : index
    %c0_109 = arith.constant 0 : index
    %122 = vector.load %arg6[%c4_107, %c0_108, %c0_109] : memref<9x16x32xbf16, #tpu.memory_space<vmem>>, vector<1x16x32xbf16>
    %123 = vector.shape_cast %122 : vector<1x16x32xbf16> to vector<16x32xbf16>
    %cst_110 = arith.constant dense<0.000000e+00> : vector<144x32xf32>
    %124 = tpu.matmul %121, %123, %cst_110 {dimension_numbers = #tpu.dot_dimension_numbers<[1], [0], [0], [1], [0, 0, 1, 1], [], []>} : vector<144x16xbf16>, vector<16x32xbf16>, vector<144x32xf32> -> vector<144x32xf32>
    %125 = arith.addf %117, %124 : vector<144x32xf32>
    %c5_111 = arith.constant 5 : index
    %c0_112 = arith.constant 0 : index
    %c0_113 = arith.constant 0 : index
    %126 = vector.load %arg5[%c5_111, %c0_112, %c0_113] : memref<9x144x196xbf16, #tpu.memory_space<vmem>>, vector<1x144x196xbf16>
    %127 = vector.shape_cast %126 : vector<1x144x196xbf16> to vector<144x196xbf16>
    %cst_114 = arith.constant dense<0.000000e+00> : vector<144x16xf32>
    %128 = tpu.matmul %127, %84, %cst_114 {dimension_numbers = #tpu.dot_dimension_numbers<[1], [0], [0], [1], [0, 0, 1, 1], [], []>} : vector<144x196xbf16>, vector<196x16xbf16>, vector<144x16xf32> -> vector<144x16xf32>
    %129 = arith.truncf %128 : vector<144x16xf32> to vector<144x16xbf16>
    %c5_115 = arith.constant 5 : index
    %c0_116 = arith.constant 0 : index
    %c0_117 = arith.constant 0 : index
    %130 = vector.load %arg6[%c5_115, %c0_116, %c0_117] : memref<9x16x32xbf16, #tpu.memory_space<vmem>>, vector<1x16x32xbf16>
    %131 = vector.shape_cast %130 : vector<1x16x32xbf16> to vector<16x32xbf16>
    %cst_118 = arith.constant dense<0.000000e+00> : vector<144x32xf32>
    %132 = tpu.matmul %129, %131, %cst_118 {dimension_numbers = #tpu.dot_dimension_numbers<[1], [0], [0], [1], [0, 0, 1, 1], [], []>} : vector<144x16xbf16>, vector<16x32xbf16>, vector<144x32xf32> -> vector<144x32xf32>
    %133 = arith.addf %125, %132 : vector<144x32xf32>
    %c6_119 = arith.constant 6 : index
    %c0_120 = arith.constant 0 : index
    %c0_121 = arith.constant 0 : index
    %134 = vector.load %arg5[%c6_119, %c0_120, %c0_121] : memref<9x144x196xbf16, #tpu.memory_space<vmem>>, vector<1x144x196xbf16>
    %135 = vector.shape_cast %134 : vector<1x144x196xbf16> to vector<144x196xbf16>
    %cst_122 = arith.constant dense<0.000000e+00> : vector<144x16xf32>
    %136 = tpu.matmul %135, %84, %cst_122 {dimension_numbers = #tpu.dot_dimension_numbers<[1], [0], [0], [1], [0, 0, 1, 1], [], []>} : vector<144x196xbf16>, vector<196x16xbf16>, vector<144x16xf32> -> vector<144x16xf32>
    %137 = arith.truncf %136 : vector<144x16xf32> to vector<144x16xbf16>
    %c6_123 = arith.constant 6 : index
    %c0_124 = arith.constant 0 : index
    %c0_125 = arith.constant 0 : index
    %138 = vector.load %arg6[%c6_123, %c0_124, %c0_125] : memref<9x16x32xbf16, #tpu.memory_space<vmem>>, vector<1x16x32xbf16>
    %139 = vector.shape_cast %138 : vector<1x16x32xbf16> to vector<16x32xbf16>
    %cst_126 = arith.constant dense<0.000000e+00> : vector<144x32xf32>
    %140 = tpu.matmul %137, %139, %cst_126 {dimension_numbers = #tpu.dot_dimension_numbers<[1], [0], [0], [1], [0, 0, 1, 1], [], []>} : vector<144x16xbf16>, vector<16x32xbf16>, vector<144x32xf32> -> vector<144x32xf32>
    %141 = arith.addf %133, %140 : vector<144x32xf32>
    %c7_127 = arith.constant 7 : index
    %c0_128 = arith.constant 0 : index
    %c0_129 = arith.constant 0 : index
    %142 = vector.load %arg5[%c7_127, %c0_128, %c0_129] : memref<9x144x196xbf16, #tpu.memory_space<vmem>>, vector<1x144x196xbf16>
    %143 = vector.shape_cast %142 : vector<1x144x196xbf16> to vector<144x196xbf16>
    %cst_130 = arith.constant dense<0.000000e+00> : vector<144x16xf32>
    %144 = tpu.matmul %143, %84, %cst_130 {dimension_numbers = #tpu.dot_dimension_numbers<[1], [0], [0], [1], [0, 0, 1, 1], [], []>} : vector<144x196xbf16>, vector<196x16xbf16>, vector<144x16xf32> -> vector<144x16xf32>
    %145 = arith.truncf %144 : vector<144x16xf32> to vector<144x16xbf16>
    %c7_131 = arith.constant 7 : index
    %c0_132 = arith.constant 0 : index
    %c0_133 = arith.constant 0 : index
    %146 = vector.load %arg6[%c7_131, %c0_132, %c0_133] : memref<9x16x32xbf16, #tpu.memory_space<vmem>>, vector<1x16x32xbf16>
    %147 = vector.shape_cast %146 : vector<1x16x32xbf16> to vector<16x32xbf16>
    %cst_134 = arith.constant dense<0.000000e+00> : vector<144x32xf32>
    %148 = tpu.matmul %145, %147, %cst_134 {dimension_numbers = #tpu.dot_dimension_numbers<[1], [0], [0], [1], [0, 0, 1, 1], [], []>} : vector<144x16xbf16>, vector<16x32xbf16>, vector<144x32xf32> -> vector<144x32xf32>
    %149 = arith.addf %141, %148 : vector<144x32xf32>
    %c8_135 = arith.constant 8 : index
    %c0_136 = arith.constant 0 : index
    %c0_137 = arith.constant 0 : index
    %150 = vector.load %arg5[%c8_135, %c0_136, %c0_137] : memref<9x144x196xbf16, #tpu.memory_space<vmem>>, vector<1x144x196xbf16>
    %151 = vector.shape_cast %150 : vector<1x144x196xbf16> to vector<144x196xbf16>
    %cst_138 = arith.constant dense<0.000000e+00> : vector<144x16xf32>
    %152 = tpu.matmul %151, %84, %cst_138 {dimension_numbers = #tpu.dot_dimension_numbers<[1], [0], [0], [1], [0, 0, 1, 1], [], []>} : vector<144x196xbf16>, vector<196x16xbf16>, vector<144x16xf32> -> vector<144x16xf32>
    %153 = arith.truncf %152 : vector<144x16xf32> to vector<144x16xbf16>
    %c8_139 = arith.constant 8 : index
    %c0_140 = arith.constant 0 : index
    %c0_141 = arith.constant 0 : index
    %154 = vector.load %arg6[%c8_139, %c0_140, %c0_141] : memref<9x16x32xbf16, #tpu.memory_space<vmem>>, vector<1x16x32xbf16>
    %155 = vector.shape_cast %154 : vector<1x16x32xbf16> to vector<16x32xbf16>
    %cst_142 = arith.constant dense<0.000000e+00> : vector<144x32xf32>
    %156 = tpu.matmul %153, %155, %cst_142 {dimension_numbers = #tpu.dot_dimension_numbers<[1], [0], [0], [1], [0, 0, 1, 1], [], []>} : vector<144x16xbf16>, vector<16x32xbf16>, vector<144x32xf32> -> vector<144x32xf32>
    %157 = arith.addf %149, %156 : vector<144x32xf32>
    %c0_143 = arith.constant 0 : index
    %c0_144 = arith.constant 0 : index
    %158 = vector.load %arg7[%c0_143, %c0_144] : memref<1x32xf32, #tpu.memory_space<vmem>>, vector<1x32xf32>
    %159 = vector.broadcast %158 : vector<1x32xf32> to vector<144x32xf32>
    %160 = arith.addf %157, %159 : vector<144x32xf32>
    %cst_145 = arith.constant 0.000000e+00 : f32
    %161 = vector.broadcast %cst_145 : f32 to vector<144x32xf32>
    %162 = arith.cmpf oge, %160, %161 : vector<144x32xf32>
    %cst_146 = arith.constant 0.00999999977 : f32
    %163 = vector.broadcast %cst_146 : f32 to vector<144x32xf32>
    %164 = arith.mulf %163, %160 : vector<144x32xf32>
    %165 = arith.select %162, %160, %164 : vector<144x32xi1>, vector<144x32xf32>
    %166 = arith.truncf %165 : vector<144x32xf32> to vector<144x32xbf16>
    %cst_147 = arith.constant 0.000000e+00 : f32
    %167 = vector.broadcast %cst_147 : f32 to vector<25x64xf32>
    %c0_148 = arith.constant 0 : index
    %c0_149 = arith.constant 0 : index
    %c0_150 = arith.constant 0 : index
    %168 = vector.load %arg8[%c0_148, %c0_149, %c0_150] : memref<9x25x144xbf16, #tpu.memory_space<vmem>>, vector<1x25x144xbf16>
    %169 = vector.shape_cast %168 : vector<1x25x144xbf16> to vector<25x144xbf16>
    %cst_151 = arith.constant dense<0.000000e+00> : vector<25x32xf32>
    %170 = tpu.matmul %169, %166, %cst_151 {dimension_numbers = #tpu.dot_dimension_numbers<[1], [0], [0], [1], [0, 0, 1, 1], [], []>} : vector<25x144xbf16>, vector<144x32xbf16>, vector<25x32xf32> -> vector<25x32xf32>
    %171 = arith.truncf %170 : vector<25x32xf32> to vector<25x32xbf16>
    %c0_152 = arith.constant 0 : index
    %c0_153 = arith.constant 0 : index
    %c0_154 = arith.constant 0 : index
    %172 = vector.load %arg9[%c0_152, %c0_153, %c0_154] : memref<9x32x64xbf16, #tpu.memory_space<vmem>>, vector<1x32x64xbf16>
    %173 = vector.shape_cast %172 : vector<1x32x64xbf16> to vector<32x64xbf16>
    %cst_155 = arith.constant dense<0.000000e+00> : vector<25x64xf32>
    %174 = tpu.matmul %171, %173, %cst_155 {dimension_numbers = #tpu.dot_dimension_numbers<[1], [0], [0], [1], [0, 0, 1, 1], [], []>} : vector<25x32xbf16>, vector<32x64xbf16>, vector<25x64xf32> -> vector<25x64xf32>
    %175 = arith.addf %167, %174 : vector<25x64xf32>
    %c1_156 = arith.constant 1 : index
    %c0_157 = arith.constant 0 : index
    %c0_158 = arith.constant 0 : index
    %176 = vector.load %arg8[%c1_156, %c0_157, %c0_158] : memref<9x25x144xbf16, #tpu.memory_space<vmem>>, vector<1x25x144xbf16>
    %177 = vector.shape_cast %176 : vector<1x25x144xbf16> to vector<25x144xbf16>
    %cst_159 = arith.constant dense<0.000000e+00> : vector<25x32xf32>
    %178 = tpu.matmul %177, %166, %cst_159 {dimension_numbers = #tpu.dot_dimension_numbers<[1], [0], [0], [1], [0, 0, 1, 1], [], []>} : vector<25x144xbf16>, vector<144x32xbf16>, vector<25x32xf32> -> vector<25x32xf32>
    %179 = arith.truncf %178 : vector<25x32xf32> to vector<25x32xbf16>
    %c1_160 = arith.constant 1 : index
    %c0_161 = arith.constant 0 : index
    %c0_162 = arith.constant 0 : index
    %180 = vector.load %arg9[%c1_160, %c0_161, %c0_162] : memref<9x32x64xbf16, #tpu.memory_space<vmem>>, vector<1x32x64xbf16>
    %181 = vector.shape_cast %180 : vector<1x32x64xbf16> to vector<32x64xbf16>
    %cst_163 = arith.constant dense<0.000000e+00> : vector<25x64xf32>
    %182 = tpu.matmul %179, %181, %cst_163 {dimension_numbers = #tpu.dot_dimension_numbers<[1], [0], [0], [1], [0, 0, 1, 1], [], []>} : vector<25x32xbf16>, vector<32x64xbf16>, vector<25x64xf32> -> vector<25x64xf32>
    %183 = arith.addf %175, %182 : vector<25x64xf32>
    %c2_164 = arith.constant 2 : index
    %c0_165 = arith.constant 0 : index
    %c0_166 = arith.constant 0 : index
    %184 = vector.load %arg8[%c2_164, %c0_165, %c0_166] : memref<9x25x144xbf16, #tpu.memory_space<vmem>>, vector<1x25x144xbf16>
    %185 = vector.shape_cast %184 : vector<1x25x144xbf16> to vector<25x144xbf16>
    %cst_167 = arith.constant dense<0.000000e+00> : vector<25x32xf32>
    %186 = tpu.matmul %185, %166, %cst_167 {dimension_numbers = #tpu.dot_dimension_numbers<[1], [0], [0], [1], [0, 0, 1, 1], [], []>} : vector<25x144xbf16>, vector<144x32xbf16>, vector<25x32xf32> -> vector<25x32xf32>
    %187 = arith.truncf %186 : vector<25x32xf32> to vector<25x32xbf16>
    %c2_168 = arith.constant 2 : index
    %c0_169 = arith.constant 0 : index
    %c0_170 = arith.constant 0 : index
    %188 = vector.load %arg9[%c2_168, %c0_169, %c0_170] : memref<9x32x64xbf16, #tpu.memory_space<vmem>>, vector<1x32x64xbf16>
    %189 = vector.shape_cast %188 : vector<1x32x64xbf16> to vector<32x64xbf16>
    %cst_171 = arith.constant dense<0.000000e+00> : vector<25x64xf32>
    %190 = tpu.matmul %187, %189, %cst_171 {dimension_numbers = #tpu.dot_dimension_numbers<[1], [0], [0], [1], [0, 0, 1, 1], [], []>} : vector<25x32xbf16>, vector<32x64xbf16>, vector<25x64xf32> -> vector<25x64xf32>
    %191 = arith.addf %183, %190 : vector<25x64xf32>
    %c3_172 = arith.constant 3 : index
    %c0_173 = arith.constant 0 : index
    %c0_174 = arith.constant 0 : index
    %192 = vector.load %arg8[%c3_172, %c0_173, %c0_174] : memref<9x25x144xbf16, #tpu.memory_space<vmem>>, vector<1x25x144xbf16>
    %193 = vector.shape_cast %192 : vector<1x25x144xbf16> to vector<25x144xbf16>
    %cst_175 = arith.constant dense<0.000000e+00> : vector<25x32xf32>
    %194 = tpu.matmul %193, %166, %cst_175 {dimension_numbers = #tpu.dot_dimension_numbers<[1], [0], [0], [1], [0, 0, 1, 1], [], []>} : vector<25x144xbf16>, vector<144x32xbf16>, vector<25x32xf32> -> vector<25x32xf32>
    %195 = arith.truncf %194 : vector<25x32xf32> to vector<25x32xbf16>
    %c3_176 = arith.constant 3 : index
    %c0_177 = arith.constant 0 : index
    %c0_178 = arith.constant 0 : index
    %196 = vector.load %arg9[%c3_176, %c0_177, %c0_178] : memref<9x32x64xbf16, #tpu.memory_space<vmem>>, vector<1x32x64xbf16>
    %197 = vector.shape_cast %196 : vector<1x32x64xbf16> to vector<32x64xbf16>
    %cst_179 = arith.constant dense<0.000000e+00> : vector<25x64xf32>
    %198 = tpu.matmul %195, %197, %cst_179 {dimension_numbers = #tpu.dot_dimension_numbers<[1], [0], [0], [1], [0, 0, 1, 1], [], []>} : vector<25x32xbf16>, vector<32x64xbf16>, vector<25x64xf32> -> vector<25x64xf32>
    %199 = arith.addf %191, %198 : vector<25x64xf32>
    %c4_180 = arith.constant 4 : index
    %c0_181 = arith.constant 0 : index
    %c0_182 = arith.constant 0 : index
    %200 = vector.load %arg8[%c4_180, %c0_181, %c0_182] : memref<9x25x144xbf16, #tpu.memory_space<vmem>>, vector<1x25x144xbf16>
    %201 = vector.shape_cast %200 : vector<1x25x144xbf16> to vector<25x144xbf16>
    %cst_183 = arith.constant dense<0.000000e+00> : vector<25x32xf32>
    %202 = tpu.matmul %201, %166, %cst_183 {dimension_numbers = #tpu.dot_dimension_numbers<[1], [0], [0], [1], [0, 0, 1, 1], [], []>} : vector<25x144xbf16>, vector<144x32xbf16>, vector<25x32xf32> -> vector<25x32xf32>
    %203 = arith.truncf %202 : vector<25x32xf32> to vector<25x32xbf16>
    %c4_184 = arith.constant 4 : index
    %c0_185 = arith.constant 0 : index
    %c0_186 = arith.constant 0 : index
    %204 = vector.load %arg9[%c4_184, %c0_185, %c0_186] : memref<9x32x64xbf16, #tpu.memory_space<vmem>>, vector<1x32x64xbf16>
    %205 = vector.shape_cast %204 : vector<1x32x64xbf16> to vector<32x64xbf16>
    %cst_187 = arith.constant dense<0.000000e+00> : vector<25x64xf32>
    %206 = tpu.matmul %203, %205, %cst_187 {dimension_numbers = #tpu.dot_dimension_numbers<[1], [0], [0], [1], [0, 0, 1, 1], [], []>} : vector<25x32xbf16>, vector<32x64xbf16>, vector<25x64xf32> -> vector<25x64xf32>
    %207 = arith.addf %199, %206 : vector<25x64xf32>
    %c5_188 = arith.constant 5 : index
    %c0_189 = arith.constant 0 : index
    %c0_190 = arith.constant 0 : index
    %208 = vector.load %arg8[%c5_188, %c0_189, %c0_190] : memref<9x25x144xbf16, #tpu.memory_space<vmem>>, vector<1x25x144xbf16>
    %209 = vector.shape_cast %208 : vector<1x25x144xbf16> to vector<25x144xbf16>
    %cst_191 = arith.constant dense<0.000000e+00> : vector<25x32xf32>
    %210 = tpu.matmul %209, %166, %cst_191 {dimension_numbers = #tpu.dot_dimension_numbers<[1], [0], [0], [1], [0, 0, 1, 1], [], []>} : vector<25x144xbf16>, vector<144x32xbf16>, vector<25x32xf32> -> vector<25x32xf32>
    %211 = arith.truncf %210 : vector<25x32xf32> to vector<25x32xbf16>
    %c5_192 = arith.constant 5 : index
    %c0_193 = arith.constant 0 : index
    %c0_194 = arith.constant 0 : index
    %212 = vector.load %arg9[%c5_192, %c0_193, %c0_194] : memref<9x32x64xbf16, #tpu.memory_space<vmem>>, vector<1x32x64xbf16>
    %213 = vector.shape_cast %212 : vector<1x32x64xbf16> to vector<32x64xbf16>
    %cst_195 = arith.constant dense<0.000000e+00> : vector<25x64xf32>
    %214 = tpu.matmul %211, %213, %cst_195 {dimension_numbers = #tpu.dot_dimension_numbers<[1], [0], [0], [1], [0, 0, 1, 1], [], []>} : vector<25x32xbf16>, vector<32x64xbf16>, vector<25x64xf32> -> vector<25x64xf32>
    %215 = arith.addf %207, %214 : vector<25x64xf32>
    %c6_196 = arith.constant 6 : index
    %c0_197 = arith.constant 0 : index
    %c0_198 = arith.constant 0 : index
    %216 = vector.load %arg8[%c6_196, %c0_197, %c0_198] : memref<9x25x144xbf16, #tpu.memory_space<vmem>>, vector<1x25x144xbf16>
    %217 = vector.shape_cast %216 : vector<1x25x144xbf16> to vector<25x144xbf16>
    %cst_199 = arith.constant dense<0.000000e+00> : vector<25x32xf32>
    %218 = tpu.matmul %217, %166, %cst_199 {dimension_numbers = #tpu.dot_dimension_numbers<[1], [0], [0], [1], [0, 0, 1, 1], [], []>} : vector<25x144xbf16>, vector<144x32xbf16>, vector<25x32xf32> -> vector<25x32xf32>
    %219 = arith.truncf %218 : vector<25x32xf32> to vector<25x32xbf16>
    %c6_200 = arith.constant 6 : index
    %c0_201 = arith.constant 0 : index
    %c0_202 = arith.constant 0 : index
    %220 = vector.load %arg9[%c6_200, %c0_201, %c0_202] : memref<9x32x64xbf16, #tpu.memory_space<vmem>>, vector<1x32x64xbf16>
    %221 = vector.shape_cast %220 : vector<1x32x64xbf16> to vector<32x64xbf16>
    %cst_203 = arith.constant dense<0.000000e+00> : vector<25x64xf32>
    %222 = tpu.matmul %219, %221, %cst_203 {dimension_numbers = #tpu.dot_dimension_numbers<[1], [0], [0], [1], [0, 0, 1, 1], [], []>} : vector<25x32xbf16>, vector<32x64xbf16>, vector<25x64xf32> -> vector<25x64xf32>
    %223 = arith.addf %215, %222 : vector<25x64xf32>
    %c7_204 = arith.constant 7 : index
    %c0_205 = arith.constant 0 : index
    %c0_206 = arith.constant 0 : index
    %224 = vector.load %arg8[%c7_204, %c0_205, %c0_206] : memref<9x25x144xbf16, #tpu.memory_space<vmem>>, vector<1x25x144xbf16>
    %225 = vector.shape_cast %224 : vector<1x25x144xbf16> to vector<25x144xbf16>
    %cst_207 = arith.constant dense<0.000000e+00> : vector<25x32xf32>
    %226 = tpu.matmul %225, %166, %cst_207 {dimension_numbers = #tpu.dot_dimension_numbers<[1], [0], [0], [1], [0, 0, 1, 1], [], []>} : vector<25x144xbf16>, vector<144x32xbf16>, vector<25x32xf32> -> vector<25x32xf32>
    %227 = arith.truncf %226 : vector<25x32xf32> to vector<25x32xbf16>
    %c7_208 = arith.constant 7 : index
    %c0_209 = arith.constant 0 : index
    %c0_210 = arith.constant 0 : index
    %228 = vector.load %arg9[%c7_208, %c0_209, %c0_210] : memref<9x32x64xbf16, #tpu.memory_space<vmem>>, vector<1x32x64xbf16>
    %229 = vector.shape_cast %228 : vector<1x32x64xbf16> to vector<32x64xbf16>
    %cst_211 = arith.constant dense<0.000000e+00> : vector<25x64xf32>
    %230 = tpu.matmul %227, %229, %cst_211 {dimension_numbers = #tpu.dot_dimension_numbers<[1], [0], [0], [1], [0, 0, 1, 1], [], []>} : vector<25x32xbf16>, vector<32x64xbf16>, vector<25x64xf32> -> vector<25x64xf32>
    %231 = arith.addf %223, %230 : vector<25x64xf32>
    %c8_212 = arith.constant 8 : index
    %c0_213 = arith.constant 0 : index
    %c0_214 = arith.constant 0 : index
    %232 = vector.load %arg8[%c8_212, %c0_213, %c0_214] : memref<9x25x144xbf16, #tpu.memory_space<vmem>>, vector<1x25x144xbf16>
    %233 = vector.shape_cast %232 : vector<1x25x144xbf16> to vector<25x144xbf16>
    %cst_215 = arith.constant dense<0.000000e+00> : vector<25x32xf32>
    %234 = tpu.matmul %233, %166, %cst_215 {dimension_numbers = #tpu.dot_dimension_numbers<[1], [0], [0], [1], [0, 0, 1, 1], [], []>} : vector<25x144xbf16>, vector<144x32xbf16>, vector<25x32xf32> -> vector<25x32xf32>
    %235 = arith.truncf %234 : vector<25x32xf32> to vector<25x32xbf16>
    %c8_216 = arith.constant 8 : index
    %c0_217 = arith.constant 0 : index
    %c0_218 = arith.constant 0 : index
    %236 = vector.load %arg9[%c8_216, %c0_217, %c0_218] : memref<9x32x64xbf16, #tpu.memory_space<vmem>>, vector<1x32x64xbf16>
    %237 = vector.shape_cast %236 : vector<1x32x64xbf16> to vector<32x64xbf16>
    %cst_219 = arith.constant dense<0.000000e+00> : vector<25x64xf32>
    %238 = tpu.matmul %235, %237, %cst_219 {dimension_numbers = #tpu.dot_dimension_numbers<[1], [0], [0], [1], [0, 0, 1, 1], [], []>} : vector<25x32xbf16>, vector<32x64xbf16>, vector<25x64xf32> -> vector<25x64xf32>
    %239 = arith.addf %231, %238 : vector<25x64xf32>
    %c0_220 = arith.constant 0 : index
    %c0_221 = arith.constant 0 : index
    %240 = vector.load %arg10[%c0_220, %c0_221] : memref<1x64xf32, #tpu.memory_space<vmem>>, vector<1x64xf32>
    %241 = vector.broadcast %240 : vector<1x64xf32> to vector<25x64xf32>
    %242 = arith.addf %239, %241 : vector<25x64xf32>
    %cst_222 = arith.constant 0.000000e+00 : f32
    %243 = vector.broadcast %cst_222 : f32 to vector<25x64xf32>
    %244 = arith.cmpf oge, %242, %243 : vector<25x64xf32>
    %cst_223 = arith.constant 0.00999999977 : f32
    %245 = vector.broadcast %cst_223 : f32 to vector<25x64xf32>
    %246 = arith.mulf %245, %242 : vector<25x64xf32>
    %247 = arith.select %244, %242, %246 : vector<25x64xi1>, vector<25x64xf32>
    %248 = arith.truncf %247 : vector<25x64xf32> to vector<25x64xbf16>
    %cst_224 = arith.constant 0.000000e+00 : f32
    %249 = vector.broadcast %cst_224 : f32 to vector<1x128xf32>
    %c0_225 = arith.constant 0 : index
    %c0_226 = arith.constant 0 : index
    %c0_227 = arith.constant 0 : index
    %250 = vector.load %arg11[%c0_225, %c0_226, %c0_227] : memref<36x1x25xbf16, #tpu.memory_space<vmem>>, vector<1x1x25xbf16>
    %251 = vector.shape_cast %250 : vector<1x1x25xbf16> to vector<1x25xbf16>
    %cst_228 = arith.constant dense<0.000000e+00> : vector<1x64xf32>
    %252 = tpu.matmul %251, %248, %cst_228 {dimension_numbers = #tpu.dot_dimension_numbers<[1], [0], [0], [1], [0, 0, 1, 1], [], []>} : vector<1x25xbf16>, vector<25x64xbf16>, vector<1x64xf32> -> vector<1x64xf32>
    %253 = arith.truncf %252 : vector<1x64xf32> to vector<1x64xbf16>
    %c0_229 = arith.constant 0 : index
    %c0_230 = arith.constant 0 : index
    %c0_231 = arith.constant 0 : index
    %254 = vector.load %arg12[%c0_229, %c0_230, %c0_231] : memref<36x64x128xbf16, #tpu.memory_space<vmem>>, vector<1x64x128xbf16>
    %255 = vector.shape_cast %254 : vector<1x64x128xbf16> to vector<64x128xbf16>
    %cst_232 = arith.constant dense<0.000000e+00> : vector<1x128xf32>
    %256 = tpu.matmul %253, %255, %cst_232 {dimension_numbers = #tpu.dot_dimension_numbers<[1], [0], [0], [1], [0, 0, 1, 1], [], []>} : vector<1x64xbf16>, vector<64x128xbf16>, vector<1x128xf32> -> vector<1x128xf32>
    %257 = arith.addf %249, %256 : vector<1x128xf32>
    %c1_233 = arith.constant 1 : index
    %c0_234 = arith.constant 0 : index
    %c0_235 = arith.constant 0 : index
    %258 = vector.load %arg11[%c1_233, %c0_234, %c0_235] : memref<36x1x25xbf16, #tpu.memory_space<vmem>>, vector<1x1x25xbf16>
    %259 = vector.shape_cast %258 : vector<1x1x25xbf16> to vector<1x25xbf16>
    %cst_236 = arith.constant dense<0.000000e+00> : vector<1x64xf32>
    %260 = tpu.matmul %259, %248, %cst_236 {dimension_numbers = #tpu.dot_dimension_numbers<[1], [0], [0], [1], [0, 0, 1, 1], [], []>} : vector<1x25xbf16>, vector<25x64xbf16>, vector<1x64xf32> -> vector<1x64xf32>
    %261 = arith.truncf %260 : vector<1x64xf32> to vector<1x64xbf16>
    %c1_237 = arith.constant 1 : index
    %c0_238 = arith.constant 0 : index
    %c0_239 = arith.constant 0 : index
    %262 = vector.load %arg12[%c1_237, %c0_238, %c0_239] : memref<36x64x128xbf16, #tpu.memory_space<vmem>>, vector<1x64x128xbf16>
    %263 = vector.shape_cast %262 : vector<1x64x128xbf16> to vector<64x128xbf16>
    %cst_240 = arith.constant dense<0.000000e+00> : vector<1x128xf32>
    %264 = tpu.matmul %261, %263, %cst_240 {dimension_numbers = #tpu.dot_dimension_numbers<[1], [0], [0], [1], [0, 0, 1, 1], [], []>} : vector<1x64xbf16>, vector<64x128xbf16>, vector<1x128xf32> -> vector<1x128xf32>
    %265 = arith.addf %257, %264 : vector<1x128xf32>
    %c2_241 = arith.constant 2 : index
    %c0_242 = arith.constant 0 : index
    %c0_243 = arith.constant 0 : index
    %266 = vector.load %arg11[%c2_241, %c0_242, %c0_243] : memref<36x1x25xbf16, #tpu.memory_space<vmem>>, vector<1x1x25xbf16>
    %267 = vector.shape_cast %266 : vector<1x1x25xbf16> to vector<1x25xbf16>
    %cst_244 = arith.constant dense<0.000000e+00> : vector<1x64xf32>
    %268 = tpu.matmul %267, %248, %cst_244 {dimension_numbers = #tpu.dot_dimension_numbers<[1], [0], [0], [1], [0, 0, 1, 1], [], []>} : vector<1x25xbf16>, vector<25x64xbf16>, vector<1x64xf32> -> vector<1x64xf32>
    %269 = arith.truncf %268 : vector<1x64xf32> to vector<1x64xbf16>
    %c2_245 = arith.constant 2 : index
    %c0_246 = arith.constant 0 : index
    %c0_247 = arith.constant 0 : index
    %270 = vector.load %arg12[%c2_245, %c0_246, %c0_247] : memref<36x64x128xbf16, #tpu.memory_space<vmem>>, vector<1x64x128xbf16>
    %271 = vector.shape_cast %270 : vector<1x64x128xbf16> to vector<64x128xbf16>
    %cst_248 = arith.constant dense<0.000000e+00> : vector<1x128xf32>
    %272 = tpu.matmul %269, %271, %cst_248 {dimension_numbers = #tpu.dot_dimension_numbers<[1], [0], [0], [1], [0, 0, 1, 1], [], []>} : vector<1x64xbf16>, vector<64x128xbf16>, vector<1x128xf32> -> vector<1x128xf32>
    %273 = arith.addf %265, %272 : vector<1x128xf32>
    %c3_249 = arith.constant 3 : index
    %c0_250 = arith.constant 0 : index
    %c0_251 = arith.constant 0 : index
    %274 = vector.load %arg11[%c3_249, %c0_250, %c0_251] : memref<36x1x25xbf16, #tpu.memory_space<vmem>>, vector<1x1x25xbf16>
    %275 = vector.shape_cast %274 : vector<1x1x25xbf16> to vector<1x25xbf16>
    %cst_252 = arith.constant dense<0.000000e+00> : vector<1x64xf32>
    %276 = tpu.matmul %275, %248, %cst_252 {dimension_numbers = #tpu.dot_dimension_numbers<[1], [0], [0], [1], [0, 0, 1, 1], [], []>} : vector<1x25xbf16>, vector<25x64xbf16>, vector<1x64xf32> -> vector<1x64xf32>
    %277 = arith.truncf %276 : vector<1x64xf32> to vector<1x64xbf16>
    %c3_253 = arith.constant 3 : index
    %c0_254 = arith.constant 0 : index
    %c0_255 = arith.constant 0 : index
    %278 = vector.load %arg12[%c3_253, %c0_254, %c0_255] : memref<36x64x128xbf16, #tpu.memory_space<vmem>>, vector<1x64x128xbf16>
    %279 = vector.shape_cast %278 : vector<1x64x128xbf16> to vector<64x128xbf16>
    %cst_256 = arith.constant dense<0.000000e+00> : vector<1x128xf32>
    %280 = tpu.matmul %277, %279, %cst_256 {dimension_numbers = #tpu.dot_dimension_numbers<[1], [0], [0], [1], [0, 0, 1, 1], [], []>} : vector<1x64xbf16>, vector<64x128xbf16>, vector<1x128xf32> -> vector<1x128xf32>
    %281 = arith.addf %273, %280 : vector<1x128xf32>
    %c4_257 = arith.constant 4 : index
    %c0_258 = arith.constant 0 : index
    %c0_259 = arith.constant 0 : index
    %282 = vector.load %arg11[%c4_257, %c0_258, %c0_259] : memref<36x1x25xbf16, #tpu.memory_space<vmem>>, vector<1x1x25xbf16>
    %283 = vector.shape_cast %282 : vector<1x1x25xbf16> to vector<1x25xbf16>
    %cst_260 = arith.constant dense<0.000000e+00> : vector<1x64xf32>
    %284 = tpu.matmul %283, %248, %cst_260 {dimension_numbers = #tpu.dot_dimension_numbers<[1], [0], [0], [1], [0, 0, 1, 1], [], []>} : vector<1x25xbf16>, vector<25x64xbf16>, vector<1x64xf32> -> vector<1x64xf32>
    %285 = arith.truncf %284 : vector<1x64xf32> to vector<1x64xbf16>
    %c4_261 = arith.constant 4 : index
    %c0_262 = arith.constant 0 : index
    %c0_263 = arith.constant 0 : index
    %286 = vector.load %arg12[%c4_261, %c0_262, %c0_263] : memref<36x64x128xbf16, #tpu.memory_space<vmem>>, vector<1x64x128xbf16>
    %287 = vector.shape_cast %286 : vector<1x64x128xbf16> to vector<64x128xbf16>
    %cst_264 = arith.constant dense<0.000000e+00> : vector<1x128xf32>
    %288 = tpu.matmul %285, %287, %cst_264 {dimension_numbers = #tpu.dot_dimension_numbers<[1], [0], [0], [1], [0, 0, 1, 1], [], []>} : vector<1x64xbf16>, vector<64x128xbf16>, vector<1x128xf32> -> vector<1x128xf32>
    %289 = arith.addf %281, %288 : vector<1x128xf32>
    %c5_265 = arith.constant 5 : index
    %c0_266 = arith.constant 0 : index
    %c0_267 = arith.constant 0 : index
    %290 = vector.load %arg11[%c5_265, %c0_266, %c0_267] : memref<36x1x25xbf16, #tpu.memory_space<vmem>>, vector<1x1x25xbf16>
    %291 = vector.shape_cast %290 : vector<1x1x25xbf16> to vector<1x25xbf16>
    %cst_268 = arith.constant dense<0.000000e+00> : vector<1x64xf32>
    %292 = tpu.matmul %291, %248, %cst_268 {dimension_numbers = #tpu.dot_dimension_numbers<[1], [0], [0], [1], [0, 0, 1, 1], [], []>} : vector<1x25xbf16>, vector<25x64xbf16>, vector<1x64xf32> -> vector<1x64xf32>
    %293 = arith.truncf %292 : vector<1x64xf32> to vector<1x64xbf16>
    %c5_269 = arith.constant 5 : index
    %c0_270 = arith.constant 0 : index
    %c0_271 = arith.constant 0 : index
    %294 = vector.load %arg12[%c5_269, %c0_270, %c0_271] : memref<36x64x128xbf16, #tpu.memory_space<vmem>>, vector<1x64x128xbf16>
    %295 = vector.shape_cast %294 : vector<1x64x128xbf16> to vector<64x128xbf16>
    %cst_272 = arith.constant dense<0.000000e+00> : vector<1x128xf32>
    %296 = tpu.matmul %293, %295, %cst_272 {dimension_numbers = #tpu.dot_dimension_numbers<[1], [0], [0], [1], [0, 0, 1, 1], [], []>} : vector<1x64xbf16>, vector<64x128xbf16>, vector<1x128xf32> -> vector<1x128xf32>
    %297 = arith.addf %289, %296 : vector<1x128xf32>
    %c6_273 = arith.constant 6 : index
    %c0_274 = arith.constant 0 : index
    %c0_275 = arith.constant 0 : index
    %298 = vector.load %arg11[%c6_273, %c0_274, %c0_275] : memref<36x1x25xbf16, #tpu.memory_space<vmem>>, vector<1x1x25xbf16>
    %299 = vector.shape_cast %298 : vector<1x1x25xbf16> to vector<1x25xbf16>
    %cst_276 = arith.constant dense<0.000000e+00> : vector<1x64xf32>
    %300 = tpu.matmul %299, %248, %cst_276 {dimension_numbers = #tpu.dot_dimension_numbers<[1], [0], [0], [1], [0, 0, 1, 1], [], []>} : vector<1x25xbf16>, vector<25x64xbf16>, vector<1x64xf32> -> vector<1x64xf32>
    %301 = arith.truncf %300 : vector<1x64xf32> to vector<1x64xbf16>
    %c6_277 = arith.constant 6 : index
    %c0_278 = arith.constant 0 : index
    %c0_279 = arith.constant 0 : index
    %302 = vector.load %arg12[%c6_277, %c0_278, %c0_279] : memref<36x64x128xbf16, #tpu.memory_space<vmem>>, vector<1x64x128xbf16>
    %303 = vector.shape_cast %302 : vector<1x64x128xbf16> to vector<64x128xbf16>
    %cst_280 = arith.constant dense<0.000000e+00> : vector<1x128xf32>
    %304 = tpu.matmul %301, %303, %cst_280 {dimension_numbers = #tpu.dot_dimension_numbers<[1], [0], [0], [1], [0, 0, 1, 1], [], []>} : vector<1x64xbf16>, vector<64x128xbf16>, vector<1x128xf32> -> vector<1x128xf32>
    %305 = arith.addf %297, %304 : vector<1x128xf32>
    %c7_281 = arith.constant 7 : index
    %c0_282 = arith.constant 0 : index
    %c0_283 = arith.constant 0 : index
    %306 = vector.load %arg11[%c7_281, %c0_282, %c0_283] : memref<36x1x25xbf16, #tpu.memory_space<vmem>>, vector<1x1x25xbf16>
    %307 = vector.shape_cast %306 : vector<1x1x25xbf16> to vector<1x25xbf16>
    %cst_284 = arith.constant dense<0.000000e+00> : vector<1x64xf32>
    %308 = tpu.matmul %307, %248, %cst_284 {dimension_numbers = #tpu.dot_dimension_numbers<[1], [0], [0], [1], [0, 0, 1, 1], [], []>} : vector<1x25xbf16>, vector<25x64xbf16>, vector<1x64xf32> -> vector<1x64xf32>
    %309 = arith.truncf %308 : vector<1x64xf32> to vector<1x64xbf16>
    %c7_285 = arith.constant 7 : index
    %c0_286 = arith.constant 0 : index
    %c0_287 = arith.constant 0 : index
    %310 = vector.load %arg12[%c7_285, %c0_286, %c0_287] : memref<36x64x128xbf16, #tpu.memory_space<vmem>>, vector<1x64x128xbf16>
    %311 = vector.shape_cast %310 : vector<1x64x128xbf16> to vector<64x128xbf16>
    %cst_288 = arith.constant dense<0.000000e+00> : vector<1x128xf32>
    %312 = tpu.matmul %309, %311, %cst_288 {dimension_numbers = #tpu.dot_dimension_numbers<[1], [0], [0], [1], [0, 0, 1, 1], [], []>} : vector<1x64xbf16>, vector<64x128xbf16>, vector<1x128xf32> -> vector<1x128xf32>
    %313 = arith.addf %305, %312 : vector<1x128xf32>
    %c8_289 = arith.constant 8 : index
    %c0_290 = arith.constant 0 : index
    %c0_291 = arith.constant 0 : index
    %314 = vector.load %arg11[%c8_289, %c0_290, %c0_291] : memref<36x1x25xbf16, #tpu.memory_space<vmem>>, vector<1x1x25xbf16>
    %315 = vector.shape_cast %314 : vector<1x1x25xbf16> to vector<1x25xbf16>
    %cst_292 = arith.constant dense<0.000000e+00> : vector<1x64xf32>
    %316 = tpu.matmul %315, %248, %cst_292 {dimension_numbers = #tpu.dot_dimension_numbers<[1], [0], [0], [1], [0, 0, 1, 1], [], []>} : vector<1x25xbf16>, vector<25x64xbf16>, vector<1x64xf32> -> vector<1x64xf32>
    %317 = arith.truncf %316 : vector<1x64xf32> to vector<1x64xbf16>
    %c8_293 = arith.constant 8 : index
    %c0_294 = arith.constant 0 : index
    %c0_295 = arith.constant 0 : index
    %318 = vector.load %arg12[%c8_293, %c0_294, %c0_295] : memref<36x64x128xbf16, #tpu.memory_space<vmem>>, vector<1x64x128xbf16>
    %319 = vector.shape_cast %318 : vector<1x64x128xbf16> to vector<64x128xbf16>
    %cst_296 = arith.constant dense<0.000000e+00> : vector<1x128xf32>
    %320 = tpu.matmul %317, %319, %cst_296 {dimension_numbers = #tpu.dot_dimension_numbers<[1], [0], [0], [1], [0, 0, 1, 1], [], []>} : vector<1x64xbf16>, vector<64x128xbf16>, vector<1x128xf32> -> vector<1x128xf32>
    %321 = arith.addf %313, %320 : vector<1x128xf32>
    %c9 = arith.constant 9 : index
    %c0_297 = arith.constant 0 : index
    %c0_298 = arith.constant 0 : index
    %322 = vector.load %arg11[%c9, %c0_297, %c0_298] : memref<36x1x25xbf16, #tpu.memory_space<vmem>>, vector<1x1x25xbf16>
    %323 = vector.shape_cast %322 : vector<1x1x25xbf16> to vector<1x25xbf16>
    %cst_299 = arith.constant dense<0.000000e+00> : vector<1x64xf32>
    %324 = tpu.matmul %323, %248, %cst_299 {dimension_numbers = #tpu.dot_dimension_numbers<[1], [0], [0], [1], [0, 0, 1, 1], [], []>} : vector<1x25xbf16>, vector<25x64xbf16>, vector<1x64xf32> -> vector<1x64xf32>
    %325 = arith.truncf %324 : vector<1x64xf32> to vector<1x64xbf16>
    %c9_300 = arith.constant 9 : index
    %c0_301 = arith.constant 0 : index
    %c0_302 = arith.constant 0 : index
    %326 = vector.load %arg12[%c9_300, %c0_301, %c0_302] : memref<36x64x128xbf16, #tpu.memory_space<vmem>>, vector<1x64x128xbf16>
    %327 = vector.shape_cast %326 : vector<1x64x128xbf16> to vector<64x128xbf16>
    %cst_303 = arith.constant dense<0.000000e+00> : vector<1x128xf32>
    %328 = tpu.matmul %325, %327, %cst_303 {dimension_numbers = #tpu.dot_dimension_numbers<[1], [0], [0], [1], [0, 0, 1, 1], [], []>} : vector<1x64xbf16>, vector<64x128xbf16>, vector<1x128xf32> -> vector<1x128xf32>
    %329 = arith.addf %321, %328 : vector<1x128xf32>
    %c10 = arith.constant 10 : index
    %c0_304 = arith.constant 0 : index
    %c0_305 = arith.constant 0 : index
    %330 = vector.load %arg11[%c10, %c0_304, %c0_305] : memref<36x1x25xbf16, #tpu.memory_space<vmem>>, vector<1x1x25xbf16>
    %331 = vector.shape_cast %330 : vector<1x1x25xbf16> to vector<1x25xbf16>
    %cst_306 = arith.constant dense<0.000000e+00> : vector<1x64xf32>
    %332 = tpu.matmul %331, %248, %cst_306 {dimension_numbers = #tpu.dot_dimension_numbers<[1], [0], [0], [1], [0, 0, 1, 1], [], []>} : vector<1x25xbf16>, vector<25x64xbf16>, vector<1x64xf32> -> vector<1x64xf32>
    %333 = arith.truncf %332 : vector<1x64xf32> to vector<1x64xbf16>
    %c10_307 = arith.constant 10 : index
    %c0_308 = arith.constant 0 : index
    %c0_309 = arith.constant 0 : index
    %334 = vector.load %arg12[%c10_307, %c0_308, %c0_309] : memref<36x64x128xbf16, #tpu.memory_space<vmem>>, vector<1x64x128xbf16>
    %335 = vector.shape_cast %334 : vector<1x64x128xbf16> to vector<64x128xbf16>
    %cst_310 = arith.constant dense<0.000000e+00> : vector<1x128xf32>
    %336 = tpu.matmul %333, %335, %cst_310 {dimension_numbers = #tpu.dot_dimension_numbers<[1], [0], [0], [1], [0, 0, 1, 1], [], []>} : vector<1x64xbf16>, vector<64x128xbf16>, vector<1x128xf32> -> vector<1x128xf32>
    %337 = arith.addf %329, %336 : vector<1x128xf32>
    %c11 = arith.constant 11 : index
    %c0_311 = arith.constant 0 : index
    %c0_312 = arith.constant 0 : index
    %338 = vector.load %arg11[%c11, %c0_311, %c0_312] : memref<36x1x25xbf16, #tpu.memory_space<vmem>>, vector<1x1x25xbf16>
    %339 = vector.shape_cast %338 : vector<1x1x25xbf16> to vector<1x25xbf16>
    %cst_313 = arith.constant dense<0.000000e+00> : vector<1x64xf32>
    %340 = tpu.matmul %339, %248, %cst_313 {dimension_numbers = #tpu.dot_dimension_numbers<[1], [0], [0], [1], [0, 0, 1, 1], [], []>} : vector<1x25xbf16>, vector<25x64xbf16>, vector<1x64xf32> -> vector<1x64xf32>
    %341 = arith.truncf %340 : vector<1x64xf32> to vector<1x64xbf16>
    %c11_314 = arith.constant 11 : index
    %c0_315 = arith.constant 0 : index
    %c0_316 = arith.constant 0 : index
    %342 = vector.load %arg12[%c11_314, %c0_315, %c0_316] : memref<36x64x128xbf16, #tpu.memory_space<vmem>>, vector<1x64x128xbf16>
    %343 = vector.shape_cast %342 : vector<1x64x128xbf16> to vector<64x128xbf16>
    %cst_317 = arith.constant dense<0.000000e+00> : vector<1x128xf32>
    %344 = tpu.matmul %341, %343, %cst_317 {dimension_numbers = #tpu.dot_dimension_numbers<[1], [0], [0], [1], [0, 0, 1, 1], [], []>} : vector<1x64xbf16>, vector<64x128xbf16>, vector<1x128xf32> -> vector<1x128xf32>
    %345 = arith.addf %337, %344 : vector<1x128xf32>
    %c12 = arith.constant 12 : index
    %c0_318 = arith.constant 0 : index
    %c0_319 = arith.constant 0 : index
    %346 = vector.load %arg11[%c12, %c0_318, %c0_319] : memref<36x1x25xbf16, #tpu.memory_space<vmem>>, vector<1x1x25xbf16>
    %347 = vector.shape_cast %346 : vector<1x1x25xbf16> to vector<1x25xbf16>
    %cst_320 = arith.constant dense<0.000000e+00> : vector<1x64xf32>
    %348 = tpu.matmul %347, %248, %cst_320 {dimension_numbers = #tpu.dot_dimension_numbers<[1], [0], [0], [1], [0, 0, 1, 1], [], []>} : vector<1x25xbf16>, vector<25x64xbf16>, vector<1x64xf32> -> vector<1x64xf32>
    %349 = arith.truncf %348 : vector<1x64xf32> to vector<1x64xbf16>
    %c12_321 = arith.constant 12 : index
    %c0_322 = arith.constant 0 : index
    %c0_323 = arith.constant 0 : index
    %350 = vector.load %arg12[%c12_321, %c0_322, %c0_323] : memref<36x64x128xbf16, #tpu.memory_space<vmem>>, vector<1x64x128xbf16>
    %351 = vector.shape_cast %350 : vector<1x64x128xbf16> to vector<64x128xbf16>
    %cst_324 = arith.constant dense<0.000000e+00> : vector<1x128xf32>
    %352 = tpu.matmul %349, %351, %cst_324 {dimension_numbers = #tpu.dot_dimension_numbers<[1], [0], [0], [1], [0, 0, 1, 1], [], []>} : vector<1x64xbf16>, vector<64x128xbf16>, vector<1x128xf32> -> vector<1x128xf32>
    %353 = arith.addf %345, %352 : vector<1x128xf32>
    %c13 = arith.constant 13 : index
    %c0_325 = arith.constant 0 : index
    %c0_326 = arith.constant 0 : index
    %354 = vector.load %arg11[%c13, %c0_325, %c0_326] : memref<36x1x25xbf16, #tpu.memory_space<vmem>>, vector<1x1x25xbf16>
    %355 = vector.shape_cast %354 : vector<1x1x25xbf16> to vector<1x25xbf16>
    %cst_327 = arith.constant dense<0.000000e+00> : vector<1x64xf32>
    %356 = tpu.matmul %355, %248, %cst_327 {dimension_numbers = #tpu.dot_dimension_numbers<[1], [0], [0], [1], [0, 0, 1, 1], [], []>} : vector<1x25xbf16>, vector<25x64xbf16>, vector<1x64xf32> -> vector<1x64xf32>
    %357 = arith.truncf %356 : vector<1x64xf32> to vector<1x64xbf16>
    %c13_328 = arith.constant 13 : index
    %c0_329 = arith.constant 0 : index
    %c0_330 = arith.constant 0 : index
    %358 = vector.load %arg12[%c13_328, %c0_329, %c0_330] : memref<36x64x128xbf16, #tpu.memory_space<vmem>>, vector<1x64x128xbf16>
    %359 = vector.shape_cast %358 : vector<1x64x128xbf16> to vector<64x128xbf16>
    %cst_331 = arith.constant dense<0.000000e+00> : vector<1x128xf32>
    %360 = tpu.matmul %357, %359, %cst_331 {dimension_numbers = #tpu.dot_dimension_numbers<[1], [0], [0], [1], [0, 0, 1, 1], [], []>} : vector<1x64xbf16>, vector<64x128xbf16>, vector<1x128xf32> -> vector<1x128xf32>
    %361 = arith.addf %353, %360 : vector<1x128xf32>
    %c14 = arith.constant 14 : index
    %c0_332 = arith.constant 0 : index
    %c0_333 = arith.constant 0 : index
    %362 = vector.load %arg11[%c14, %c0_332, %c0_333] : memref<36x1x25xbf16, #tpu.memory_space<vmem>>, vector<1x1x25xbf16>
    %363 = vector.shape_cast %362 : vector<1x1x25xbf16> to vector<1x25xbf16>
    %cst_334 = arith.constant dense<0.000000e+00> : vector<1x64xf32>
    %364 = tpu.matmul %363, %248, %cst_334 {dimension_numbers = #tpu.dot_dimension_numbers<[1], [0], [0], [1], [0, 0, 1, 1], [], []>} : vector<1x25xbf16>, vector<25x64xbf16>, vector<1x64xf32> -> vector<1x64xf32>
    %365 = arith.truncf %364 : vector<1x64xf32> to vector<1x64xbf16>
    %c14_335 = arith.constant 14 : index
    %c0_336 = arith.constant 0 : index
    %c0_337 = arith.constant 0 : index
    %366 = vector.load %arg12[%c14_335, %c0_336, %c0_337] : memref<36x64x128xbf16, #tpu.memory_space<vmem>>, vector<1x64x128xbf16>
    %367 = vector.shape_cast %366 : vector<1x64x128xbf16> to vector<64x128xbf16>
    %cst_338 = arith.constant dense<0.000000e+00> : vector<1x128xf32>
    %368 = tpu.matmul %365, %367, %cst_338 {dimension_numbers = #tpu.dot_dimension_numbers<[1], [0], [0], [1], [0, 0, 1, 1], [], []>} : vector<1x64xbf16>, vector<64x128xbf16>, vector<1x128xf32> -> vector<1x128xf32>
    %369 = arith.addf %361, %368 : vector<1x128xf32>
    %c15 = arith.constant 15 : index
    %c0_339 = arith.constant 0 : index
    %c0_340 = arith.constant 0 : index
    %370 = vector.load %arg11[%c15, %c0_339, %c0_340] : memref<36x1x25xbf16, #tpu.memory_space<vmem>>, vector<1x1x25xbf16>
    %371 = vector.shape_cast %370 : vector<1x1x25xbf16> to vector<1x25xbf16>
    %cst_341 = arith.constant dense<0.000000e+00> : vector<1x64xf32>
    %372 = tpu.matmul %371, %248, %cst_341 {dimension_numbers = #tpu.dot_dimension_numbers<[1], [0], [0], [1], [0, 0, 1, 1], [], []>} : vector<1x25xbf16>, vector<25x64xbf16>, vector<1x64xf32> -> vector<1x64xf32>
    %373 = arith.truncf %372 : vector<1x64xf32> to vector<1x64xbf16>
    %c15_342 = arith.constant 15 : index
    %c0_343 = arith.constant 0 : index
    %c0_344 = arith.constant 0 : index
    %374 = vector.load %arg12[%c15_342, %c0_343, %c0_344] : memref<36x64x128xbf16, #tpu.memory_space<vmem>>, vector<1x64x128xbf16>
    %375 = vector.shape_cast %374 : vector<1x64x128xbf16> to vector<64x128xbf16>
    %cst_345 = arith.constant dense<0.000000e+00> : vector<1x128xf32>
    %376 = tpu.matmul %373, %375, %cst_345 {dimension_numbers = #tpu.dot_dimension_numbers<[1], [0], [0], [1], [0, 0, 1, 1], [], []>} : vector<1x64xbf16>, vector<64x128xbf16>, vector<1x128xf32> -> vector<1x128xf32>
    %377 = arith.addf %369, %376 : vector<1x128xf32>
    %c16 = arith.constant 16 : index
    %c0_346 = arith.constant 0 : index
    %c0_347 = arith.constant 0 : index
    %378 = vector.load %arg11[%c16, %c0_346, %c0_347] : memref<36x1x25xbf16, #tpu.memory_space<vmem>>, vector<1x1x25xbf16>
    %379 = vector.shape_cast %378 : vector<1x1x25xbf16> to vector<1x25xbf16>
    %cst_348 = arith.constant dense<0.000000e+00> : vector<1x64xf32>
    %380 = tpu.matmul %379, %248, %cst_348 {dimension_numbers = #tpu.dot_dimension_numbers<[1], [0], [0], [1], [0, 0, 1, 1], [], []>} : vector<1x25xbf16>, vector<25x64xbf16>, vector<1x64xf32> -> vector<1x64xf32>
    %381 = arith.truncf %380 : vector<1x64xf32> to vector<1x64xbf16>
    %c16_349 = arith.constant 16 : index
    %c0_350 = arith.constant 0 : index
    %c0_351 = arith.constant 0 : index
    %382 = vector.load %arg12[%c16_349, %c0_350, %c0_351] : memref<36x64x128xbf16, #tpu.memory_space<vmem>>, vector<1x64x128xbf16>
    %383 = vector.shape_cast %382 : vector<1x64x128xbf16> to vector<64x128xbf16>
    %cst_352 = arith.constant dense<0.000000e+00> : vector<1x128xf32>
    %384 = tpu.matmul %381, %383, %cst_352 {dimension_numbers = #tpu.dot_dimension_numbers<[1], [0], [0], [1], [0, 0, 1, 1], [], []>} : vector<1x64xbf16>, vector<64x128xbf16>, vector<1x128xf32> -> vector<1x128xf32>
    %385 = arith.addf %377, %384 : vector<1x128xf32>
    %c17 = arith.constant 17 : index
    %c0_353 = arith.constant 0 : index
    %c0_354 = arith.constant 0 : index
    %386 = vector.load %arg11[%c17, %c0_353, %c0_354] : memref<36x1x25xbf16, #tpu.memory_space<vmem>>, vector<1x1x25xbf16>
    %387 = vector.shape_cast %386 : vector<1x1x25xbf16> to vector<1x25xbf16>
    %cst_355 = arith.constant dense<0.000000e+00> : vector<1x64xf32>
    %388 = tpu.matmul %387, %248, %cst_355 {dimension_numbers = #tpu.dot_dimension_numbers<[1], [0], [0], [1], [0, 0, 1, 1], [], []>} : vector<1x25xbf16>, vector<25x64xbf16>, vector<1x64xf32> -> vector<1x64xf32>
    %389 = arith.truncf %388 : vector<1x64xf32> to vector<1x64xbf16>
    %c17_356 = arith.constant 17 : index
    %c0_357 = arith.constant 0 : index
    %c0_358 = arith.constant 0 : index
    %390 = vector.load %arg12[%c17_356, %c0_357, %c0_358] : memref<36x64x128xbf16, #tpu.memory_space<vmem>>, vector<1x64x128xbf16>
    %391 = vector.shape_cast %390 : vector<1x64x128xbf16> to vector<64x128xbf16>
    %cst_359 = arith.constant dense<0.000000e+00> : vector<1x128xf32>
    %392 = tpu.matmul %389, %391, %cst_359 {dimension_numbers = #tpu.dot_dimension_numbers<[1], [0], [0], [1], [0, 0, 1, 1], [], []>} : vector<1x64xbf16>, vector<64x128xbf16>, vector<1x128xf32> -> vector<1x128xf32>
    %393 = arith.addf %385, %392 : vector<1x128xf32>
    %c18 = arith.constant 18 : index
    %c0_360 = arith.constant 0 : index
    %c0_361 = arith.constant 0 : index
    %394 = vector.load %arg11[%c18, %c0_360, %c0_361] : memref<36x1x25xbf16, #tpu.memory_space<vmem>>, vector<1x1x25xbf16>
    %395 = vector.shape_cast %394 : vector<1x1x25xbf16> to vector<1x25xbf16>
    %cst_362 = arith.constant dense<0.000000e+00> : vector<1x64xf32>
    %396 = tpu.matmul %395, %248, %cst_362 {dimension_numbers = #tpu.dot_dimension_numbers<[1], [0], [0], [1], [0, 0, 1, 1], [], []>} : vector<1x25xbf16>, vector<25x64xbf16>, vector<1x64xf32> -> vector<1x64xf32>
    %397 = arith.truncf %396 : vector<1x64xf32> to vector<1x64xbf16>
    %c18_363 = arith.constant 18 : index
    %c0_364 = arith.constant 0 : index
    %c0_365 = arith.constant 0 : index
    %398 = vector.load %arg12[%c18_363, %c0_364, %c0_365] : memref<36x64x128xbf16, #tpu.memory_space<vmem>>, vector<1x64x128xbf16>
    %399 = vector.shape_cast %398 : vector<1x64x128xbf16> to vector<64x128xbf16>
    %cst_366 = arith.constant dense<0.000000e+00> : vector<1x128xf32>
    %400 = tpu.matmul %397, %399, %cst_366 {dimension_numbers = #tpu.dot_dimension_numbers<[1], [0], [0], [1], [0, 0, 1, 1], [], []>} : vector<1x64xbf16>, vector<64x128xbf16>, vector<1x128xf32> -> vector<1x128xf32>
    %401 = arith.addf %393, %400 : vector<1x128xf32>
    %c19 = arith.constant 19 : index
    %c0_367 = arith.constant 0 : index
    %c0_368 = arith.constant 0 : index
    %402 = vector.load %arg11[%c19, %c0_367, %c0_368] : memref<36x1x25xbf16, #tpu.memory_space<vmem>>, vector<1x1x25xbf16>
    %403 = vector.shape_cast %402 : vector<1x1x25xbf16> to vector<1x25xbf16>
    %cst_369 = arith.constant dense<0.000000e+00> : vector<1x64xf32>
    %404 = tpu.matmul %403, %248, %cst_369 {dimension_numbers = #tpu.dot_dimension_numbers<[1], [0], [0], [1], [0, 0, 1, 1], [], []>} : vector<1x25xbf16>, vector<25x64xbf16>, vector<1x64xf32> -> vector<1x64xf32>
    %405 = arith.truncf %404 : vector<1x64xf32> to vector<1x64xbf16>
    %c19_370 = arith.constant 19 : index
    %c0_371 = arith.constant 0 : index
    %c0_372 = arith.constant 0 : index
    %406 = vector.load %arg12[%c19_370, %c0_371, %c0_372] : memref<36x64x128xbf16, #tpu.memory_space<vmem>>, vector<1x64x128xbf16>
    %407 = vector.shape_cast %406 : vector<1x64x128xbf16> to vector<64x128xbf16>
    %cst_373 = arith.constant dense<0.000000e+00> : vector<1x128xf32>
    %408 = tpu.matmul %405, %407, %cst_373 {dimension_numbers = #tpu.dot_dimension_numbers<[1], [0], [0], [1], [0, 0, 1, 1], [], []>} : vector<1x64xbf16>, vector<64x128xbf16>, vector<1x128xf32> -> vector<1x128xf32>
    %409 = arith.addf %401, %408 : vector<1x128xf32>
    %c20 = arith.constant 20 : index
    %c0_374 = arith.constant 0 : index
    %c0_375 = arith.constant 0 : index
    %410 = vector.load %arg11[%c20, %c0_374, %c0_375] : memref<36x1x25xbf16, #tpu.memory_space<vmem>>, vector<1x1x25xbf16>
    %411 = vector.shape_cast %410 : vector<1x1x25xbf16> to vector<1x25xbf16>
    %cst_376 = arith.constant dense<0.000000e+00> : vector<1x64xf32>
    %412 = tpu.matmul %411, %248, %cst_376 {dimension_numbers = #tpu.dot_dimension_numbers<[1], [0], [0], [1], [0, 0, 1, 1], [], []>} : vector<1x25xbf16>, vector<25x64xbf16>, vector<1x64xf32> -> vector<1x64xf32>
    %413 = arith.truncf %412 : vector<1x64xf32> to vector<1x64xbf16>
    %c20_377 = arith.constant 20 : index
    %c0_378 = arith.constant 0 : index
    %c0_379 = arith.constant 0 : index
    %414 = vector.load %arg12[%c20_377, %c0_378, %c0_379] : memref<36x64x128xbf16, #tpu.memory_space<vmem>>, vector<1x64x128xbf16>
    %415 = vector.shape_cast %414 : vector<1x64x128xbf16> to vector<64x128xbf16>
    %cst_380 = arith.constant dense<0.000000e+00> : vector<1x128xf32>
    %416 = tpu.matmul %413, %415, %cst_380 {dimension_numbers = #tpu.dot_dimension_numbers<[1], [0], [0], [1], [0, 0, 1, 1], [], []>} : vector<1x64xbf16>, vector<64x128xbf16>, vector<1x128xf32> -> vector<1x128xf32>
    %417 = arith.addf %409, %416 : vector<1x128xf32>
    %c21 = arith.constant 21 : index
    %c0_381 = arith.constant 0 : index
    %c0_382 = arith.constant 0 : index
    %418 = vector.load %arg11[%c21, %c0_381, %c0_382] : memref<36x1x25xbf16, #tpu.memory_space<vmem>>, vector<1x1x25xbf16>
    %419 = vector.shape_cast %418 : vector<1x1x25xbf16> to vector<1x25xbf16>
    %cst_383 = arith.constant dense<0.000000e+00> : vector<1x64xf32>
    %420 = tpu.matmul %419, %248, %cst_383 {dimension_numbers = #tpu.dot_dimension_numbers<[1], [0], [0], [1], [0, 0, 1, 1], [], []>} : vector<1x25xbf16>, vector<25x64xbf16>, vector<1x64xf32> -> vector<1x64xf32>
    %421 = arith.truncf %420 : vector<1x64xf32> to vector<1x64xbf16>
    %c21_384 = arith.constant 21 : index
    %c0_385 = arith.constant 0 : index
    %c0_386 = arith.constant 0 : index
    %422 = vector.load %arg12[%c21_384, %c0_385, %c0_386] : memref<36x64x128xbf16, #tpu.memory_space<vmem>>, vector<1x64x128xbf16>
    %423 = vector.shape_cast %422 : vector<1x64x128xbf16> to vector<64x128xbf16>
    %cst_387 = arith.constant dense<0.000000e+00> : vector<1x128xf32>
    %424 = tpu.matmul %421, %423, %cst_387 {dimension_numbers = #tpu.dot_dimension_numbers<[1], [0], [0], [1], [0, 0, 1, 1], [], []>} : vector<1x64xbf16>, vector<64x128xbf16>, vector<1x128xf32> -> vector<1x128xf32>
    %425 = arith.addf %417, %424 : vector<1x128xf32>
    %c22 = arith.constant 22 : index
    %c0_388 = arith.constant 0 : index
    %c0_389 = arith.constant 0 : index
    %426 = vector.load %arg11[%c22, %c0_388, %c0_389] : memref<36x1x25xbf16, #tpu.memory_space<vmem>>, vector<1x1x25xbf16>
    %427 = vector.shape_cast %426 : vector<1x1x25xbf16> to vector<1x25xbf16>
    %cst_390 = arith.constant dense<0.000000e+00> : vector<1x64xf32>
    %428 = tpu.matmul %427, %248, %cst_390 {dimension_numbers = #tpu.dot_dimension_numbers<[1], [0], [0], [1], [0, 0, 1, 1], [], []>} : vector<1x25xbf16>, vector<25x64xbf16>, vector<1x64xf32> -> vector<1x64xf32>
    %429 = arith.truncf %428 : vector<1x64xf32> to vector<1x64xbf16>
    %c22_391 = arith.constant 22 : index
    %c0_392 = arith.constant 0 : index
    %c0_393 = arith.constant 0 : index
    %430 = vector.load %arg12[%c22_391, %c0_392, %c0_393] : memref<36x64x128xbf16, #tpu.memory_space<vmem>>, vector<1x64x128xbf16>
    %431 = vector.shape_cast %430 : vector<1x64x128xbf16> to vector<64x128xbf16>
    %cst_394 = arith.constant dense<0.000000e+00> : vector<1x128xf32>
    %432 = tpu.matmul %429, %431, %cst_394 {dimension_numbers = #tpu.dot_dimension_numbers<[1], [0], [0], [1], [0, 0, 1, 1], [], []>} : vector<1x64xbf16>, vector<64x128xbf16>, vector<1x128xf32> -> vector<1x128xf32>
    %433 = arith.addf %425, %432 : vector<1x128xf32>
    %c23 = arith.constant 23 : index
    %c0_395 = arith.constant 0 : index
    %c0_396 = arith.constant 0 : index
    %434 = vector.load %arg11[%c23, %c0_395, %c0_396] : memref<36x1x25xbf16, #tpu.memory_space<vmem>>, vector<1x1x25xbf16>
    %435 = vector.shape_cast %434 : vector<1x1x25xbf16> to vector<1x25xbf16>
    %cst_397 = arith.constant dense<0.000000e+00> : vector<1x64xf32>
    %436 = tpu.matmul %435, %248, %cst_397 {dimension_numbers = #tpu.dot_dimension_numbers<[1], [0], [0], [1], [0, 0, 1, 1], [], []>} : vector<1x25xbf16>, vector<25x64xbf16>, vector<1x64xf32> -> vector<1x64xf32>
    %437 = arith.truncf %436 : vector<1x64xf32> to vector<1x64xbf16>
    %c23_398 = arith.constant 23 : index
    %c0_399 = arith.constant 0 : index
    %c0_400 = arith.constant 0 : index
    %438 = vector.load %arg12[%c23_398, %c0_399, %c0_400] : memref<36x64x128xbf16, #tpu.memory_space<vmem>>, vector<1x64x128xbf16>
    %439 = vector.shape_cast %438 : vector<1x64x128xbf16> to vector<64x128xbf16>
    %cst_401 = arith.constant dense<0.000000e+00> : vector<1x128xf32>
    %440 = tpu.matmul %437, %439, %cst_401 {dimension_numbers = #tpu.dot_dimension_numbers<[1], [0], [0], [1], [0, 0, 1, 1], [], []>} : vector<1x64xbf16>, vector<64x128xbf16>, vector<1x128xf32> -> vector<1x128xf32>
    %441 = arith.addf %433, %440 : vector<1x128xf32>
    %c24 = arith.constant 24 : index
    %c0_402 = arith.constant 0 : index
    %c0_403 = arith.constant 0 : index
    %442 = vector.load %arg11[%c24, %c0_402, %c0_403] : memref<36x1x25xbf16, #tpu.memory_space<vmem>>, vector<1x1x25xbf16>
    %443 = vector.shape_cast %442 : vector<1x1x25xbf16> to vector<1x25xbf16>
    %cst_404 = arith.constant dense<0.000000e+00> : vector<1x64xf32>
    %444 = tpu.matmul %443, %248, %cst_404 {dimension_numbers = #tpu.dot_dimension_numbers<[1], [0], [0], [1], [0, 0, 1, 1], [], []>} : vector<1x25xbf16>, vector<25x64xbf16>, vector<1x64xf32> -> vector<1x64xf32>
    %445 = arith.truncf %444 : vector<1x64xf32> to vector<1x64xbf16>
    %c24_405 = arith.constant 24 : index
    %c0_406 = arith.constant 0 : index
    %c0_407 = arith.constant 0 : index
    %446 = vector.load %arg12[%c24_405, %c0_406, %c0_407] : memref<36x64x128xbf16, #tpu.memory_space<vmem>>, vector<1x64x128xbf16>
    %447 = vector.shape_cast %446 : vector<1x64x128xbf16> to vector<64x128xbf16>
    %cst_408 = arith.constant dense<0.000000e+00> : vector<1x128xf32>
    %448 = tpu.matmul %445, %447, %cst_408 {dimension_numbers = #tpu.dot_dimension_numbers<[1], [0], [0], [1], [0, 0, 1, 1], [], []>} : vector<1x64xbf16>, vector<64x128xbf16>, vector<1x128xf32> -> vector<1x128xf32>
    %449 = arith.addf %441, %448 : vector<1x128xf32>
    %c25 = arith.constant 25 : index
    %c0_409 = arith.constant 0 : index
    %c0_410 = arith.constant 0 : index
    %450 = vector.load %arg11[%c25, %c0_409, %c0_410] : memref<36x1x25xbf16, #tpu.memory_space<vmem>>, vector<1x1x25xbf16>
    %451 = vector.shape_cast %450 : vector<1x1x25xbf16> to vector<1x25xbf16>
    %cst_411 = arith.constant dense<0.000000e+00> : vector<1x64xf32>
    %452 = tpu.matmul %451, %248, %cst_411 {dimension_numbers = #tpu.dot_dimension_numbers<[1], [0], [0], [1], [0, 0, 1, 1], [], []>} : vector<1x25xbf16>, vector<25x64xbf16>, vector<1x64xf32> -> vector<1x64xf32>
    %453 = arith.truncf %452 : vector<1x64xf32> to vector<1x64xbf16>
    %c25_412 = arith.constant 25 : index
    %c0_413 = arith.constant 0 : index
    %c0_414 = arith.constant 0 : index
    %454 = vector.load %arg12[%c25_412, %c0_413, %c0_414] : memref<36x64x128xbf16, #tpu.memory_space<vmem>>, vector<1x64x128xbf16>
    %455 = vector.shape_cast %454 : vector<1x64x128xbf16> to vector<64x128xbf16>
    %cst_415 = arith.constant dense<0.000000e+00> : vector<1x128xf32>
    %456 = tpu.matmul %453, %455, %cst_415 {dimension_numbers = #tpu.dot_dimension_numbers<[1], [0], [0], [1], [0, 0, 1, 1], [], []>} : vector<1x64xbf16>, vector<64x128xbf16>, vector<1x128xf32> -> vector<1x128xf32>
    %457 = arith.addf %449, %456 : vector<1x128xf32>
    %c26 = arith.constant 26 : index
    %c0_416 = arith.constant 0 : index
    %c0_417 = arith.constant 0 : index
    %458 = vector.load %arg11[%c26, %c0_416, %c0_417] : memref<36x1x25xbf16, #tpu.memory_space<vmem>>, vector<1x1x25xbf16>
    %459 = vector.shape_cast %458 : vector<1x1x25xbf16> to vector<1x25xbf16>
    %cst_418 = arith.constant dense<0.000000e+00> : vector<1x64xf32>
    %460 = tpu.matmul %459, %248, %cst_418 {dimension_numbers = #tpu.dot_dimension_numbers<[1], [0], [0], [1], [0, 0, 1, 1], [], []>} : vector<1x25xbf16>, vector<25x64xbf16>, vector<1x64xf32> -> vector<1x64xf32>
    %461 = arith.truncf %460 : vector<1x64xf32> to vector<1x64xbf16>
    %c26_419 = arith.constant 26 : index
    %c0_420 = arith.constant 0 : index
    %c0_421 = arith.constant 0 : index
    %462 = vector.load %arg12[%c26_419, %c0_420, %c0_421] : memref<36x64x128xbf16, #tpu.memory_space<vmem>>, vector<1x64x128xbf16>
    %463 = vector.shape_cast %462 : vector<1x64x128xbf16> to vector<64x128xbf16>
    %cst_422 = arith.constant dense<0.000000e+00> : vector<1x128xf32>
    %464 = tpu.matmul %461, %463, %cst_422 {dimension_numbers = #tpu.dot_dimension_numbers<[1], [0], [0], [1], [0, 0, 1, 1], [], []>} : vector<1x64xbf16>, vector<64x128xbf16>, vector<1x128xf32> -> vector<1x128xf32>
    %465 = arith.addf %457, %464 : vector<1x128xf32>
    %c27 = arith.constant 27 : index
    %c0_423 = arith.constant 0 : index
    %c0_424 = arith.constant 0 : index
    %466 = vector.load %arg11[%c27, %c0_423, %c0_424] : memref<36x1x25xbf16, #tpu.memory_space<vmem>>, vector<1x1x25xbf16>
    %467 = vector.shape_cast %466 : vector<1x1x25xbf16> to vector<1x25xbf16>
    %cst_425 = arith.constant dense<0.000000e+00> : vector<1x64xf32>
    %468 = tpu.matmul %467, %248, %cst_425 {dimension_numbers = #tpu.dot_dimension_numbers<[1], [0], [0], [1], [0, 0, 1, 1], [], []>} : vector<1x25xbf16>, vector<25x64xbf16>, vector<1x64xf32> -> vector<1x64xf32>
    %469 = arith.truncf %468 : vector<1x64xf32> to vector<1x64xbf16>
    %c27_426 = arith.constant 27 : index
    %c0_427 = arith.constant 0 : index
    %c0_428 = arith.constant 0 : index
    %470 = vector.load %arg12[%c27_426, %c0_427, %c0_428] : memref<36x64x128xbf16, #tpu.memory_space<vmem>>, vector<1x64x128xbf16>
    %471 = vector.shape_cast %470 : vector<1x64x128xbf16> to vector<64x128xbf16>
    %cst_429 = arith.constant dense<0.000000e+00> : vector<1x128xf32>
    %472 = tpu.matmul %469, %471, %cst_429 {dimension_numbers = #tpu.dot_dimension_numbers<[1], [0], [0], [1], [0, 0, 1, 1], [], []>} : vector<1x64xbf16>, vector<64x128xbf16>, vector<1x128xf32> -> vector<1x128xf32>
    %473 = arith.addf %465, %472 : vector<1x128xf32>
    %c28 = arith.constant 28 : index
    %c0_430 = arith.constant 0 : index
    %c0_431 = arith.constant 0 : index
    %474 = vector.load %arg11[%c28, %c0_430, %c0_431] : memref<36x1x25xbf16, #tpu.memory_space<vmem>>, vector<1x1x25xbf16>
    %475 = vector.shape_cast %474 : vector<1x1x25xbf16> to vector<1x25xbf16>
    %cst_432 = arith.constant dense<0.000000e+00> : vector<1x64xf32>
    %476 = tpu.matmul %475, %248, %cst_432 {dimension_numbers = #tpu.dot_dimension_numbers<[1], [0], [0], [1], [0, 0, 1, 1], [], []>} : vector<1x25xbf16>, vector<25x64xbf16>, vector<1x64xf32> -> vector<1x64xf32>
    %477 = arith.truncf %476 : vector<1x64xf32> to vector<1x64xbf16>
    %c28_433 = arith.constant 28 : index
    %c0_434 = arith.constant 0 : index
    %c0_435 = arith.constant 0 : index
    %478 = vector.load %arg12[%c28_433, %c0_434, %c0_435] : memref<36x64x128xbf16, #tpu.memory_space<vmem>>, vector<1x64x128xbf16>
    %479 = vector.shape_cast %478 : vector<1x64x128xbf16> to vector<64x128xbf16>
    %cst_436 = arith.constant dense<0.000000e+00> : vector<1x128xf32>
    %480 = tpu.matmul %477, %479, %cst_436 {dimension_numbers = #tpu.dot_dimension_numbers<[1], [0], [0], [1], [0, 0, 1, 1], [], []>} : vector<1x64xbf16>, vector<64x128xbf16>, vector<1x128xf32> -> vector<1x128xf32>
    %481 = arith.addf %473, %480 : vector<1x128xf32>
    %c29 = arith.constant 29 : index
    %c0_437 = arith.constant 0 : index
    %c0_438 = arith.constant 0 : index
    %482 = vector.load %arg11[%c29, %c0_437, %c0_438] : memref<36x1x25xbf16, #tpu.memory_space<vmem>>, vector<1x1x25xbf16>
    %483 = vector.shape_cast %482 : vector<1x1x25xbf16> to vector<1x25xbf16>
    %cst_439 = arith.constant dense<0.000000e+00> : vector<1x64xf32>
    %484 = tpu.matmul %483, %248, %cst_439 {dimension_numbers = #tpu.dot_dimension_numbers<[1], [0], [0], [1], [0, 0, 1, 1], [], []>} : vector<1x25xbf16>, vector<25x64xbf16>, vector<1x64xf32> -> vector<1x64xf32>
    %485 = arith.truncf %484 : vector<1x64xf32> to vector<1x64xbf16>
    %c29_440 = arith.constant 29 : index
    %c0_441 = arith.constant 0 : index
    %c0_442 = arith.constant 0 : index
    %486 = vector.load %arg12[%c29_440, %c0_441, %c0_442] : memref<36x64x128xbf16, #tpu.memory_space<vmem>>, vector<1x64x128xbf16>
    %487 = vector.shape_cast %486 : vector<1x64x128xbf16> to vector<64x128xbf16>
    %cst_443 = arith.constant dense<0.000000e+00> : vector<1x128xf32>
    %488 = tpu.matmul %485, %487, %cst_443 {dimension_numbers = #tpu.dot_dimension_numbers<[1], [0], [0], [1], [0, 0, 1, 1], [], []>} : vector<1x64xbf16>, vector<64x128xbf16>, vector<1x128xf32> -> vector<1x128xf32>
    %489 = arith.addf %481, %488 : vector<1x128xf32>
    %c30 = arith.constant 30 : index
    %c0_444 = arith.constant 0 : index
    %c0_445 = arith.constant 0 : index
    %490 = vector.load %arg11[%c30, %c0_444, %c0_445] : memref<36x1x25xbf16, #tpu.memory_space<vmem>>, vector<1x1x25xbf16>
    %491 = vector.shape_cast %490 : vector<1x1x25xbf16> to vector<1x25xbf16>
    %cst_446 = arith.constant dense<0.000000e+00> : vector<1x64xf32>
    %492 = tpu.matmul %491, %248, %cst_446 {dimension_numbers = #tpu.dot_dimension_numbers<[1], [0], [0], [1], [0, 0, 1, 1], [], []>} : vector<1x25xbf16>, vector<25x64xbf16>, vector<1x64xf32> -> vector<1x64xf32>
    %493 = arith.truncf %492 : vector<1x64xf32> to vector<1x64xbf16>
    %c30_447 = arith.constant 30 : index
    %c0_448 = arith.constant 0 : index
    %c0_449 = arith.constant 0 : index
    %494 = vector.load %arg12[%c30_447, %c0_448, %c0_449] : memref<36x64x128xbf16, #tpu.memory_space<vmem>>, vector<1x64x128xbf16>
    %495 = vector.shape_cast %494 : vector<1x64x128xbf16> to vector<64x128xbf16>
    %cst_450 = arith.constant dense<0.000000e+00> : vector<1x128xf32>
    %496 = tpu.matmul %493, %495, %cst_450 {dimension_numbers = #tpu.dot_dimension_numbers<[1], [0], [0], [1], [0, 0, 1, 1], [], []>} : vector<1x64xbf16>, vector<64x128xbf16>, vector<1x128xf32> -> vector<1x128xf32>
    %497 = arith.addf %489, %496 : vector<1x128xf32>
    %c31 = arith.constant 31 : index
    %c0_451 = arith.constant 0 : index
    %c0_452 = arith.constant 0 : index
    %498 = vector.load %arg11[%c31, %c0_451, %c0_452] : memref<36x1x25xbf16, #tpu.memory_space<vmem>>, vector<1x1x25xbf16>
    %499 = vector.shape_cast %498 : vector<1x1x25xbf16> to vector<1x25xbf16>
    %cst_453 = arith.constant dense<0.000000e+00> : vector<1x64xf32>
    %500 = tpu.matmul %499, %248, %cst_453 {dimension_numbers = #tpu.dot_dimension_numbers<[1], [0], [0], [1], [0, 0, 1, 1], [], []>} : vector<1x25xbf16>, vector<25x64xbf16>, vector<1x64xf32> -> vector<1x64xf32>
    %501 = arith.truncf %500 : vector<1x64xf32> to vector<1x64xbf16>
    %c31_454 = arith.constant 31 : index
    %c0_455 = arith.constant 0 : index
    %c0_456 = arith.constant 0 : index
    %502 = vector.load %arg12[%c31_454, %c0_455, %c0_456] : memref<36x64x128xbf16, #tpu.memory_space<vmem>>, vector<1x64x128xbf16>
    %503 = vector.shape_cast %502 : vector<1x64x128xbf16> to vector<64x128xbf16>
    %cst_457 = arith.constant dense<0.000000e+00> : vector<1x128xf32>
    %504 = tpu.matmul %501, %503, %cst_457 {dimension_numbers = #tpu.dot_dimension_numbers<[1], [0], [0], [1], [0, 0, 1, 1], [], []>} : vector<1x64xbf16>, vector<64x128xbf16>, vector<1x128xf32> -> vector<1x128xf32>
    %505 = arith.addf %497, %504 : vector<1x128xf32>
    %c32 = arith.constant 32 : index
    %c0_458 = arith.constant 0 : index
    %c0_459 = arith.constant 0 : index
    %506 = vector.load %arg11[%c32, %c0_458, %c0_459] : memref<36x1x25xbf16, #tpu.memory_space<vmem>>, vector<1x1x25xbf16>
    %507 = vector.shape_cast %506 : vector<1x1x25xbf16> to vector<1x25xbf16>
    %cst_460 = arith.constant dense<0.000000e+00> : vector<1x64xf32>
    %508 = tpu.matmul %507, %248, %cst_460 {dimension_numbers = #tpu.dot_dimension_numbers<[1], [0], [0], [1], [0, 0, 1, 1], [], []>} : vector<1x25xbf16>, vector<25x64xbf16>, vector<1x64xf32> -> vector<1x64xf32>
    %509 = arith.truncf %508 : vector<1x64xf32> to vector<1x64xbf16>
    %c32_461 = arith.constant 32 : index
    %c0_462 = arith.constant 0 : index
    %c0_463 = arith.constant 0 : index
    %510 = vector.load %arg12[%c32_461, %c0_462, %c0_463] : memref<36x64x128xbf16, #tpu.memory_space<vmem>>, vector<1x64x128xbf16>
    %511 = vector.shape_cast %510 : vector<1x64x128xbf16> to vector<64x128xbf16>
    %cst_464 = arith.constant dense<0.000000e+00> : vector<1x128xf32>
    %512 = tpu.matmul %509, %511, %cst_464 {dimension_numbers = #tpu.dot_dimension_numbers<[1], [0], [0], [1], [0, 0, 1, 1], [], []>} : vector<1x64xbf16>, vector<64x128xbf16>, vector<1x128xf32> -> vector<1x128xf32>
    %513 = arith.addf %505, %512 : vector<1x128xf32>
    %c33 = arith.constant 33 : index
    %c0_465 = arith.constant 0 : index
    %c0_466 = arith.constant 0 : index
    %514 = vector.load %arg11[%c33, %c0_465, %c0_466] : memref<36x1x25xbf16, #tpu.memory_space<vmem>>, vector<1x1x25xbf16>
    %515 = vector.shape_cast %514 : vector<1x1x25xbf16> to vector<1x25xbf16>
    %cst_467 = arith.constant dense<0.000000e+00> : vector<1x64xf32>
    %516 = tpu.matmul %515, %248, %cst_467 {dimension_numbers = #tpu.dot_dimension_numbers<[1], [0], [0], [1], [0, 0, 1, 1], [], []>} : vector<1x25xbf16>, vector<25x64xbf16>, vector<1x64xf32> -> vector<1x64xf32>
    %517 = arith.truncf %516 : vector<1x64xf32> to vector<1x64xbf16>
    %c33_468 = arith.constant 33 : index
    %c0_469 = arith.constant 0 : index
    %c0_470 = arith.constant 0 : index
    %518 = vector.load %arg12[%c33_468, %c0_469, %c0_470] : memref<36x64x128xbf16, #tpu.memory_space<vmem>>, vector<1x64x128xbf16>
    %519 = vector.shape_cast %518 : vector<1x64x128xbf16> to vector<64x128xbf16>
    %cst_471 = arith.constant dense<0.000000e+00> : vector<1x128xf32>
    %520 = tpu.matmul %517, %519, %cst_471 {dimension_numbers = #tpu.dot_dimension_numbers<[1], [0], [0], [1], [0, 0, 1, 1], [], []>} : vector<1x64xbf16>, vector<64x128xbf16>, vector<1x128xf32> -> vector<1x128xf32>
    %521 = arith.addf %513, %520 : vector<1x128xf32>
    %c34 = arith.constant 34 : index
    %c0_472 = arith.constant 0 : index
    %c0_473 = arith.constant 0 : index
    %522 = vector.load %arg11[%c34, %c0_472, %c0_473] : memref<36x1x25xbf16, #tpu.memory_space<vmem>>, vector<1x1x25xbf16>
    %523 = vector.shape_cast %522 : vector<1x1x25xbf16> to vector<1x25xbf16>
    %cst_474 = arith.constant dense<0.000000e+00> : vector<1x64xf32>
    %524 = tpu.matmul %523, %248, %cst_474 {dimension_numbers = #tpu.dot_dimension_numbers<[1], [0], [0], [1], [0, 0, 1, 1], [], []>} : vector<1x25xbf16>, vector<25x64xbf16>, vector<1x64xf32> -> vector<1x64xf32>
    %525 = arith.truncf %524 : vector<1x64xf32> to vector<1x64xbf16>
    %c34_475 = arith.constant 34 : index
    %c0_476 = arith.constant 0 : index
    %c0_477 = arith.constant 0 : index
    %526 = vector.load %arg12[%c34_475, %c0_476, %c0_477] : memref<36x64x128xbf16, #tpu.memory_space<vmem>>, vector<1x64x128xbf16>
    %527 = vector.shape_cast %526 : vector<1x64x128xbf16> to vector<64x128xbf16>
    %cst_478 = arith.constant dense<0.000000e+00> : vector<1x128xf32>
    %528 = tpu.matmul %525, %527, %cst_478 {dimension_numbers = #tpu.dot_dimension_numbers<[1], [0], [0], [1], [0, 0, 1, 1], [], []>} : vector<1x64xbf16>, vector<64x128xbf16>, vector<1x128xf32> -> vector<1x128xf32>
    %529 = arith.addf %521, %528 : vector<1x128xf32>
    %c35 = arith.constant 35 : index
    %c0_479 = arith.constant 0 : index
    %c0_480 = arith.constant 0 : index
    %530 = vector.load %arg11[%c35, %c0_479, %c0_480] : memref<36x1x25xbf16, #tpu.memory_space<vmem>>, vector<1x1x25xbf16>
    %531 = vector.shape_cast %530 : vector<1x1x25xbf16> to vector<1x25xbf16>
    %cst_481 = arith.constant dense<0.000000e+00> : vector<1x64xf32>
    %532 = tpu.matmul %531, %248, %cst_481 {dimension_numbers = #tpu.dot_dimension_numbers<[1], [0], [0], [1], [0, 0, 1, 1], [], []>} : vector<1x25xbf16>, vector<25x64xbf16>, vector<1x64xf32> -> vector<1x64xf32>
    %533 = arith.truncf %532 : vector<1x64xf32> to vector<1x64xbf16>
    %c35_482 = arith.constant 35 : index
    %c0_483 = arith.constant 0 : index
    %c0_484 = arith.constant 0 : index
    %534 = vector.load %arg12[%c35_482, %c0_483, %c0_484] : memref<36x64x128xbf16, #tpu.memory_space<vmem>>, vector<1x64x128xbf16>
    %535 = vector.shape_cast %534 : vector<1x64x128xbf16> to vector<64x128xbf16>
    %cst_485 = arith.constant dense<0.000000e+00> : vector<1x128xf32>
    %536 = tpu.matmul %533, %535, %cst_485 {dimension_numbers = #tpu.dot_dimension_numbers<[1], [0], [0], [1], [0, 0, 1, 1], [], []>} : vector<1x64xbf16>, vector<64x128xbf16>, vector<1x128xf32> -> vector<1x128xf32>
    %537 = arith.addf %529, %536 : vector<1x128xf32>
    %c0_486 = arith.constant 0 : index
    %c0_487 = arith.constant 0 : index
    %538 = vector.load %arg13[%c0_486, %c0_487] : memref<1x128xf32, #tpu.memory_space<vmem>>, vector<1x128xf32>
    %539 = arith.addf %537, %538 : vector<1x128xf32>
    %cst_488 = arith.constant 0.000000e+00 : f32
    %540 = vector.broadcast %cst_488 : f32 to vector<1x128xf32>
    %541 = arith.cmpf oge, %539, %540 : vector<1x128xf32>
    %cst_489 = arith.constant 0.00999999977 : f32
    %542 = vector.broadcast %cst_489 : f32 to vector<1x128xf32>
    %543 = arith.mulf %542, %539 : vector<1x128xf32>
    %544 = arith.select %541, %539, %543 : vector<1x128xi1>, vector<1x128xf32>
    %c0_490 = arith.constant 0 : index
    %c0_491 = arith.constant 0 : index
    %c0_492 = arith.constant 0 : index
    %545 = vector.load %arg14[%c0_490, %c0_491, %c0_492] : memref<1x1x128xf32, #tpu.memory_space<vmem>>, vector<1x1x128xf32>
    %546 = vector.shape_cast %545 : vector<1x1x128xf32> to vector<1x128xf32>
    %547 = vector.shape_cast %544 : vector<1x128xf32> to vector<1x1x128xf32>
    tpu.vector_store %arg14[%c0_490, %c0_491, %c0_492], %547 {strides = array<i32>} : memref<1x1x128xf32, #tpu.memory_space<vmem>>, vector<1x1x128xf32>,
    return
  }
  func.func @transform_0(%arg0: i32) -> (i32, i32, i32) {
    %c0_i32 = arith.constant 0 : i32
    %c0_i32_0 = arith.constant 0 : i32
    %c0_i32_1 = arith.constant 0 : i32
    return %arg0, %c0_i32, %c0_i32_0 : i32, i32, i32
  }
  func.func @transform_1(%arg0: i32) -> (i32, i32, i32) {
    %c0_i32 = arith.constant 0 : i32
    %c0_i32_0 = arith.constant 0 : i32
    %c0_i32_1 = arith.constant 0 : i32
    %c0_i32_2 = arith.constant 0 : i32
    return %c0_i32, %c0_i32_0, %c0_i32_1 : i32, i32, i32
  }
  func.func @transform_2(%arg0: i32) -> (i32, i32, i32) {
    %c0_i32 = arith.constant 0 : i32
    %c0_i32_0 = arith.constant 0 : i32
    %c0_i32_1 = arith.constant 0 : i32
    %c0_i32_2 = arith.constant 0 : i32
    return %c0_i32, %c0_i32_0, %c0_i32_1 : i32, i32, i32
  }
  func.func @transform_3(%arg0: i32) -> (i32, i32) {
    %c0_i32 = arith.constant 0 : i32
    %c0_i32_0 = arith.constant 0 : i32
    %c0_i32_1 = arith.constant 0 : i32
    return %c0_i32, %c0_i32_0 : i32, i32
  }
  func.func @transform_4(%arg0: i32) -> (i32, i32, i32) {
    %c0_i32 = arith.constant 0 : i32
    %c0_i32_0 = arith.constant 0 : i32
    %c0_i32_1 = arith.constant 0 : i32
    %c0_i32_2 = arith.constant 0 : i32
    return %c0_i32, %c0_i32_0, %c0_i32_1 : i32, i32, i32
  }
  func.func @transform_5(%arg0: i32) -> (i32, i32, i32) {
    %c0_i32 = arith.constant 0 : i32
    %c0_i32_0 = arith.constant 0 : i32
    %c0_i32_1 = arith.constant 0 : i32
    %c0_i32_2 = arith.constant 0 : i32
    return %c0_i32, %c0_i32_0, %c0_i32_1 : i32, i32, i32
  }
  func.func @transform_6(%arg0: i32) -> (i32, i32) {
    %c0_i32 = arith.constant 0 : i32
    %c0_i32_0 = arith.constant 0 : i32
    %c0_i32_1 = arith.constant 0 : i32
    return %c0_i32, %c0_i32_0 : i32, i32
  }
  func.func @transform_7(%arg0: i32) -> (i32, i32, i32) {
    %c0_i32 = arith.constant 0 : i32
    %c0_i32_0 = arith.constant 0 : i32
    %c0_i32_1 = arith.constant 0 : i32
    %c0_i32_2 = arith.constant 0 : i32
    return %c0_i32, %c0_i32_0, %c0_i32_1 : i32, i32, i32
  }
  func.func @transform_8(%arg0: i32) -> (i32, i32, i32) {
    %c0_i32 = arith.constant 0 : i32
    %c0_i32_0 = arith.constant 0 : i32
    %c0_i32_1 = arith.constant 0 : i32
    %c0_i32_2 = arith.constant 0 : i32
    return %c0_i32, %c0_i32_0, %c0_i32_1 : i32, i32, i32
  }
  func.func @transform_9(%arg0: i32) -> (i32, i32) {
    %c0_i32 = arith.constant 0 : i32
    %c0_i32_0 = arith.constant 0 : i32
    %c0_i32_1 = arith.constant 0 : i32
    return %c0_i32, %c0_i32_0 : i32, i32
  }
  func.func @transform_10(%arg0: i32) -> (i32, i32, i32) {
    %c0_i32 = arith.constant 0 : i32
    %c0_i32_0 = arith.constant 0 : i32
    %c0_i32_1 = arith.constant 0 : i32
    %c0_i32_2 = arith.constant 0 : i32
    return %c0_i32, %c0_i32_0, %c0_i32_1 : i32, i32, i32
  }
  func.func @transform_11(%arg0: i32) -> (i32, i32, i32) {
    %c0_i32 = arith.constant 0 : i32
    %c0_i32_0 = arith.constant 0 : i32
    %c0_i32_1 = arith.constant 0 : i32
    %c0_i32_2 = arith.constant 0 : i32
    return %c0_i32, %c0_i32_0, %c0_i32_1 : i32, i32, i32
  }
  func.func @transform_12(%arg0: i32) -> (i32, i32) {
    %c0_i32 = arith.constant 0 : i32
    %c0_i32_0 = arith.constant 0 : i32
    %c0_i32_1 = arith.constant 0 : i32
    return %c0_i32, %c0_i32_0 : i32, i32
  }
  func.func @transform_13(%arg0: i32) -> (i32, i32, i32) {
    %c0_i32 = arith.constant 0 : i32
    %c0_i32_0 = arith.constant 0 : i32
    %c0_i32_1 = arith.constant 0 : i32
    return %arg0, %c0_i32, %c0_i32_0 : i32, i32, i32
  }
}

</mosaic_0001>

<bundles_post_ra>
// kernel: convolutional_encoder.1
= control target key start
LH: loop header
LB: loop body
LE: loop exit
PB: predicated region body
PF: predicated region fallthrough
CT: control target
= control target key end

     0   :  { %s21443_s0 = inlined_call_operand.vmem [shape: f32[2,256,8], index: 0, kind: input, shape index: {}]   ;;  %s21444_s1 = inlined_call_operand.vmem [shape: bf16[9,196,256], index: 1, kind: input, shape index: {}]   ;;  %s21445_s2 = inlined_call_operand.vmem [shape: bf16[9,8,16], index: 2, kind: input, shape index: {}]   ;;  %s21446_s3 = inlined_call_operand.vmem [shape: f32[1,16], index: 3, kind: input, shape index: {}]   ;;  %s21447_s4 = inlined_call_operand.vmem [shape: bf16[9,144,196], index: 4, kind: input, shape index: {}]   ;;  %s21448_s5 = inlined_call_operand.vmem [shape: bf16[9,16,32], index: 5, kind: input, shape index: {}]   ;;  %s21449_s6 = inlined_call_operand.vmem [shape: f32[1,32], index: 6, kind: input, shape index: {}]   ;;  %s21450_s7 = inlined_call_operand.vmem [shape: bf16[9,25,144], index: 7, kind: input, shape index: {}]   ;;  %s21451_s8 = inlined_call_operand.vmem [shape: bf16[9,32,64], index: 8, kind: input, shape index: {}]   ;;  %s21452_s9 = inlined_call_operand.vmem [shape: f32[1,64], index: 9, kind: input, shape index: {}]   ;;  %s21453_s10 = inlined_call_operand.vmem [shape: bf16[36,1,25], index: 10, kind: input, shape index: {}]   ;;  %s21454_s11 = inlined_call_operand.vmem [shape: bf16[36,64,128], index: 11, kind: input, shape index: {}]   ;;  %s21455_s12 = inlined_call_operand.vmem [shape: f32[1,128], index: 12, kind: input, shape index: {}]   ;;  %s21456_s13 = inlined_call_operand.hbm [shape: f32[2,1,128], index: 13, kind: output, shape index: {}]  }
   0x1   :  { %21460 = sst [smem:[#allocation11_spill]] %s21443_s0 }
   0x2   :  { %18 = vsyncpa [#allocation3], 0 }
   0x3   :  { %20 = vsyncpa [#allocation3 + $0x1], 0  ;;  %s15717_s25 = smov 0   ;;  %s15719_s26 = smov 0  }
   0x4   :  { %s15721_s27 = smov 0   ;;  %s15723_s28 = smov 0  }
   0x5 LB: > { %21461 = sst [smem:[#allocation5_spill]] %s15640_s27  ;;  %s15738_s29 = sadd.s32 4294967295, %s15644_s28   ;;  %s15644_s28 = sphi %s15723_s28, %s21479_s28   ;;  %s15640_s27 = sphi %s15721_s27, %s21481_s27   ;;  %s15636_s26 = sphi %s15719_s26, %s21483_s26   ;;  %s15632_s25 = sphi %s15717_s25, %s21482_s25  }
   0x6   : > { %s11471_s30 = sadd.s32 4294967294, %s15644_s28   ;;  %s15742_s14 = sadd.s32 1, %s15644_s28  }
   0x7   : > { %21462 = sst [smem:[#allocation6_spill]] %s15742_s14  ;;  %s311_s15 = sadd.s32 1, %s15640_s27 }
   0x8   : > { %s308_s16 = ssub.s32 %s15644_s28, %s15742_s14  ;;  %p321_p0 = scmp.ne.s32.totalorder %s15640_s27, %s15636_s26 }
   0x9   : > { %p309_p1 = scmp.eq.s32.totalorder %s308_s16, 0  ;;  %p322_p2 = scmp.eq.s32.totalorder %s15738_s29, 1 }
   0xa   : > { %p327_p3 = scmp.ne.s32.totalorder %s15636_s26, %s15632_s25  ;;  %p328_p4 = scmp.eq.s32.totalorder %s11471_s30, 1 }
   0xb   : > { %s15753_s17 = scalar_select %p309_p1, %s15640_s27, %s311_s15  }
   0xc   : > { %p15755_p5 = por %p322_p2, %p321_p0  ;;  %p15759_p6 = por %p328_p4, %p327_p3 }
   0xd   : > { %21463 = sst [smem:[#allocation7_spill]] %s15753_s17  ;;  %p11474_p7 = scmp.ge.s32.totalorder %s15644_s28, 1 }
   0xe   : > { %p390_p8 = scmp.lt.s32.totalorder %s15644_s28, 3 }
  0x10   : > { %p391_p9 = pnand %p11474_p7, %p390_p8 }
  0x12   : > { %394 = sbr.rel (%p391_p9) target bundleno = 5057 (0x13c1), region = 72 }
  0x17   : > { %p433_p10 = scmp.lt.s32.totalorder %s15738_s29, 1  ;;  %s21466_s0 = sld [smem:[#allocation11_spill]]  ;;  %v11479_v46 = vld [vmem:[%s21444_s1] sm:$0xf]  ;;  %v14955_v48 = vld [vmem:[%s21444_s1 + $0x4] sm:$0xf0] }
  0x18   : > { %v11600_v49 = vld [vmem:[%s21444_s1 + $0xc8] sm:$0xf]  ;;  %v14979_v50 = vld [vmem:[%s21444_s1 + $0xcc] sm:$0xf0]  ;;  %v14954_v52 = vld [vmem:[%s21444_s1 + $0x4] sm:$0xf]  ;;  %v11480_v54 = vor.u32 %v14955_v48, %v11479_v46 }
  0x19   : > { %s434_s20 = scalar_select %p433_p10, %s15738_s29, 1  ;;  %v11481_v53 = vld [vmem:[%s21444_s1 + $0x8] sm:$0xf0]  ;;  %v11601_v55 = vor.u32 %v14979_v50, %v11600_v49  ;;  %v11487_v57 = vld [vmem:[%s21444_s1 + $0x10] sm:$0xf]  ;;  %vm1153_vm0 = vcmask 1043456  }
  0x1a   : > { %v11484_v56 = vor.u32 %v14954_v52, %v11481_v53  ;;  %v14957_v58 = vld [vmem:[%s21444_s1 + $0x14] sm:$0xf0]  ;;  %v14981_v60 = vld [vmem:[%s21444_s1 + $0xdc] sm:$0xf0]  ;;  %v14956_v61 = vld [vmem:[%s21444_s1 + $0x14] sm:$0xf] }
  0x1b   : > { %s14953_s21 = sshll.u32 %s434_s20, 8  ;;  %v11608_v59 = vld [vmem:[%s21444_s1 + $0xd8] sm:$0xf]  ;;  %v11489_v62 = vld [vmem:[%s21444_s1 + $0x18] sm:$0xf0]  ;;  %v11488_v63 = vor.u32 %v14957_v58, %v11487_v57  ;;  %vm1113_vm1 = vcmask 64512   ;;  %s11412_s20 = scalar_lea.hbm %s21456_s13, %s15738_s29 }
  0x1c   : > { %v14987_v46 = vld [vmem:[%s21444_s1 + $0x10c] sm:$0xf0]  ;;  %v14962_v48 = vld [vmem:[%s21444_s1 + $0x44] sm:$0xf]  ;;  %v11513_v49 = vld [vmem:[%s21444_s1 + $0x48] sm:$0xf0] }
  0x1d   : > { %s15770_s24 = scalar_lea.vmem %s21466_s0, %s14953_s21  ;;  %v11516_v53 = vor.u32 %v14962_v48, %v11513_v49  ;;  %v11519_v57 = vld [vmem:[%s21444_s1 + $0x50] sm:$0xf]  ;;  %v14965_v58 = vld [vmem:[%s21444_s1 + $0x54] sm:$0xf0]  ;;  %v14970_v48 = vld [vmem:[%s21444_s1 + $0x84] sm:$0xf] }
  0x1e   : > { %v453_v0 = vld [vmem:[%s15770_s24 + $0x70] sm:$0xff]  ;;  %v454_v1 = vld [vmem:[%s15770_s24 + $0x78] sm:$0xff]  ;;  %v451_v5 = vld [vmem:[%s15770_s24 + $0x60] sm:$0xff]  ;;  %s431_s0 = sand.u32 1, %s15636_s26   ;;  %s11416_s23 = sshll.u32 %s11412_s20, 4  ;;  %s11417_s23 = int_to_ptr.hbm [resolvable:$true] %s11416_s23 }
  0x1f   : > { %v469_v2 = vld [vmem:[%s15770_s24 + $0xf0] sm:$0xff]  ;;  %v15775_v3 = vpack.c.bf16 %v454_v1, %v453_v0  ;;  %v470_v4 = vld [vmem:[%s15770_s24 + $0xf8] sm:$0xff]  ;;  %v452_v6 = vld [vmem:[%s15770_s24 + $0x68] sm:$0xff]  ;;  %v11609_v0 = vor.u32 %v14981_v60, %v11608_v59  ;;  %v11492_v1 = vor.u32 %v14956_v61, %v11489_v62  ;;  %s432_s21 = scalar_lea.vmem [#allocation2], %s431_s0  ;;  %s15596_s30 = sshra.s32 %s11417_s23, 4  ;;  %s15597_s30 = int_to_ptr.hbm [resolvable:$true] %s15596_s30 }
  0x20   : > { %v15780_v7 = vpack.c.bf16 %v470_v4, %v469_v2  ;;  %v467_v8 = vld [vmem:[%s15770_s24 + $0xe0] sm:$0xff]  ;;  %v468_v9 = vld [vmem:[%s15770_s24 + $0xe8] sm:$0xff]  ;;  %v15786_v10 = vpack.c.bf16 %v452_v6, %v451_v5  ;;  %v449_v12 = vld [vmem:[%s15770_s24 + $0x50] sm:$0xff]  ;;  %s11414_s22 = sshll.u32 %s432_s21, 4  ;;  %s15598_s15 = scalar_lea.hbm %s15597_s30, 1  ;;  %s11415_s22 = int_to_ptr.vmem [resolvable:$true] %s11414_s22 }
  0x21   : > { %639 = vmatpush.bf16.msra.mxu0 %v15775_v3  ;;  %952 = vmatpush.bf16.msra.mxu2 %v15775_v3  ;;  %v15789_v11 = vpack.c.bf16 %v468_v9, %v467_v8  ;;  %v450_v13 = vld [vmem:[%s15770_s24 + $0x58] sm:$0xff]  ;;  %v465_v14 = vld [vmem:[%s15770_s24 + $0xd0] sm:$0xff]  ;;  %v447_v18 = vld [vmem:[%s15770_s24 + $0x40] sm:$0xff]  ;;  %p15599_p11 = scmp.ne.s32.totalorder %s15597_s30, %s15598_s15  ;;  %s15602_s16 = scalar_lea.hbm %s21456_s13, 2 }
  0x22   : > { %712 = vmatpush.bf16.msra.mxu1 %v15780_v7  ;;  %1025 = vmatpush.bf16.msra.mxu3 %v15780_v7  ;;  %v466_v15 = vld [vmem:[%s15770_s24 + $0xd8] sm:$0xff]  ;;  %v15798_v16 = vpack.c.bf16 %v450_v13, %v449_v12  ;;  %v448_v19 = vld [vmem:[%s15770_s24 + $0x48] sm:$0xff]  ;;  %v463_v20 = vld [vmem:[%s15770_s24 + $0xc0] sm:$0xff]  ;;  %p15603_p0 = scmp.lt.s32.totalorder %s15597_s30, %s21456_s13  ;;  %p15604_p1 = scmp.lt.s32.totalorder %s15602_s16, %s15598_s15 }
  0x23   : > { %v15801_v17 = vpack.c.bf16 %v466_v15, %v465_v14  ;;  %v464_v21 = vld [vmem:[%s15770_s24 + $0xc8] sm:$0xff]  ;;  %v15810_v22 = vpack.c.bf16 %v448_v19, %v447_v18  ;;  %v445_v24 = vld [vmem:[%s15770_s24 + $0x30] sm:$0xff]  ;;  %v446_v25 = vld [vmem:[%s15770_s24 + $0x38] sm:$0xff]  ;;  %p15600_p12 = pnand %p15599_p11, %p15755_p5 }
  0x24   : > { %v15813_v23 = vpack.c.bf16 %v464_v21, %v463_v20  ;;  %v461_v26 = vld [vmem:[%s15770_s24 + $0xb0] sm:$0xff]  ;;  %v462_v27 = vld [vmem:[%s15770_s24 + $0xb8] sm:$0xff]  ;;  %v15822_v28 = vpack.c.bf16 %v446_v25, %v445_v24  ;;  %v443_v30 = vld [vmem:[%s15770_s24 + $0x20] sm:$0xff]  ;;  %p15605_p2 = por %p15604_p1, %p15603_p0 }
  0x25   : > { %640 = vmatpush.bf16.msra.mxu0 %v15786_v10  ;;  %953 = vmatpush.bf16.msra.mxu2 %v15786_v10  ;;  %v15825_v29 = vpack.c.bf16 %v462_v27, %v461_v26  ;;  %v444_v31 = vld [vmem:[%s15770_s24 + $0x28] sm:$0xff]  ;;  %v459_v32 = vld [vmem:[%s15770_s24 + $0xa0] sm:$0xff]  ;;  %v441_v36 = vld [vmem:[%s15770_s24 + $0x10] sm:$0xff]  ;;  %p15601_p13 = pneg %p15600_p12 }
  0x26   : > { %713 = vmatpush.bf16.msra.mxu1 %v15789_v11  ;;  %1026 = vmatpush.bf16.msra.mxu3 %v15789_v11  ;;  %v460_v33 = vld [vmem:[%s15770_s24 + $0xa8] sm:$0xff]  ;;  %v15834_v34 = vpack.c.bf16 %v444_v31, %v443_v30  ;;  %v442_v37 = vld [vmem:[%s15770_s24 + $0x18] sm:$0xff]  ;;  %v457_v38 = vld [vmem:[%s15770_s24 + $0x90] sm:$0xff] }
  0x27   : > { %v15837_v35 = vpack.c.bf16 %v460_v33, %v459_v32  ;;  %v458_v39 = vld [vmem:[%s15770_s24 + $0x98] sm:$0xff]  ;;  %v15846_v40 = vpack.c.bf16 %v442_v37, %v441_v36  ;;  %v439_v42 = vld [vmem:[%s15770_s24] sm:$0xff]  ;;  %v440_v43 = vld [vmem:[%s15770_s24 + $0x8] sm:$0xff]  ;;  %p15606_p3 = pnand %p15605_p2, %p15601_p13 }
  0x28   : > { %v15849_v41 = vpack.c.bf16 %v458_v39, %v457_v38  ;;  %v455_v44 = vld [vmem:[%s15770_s24 + $0x80] sm:$0xff]  ;;  %v456_v45 = vld [vmem:[%s15770_s24 + $0x88] sm:$0xff]  ;;  %v15861_v47 = vpack.c.bf16 %v440_v43, %v439_v42  ;;  %v11602_v4 = vld [vmem:[%s21444_s1 + $0xd0] sm:$0xf0]  ;;  %s11404_s24 = scalar_lea.sflag [#allocation3], %s431_s0 }
  0x29   : > { %641 = vmatpush.bf16.msra.mxu0 %v15798_v16  ;;  %954 = vmatpush.bf16.msra.mxu2 %v15798_v16  ;;  %v15873_v51 = vpack.c.bf16 %v456_v45, %v455_v44  ;;  %v14978_v2 = vld [vmem:[%s21444_s1 + $0xcc] sm:$0xf]  ;;  %v11495_v6 = vld [vmem:[%s21444_s1 + $0x20] sm:$0xf]  ;;  %v14959_v8 = vld [vmem:[%s21444_s1 + $0x24] sm:$0xf0] }
  0x2a   : > { %714 = vmatpush.bf16.msra.mxu1 %v15801_v17  ;;  %1027 = vmatpush.bf16.msra.mxu3 %v15801_v17  ;;  %v11605_v5 = vor.u32 %v14978_v2, %v11602_v4  ;;  %v11616_v9 = vld [vmem:[%s21444_s1 + $0xe8] sm:$0xf]  ;;  %v14983_v12 = vld [vmem:[%s21444_s1 + $0xec] sm:$0xf0]  ;;  %v14958_v13 = vld [vmem:[%s21444_s1 + $0x24] sm:$0xf]  ;;  %v11496_v15 = vor.u32 %v14959_v8, %v11495_v6 }
  0x2b   : > { %v11497_v14 = vld [vmem:[%s21444_s1 + $0x28] sm:$0xf0]  ;;  %v11617_v18 = vor.u32 %v14983_v12, %v11616_v9  ;;  %v14980_v20 = vld [vmem:[%s21444_s1 + $0xdc] sm:$0xf]  ;;  %v11610_v21 = vld [vmem:[%s21444_s1 + $0xe0] sm:$0xf0] }
  0x2c   : > { %v11500_v19 = vor.u32 %v14958_v13, %v11497_v14  ;;  %v11613_v24 = vor.u32 %v14980_v20, %v11610_v21  ;;  %v11503_v25 = vld [vmem:[%s21444_s1 + $0x30] sm:$0xf]  ;;  %v14961_v26 = vld [vmem:[%s21444_s1 + $0x34] sm:$0xf0]  ;;  %v14985_v30 = vld [vmem:[%s21444_s1 + $0xfc] sm:$0xf0] }
  0x2d   : > { %642 = vmatpush.bf16.msra.mxu0 %v15810_v22  ;;  %955 = vmatpush.bf16.msra.mxu2 %v15810_v22  ;;  %v11624_v27 = vld [vmem:[%s21444_s1 + $0xf8] sm:$0xf]  ;;  %v14960_v31 = vld [vmem:[%s21444_s1 + $0x34] sm:$0xf]  ;;  %v11505_v32 = vld [vmem:[%s21444_s1 + $0x38] sm:$0xf0]  ;;  %v11504_v33 = vor.u32 %v14961_v26, %v11503_v25 }
  0x2e   : > { %715 = vmatpush.bf16.msra.mxu1 %v15813_v23  ;;  %1028 = vmatpush.bf16.msra.mxu3 %v15813_v23  ;;  %v11625_v36 = vor.u32 %v14985_v30, %v11624_v27  ;;  %v11508_v37 = vor.u32 %v14960_v31, %v11505_v32  ;;  %v14982_v38 = vld [vmem:[%s21444_s1 + $0xec] sm:$0xf]  ;;  %v11618_v39 = vld [vmem:[%s21444_s1 + $0xf0] sm:$0xf0]  ;;  %v11511_v43 = vld [vmem:[%s21444_s1 + $0x40] sm:$0xf] }
  0x2f   : > { %v11621_v42 = vor.u32 %v14982_v38, %v11618_v39  ;;  %v14963_v44 = vld [vmem:[%s21444_s1 + $0x44] sm:$0xf0]  ;;  %v11640_v59 = vld [vmem:[%s21444_s1 + $0x118] sm:$0xf]  ;;  %v14989_v60 = vld [vmem:[%s21444_s1 + $0x11c] sm:$0xf0] }
  0x30   : > { %v11632_v45 = vld [vmem:[%s21444_s1 + $0x108] sm:$0xf]  ;;  %v11512_v50 = vor.u32 %v14963_v44, %v11511_v43  ;;  %v14964_v61 = vld [vmem:[%s21444_s1 + $0x54] sm:$0xf]  ;;  %v11521_v62 = vld [vmem:[%s21444_s1 + $0x58] sm:$0xf0] }
  0x31   : > { %643 = vmatpush.bf16.msra.mxu0 %v15822_v28  ;;  %956 = vmatpush.bf16.msra.mxu2 %v15822_v28  ;;  %v11633_v52 = vor.u32 %v14987_v46, %v11632_v45  ;;  %v14986_v2 = vld [vmem:[%s21444_s1 + $0x10c] sm:$0xf]  ;;  %v11634_v4 = vld [vmem:[%s21444_s1 + $0x110] sm:$0xf0]  ;;  %v11527_v6 = vld [vmem:[%s21444_s1 + $0x60] sm:$0xf] }
  0x32   : > { %716 = vmatpush.bf16.msra.mxu1 %v15825_v29  ;;  %1029 = vmatpush.bf16.msra.mxu3 %v15825_v29  ;;  %v14967_v8 = vld [vmem:[%s21444_s1 + $0x64] sm:$0xf0]  ;;  %v14991_v12 = vld [vmem:[%s21444_s1 + $0x12c] sm:$0xf0]  ;;  %v14966_v13 = vld [vmem:[%s21444_s1 + $0x64] sm:$0xf] }
  0x33   : > { %v11648_v9 = vld [vmem:[%s21444_s1 + $0x128] sm:$0xf]  ;;  %v11529_v14 = vld [vmem:[%s21444_s1 + $0x68] sm:$0xf0]  ;;  %v14988_v20 = vld [vmem:[%s21444_s1 + $0x11c] sm:$0xf] }
  0x34   : > { %v11642_v21 = vld [vmem:[%s21444_s1 + $0x120] sm:$0xf0]  ;;  %v11535_v25 = vld [vmem:[%s21444_s1 + $0x70] sm:$0xf]  ;;  %v14969_v26 = vld [vmem:[%s21444_s1 + $0x74] sm:$0xf0] }
  0x35   : > { %644 = vmatpush.bf16.msra.mxu0 %v15834_v34  ;;  %957 = vmatpush.bf16.msra.mxu2 %v15834_v34  ;;  %v11656_v27 = vld [vmem:[%s21444_s1 + $0x138] sm:$0xf]  ;;  %v14993_v30 = vld [vmem:[%s21444_s1 + $0x13c] sm:$0xf0]  ;;  %v14968_v31 = vld [vmem:[%s21444_s1 + $0x74] sm:$0xf] }
  0x36   : > { %717 = vmatpush.bf16.msra.mxu1 %v15837_v35  ;;  %1030 = vmatpush.bf16.msra.mxu3 %v15837_v35  ;;  %v11537_v32 = vld [vmem:[%s21444_s1 + $0x78] sm:$0xf0]  ;;  %v14990_v38 = vld [vmem:[%s21444_s1 + $0x12c] sm:$0xf]  ;;  %v11650_v39 = vld [vmem:[%s21444_s1 + $0x130] sm:$0xf0] }
  0x37   : > { %v11543_v43 = vld [vmem:[%s21444_s1 + $0x80] sm:$0xf]  ;;  %v14971_v44 = vld [vmem:[%s21444_s1 + $0x84] sm:$0xf0]  ;;  %v14995_v46 = vld [vmem:[%s21444_s1 + $0x14c] sm:$0xf0] }
  0x38   : > { %v11664_v45 = vld [vmem:[%s21444_s1 + $0x148] sm:$0xf]  ;;  %v11545_v49 = vld [vmem:[%s21444_s1 + $0x88] sm:$0xf0] }
  0x39   : > { %645 = vmatpush.bf16.msra.mxu0 %v15846_v40  ;;  %958 = vmatpush.bf16.msra.mxu2 %v15846_v40 }
  0x3a   : > { %718 = vmatpush.bf16.msra.mxu1 %v15849_v41  ;;  %1031 = vmatpush.bf16.msra.mxu3 %v15849_v41 }
  0x3d   : > { %646 = vmatpush.bf16.msra.mxu0 %v15861_v47  ;;  %959 = vmatpush.bf16.msra.mxu2 %v15861_v47 }
  0x3e   : > { %719 = vmatpush.bf16.msra.mxu1 %v15873_v51  ;;  %1032 = vmatpush.bf16.msra.mxu3 %v15873_v51 }
  0x40   : > { %647 = vmatmul.bf16.vlgmr.msra.gmra.mxu0 %v11480_v54  ;;  %960 = vmatmul.bf16.vlgmr.msra.gmra.mxu2 %v11601_v55  ;;  %v14984_v54 = vld [vmem:[%s21444_s1 + $0xfc] sm:$0xf]  ;;  %v11626_v55 = vld [vmem:[%s21444_s1 + $0x100] sm:$0xf0] }
  0x41   : > { %1498 = vmatpush.bf16.msrb.mxu2 %v15775_v3  ;;  %720 = vmatmul.bf16.vlgmr.msra.gmra.mxu1 %v11484_v56  ;;  %v11629_v56 = vor.u32 %v14984_v54, %v11626_v55  ;;  %v11548_v54 = vor.u32 %v14970_v48, %v11545_v49 }
  0x42   : > { %1571 = vmatpush.bf16.msrb.mxu3 %v15780_v7 }
  0x43   : > { %1033 = vmatmul.bf16.vlgmr.msra.gmra.mxu3 %v11605_v5  ;;  %v11637_v5 = vor.u32 %v14986_v2, %v11634_v4  ;;  %v14973_v2 = vld [vmem:[%s21444_s1 + $0x94] sm:$0xf0] }
  0x44   : > { %v11672_v4 = vld [vmem:[%s21444_s1 + $0x158] sm:$0xf] }
  0x45   : > { %1499 = vmatpush.bf16.msrb.mxu2 %v15786_v10 }
  0x46   : > { %1572 = vmatpush.bf16.msrb.mxu3 %v15789_v11 }
  0x49   : > { %1500 = vmatpush.bf16.msrb.mxu2 %v15798_v16 }
  0x4a   : > { %1573 = vmatpush.bf16.msrb.mxu3 %v15801_v17 }
  0x4d   : > { %1501 = vmatpush.bf16.msrb.mxu2 %v15810_v22 }
  0x4e   : > { %1574 = vmatpush.bf16.msrb.mxu3 %v15813_v23 }
  0x50   : > { %652 = vmatmul.bf16.gmra.mxu0 %v11488_v63  ;;  %965 = vmatmul.bf16.gmra.mxu2 %v11609_v0  ;;  %v11520_v63 = vor.u32 %v14965_v58, %v11519_v57  ;;  %v11641_v0 = vor.u32 %v14989_v60, %v11640_v59  ;;  %v14992_v57 = vld [vmem:[%s21444_s1 + $0x13c] sm:$0xf]  ;;  %v11658_v58 = vld [vmem:[%s21444_s1 + $0x140] sm:$0xf0] }
  0x51   : > { %1502 = vmatpush.bf16.msrb.mxu2 %v15822_v28  ;;  %725 = vmatmul.bf16.gmra.mxu1 %v11492_v1  ;;  %v11524_v1 = vor.u32 %v14964_v61, %v11521_v62  ;;  %v11661_v59 = vor.u32 %v14992_v57, %v11658_v58  ;;  %v14996_v58 = vld [vmem:[%s21444_s1 + $0x15c] sm:$0xf] }
  0x52   : > { %1575 = vmatpush.bf16.msrb.mxu3 %v15825_v29 }
  0x53   : > { %1038 = vmatmul.bf16.gmra.mxu3 %v11613_v24  ;;  %v11645_v24 = vor.u32 %v14988_v20, %v11642_v21  ;;  %v14994_v20 = vld [vmem:[%s21444_s1 + $0x14c] sm:$0xf]  ;;  %v11666_v21 = vld [vmem:[%s21444_s1 + $0x150] sm:$0xf0] }
  0x55   : > { %1503 = vmatpush.bf16.msrb.mxu2 %v15834_v34 }
  0x56   : > { %1576 = vmatpush.bf16.msrb.mxu3 %v15837_v35 }
  0x59   : > { %1504 = vmatpush.bf16.msrb.mxu2 %v15846_v40 }
  0x5a   : > { %1577 = vmatpush.bf16.msrb.mxu3 %v15849_v41 }
  0x5d   : > { %1505 = vmatpush.bf16.msrb.mxu2 %v15861_v47 }
  0x5e   : > { %1578 = vmatpush.bf16.msrb.mxu3 %v15873_v51 }
  0x60   : > { %657 = vmatmul.bf16.gmra.mxu0 %v11496_v15  ;;  %970 = vmatmul.bf16.gmra.mxu2 %v11617_v18  ;;  %v11528_v15 = vor.u32 %v14967_v8, %v11527_v6  ;;  %v11649_v18 = vor.u32 %v14991_v12, %v11648_v9  ;;  %v14972_v6 = vld [vmem:[%s21444_s1 + $0x94] sm:$0xf]  ;;  %v11553_v8 = vld [vmem:[%s21444_s1 + $0x98] sm:$0xf0] }
  0x61   : > { %2025 = vmatpush.bf16.msra.mxu2 %v15780_v7  ;;  %730 = vmatmul.bf16.gmra.mxu1 %v11500_v19  ;;  %v11532_v19 = vor.u32 %v14966_v13, %v11529_v14 }
  0x63   : > { %1043 = vmatmul.bf16.gmra.mxu3 %v11621_v42  ;;  %v11653_v42 = vor.u32 %v14990_v38, %v11650_v39  ;;  %v14975_v38 = vld [vmem:[%s21444_s1 + $0xa4] sm:$0xf0] }
  0x64   : > { %v11680_v39 = vld [vmem:[%s21444_s1 + $0x168] sm:$0xf] }
  0x65   : > { %2026 = vmatpush.bf16.msra.mxu2 %v15789_v11 }
  0x69   : > { %2027 = vmatpush.bf16.msra.mxu2 %v15801_v17 }
  0x6d   : > { %2028 = vmatpush.bf16.msra.mxu2 %v15813_v23 }
  0x70   : > { %662 = vmatmul.bf16.gmra.mxu0 %v11504_v33  ;;  %975 = vmatmul.bf16.gmra.mxu2 %v11625_v36  ;;  %v11536_v33 = vor.u32 %v14969_v26, %v11535_v25  ;;  %v11657_v36 = vor.u32 %v14993_v30, %v11656_v27  ;;  %v11669_v25 = vor.u32 %v14994_v20, %v11666_v21 }
  0x71   : > { %2029 = vmatpush.bf16.msra.mxu2 %v15825_v29  ;;  %735 = vmatmul.bf16.gmra.mxu1 %v11508_v37  ;;  %v11540_v37 = vor.u32 %v14968_v31, %v11537_v32 }
  0x73   : > { %1048 = vmatmul.bf16.gmra.mxu3 %v11629_v56 }
  0x75   : > { %2030 = vmatpush.bf16.msra.mxu2 %v15837_v35 }
  0x79   : > { %2031 = vmatpush.bf16.msra.mxu2 %v15849_v41 }
  0x7d   : > { %2032 = vmatpush.bf16.msra.mxu2 %v15873_v51 }
  0x80   : > { %667 = vmatmul.bf16.gmra.mxu0 %v11512_v50  ;;  %980 = vmatmul.bf16.gmra.mxu2 %v11633_v52  ;;  %v11544_v50 = vor.u32 %v14971_v44, %v11543_v43  ;;  %v11665_v52 = vor.u32 %v14995_v46, %v11664_v45  ;;  %v14974_v43 = vld [vmem:[%s21444_s1 + $0xa4] sm:$0xf]  ;;  %v11561_v44 = vld [vmem:[%s21444_s1 + $0xa8] sm:$0xf0] }
  0x81   : > { %740 = vmatmul.bf16.gmra.mxu1 %v11516_v53 }
  0x83   : > { %1053 = vmatmul.bf16.gmra.mxu3 %v11637_v5  ;;  %v14997_v5 = vld [vmem:[%s21444_s1 + $0x15c] sm:$0xf0] }
  0x84   : > { %v11673_v13 = vor.u32 %v14997_v5, %v11672_v4 }
  0x90   : > { %672 = vmatmul.bf16.gmra.mxu0 %v11520_v63  ;;  %985 = vmatmul.bf16.gmra.mxu2 %v11641_v0  ;;  %v11551_v0 = vld [vmem:[%s21444_s1 + $0x90] sm:$0xf] }
  0x91   : > { %745 = vmatmul.bf16.gmra.mxu1 %v11524_v1  ;;  %v11552_v12 = vor.u32 %v14973_v2, %v11551_v0 }
  0x93   : > { %1058 = vmatmul.bf16.gmra.mxu3 %v11645_v24  ;;  %v11694_v24 = vld [vmem:[%s21445_s2 + $0x4] sm:$0xf] }
  0x94   : > { %v1155_v26 = vsel %vm1153_vm0, %v11694_v24, 0  ;;  %v798_v24 = vld [vmem:[%s21445_s2] sm:$0xf] }
  0x95   : > { %1164 = vmatpush.bf16.msrb.mxu0 %v1155_v26 }
  0xa0   : > { %677 = vmatmul.bf16.gmra.mxu0 %v11528_v15  ;;  %990 = vmatmul.bf16.gmra.mxu2 %v11649_v18  ;;  %v11556_v15 = vor.u32 %v14972_v6, %v11553_v8  ;;  %v11567_v6 = vld [vmem:[%s21444_s1 + $0xb0] sm:$0xf] }
  0xa1   : > { %750 = vmatmul.bf16.gmra.mxu1 %v11532_v19 }
  0xa3   : > { %1063 = vmatmul.bf16.gmra.mxu3 %v11653_v42  ;;  %v14999_v42 = vld [vmem:[%s21444_s1 + $0x16c] sm:$0xf0] }
  0xa4   : > { %v11681_v48 = vor.u32 %v14999_v42, %v11680_v39  ;;  %v14998_v42 = vld [vmem:[%s21444_s1 + $0x16c] sm:$0xf] }
  0xb0   : > { %682 = vmatmul.bf16.gmra.mxu0 %v11536_v33  ;;  %995 = vmatmul.bf16.gmra.mxu2 %v11657_v36  ;;  %v11559_v36 = vld [vmem:[%s21444_s1 + $0xa0] sm:$0xf] }
  0xb1   : > { %755 = vmatmul.bf16.gmra.mxu1 %v11540_v37  ;;  %v11560_v46 = vor.u32 %v14975_v38, %v11559_v36 }
  0xb3   : > { %1068 = vmatmul.bf16.gmra.mxu3 %v11661_v59  ;;  %v11674_v59 = vld [vmem:[%s21444_s1 + $0x160] sm:$0xf0] }
  0xbd   : > { %v648_v53 = vpop.f32.mrf.mxu0 }
  0xbe   : > { %v721_v55 = vpop.f32.mrf.mxu1 }
  0xbf   : > { %v16096_v56 = vadd.f32 %v721_v55, %v648_v53 }
  0xc0   : > { %687 = vmatmul.bf16.gmra.mxu0 %v11544_v50  ;;  %1000 = vmatmul.bf16.gmra.mxu2 %v11665_v52  ;;  %v11564_v50 = vor.u32 %v14974_v43, %v11561_v44 }
  0xc1   : > { %760 = vmatmul.bf16.gmra.mxu1 %v11548_v54 }
  0xc3   : > { %v961_v60 = vpop.f32.mrf.mxu2  ;;  %1073 = vmatmul.bf16.gmra.mxu3 %v11669_v25 }
  0xc5   : > { %v650_v61 = vpop.f32.mrf.mxu0 }
  0xc6   : > { %v723_v62 = vpop.f32.mrf.mxu1  ;;  %v1034_v32 = vpop.f32.mrf.mxu3 }
  0xc7   : > { %v16104_v63 = vadd.f32 %v723_v62, %v650_v61  ;;  %v16160_v52 = vadd.f32 %v1034_v32, %v961_v60  ;;  %v11677_v61 = vor.u32 %v14996_v58, %v11674_v59 }
  0xc9   : > { %v785_v1 = vpack.c.bf16 %v16104_v63, %v16096_v56  ;;  %v11756_v63 = vld [vmem:[%s21444_s1 + $0x1a0] sm:$0xf] }
  0xcb   : > { %v963_v9 = vpop.f32.mrf.mxu2 }
  0xcd   : > { %v653_v14 = vpop.f32.mrf.mxu0 }
  0xce   : > { %v726_v18 = vpop.f32.mrf.mxu1  ;;  %v1036_v54 = vpop.f32.mrf.mxu3 }
  0xcf   : > { %v16126_v19 = vadd.f32 %v726_v18, %v653_v14  ;;  %v16164_v57 = vadd.f32 %v1036_v54, %v963_v9  ;;  %v14977_v9 = vld [vmem:[%s21444_s1 + $0xb4] sm:$0xf0]  ;;  %v14976_v14 = vld [vmem:[%s21444_s1 + $0xb4] sm:$0xf] }
  0xd0   : > { %692 = vmatmul.bf16.gmra.mxu0 %v11552_v12  ;;  %1005 = vmatmul.bf16.gmra.mxu2 %v11673_v13  ;;  %v11688_v12 = vld [vmem:[%s21444_s1 + $0x178] sm:$0xf]  ;;  %v15001_v13 = vld [vmem:[%s21444_s1 + $0x17c] sm:$0xf0]  ;;  %v11568_v20 = vor.u32 %v14977_v9, %v11567_v6 }
  0xd1   : > { %765 = vmatmul.bf16.gmra.mxu1 %v11556_v15  ;;  %v1098_v60 = vpack.c.bf16 %v16164_v57, %v16160_v52  ;;  %v11569_v15 = vld [vmem:[%s21444_s1 + $0xb8] sm:$0xf0]  ;;  %v11689_v21 = vor.u32 %v15001_v13, %v11688_v12 }
  0xd2   : > { %v11572_v26 = vor.u32 %v14976_v14, %v11569_v15 }
  0xd3   : > { %v966_v27 = vpop.f32.mrf.mxu2  ;;  %1078 = vmatmul.bf16.gmra.mxu3 %v11677_v61 }
  0xd5   : > { %v655_v30 = vpop.f32.mrf.mxu0 }
  0xd6   : > { %v728_v31 = vpop.f32.mrf.mxu1  ;;  %v1039_v4 = vpop.f32.mrf.mxu3 }
  0xd7   : > { %v16138_v33 = vadd.f32 %v728_v31, %v655_v30  ;;  %v16199_v30 = vadd.f32 %v1039_v4, %v966_v27  ;;  %v1270_v31 = vsel %vm1153_vm0, %v798_v24, 0  ;;  %v11682_v27 = vld [vmem:[%s21444_s1 + $0x170] sm:$0xf0]  ;;  %v15000_v24 = vld [vmem:[%s21444_s1 + $0x17c] sm:$0xf] }
  0xd8   : > { %1279 = vmatpush.bf16.msrb.mxu1 %v1270_v31  ;;  %v11685_v44 = vor.u32 %v14998_v42, %v11682_v27 }
  0xd9   : > { %v786_v37 = vpack.c.bf16 %v16138_v33, %v16126_v19  ;;  %v11764_v33 = vld [vmem:[%s21444_s1 + $0x1b0] sm:$0xf] }
  0xdb   : > { %v968_v45 = vpop.f32.mrf.mxu2 }
  0xdc   : > { %1952 = vmatpush.bf16.msra.mxu1 %v15775_v3 }
  0xdd   : > { %v658_v49 = vpop.f32.mrf.mxu0 }
  0xde   : > { %v731_v53 = vpop.f32.mrf.mxu1  ;;  %v1041_v36 = vpop.f32.mrf.mxu3 }
  0xdf   : > { %v16162_v55 = vadd.f32 %v731_v53, %v658_v49  ;;  %v16204_v39 = vadd.f32 %v1041_v36, %v968_v45  ;;  %v11597_v49 = vld [vmem:[%s21444_s1 + $0x188] sm:$0x33] }
  0xe0   : > { %697 = vmatmul.bf16.gmra.mxu0 %v11560_v46  ;;  %1010 = vmatmul.bf16.gmra.mxu2 %v11681_v48  ;;  %v511_v48 = vld [vmem:[%s21444_s1 + $0xc0] sm:$0x33]  ;;  %v898_v59 = vunpack.c.l.b16 %v11597_v49 }
  0xe1   : > { %770 = vmatmul.bf16.gmra.mxu1 %v11564_v50  ;;  %v1099_v43 = vpack.c.bf16 %v16204_v39, %v16199_v30  ;;  %v585_v58 = vunpack.c.l.b16 %v511_v48 }
  0xe2   : > { %1953 = vmatpush.bf16.msra.mxu1 %v15786_v10  ;;  %v924_v6 = vpack.c.b16 %v898_v59, %v898_v59 }
  0xe3   : > { %v971_v62 = vpop.f32.mrf.mxu2  ;;  %1083 = vmatmul.bf16.gmra.mxu3 %v11685_v44  ;;  %v611_v4 = vpack.c.b16 %v585_v58, %v585_v58  ;;  %v11748_v44 = vld [vmem:[%s21444_s1 + $0x190] sm:$0xf] }
  0xe5   : > { %v660_v0 = vpop.f32.mrf.mxu0 }
  0xe6   : > { %v733_v2 = vpop.f32.mrf.mxu1  ;;  %v1044_v53 = vpop.f32.mrf.mxu3  ;;  %1954 = vmatpush.bf16.msra.mxu1 %v15798_v16 }
  0xe7   : > { %v16174_v5 = vadd.f32 %v733_v2, %v660_v0  ;;  %v586_v0 = vunpack.c.h.b16 %v511_v48  ;;  %v16228_v13 = vadd.f32 %v1044_v53, %v971_v62 }
  0xe9   : > { %v787_v8 = vpack.c.bf16 %v16174_v5, %v16162_v55  ;;  %v612_v12 = vpack.c.b16 %v586_v0, %v586_v0  ;;  %v11772_v55 = vld [vmem:[%s21444_s1 + $0x1c0] sm:$0xf]  ;;  %v15009_v5 = vld [vmem:[%s21444_s1 + $0x1c4] sm:$0xf0] }
  0xea   : > { %1955 = vmatpush.bf16.msra.mxu1 %v15810_v22 }
  0xeb   : > { %v973_v18 = vpop.f32.mrf.mxu2 }
  0xed   : > { %v663_v25 = vpop.f32.mrf.mxu0 }
  0xee   : > { %v736_v32 = vpop.f32.mrf.mxu1  ;;  %v1046_v15 = vpop.f32.mrf.mxu3  ;;  %1956 = vmatpush.bf16.msra.mxu1 %v15822_v28 }
  0xef   : > { %v16202_v38 = vadd.f32 %v736_v32, %v663_v25  ;;  %v11690_v25 = vld [vmem:[%s21444_s1 + $0x180] sm:$0xf0] }
  0xf0   : > { %702 = vmatmul.bf16.gmra.mxu0 %v11568_v20  ;;  %1015 = vmatmul.bf16.gmra.mxu2 %v11689_v21  ;;  %v16232_v21 = vadd.f32 %v1046_v15, %v973_v18 }
  0xf1   : > { %775 = vmatmul.bf16.gmra.mxu1 %v11572_v26  ;;  %v11693_v26 = vor.u32 %v15000_v24, %v11690_v25 }
  0xf2   : > { %v1100_v62 = vpack.c.bf16 %v16232_v21, %v16228_v13  ;;  %1957 = vmatpush.bf16.msra.mxu1 %v15834_v34 }
  0xf3   : > { %v976_v46 = vpop.f32.mrf.mxu2  ;;  %1088 = vmatmul.bf16.gmra.mxu3 %v11693_v26 }
  0xf5   : > { %v665_v45 = vpop.f32.mrf.mxu0 }
  0xf6   : > { %v738_v50 = vpop.f32.mrf.mxu1  ;;  %v1049_v36 = vpop.f32.mrf.mxu3  ;;  %1958 = vmatpush.bf16.msra.mxu1 %v15846_v40 }
  0xf7   : > { %v16222_v54 = vadd.f32 %v738_v50, %v665_v45  ;;  %v15003_v45 = vld [vmem:[%s21444_s1 + $0x194] sm:$0xf0]  ;;  %v16256_v58 = vadd.f32 %v1049_v36, %v976_v46 }
  0xf8   : > { %v11749_v50 = vor.u32 %v15003_v45, %v11748_v44  ;;  %v15002_v44 = vld [vmem:[%s21444_s1 + $0x194] sm:$0xf] }
  0xf9   : > { %v788_v61 = vpack.c.bf16 %v16222_v54, %v16202_v38  ;;  %v11780_v38 = vld [vmem:[%s21444_s1 + $0x1d0] sm:$0xf]  ;;  %v15011_v54 = vld [vmem:[%s21444_s1 + $0x1d4] sm:$0xf0] }
  0xfa   : > { %1959 = vmatpush.bf16.msra.mxu1 %v15861_v47 }
  0xfb   : > { %v978_v2 = vpop.f32.mrf.mxu2 }
  0xfd   : > { %v668_v9 = vpop.f32.mrf.mxu0 }
  0xfe   : > { %v741_v14 = vpop.f32.mrf.mxu1  ;;  %v1051_v0 = vpop.f32.mrf.mxu3 }
  0xff   : > { %v16230_v20 = vadd.f32 %v741_v14, %v668_v9  ;;  %v899_v9 = vunpack.c.h.b16 %v11597_v49 }
 0x100   : > { %707 = vmatmul.bf16.gmra.mxu0 %v611_v4  ;;  %1020 = vmatmul.bf16.gmra.mxu2 %v924_v6  ;;  %v16260_v6 = vadd.f32 %v1051_v0, %v978_v2 }
 0x101   : > { %780 = vmatmul.bf16.gmra.mxu1 %v612_v12  ;;  %v925_v12 = vpack.c.b16 %v899_v9, %v899_v9 }
 0x102   : > { %v1101_v46 = vpack.c.bf16 %v16260_v6, %v16256_v58 }
 0x103   : > { %v981_v31 = vpop.f32.mrf.mxu2  ;;  %1093 = vmatmul.bf16.gmra.mxu3 %v925_v12 }
 0x105   : > { %v670_v18 = vpop.f32.mrf.mxu0 }
 0x106   : > { %v743_v32 = vpop.f32.mrf.mxu1  ;;  %v1054_v15 = vpop.f32.mrf.mxu3 }
 0x107   : > { %v16244_v42 = vadd.f32 %v743_v32, %v670_v18  ;;  %v16285_v25 = vadd.f32 %v1054_v15, %v981_v31  ;;  %v11750_v31 = vld [vmem:[%s21444_s1 + $0x198] sm:$0xf0] }
 0x108   : > { %v11753_v30 = vor.u32 %v15002_v44, %v11750_v31  ;;  %v11773_v44 = vor.u32 %v15009_v5, %v11772_v55  ;;  %v15008_v5 = vld [vmem:[%s21444_s1 + $0x1c4] sm:$0xf] }
 0x109   : > { %v789_v27 = vpack.c.bf16 %v16244_v42, %v16230_v20  ;;  %v11788_v20 = vld [vmem:[%s21444_s1 + $0x1e0] sm:$0xf]  ;;  %v15013_v42 = vld [vmem:[%s21444_s1 + $0x1e4] sm:$0xf0] }
 0x10b   : > { %v983_v48 = vpop.f32.mrf.mxu2 }
 0x10d   : > { %v673_v53 = vpop.f32.mrf.mxu0 }
 0x10e   : > { %v746_v59 = vpop.f32.mrf.mxu1  ;;  %v1056_v18 = vpop.f32.mrf.mxu3 }
 0x10f   : > { %v16258_v4 = vadd.f32 %v746_v59, %v673_v53  ;;  %v16290_v36 = vadd.f32 %v1056_v18, %v983_v48 }
 0x110   : > { %11695 = vmatmul.msk.bf16.vlgmr.msrb.gmra.mxu0 %vm1113_vm1, %v1098_v60  ;;  %1506 = vmatmul.bf16.vlgmr.msrb.gmra.mxu2 %v11749_v50 }
 0x111   : > { %11708 = vmatmul.msk.bf16.vlgmr.msrb.gmra.mxu1 %vm1113_vm1, %v785_v1  ;;  %v15005_v1 = vld [vmem:[%s21444_s1 + $0x1a4] sm:$0xf0]  ;;  %v1102_v45 = vpack.c.bf16 %v16290_v36, %v16285_v25 }
 0x112   : > { %2479 = vmatpush.bf16.msrb.mxu1 %v15780_v7  ;;  %v11757_v60 = vor.u32 %v15005_v1, %v11756_v63  ;;  %v15004_v1 = vld [vmem:[%s21444_s1 + $0x1a4] sm:$0xf] }
 0x113   : > { %v986_v2 = vpop.f32.mrf.mxu2  ;;  %1579 = vmatmul.bf16.vlgmr.msrb.gmra.mxu3 %v11753_v30 }
 0x115   : > { %v675_v49 = vpop.f32.mrf.mxu0 }
 0x116   : > { %v748_v14 = vpop.f32.mrf.mxu1  ;;  %2480 = vmatpush.bf16.msrb.mxu1 %v15789_v11  ;;  %v1059_v50 = vpop.f32.mrf.mxu3 }
 0x117   : > { %v16274_v52 = vadd.f32 %v748_v14, %v675_v49  ;;  %v16321_v12 = vadd.f32 %v1059_v50, %v986_v2  ;;  %v11758_v2 = vld [vmem:[%s21444_s1 + $0x1a8] sm:$0xf0] }
 0x118   : > { %v11761_v13 = vor.u32 %v15004_v1, %v11758_v2  ;;  %v11781_v1 = vor.u32 %v15011_v54, %v11780_v38  ;;  %v15010_v54 = vld [vmem:[%s21444_s1 + $0x1d4] sm:$0xf] }
 0x119   : > { %v790_v56 = vpack.c.bf16 %v16274_v52, %v16258_v4  ;;  %v11796_v4 = vld [vmem:[%s21444_s1 + $0x1f0] sm:$0xf]  ;;  %v15015_v52 = vld [vmem:[%s21444_s1 + $0x1f4] sm:$0xf0] }
 0x11a   : > { %2481 = vmatpush.bf16.msrb.mxu1 %v15801_v17 }
 0x11b   : > { %v988_v57 = vpop.f32.mrf.mxu2 }
 0x11d   : > { %v678_v24 = vpop.f32.mrf.mxu0 }
 0x11e   : > { %v751_v26 = vpop.f32.mrf.mxu1  ;;  %2482 = vmatpush.bf16.msrb.mxu1 %v15813_v23  ;;  %v1061_v14 = vpop.f32.mrf.mxu3 }
 0x11f   : > { %v16288_v32 = vadd.f32 %v751_v26, %v678_v24  ;;  %v16326_v63 = vadd.f32 %v1061_v14, %v988_v57 }
 0x120   : > { %11696 = vmatmul.msk.bf16.gmra.mxu0 %vm1113_vm1, %v1099_v43  ;;  %1511 = vmatmul.bf16.gmra.mxu2 %v11757_v60 }
 0x121   : > { %11709 = vmatmul.msk.bf16.gmra.mxu1 %vm1113_vm1, %v786_v37  ;;  %v15007_v37 = vld [vmem:[%s21444_s1 + $0x1b4] sm:$0xf0]  ;;  %v1103_v57 = vpack.c.bf16 %v16326_v63, %v16321_v12 }
 0x122   : > { %2483 = vmatpush.bf16.msrb.mxu1 %v15825_v29  ;;  %v11765_v0 = vor.u32 %v15007_v37, %v11764_v33  ;;  %v15006_v37 = vld [vmem:[%s21444_s1 + $0x1b4] sm:$0xf] }
 0x123   : > { %v991_v39 = vpop.f32.mrf.mxu2  ;;  %1584 = vmatmul.bf16.gmra.mxu3 %v11761_v13 }
 0x125   : > { %v680_v43 = vpop.f32.mrf.mxu0 }
 0x126   : > { %v753_v48 = vpop.f32.mrf.mxu1  ;;  %2484 = vmatpush.bf16.msrb.mxu1 %v15837_v35  ;;  %v1064_v24 = vpop.f32.mrf.mxu3 }
 0x127   : > { %v16310_v53 = vadd.f32 %v753_v48, %v680_v43  ;;  %v16354_v30 = vadd.f32 %v1064_v24, %v991_v39  ;;  %v11766_v39 = vld [vmem:[%s21444_s1 + $0x1b8] sm:$0xf0] }
 0x128   : > { %v11769_v58 = vor.u32 %v15006_v37, %v11766_v39  ;;  %v11789_v37 = vor.u32 %v15013_v42, %v11788_v20  ;;  %v15012_v42 = vld [vmem:[%s21444_s1 + $0x1e4] sm:$0xf] }
 0x129   : > { %v791_v19 = vpack.c.bf16 %v16310_v53, %v16288_v32  ;;  %v11804_v32 = vld [vmem:[%s21444_s1 + $0x200] sm:$0xf]  ;;  %v15017_v53 = vld [vmem:[%s21444_s1 + $0x204] sm:$0xf0] }
 0x12a   : > { %2485 = vmatpush.bf16.msrb.mxu1 %v15849_v41 }
 0x12b   : > { %v993_v59 = vpop.f32.mrf.mxu2 }
 0x12d   : > { %v683_v9 = vpop.f32.mrf.mxu0 }
 0x12e   : > { %v756_v49 = vpop.f32.mrf.mxu1  ;;  %2486 = vmatpush.bf16.msrb.mxu1 %v15873_v51  ;;  %v1066_v48 = vpop.f32.mrf.mxu3 }
 0x12f   : > { %v16324_v15 = vadd.f32 %v756_v49, %v683_v9  ;;  %v16358_v33 = vadd.f32 %v1066_v48, %v993_v59 }
 0x130   : > { %11697 = vmatmul.msk.bf16.gmra.mxu0 %vm1113_vm1, %v1100_v62  ;;  %1516 = vmatmul.bf16.gmra.mxu2 %v11765_v0 }
 0x131   : > { %11710 = vmatmul.msk.bf16.gmra.mxu1 %vm1113_vm1, %v787_v8  ;;  %v1104_v59 = vpack.c.bf16 %v16358_v33, %v16354_v30 }
 0x133   : > { %v996_v21 = vpop.f32.mrf.mxu2  ;;  %1589 = vmatmul.bf16.gmra.mxu3 %v11769_v58 }
 0x135   : > { %v685_v62 = vpop.f32.mrf.mxu0 }
 0x136   : > { %v758_v60 = vpop.f32.mrf.mxu1  ;;  %v1069_v9 = vpop.f32.mrf.mxu3 }
 0x137   : > { %v16344_v26 = vadd.f32 %v758_v60, %v685_v62  ;;  %v16386_v13 = vadd.f32 %v1069_v9, %v996_v21  ;;  %v11774_v21 = vld [vmem:[%s21444_s1 + $0x1c8] sm:$0xf0] }
 0x138   : > { %v11777_v25 = vor.u32 %v15008_v5, %v11774_v21  ;;  %v11797_v5 = vor.u32 %v15015_v52, %v11796_v4  ;;  %v15014_v52 = vld [vmem:[%s21444_s1 + $0x1f4] sm:$0xf] }
 0x139   : > { %v792_v18 = vpack.c.bf16 %v16344_v26, %v16324_v15  ;;  %v15019_v15 = vld [vmem:[%s21444_s1 + $0x214] sm:$0xf0] }
 0x13b   : > { %v998_v8 = vpop.f32.mrf.mxu2 }
 0x13d   : > { %v688_v31 = vpop.f32.mrf.mxu0 }
 0x13e   : > { %v761_v43 = vpop.f32.mrf.mxu1  ;;  %v1071_v60 = vpop.f32.mrf.mxu3 }
 0x13f   : > { %v16356_v50 = vadd.f32 %v761_v43, %v688_v31  ;;  %v16390_v55 = vadd.f32 %v1071_v60, %v998_v8 }
 0x140   : > { %11698 = vmatmul.msk.bf16.gmra.mxu0 %vm1113_vm1, %v1101_v46  ;;  %1521 = vmatmul.bf16.gmra.mxu2 %v11773_v44 }
 0x141   : > { %11711 = vmatmul.msk.bf16.gmra.mxu1 %vm1113_vm1, %v788_v61  ;;  %v1105_v8 = vpack.c.bf16 %v16390_v55, %v16386_v13 }
 0x143   : > { %v1001_v6 = vpop.f32.mrf.mxu2  ;;  %1594 = vmatmul.bf16.gmra.mxu3 %v11777_v25 }
 0x145   : > { %v690_v46 = vpop.f32.mrf.mxu0 }
 0x146   : > { %v763_v0 = vpop.f32.mrf.mxu1  ;;  %v1074_v31 = vpop.f32.mrf.mxu3 }
 0x147   : > { %v16376_v49 = vadd.f32 %v763_v0, %v690_v46  ;;  %v16418_v58 = vadd.f32 %v1074_v31, %v1001_v6  ;;  %v11782_v6 = vld [vmem:[%s21444_s1 + $0x1d8] sm:$0xf0] }
 0x148   : > { %v11785_v12 = vor.u32 %v15010_v54, %v11782_v6  ;;  %v11805_v54 = vor.u32 %v15017_v53, %v11804_v32 }
 0x149   : > { %v793_v14 = vpack.c.bf16 %v16376_v49, %v16356_v50  ;;  %v15021_v50 = vld [vmem:[%s21444_s1 + $0x224] sm:$0xf0] }
 0x14b   : > { %v1003_v61 = vpop.f32.mrf.mxu2 }
 0x14d   : > { %v693_v2 = vpop.f32.mrf.mxu0 }
 0x14e   : > { %v766_v62 = vpop.f32.mrf.mxu1  ;;  %v1076_v0 = vpop.f32.mrf.mxu3 }
 0x14f   : > { %v16388_v24 = vadd.f32 %v766_v62, %v693_v2  ;;  %v16422_v38 = vadd.f32 %v1076_v0, %v1003_v61 }
 0x150   : > { %11699 = vmatmul.msk.bf16.gmra.mxu0 %vm1113_vm1, %v1102_v45  ;;  %1526 = vmatmul.bf16.gmra.mxu2 %v11781_v1 }
 0x151   : > { %11712 = vmatmul.msk.bf16.gmra.mxu1 %vm1113_vm1, %v789_v27  ;;  %v1106_v61 = vpack.c.bf16 %v16422_v38, %v16418_v58 }
 0x153   : > { %v1006_v36 = vpop.f32.mrf.mxu2  ;;  %1599 = vmatmul.bf16.gmra.mxu3 %v11785_v12 }
 0x155   : > { %v695_v45 = vpop.f32.mrf.mxu0 }
 0x156   : > { %v768_v44 = vpop.f32.mrf.mxu1  ;;  %v1079_v2 = vpop.f32.mrf.mxu3 }
 0x157   : > { %v16408_v43 = vadd.f32 %v768_v44, %v695_v45  ;;  %v16450_v25 = vadd.f32 %v1079_v2, %v1006_v36  ;;  %v11790_v36 = vld [vmem:[%s21444_s1 + $0x1e8] sm:$0xf0] }
 0x158   : > { %v11793_v30 = vor.u32 %v15012_v42, %v11790_v36 }
 0x159   : > { %v794_v48 = vpack.c.bf16 %v16408_v43, %v16388_v24  ;;  %v11828_v24 = vld [vmem:[%s21444_s1 + $0x230] sm:$0xf]  ;;  %v15023_v43 = vld [vmem:[%s21444_s1 + $0x234] sm:$0xf0] }
 0x15b   : > { %v1008_v27 = vpop.f32.mrf.mxu2 }
 0x15d   : > { %v698_v39 = vpop.f32.mrf.mxu0 }
 0x15e   : > { %v771_v46 = vpop.f32.mrf.mxu1  ;;  %v1081_v44 = vpop.f32.mrf.mxu3 }
 0x15f   : > { %v16420_v9 = vadd.f32 %v771_v46, %v698_v39  ;;  %v16454_v20 = vadd.f32 %v1081_v44, %v1008_v27 }
 0x160   : > { %11700 = vmatmul.msk.bf16.gmra.mxu0 %vm1113_vm1, %v1103_v57  ;;  %1531 = vmatmul.bf16.gmra.mxu2 %v11789_v37 }
 0x161   : > { %11713 = vmatmul.msk.bf16.gmra.mxu1 %vm1113_vm1, %v790_v56  ;;  %v1107_v27 = vpack.c.bf16 %v16454_v20, %v16450_v25  ;;  %v11812_v25 = vld [vmem:[%s21444_s1 + $0x210] sm:$0xf] }
 0x163   : > { %v1011_v63 = vpop.f32.mrf.mxu2  ;;  %1604 = vmatmul.bf16.gmra.mxu3 %v11793_v30 }
 0x165   : > { %v700_v57 = vpop.f32.mrf.mxu0 }
 0x166   : > { %v773_v1 = vpop.f32.mrf.mxu1  ;;  %v1084_v39 = vpop.f32.mrf.mxu3 }
 0x167   : > { %v16440_v62 = vadd.f32 %v773_v1, %v700_v57  ;;  %v16482_v12 = vadd.f32 %v1084_v39, %v1011_v63  ;;  %v11798_v63 = vld [vmem:[%s21444_s1 + $0x1f8] sm:$0xf0] }
 0x168   : > { %v11801_v13 = vor.u32 %v15014_v52, %v11798_v63  ;;  %v15018_v52 = vld [vmem:[%s21444_s1 + $0x214] sm:$0xf]  ;;  %v11814_v63 = vld [vmem:[%s21444_s1 + $0x218] sm:$0xf0] }
 0x169   : > { %v795_v60 = vpack.c.bf16 %v16440_v62, %v16420_v9  ;;  %v11836_v9 = vld [vmem:[%s21444_s1 + $0x240] sm:$0xf]  ;;  %v15025_v62 = vld [vmem:[%s21444_s1 + $0x244] sm:$0xf0] }
 0x16b   : > { %v1013_v56 = vpop.f32.mrf.mxu2 }
 0x16d   : > { %v703_v21 = vpop.f32.mrf.mxu0 }
 0x16e   : > { %v776_v45 = vpop.f32.mrf.mxu1  ;;  %v1086_v1 = vpop.f32.mrf.mxu3 }
 0x16f   : > { %v16452_v31 = vadd.f32 %v776_v45, %v703_v21  ;;  %v16486_v4 = vadd.f32 %v1086_v1, %v1013_v56 }
 0x170   : > { %11701 = vmatmul.msk.bf16.gmra.mxu0 %vm1113_vm1, %v1104_v59  ;;  %1536 = vmatmul.bf16.gmra.mxu2 %v11797_v5 }
 0x171   : > { %11714 = vmatmul.msk.bf16.gmra.mxu1 %vm1113_vm1, %v791_v19  ;;  %v1108_v56 = vpack.c.bf16 %v16486_v4, %v16482_v12 }
 0x173   : > { %v1016_v33 = vpop.f32.mrf.mxu2  ;;  %1609 = vmatmul.bf16.gmra.mxu3 %v11801_v13  ;;  %v11842_v13 = vld [vmem:[%s21445_s2 + $0x8] sm:$0xf] }
 0x175   : > { %v705_v59 = vpop.f32.mrf.mxu0 }
 0x176   : > { %v778_v37 = vpop.f32.mrf.mxu1  ;;  %v1089_v21 = vpop.f32.mrf.mxu3 }
 0x177   : > { %v16472_v46 = vadd.f32 %v778_v37, %v705_v59  ;;  %v16512_v44 = vadd.f32 %v1089_v21, %v1016_v33  ;;  %v15016_v59 = vld [vmem:[%s21444_s1 + $0x204] sm:$0xf]  ;;  %v11806_v33 = vld [vmem:[%s21444_s1 + $0x208] sm:$0xf0] }
 0x178   : > { %v11809_v58 = vor.u32 %v15016_v59, %v11806_v33 }
 0x179   : > { %v796_v0 = vpack.c.bf16 %v16472_v46, %v16452_v31 }
 0x17b   : > { %v1018_v19 = vpop.f32.mrf.mxu2 }
 0x17d   : > { %v708_v6 = vpop.f32.mrf.mxu0 }
 0x17e   : > { %v781_v57 = vpop.f32.mrf.mxu1  ;;  %v1091_v42 = vpop.f32.mrf.mxu3 }
 0x17f   : > { %v16484_v2 = vadd.f32 %v781_v57, %v708_v6  ;;  %v16516_v30 = vadd.f32 %v1091_v42, %v1018_v19  ;;  %v11820_v19 = vld [vmem:[%s21444_s1 + $0x220] sm:$0xf] }
 0x180   : > { %11702 = vmatmul.msk.bf16.gmra.mxu0 %vm1113_vm1, %v1105_v8  ;;  %1541 = vmatmul.bf16.gmra.mxu2 %v11805_v54 }
 0x181   : > { %11715 = vmatmul.msk.bf16.gmra.mxu1 %vm1113_vm1, %v792_v18  ;;  %v11813_v18 = vor.u32 %v15019_v15, %v11812_v25  ;;  %v1109_v37 = vpack.c.bf16 %v16516_v30, %v16512_v44 }
 0x183   : > { %v16504_v55 = vpop.f32.mrf.mxu2  ;;  %1614 = vmatmul.bf16.gmra.mxu3 %v11809_v58 }
 0x185   : > { %v710_v8 = vpop.f32.mrf.mxu0 }
 0x186   : > { %v783_v5 = vpop.f32.mrf.mxu1  ;;  %v16534_v32 = vpop.f32.mrf.mxu3  ;;  %v11817_v8 = vor.u32 %v15018_v52, %v11814_v63 }
 0x187   : > { %v1095_v46 = vadd.f32 %v16534_v32, %v16504_v55  ;;  %v15024_v55 = vld [vmem:[%s21444_s1 + $0x244] sm:$0xf]  ;;  %v11838_v32 = vld [vmem:[%s21444_s1 + $0x248] sm:$0xf0] }
 0x18b   : > { %v1023_v26 = vpop.f32.mrf.mxu2 }
 0x18d   : > { %v1166_v45 = vpop.f32.mrf.mxu0 }
 0x18e   : > { %v1281_v20 = vpop.f32.mrf.mxu1  ;;  %v1096_v57 = vpop.f32.mrf.mxu3 }
 0x18f   : > { %v16514_v36 = vadd.f32 %v1281_v20, %v1166_v45 }
 0x190   : > { %11703 = vmatmul.msk.bf16.gmra.mxu0 %vm1113_vm1, %v1106_v61  ;;  %1546 = vmatmul.bf16.gmra.mxu2 %v11813_v18  ;;  %v11829_v18 = vor.u32 %v15023_v43, %v11828_v24 }
 0x191   : > { %11716 = vmatmul.msk.bf16.gmra.mxu1 %vm1113_vm1, %v793_v14  ;;  %v11821_v14 = vor.u32 %v15021_v50, %v11820_v19 }
 0x193   : > { %v1507_v38 = vpop.f32.mrf.mxu2  ;;  %1619 = vmatmul.bf16.gmra.mxu3 %v11817_v8  ;;  %v15022_v8 = vld [vmem:[%s21444_s1 + $0x234] sm:$0xf] }
 0x195   : > { %v1168_v61 = vpop.f32.mrf.mxu0 }
 0x196   : > { %v1283_v39 = vpop.f32.mrf.mxu1  ;;  %v1580_v15 = vpop.f32.mrf.mxu3 }
 0x197   : > { %v16536_v53 = vadd.f32 %v1283_v39, %v1168_v61  ;;  %v16572_v20 = vadd.f32 %v1580_v15, %v1507_v38  ;;  %v15020_v61 = vld [vmem:[%s21444_s1 + $0x224] sm:$0xf]  ;;  %v11822_v38 = vld [vmem:[%s21444_s1 + $0x228] sm:$0xf0] }
 0x198   : > { %v11825_v12 = vor.u32 %v15020_v61, %v11822_v38  ;;  %v797_v61 = vpack.c.bf16 %v16484_v2, %v16484_v2 }
 0x19b   : > { %v1509_v49 = vpop.f32.mrf.mxu2 }
 0x19d   : > { %v1171_v54 = vpop.f32.mrf.mxu0 }
 0x19e   : > { %v1286_v6 = vpop.f32.mrf.mxu1  ;;  %v1582_v59 = vpop.f32.mrf.mxu3 }
 0x19f   : > { %v16544_v1 = vadd.f32 %v1286_v6, %v1171_v54  ;;  %v16576_v58 = vadd.f32 %v1582_v59, %v1509_v49 }
 0x1a0   : > { %11704 = vmatmul.msk.bf16.gmra.mxu0 %vm1113_vm1, %v1107_v27  ;;  %1551 = vmatmul.bf16.gmra.mxu2 %v11821_v14  ;;  %v1699_v27 = vsel %vm1153_vm0, %v11842_v13, 0  ;;  %v11837_v14 = vor.u32 %v15025_v62, %v11836_v9 }
 0x1a1   : > { %11717 = vmatmul.msk.bf16.gmra.mxu1 %vm1113_vm1, %v794_v48  ;;  %1708 = vmatpush.bf16.msra.mxu0 %v1699_v27  ;;  %v1644_v39 = vpack.c.bf16 %v16576_v58, %v16572_v20  ;;  %v11830_v27 = vld [vmem:[%s21444_s1 + $0x238] sm:$0xf0]  ;;  %v15028_v20 = vld [vmem:[%s21444_s1 + $0x26c] sm:$0xf]  ;;  %v11893_v58 = vld [vmem:[%s21444_s1 + $0x270] sm:$0xf0] }
 0x1a2   : > { %v11833_v44 = vor.u32 %v15022_v8, %v11830_v27 }
 0x1a3   : > { %v1512_v5 = vpop.f32.mrf.mxu2  ;;  %1624 = vmatmul.bf16.gmra.mxu3 %v11825_v12 }
 0x1a5   : > { %2406 = vmatpush.bf16.msrb.mxu0 %v15775_v3  ;;  %v1173_v21 = vpop.f32.mrf.mxu0 }
 0x1a6   : > { %v1288_v25 = vpop.f32.mrf.mxu1  ;;  %v1585_v50 = vpop.f32.mrf.mxu3 }
 0x1a7   : > { %v16562_v26 = vadd.f32 %v1288_v25, %v1173_v21  ;;  %v16605_v6 = vadd.f32 %v1585_v50, %v1512_v5  ;;  %v11745_v21 = vld [vmem:[%s21444_s1 + $0x250] sm:$0x33] }
 0x1a8   : > { %v1444_v31 = vunpack.c.l.b16 %v11745_v21 }
 0x1a9   : > { %2407 = vmatpush.bf16.msrb.mxu0 %v15786_v10 }
 0x1aa   : > { %v1470_v43 = vpack.c.b16 %v1444_v31, %v1444_v31 }
 0x1ab   : > { %v1514_v48 = vpop.f32.mrf.mxu2 }
 0x1ad   : > { %2408 = vmatpush.bf16.msrb.mxu0 %v15798_v16  ;;  %v1176_v45 = vpop.f32.mrf.mxu0 }
 0x1ae   : > { %v1291_v42 = vpop.f32.mrf.mxu1  ;;  %v1587_v52 = vpop.f32.mrf.mxu3 }
 0x1af   : > { %v16574_v33 = vadd.f32 %v1291_v42, %v1176_v45  ;;  %v16610_v13 = vadd.f32 %v1587_v52, %v1514_v48  ;;  %v1110_v45 = vpack.c.bf16 %v1095_v46, %v1095_v46 }
 0x1b0   : > { %11705 = vmatmul.msk.bf16.gmra.mxu0 %vm1113_vm1, %v1108_v56  ;;  %1556 = vmatmul.bf16.gmra.mxu2 %v11829_v18 }
 0x1b1   : > { %11718 = vmatmul.msk.bf16.gmra.mxu1 %vm1113_vm1, %v795_v60  ;;  %2409 = vmatpush.bf16.msrb.mxu0 %v15810_v22  ;;  %v1645_v5 = vpack.c.bf16 %v16610_v13, %v16605_v6  ;;  %v15030_v6 = vld [vmem:[%s21444_s1 + $0x27c] sm:$0xf]  ;;  %v11901_v13 = vld [vmem:[%s21444_s1 + $0x280] sm:$0xf0] }
 0x1b3   : > { %v1517_v4 = vpop.f32.mrf.mxu2  ;;  %1629 = vmatmul.bf16.gmra.mxu3 %v11833_v44 }
 0x1b5   : > { %v1178_v56 = vpop.f32.mrf.mxu0  ;;  %2410 = vmatpush.bf16.msrb.mxu0 %v15822_v28 }
 0x1b6   : > { %v1293_v19 = vpop.f32.mrf.mxu1  ;;  %v1590_v15 = vpop.f32.mrf.mxu3 }
 0x1b7   : > { %v16596_v49 = vadd.f32 %v1293_v19, %v1178_v56  ;;  %v16636_v18 = vadd.f32 %v1590_v15, %v1517_v4  ;;  %v11841_v4 = vor.u32 %v15024_v55, %v11838_v32  ;;  %v15029_v55 = vld [vmem:[%s21444_s1 + $0x26c] sm:$0xf0]  ;;  %v11896_v32 = vor.u32 %v15028_v20, %v11893_v58 }
 0x1b9   : > { %2411 = vmatpush.bf16.msrb.mxu0 %v15834_v34 }
 0x1bb   : > { %v1519_v60 = vpop.f32.mrf.mxu2 }
 0x1bd   : > { %v1181_v54 = vpop.f32.mrf.mxu0  ;;  %2412 = vmatpush.bf16.msrb.mxu0 %v15846_v40 }
 0x1be   : > { %v1296_v57 = vpop.f32.mrf.mxu1  ;;  %v1592_v59 = vpop.f32.mrf.mxu3 }
 0x1bf   : > { %v16608_v63 = vadd.f32 %v1296_v57, %v1181_v54  ;;  %v16642_v12 = vadd.f32 %v1592_v59, %v1519_v60  ;;  %v15026_v60 = vld [vmem:[%s21444_s1 + $0x25c] sm:$0xf]  ;;  %v11883_v54 = vld [vmem:[%s21444_s1 + $0x258] sm:$0xf]  ;;  %v15027_v57 = vld [vmem:[%s21444_s1 + $0x25c] sm:$0xf0]  ;;  %v1445_v59 = vunpack.c.h.b16 %v11745_v21 }
 0x1c0   : > { %11706 = vmatmul.msk.bf16.gmra.mxu0 %vm1113_vm1, %v1109_v37  ;;  %1561 = vmatmul.bf16.gmra.mxu2 %v11837_v14  ;;  %v11885_v14 = vld [vmem:[%s21444_s1 + $0x260] sm:$0xf0]  ;;  %v11884_v44 = vor.u32 %v15027_v57, %v11883_v54 }
 0x1c1   : > { %11719 = vmatmul.msk.bf16.gmra.mxu1 %vm1113_vm1, %v796_v0  ;;  %2413 = vmatpush.bf16.msrb.mxu0 %v15861_v47  ;;  %v1646_v2 = vpack.c.bf16 %v16642_v12, %v16636_v18  ;;  %v11888_v8 = vor.u32 %v15026_v60, %v11885_v14  ;;  %v11909_v18 = vld [vmem:[%s21444_s1 + $0x290] sm:$0xf0]  ;;  %v11907_v12 = vld [vmem:[%s21444_s1 + $0x288] sm:$0xf] }
 0x1c3   : > { %v1522_v30 = vpop.f32.mrf.mxu2  ;;  %1634 = vmatmul.bf16.gmra.mxu3 %v11841_v4 }
 0x1c5   : > { %v1183_v37 = vpop.f32.mrf.mxu0 }
 0x1c6   : > { %v1298_v25 = vpop.f32.mrf.mxu1  ;;  %v1595_v9 = vpop.f32.mrf.mxu3 }
 0x1c7   : > { %v16632_v24 = vadd.f32 %v1298_v25, %v1183_v37  ;;  %v16668_v37 = vadd.f32 %v1595_v9, %v1522_v30 }
 0x1cb   : > { %v1524_v0 = vpop.f32.mrf.mxu2 }
 0x1cd   : > { %v1186_v48 = vpop.f32.mrf.mxu0 }
 0x1ce   : > { %v1301_v42 = vpop.f32.mrf.mxu1  ;;  %v1597_v15 = vpop.f32.mrf.mxu3 }
 0x1cf   : > { %v16640_v38 = vadd.f32 %v1301_v42, %v1186_v48  ;;  %v16672_v46 = vadd.f32 %v1597_v15, %v1524_v0 }
 0x1d0   : > { %11707 = vmatmul.msk.bf16.gmra.mxu0 %vm1113_vm1, %v1110_v45  ;;  %1566 = vmatmul.bf16.gmra.mxu2 %v1470_v43 }
 0x1d1   : > { %11720 = vmatmul.msk.bf16.gmra.mxu1 %vm1113_vm1, %v797_v61  ;;  %v1647_v43 = vpack.c.bf16 %v16672_v46, %v16668_v37  ;;  %v11891_v61 = vld [vmem:[%s21444_s1 + $0x268] sm:$0xf]  ;;  %v11917_v37 = vld [vmem:[%s21444_s1 + $0x2a0] sm:$0xf0]  ;;  %v11915_v46 = vld [vmem:[%s21444_s1 + $0x298] sm:$0xf] }
 0x1d3   : > { %v1527_v56 = vpop.f32.mrf.mxu2 }
 0x1d5   : > { %v1188_v19 = vpop.f32.mrf.mxu0 }
 0x1d6   : > { %v1303_v50 = vpop.f32.mrf.mxu1  ;;  %v1600_v42 = vpop.f32.mrf.mxu3 }
 0x1d7   : > { %v16654_v62 = vadd.f32 %v1303_v50, %v1188_v19  ;;  %v11892_v19 = vor.u32 %v15029_v55, %v11891_v61  ;;  %v16697_v50 = vadd.f32 %v1600_v42, %v1527_v56 }
 0x1db   : > { %v1529_v52 = vpop.f32.mrf.mxu2 }
 0x1dd   : > { %v1191_v27 = vpop.f32.mrf.mxu0 }
 0x1de   : > { %v1306_v25 = vpop.f32.mrf.mxu1  ;;  %v1602_v60 = vpop.f32.mrf.mxu3 }
 0x1df   : > { %v16670_v31 = vadd.f32 %v1306_v25, %v1191_v27  ;;  %v16702_v54 = vadd.f32 %v1602_v60, %v1529_v52  ;;  %v15031_v25 = vld [vmem:[%s21444_s1 + $0x27c] sm:$0xf0] }
 0x1e0   : > { %11843 = vmatmul.msk.bf16.vlgmr.msra.gmra.mxu0 %vm1113_vm1, %v1644_v39  ;;  %2033 = vmatmul.bf16.vlgmr.msra.gmra.mxu2 %v11888_v8  ;;  %v1471_v39 = vpack.c.b16 %v1445_v59, %v1445_v59 }
 0x1e1   : > { %1960 = vmatmul.bf16.vlgmr.msra.gmra.mxu1 %v11884_v44  ;;  %2933 = vmatpush.bf16.msra.mxu0 %v15780_v7  ;;  %v1648_v57 = vpack.c.bf16 %v16702_v54, %v16697_v50  ;;  %v11925_v50 = vld [vmem:[%s21444_s1 + $0x2b0] sm:$0xf0]  ;;  %v11923_v54 = vld [vmem:[%s21444_s1 + $0x2a8] sm:$0xf] }
 0x1e2   : > { %1639 = vmatmul.bf16.gmra.mxu3 %v1471_v39 }
 0x1e3   : > { %v1532_v30 = vpop.f32.mrf.mxu2 }
 0x1e5   : > { %v1193_v48 = vpop.f32.mrf.mxu0  ;;  %2934 = vmatpush.bf16.msra.mxu0 %v15789_v11 }
 0x1e6   : > { %v1308_v45 = vpop.f32.mrf.mxu1  ;;  %v1605_v44 = vpop.f32.mrf.mxu3 }
 0x1e7   : > { %v16682_v0 = vadd.f32 %v1308_v45, %v1193_v48  ;;  %v11904_v48 = vor.u32 %v15030_v6, %v11901_v13  ;;  %v16727_v59 = vadd.f32 %v1605_v44, %v1532_v30 }
 0x1e9   : > { %2935 = vmatpush.bf16.msra.mxu0 %v15801_v17 }
 0x1eb   : > { %v1534_v21 = vpop.f32.mrf.mxu2 }
 0x1ed   : > { %v1196_v4 = vpop.f32.mrf.mxu0  ;;  %2936 = vmatpush.bf16.msra.mxu0 %v15813_v23 }
 0x1ee   : > { %v1311_v9 = vpop.f32.mrf.mxu1  ;;  %v1607_v58 = vpop.f32.mrf.mxu3 }
 0x1ef   : > { %v16700_v14 = vadd.f32 %v1311_v9, %v1196_v4  ;;  %v16732_v61 = vadd.f32 %v1607_v58, %v1534_v21  ;;  %v15032_v21 = vld [vmem:[%s21444_s1 + $0x28c] sm:$0xf] }
 0x1f0   : > { %11844 = vmatmul.msk.bf16.gmra.mxu0 %vm1113_vm1, %v1645_v5  ;;  %2038 = vmatmul.bf16.gmra.mxu2 %v11896_v32  ;;  %v11899_v5 = vld [vmem:[%s21444_s1 + $0x278] sm:$0xf] }
 0x1f1   : > { %1965 = vmatmul.bf16.gmra.mxu1 %v11892_v19  ;;  %2937 = vmatpush.bf16.msra.mxu0 %v15825_v29  ;;  %v11900_v42 = vor.u32 %v15031_v25, %v11899_v5  ;;  %v1649_v55 = vpack.c.bf16 %v16732_v61, %v16727_v59  ;;  %v11933_v59 = vld [vmem:[%s21444_s1 + $0x2c0] sm:$0xf0]  ;;  %v11931_v61 = vld [vmem:[%s21444_s1 + $0x2b8] sm:$0xf] }
 0x1f3   : > { %v1537_v56 = vpop.f32.mrf.mxu2 }
 0x1f5   : > { %v1198_v8 = vpop.f32.mrf.mxu0  ;;  %2938 = vmatpush.bf16.msra.mxu0 %v15837_v35 }
 0x1f6   : > { %v1313_v27 = vpop.f32.mrf.mxu1  ;;  %v1610_v19 = vpop.f32.mrf.mxu3 }
 0x1f7   : > { %v16712_v52 = vadd.f32 %v1313_v27, %v1198_v8  ;;  %v11912_v8 = vor.u32 %v15032_v21, %v11909_v18  ;;  %v16754_v6 = vadd.f32 %v1610_v19, %v1537_v56 }
 0x1f9   : > { %2939 = vmatpush.bf16.msra.mxu0 %v15849_v41 }
 0x1fb   : > { %v1539_v15 = vpop.f32.mrf.mxu2 }
 0x1fd   : > { %v1201_v45 = vpop.f32.mrf.mxu0  ;;  %2940 = vmatpush.bf16.msra.mxu0 %v15873_v51 }
 0x1fe   : > { %v1316_v20 = vpop.f32.mrf.mxu1  ;;  %v1612_v5 = vpop.f32.mrf.mxu3 }
 0x1ff   : > { %v16730_v39 = vadd.f32 %v1316_v20, %v1201_v45 }
 0x200   : > { %11845 = vmatmul.msk.bf16.gmra.mxu0 %vm1113_vm1, %v1646_v2  ;;  %2043 = vmatmul.bf16.gmra.mxu2 %v11904_v48  ;;  %v15033_v2 = vld [vmem:[%s21444_s1 + $0x28c] sm:$0xf0]  ;;  %v16758_v48 = vadd.f32 %v1612_v5, %v1539_v15  ;;  %v15034_v15 = vld [vmem:[%s21444_s1 + $0x29c] sm:$0xf] }
 0x201   : > { %1970 = vmatmul.bf16.gmra.mxu1 %v11900_v42  ;;  %v11908_v44 = vor.u32 %v15033_v2, %v11907_v12  ;;  %v11920_v19 = vor.u32 %v15034_v15, %v11917_v37 }
 0x202   : > { %v1650_v45 = vpack.c.bf16 %v16758_v48, %v16754_v6  ;;  %v11941_v6 = vld [vmem:[%s21444_s1 + $0x2d0] sm:$0xf0]  ;;  %v11939_v48 = vld [vmem:[%s21444_s1 + $0x2c8] sm:$0xf] }
 0x203   : > { %v1542_v30 = vpop.f32.mrf.mxu2 }
 0x205   : > { %v1203_v32 = vpop.f32.mrf.mxu0 }
 0x206   : > { %v1318_v4 = vpop.f32.mrf.mxu1  ;;  %v1615_v58 = vpop.f32.mrf.mxu3 }
 0x207   : > { %v16740_v9 = vadd.f32 %v1318_v4, %v1203_v32  ;;  %v16780_v12 = vadd.f32 %v1615_v58, %v1542_v30 }
 0x20b   : > { %v1544_v60 = vpop.f32.mrf.mxu2 }
 0x20d   : > { %v1206_v27 = vpop.f32.mrf.mxu0 }
 0x20e   : > { %v1321_v13 = vpop.f32.mrf.mxu1 }
 0x20f   : > { %v16756_v25 = vadd.f32 %v1321_v13, %v1206_v27 }
 0x210   : > { %11846 = vmatmul.msk.bf16.gmra.mxu0 %vm1113_vm1, %v1647_v43  ;;  %2048 = vmatmul.bf16.gmra.mxu2 %v11912_v8  ;;  %v15035_v43 = vld [vmem:[%s21444_s1 + $0x29c] sm:$0xf0]  ;;  %v1617_v8 = vpop.f32.mrf.mxu3 }
 0x211   : > { %1975 = vmatmul.bf16.gmra.mxu1 %v11908_v44  ;;  %v11916_v18 = vor.u32 %v15035_v43, %v11915_v46  ;;  %v16784_v44 = vadd.f32 %v1617_v8, %v1544_v60  ;;  %v15036_v60 = vld [vmem:[%s21444_s1 + $0x2ac] sm:$0xf] }
 0x212   : > { %v11928_v37 = vor.u32 %v15036_v60, %v11925_v50 }
 0x213   : > { %v1547_v42 = vpop.f32.mrf.mxu2 }
 0x215   : > { %v1208_v20 = vpop.f32.mrf.mxu0 }
 0x216   : > { %v1323_v56 = vpop.f32.mrf.mxu1 }
 0x217   : > { %v16766_v32 = vadd.f32 %v1323_v56, %v1208_v20 }
 0x218   : > { %v1620_v56 = vpop.f32.mrf.mxu3 }
 0x21b   : > { %v1549_v4 = vpop.f32.mrf.mxu2 }
 0x21d   : > { %v1211_v21 = vpop.f32.mrf.mxu0 }
 0x21e   : > { %v1326_v2 = vpop.f32.mrf.mxu1 }
 0x21f   : > { %v16782_v27 = vadd.f32 %v1326_v2, %v1211_v21 }
 0x220   : > { %11847 = vmatmul.msk.bf16.gmra.mxu0 %vm1113_vm1, %v1648_v57  ;;  %2053 = vmatmul.bf16.gmra.mxu2 %v11920_v19  ;;  %v15037_v57 = vld [vmem:[%s21444_s1 + $0x2ac] sm:$0xf0]  ;;  %v16806_v19 = vadd.f32 %v1620_v56, %v1547_v42 }
 0x221   : > { %1980 = vmatmul.bf16.gmra.mxu1 %v11916_v18  ;;  %v11924_v43 = vor.u32 %v15037_v57, %v11923_v54  ;;  %v1622_v18 = vpop.f32.mrf.mxu3 }
 0x222   : > { %v16810_v8 = vadd.f32 %v1622_v18, %v1549_v4  ;;  %v15038_v4 = vld [vmem:[%s21444_s1 + $0x2bc] sm:$0xf] }
 0x223   : > { %v1552_v5 = vpop.f32.mrf.mxu2  ;;  %v11936_v57 = vor.u32 %v15038_v4, %v11933_v59 }
 0x225   : > { %v1213_v20 = vpop.f32.mrf.mxu0 }
 0x226   : > { %v1328_v30 = vpop.f32.mrf.mxu1 }
 0x227   : > { %v16792_v58 = vadd.f32 %v1328_v30, %v1213_v20 }
 0x229   : > { %v1625_v56 = vpop.f32.mrf.mxu3 }
 0x22b   : > { %v1554_v15 = vpop.f32.mrf.mxu2 }
 0x22d   : > { %v1216_v46 = vpop.f32.mrf.mxu0 }
 0x22e   : > { %v1331_v21 = vpop.f32.mrf.mxu1 }
 0x22f   : > { %v16808_v2 = vadd.f32 %v1331_v21, %v1216_v46 }
 0x230   : > { %11848 = vmatmul.msk.bf16.gmra.mxu0 %vm1113_vm1, %v1649_v55  ;;  %2058 = vmatmul.bf16.gmra.mxu2 %v11928_v37  ;;  %v15039_v55 = vld [vmem:[%s21444_s1 + $0x2bc] sm:$0xf0] }
 0x231   : > { %1985 = vmatmul.bf16.gmra.mxu1 %v11924_v43  ;;  %v11932_v46 = vor.u32 %v15039_v55, %v11931_v61  ;;  %v16832_v43 = vadd.f32 %v1625_v56, %v1552_v5  ;;  %v1627_v18 = vpop.f32.mrf.mxu3 }
 0x233   : > { %v1557_v30 = vpop.f32.mrf.mxu2 }
 0x235   : > { %v1218_v60 = vpop.f32.mrf.mxu0 }
 0x236   : > { %v1333_v42 = vpop.f32.mrf.mxu1 }
 0x237   : > { %v16818_v50 = vadd.f32 %v1333_v42, %v1218_v60  ;;  %v16836_v42 = vadd.f32 %v1627_v18, %v1554_v15  ;;  %v15040_v15 = vld [vmem:[%s21444_s1 + $0x2cc] sm:$0xf] }
 0x239   : > { %v1630_v56 = vpop.f32.mrf.mxu3 }
 0x23b   : > { %v1559_v54 = vpop.f32.mrf.mxu2 }
 0x23d   : > { %v1221_v37 = vpop.f32.mrf.mxu0 }
 0x23e   : > { %v1336_v21 = vpop.f32.mrf.mxu1 }
 0x23f   : > { %v16834_v60 = vadd.f32 %v1336_v21, %v1221_v37  ;;  %v11944_v37 = vor.u32 %v15040_v15, %v11941_v6  ;;  %v21468_v15 = vpack.c.bf16 %v16784_v44, %v16780_v12  ;;  %v15042_v12 = vld [vmem:[%s21444_s1 + $0x2dc] sm:$0xf]  ;;  %v11949_v44 = vld [vmem:[%s21444_s1 + $0x2e0] sm:$0xf0] }
 0x240   : > { %11849 = vmatmul.msk.bf16.gmra.mxu0 %vm1113_vm1, %v1650_v45  ;;  %2063 = vmatmul.bf16.gmra.mxu2 %v11936_v57  ;;  %v15041_v45 = vld [vmem:[%s21444_s1 + $0x2cc] sm:$0xf0] }
 0x241   : > { %1990 = vmatmul.bf16.gmra.mxu1 %v11932_v46  ;;  %v11977_v46 = vld [vmem:[%s21445_s2 + $0xc] sm:$0xf]  ;;  %v11940_v18 = vor.u32 %v15041_v45, %v11939_v48  ;;  %v1632_v20 = vpop.f32.mrf.mxu3  ;;  %v15043_v48 = vld [vmem:[%s21444_s1 + $0x2dc] sm:$0xf0] }
 0x243   : > { %v1562_v59 = vpop.f32.mrf.mxu2 }
 0x245   : > { %v1223_v61 = vpop.f32.mrf.mxu0 }
 0x246   : > { %v1338_v5 = vpop.f32.mrf.mxu1 }
 0x247   : > { %v16844_v55 = vadd.f32 %v1338_v5, %v1223_v61  ;;  %v16861_v61 = vadd.f32 %v1630_v56, %v1557_v30  ;;  %v2153_v5 = vsel %vm1153_vm0, %v11977_v46, 0  ;;  %v21469_v30 = vpack.c.bf16 %v16810_v8, %v16806_v19  ;;  %v15044_v19 = vld [vmem:[%s21444_s1 + $0x2ec] sm:$0xf]  ;;  %v11957_v8 = vld [vmem:[%s21444_s1 + $0x2f0] sm:$0xf0] }
 0x248   : > { %2162 = vmatpush.bf16.msra.mxu3 %v2153_v5 }
 0x249   : > { %21467 = vst [vmem:[#allocation8_spill] sm:$0xff] %v16844_v55  ;;  %v16866_v55 = vadd.f32 %v1632_v20, %v1559_v54  ;;  %v1635_v20 = vpop.f32.mrf.mxu3  ;;  %v11947_v54 = vld [vmem:[%s21444_s1 + $0x2d8] sm:$0xf] }
 0x24b   : > { %v1564_v57 = vpop.f32.mrf.mxu2 }
 0x24c   : > { %2860 = vmatpush.bf16.msrb.mxu3 %v15775_v3 }
 0x24d   : > { %v1226_v21 = vpop.f32.mrf.mxu0 }
 0x24e   : > { %v1341_v4 = vpop.f32.mrf.mxu1 }
 0x24f   : > { %v16864_v13 = vadd.f32 %v1341_v4, %v1226_v21  ;;  %v11948_v21 = vor.u32 %v15043_v48, %v11947_v54 }
 0x250   : > { %11850 = vmatmul.msk.bf16.gmra.mxu0 %vm1113_vm1, %v21468_v15  ;;  %2068 = vmatmul.bf16.gmra.mxu2 %v11944_v37  ;;  %v11952_v37 = vor.u32 %v15042_v12, %v11949_v44  ;;  %v11955_v44 = vld [vmem:[%s21444_s1 + $0x2e8] sm:$0xf] }
 0x251   : > { %1995 = vmatmul.bf16.gmra.mxu1 %v11940_v18  ;;  %2861 = vmatpush.bf16.msrb.mxu3 %v15786_v10  ;;  %v16892_v18 = vadd.f32 %v1635_v20, %v1562_v59 }
 0x253   : > { %v16875_v56 = vpop.f32.mrf.mxu2 }
 0x255   : > { %v1228_v4 = vpop.f32.mrf.mxu0  ;;  %2862 = vmatpush.bf16.msrb.mxu3 %v15798_v16 }
 0x256   : > { %v1343_v6 = vpop.f32.mrf.mxu1  ;;  %v1637_v4 = vpop.f32.mrf.mxu3 }
 0x257   : > { %v16897_v6 = vadd.f32 %v1637_v4, %v1564_v57 }
 0x259   : > { %2863 = vmatpush.bf16.msrb.mxu3 %v15810_v22  ;;  %v1655_v59 = vpack.c.bf16 %v16897_v6, %v16892_v18 }
 0x25b   : > { %v1569_v45 = vpop.f32.mrf.mxu2 }
 0x25c   : > { %v11960_v45 = vor.u32 %v15044_v19, %v11957_v8 }
 0x25d   : > { %v1710_v46 = vpop.f32.mrf.mxu0  ;;  %2864 = vmatpush.bf16.msrb.mxu3 %v15822_v28 }
 0x25e   : > { %v16895_v5 = vadd.f32 %v1710_v46, %v16514_v36  ;;  %v1961_v15 = vpop.f32.mrf.mxu1 }
 0x260   : > { %11851 = vmatmul.msk.bf16.gmra.mxu0 %vm1113_vm1, %v21469_v30  ;;  %2073 = vmatmul.bf16.gmra.mxu2 %v11952_v37 }
 0x261   : > { %2000 = vmatmul.bf16.gmra.mxu1 %v11948_v21  ;;  %2865 = vmatpush.bf16.msrb.mxu3 %v15834_v34 }
 0x263   : > { %v2034_v20 = vpop.f32.mrf.mxu2 }
 0x264   : > { %v2035_v30 = vadd.f32 %v2034_v20, %v1961_v15 }
 0x265   : > { %v1712_v36 = vpop.f32.mrf.mxu0  ;;  %2866 = vmatpush.bf16.msrb.mxu3 %v15846_v40  ;;  %v16927_v20 = vpop.f32.mrf.mxu3 }
 0x266   : > { %v16908_v12 = vadd.f32 %v1712_v36, %v16536_v53  ;;  %v1963_v57 = vpop.f32.mrf.mxu1  ;;  %v15045_v53 = vld [vmem:[%s21444_s1 + $0x2ec] sm:$0xf0]  ;;  %v21470_v36 = vpack.c.bf16 %v16836_v42, %v16832_v43  ;;  %v15046_v43 = vld [vmem:[%s21444_s1 + $0x2fc] sm:$0xf]  ;;  %v11965_v42 = vld [vmem:[%s21444_s1 + $0x300] sm:$0xf0]  ;;  %v1641_v18 = vadd.f32 %v16927_v20, %v16875_v56 }
 0x267   : > { %v11956_v46 = vor.u32 %v15045_v53, %v11955_v44  ;;  %v11963_v53 = vld [vmem:[%s21444_s1 + $0x2f8] sm:$0xf] }
 0x269   : > { %2867 = vmatpush.bf16.msrb.mxu3 %v15861_v47 }
 0x26b   : > { %v2036_v54 = vpop.f32.mrf.mxu2 }
 0x26c   : > { %v2037_v48 = vadd.f32 %v2036_v54, %v1963_v57 }
 0x26d   : > { %v1715_v37 = vpop.f32.mrf.mxu0 }
 0x26e   : > { %v2098_v21 = vpack.c.bf16 %v2037_v48, %v2035_v30  ;;  %v16925_v4 = vadd.f32 %v1715_v37, %v16544_v1  ;;  %v1966_v15 = vpop.f32.mrf.mxu1  ;;  %v1642_v30 = vpop.f32.mrf.mxu3 }
 0x270   : > { %11852 = vmatmul.msk.bf16.gmra.mxu0 %vm1113_vm1, %v21470_v36  ;;  %2078 = vmatmul.bf16.gmra.mxu2 %v11960_v45  ;;  %v11968_v45 = vor.u32 %v15046_v43, %v11965_v42  ;;  %v11971_v42 = vld [vmem:[%s21444_s1 + $0x308] sm:$0xf] }
 0x271   : > { %2005 = vmatmul.bf16.gmra.mxu1 %v11956_v46  ;;  %11978 = vmatmul.msk.bf16.vlgmr.msra.gmra.mxu3 %vm1113_vm1, %v2098_v21 }
 0x272   : > { %3387 = vmatpush.bf16.msra.mxu3 %v15780_v7 }
 0x273   : > { %v2039_v57 = vpop.f32.mrf.mxu2 }
 0x274   : > { %v2040_v44 = vadd.f32 %v2039_v57, %v1966_v15  ;;  %v21471_v57 = vpack.c.bf16 %v16866_v55, %v16861_v61  ;;  %v15048_v55 = vld [vmem:[%s21444_s1 + $0x30c] sm:$0xf]  ;;  %v11973_v61 = vld [vmem:[%s21444_s1 + $0x310] sm:$0xf0] }
 0x275   : > { %v1717_v19 = vpop.f32.mrf.mxu0 }
 0x276   : > { %v16936_v8 = vadd.f32 %v1717_v19, %v16562_v26  ;;  %v1968_v1 = vpop.f32.mrf.mxu1  ;;  %3388 = vmatpush.bf16.msra.mxu3 %v15789_v11  ;;  %v15047_v26 = vld [vmem:[%s21444_s1 + $0x2fc] sm:$0xf0] }
 0x277   : > { %v11964_v46 = vor.u32 %v15047_v26, %v11963_v53  ;;  %v11976_v26 = vor.u32 %v15048_v55, %v11973_v61 }
 0x27a   : > { %3389 = vmatpush.bf16.msra.mxu3 %v15801_v17 }
 0x27b   : > { %v2041_v54 = vpop.f32.mrf.mxu2 }
 0x27c   : > { %v2042_v48 = vadd.f32 %v2041_v54, %v1968_v1 }
 0x27d   : > { %v1720_v37 = vpop.f32.mrf.mxu0 }
 0x27e   : > { %v2099_v21 = vpack.c.bf16 %v2042_v48, %v2040_v44  ;;  %v16953_v36 = vadd.f32 %v1720_v37, %v16574_v33  ;;  %v1971_v15 = vpop.f32.mrf.mxu1  ;;  %3390 = vmatpush.bf16.msra.mxu3 %v15813_v23 }
 0x280   : > { %11853 = vmatmul.msk.bf16.gmra.mxu0 %vm1113_vm1, %v21471_v57  ;;  %2083 = vmatmul.bf16.gmra.mxu2 %v11968_v45 }
 0x281   : > { %2010 = vmatmul.bf16.gmra.mxu1 %v11964_v46  ;;  %11979 = vmatmul.msk.bf16.gmra.mxu3 %vm1113_vm1, %v2099_v21 }
 0x282   : > { %3391 = vmatpush.bf16.msra.mxu3 %v15825_v29 }
 0x283   : > { %v2044_v19 = vpop.f32.mrf.mxu2 }
 0x284   : > { %v2045_v43 = vadd.f32 %v2044_v19, %v1971_v15 }
 0x285   : > { %v1722_v1 = vpop.f32.mrf.mxu0 }
 0x286   : > { %v16963_v30 = vadd.f32 %v1722_v1, %v16596_v49  ;;  %v1973_v33 = vpop.f32.mrf.mxu1  ;;  %3392 = vmatpush.bf16.msra.mxu3 %v15837_v35  ;;  %v15049_v49 = vld [vmem:[%s21444_s1 + $0x30c] sm:$0xf0] }
 0x287   : > { %v11972_v48 = vor.u32 %v15049_v49, %v11971_v42  ;;  %v1656_v49 = vpack.c.bf16 %v1641_v18, %v1641_v18 }
 0x28a   : > { %3393 = vmatpush.bf16.msra.mxu3 %v15849_v41 }
 0x28b   : > { %v2046_v44 = vpop.f32.mrf.mxu2 }
 0x28c   : > { %v2047_v53 = vadd.f32 %v2046_v44, %v1973_v33 }
 0x28d   : > { %v1725_v54 = vpop.f32.mrf.mxu0 }
 0x28e   : > { %v2100_v45 = vpack.c.bf16 %v2047_v53, %v2045_v43  ;;  %v16980_v37 = vadd.f32 %v1725_v54, %v16608_v63  ;;  %v1976_v46 = vpop.f32.mrf.mxu1  ;;  %3394 = vmatpush.bf16.msra.mxu3 %v15873_v51  ;;  %v11880_v63 = vld [vmem:[%s21444_s1 + $0x318] sm:$0x33] }
 0x28f   : > { %v1899_v1 = vunpack.c.h.b16 %v11880_v63  ;;  %v1898_v33 = vunpack.c.l.b16 %v11880_v63 }
 0x290   : > { %11854 = vmatmul.msk.bf16.gmra.mxu0 %vm1113_vm1, %v1655_v59  ;;  %2088 = vmatmul.bf16.gmra.mxu2 %v11976_v26 }
 0x291   : > { %2015 = vmatmul.bf16.gmra.mxu1 %v11972_v48  ;;  %11980 = vmatmul.msk.bf16.gmra.mxu3 %vm1113_vm1, %v2100_v45  ;;  %v1925_v61 = vpack.c.b16 %v1899_v1, %v1899_v1  ;;  %v1924_v42 = vpack.c.b16 %v1898_v33, %v1898_v33  ;;  %v12018_v48 = vld [vmem:[%s21444_s1 + $0x320] sm:$0xf] }
 0x293   : > { %v2049_v21 = vpop.f32.mrf.mxu2 }
 0x294   : > { %v2050_v6 = vadd.f32 %v2049_v21, %v1976_v46  ;;  %v15050_v46 = vld [vmem:[%s21444_s1 + $0x324] sm:$0xf]  ;;  %v12020_v21 = vld [vmem:[%s21444_s1 + $0x328] sm:$0xf0] }
 0x295   : > { %v1727_v15 = vpop.f32.mrf.mxu0  ;;  %v12023_v1 = vor.u32 %v15050_v46, %v12020_v21 }
 0x296   : > { %v16989_v57 = vadd.f32 %v1727_v15, %v16632_v24  ;;  %v1978_v19 = vpop.f32.mrf.mxu1 }
 0x29b   : > { %v2051_v59 = vpop.f32.mrf.mxu2 }
 0x29c   : > { %v2052_v55 = vadd.f32 %v2051_v59, %v1978_v19 }
 0x29d   : > { %v1730_v43 = vpop.f32.mrf.mxu0 }
 0x29e   : > { %v2101_v44 = vpack.c.bf16 %v2052_v55, %v2050_v6  ;;  %v16997_v24 = vadd.f32 %v1730_v43, %v16640_v38  ;;  %v1981_v53 = vpop.f32.mrf.mxu1  ;;  %v15051_v38 = vld [vmem:[%s21444_s1 + $0x324] sm:$0xf0] }
 0x29f   : > { %v12019_v19 = vor.u32 %v15051_v38, %v12018_v48 }
 0x2a0   : > { %11855 = vmatmul.msk.bf16.gmra.mxu0 %vm1113_vm1, %v1656_v49  ;;  %2093 = vmatmul.bf16.gmra.mxu2 %v1925_v61 }
 0x2a1   : > { %2020 = vmatmul.bf16.gmra.mxu1 %v1924_v42  ;;  %11981 = vmatmul.msk.bf16.gmra.mxu3 %vm1113_vm1, %v2101_v44  ;;  %v12026_v42 = vld [vmem:[%s21444_s1 + $0x330] sm:$0xf]  ;;  %v15052_v44 = vld [vmem:[%s21444_s1 + $0x334] sm:$0xf] }
 0x2a3   : > { %v2054_v26 = vpop.f32.mrf.mxu2 }
 0x2a4   : > { %v2055_v45 = vadd.f32 %v2054_v26, %v1981_v53  ;;  %v12028_v53 = vld [vmem:[%s21444_s1 + $0x338] sm:$0xf0] }
 0x2a5   : > { %v1732_v56 = vpop.f32.mrf.mxu0  ;;  %v12031_v48 = vor.u32 %v15052_v44, %v12028_v53 }
 0x2a6   : > { %v17002_v20 = vadd.f32 %v1732_v56, %v16654_v62  ;;  %v1983_v54 = vpop.f32.mrf.mxu1 }
 0x2ab   : > { %v2056_v62 = vpop.f32.mrf.mxu2 }
 0x2ac   : > { %v2057_v15 = vadd.f32 %v2056_v62, %v1983_v54 }
 0x2ad   : > { %v1735_v63 = vpop.f32.mrf.mxu0 }
 0x2ae   : > { %v2102_v33 = vpack.c.bf16 %v2057_v15, %v2055_v45  ;;  %v17017_v18 = vadd.f32 %v1735_v63, %v16670_v31  ;;  %v1986_v6 = vpop.f32.mrf.mxu1  ;;  %v15053_v31 = vld [vmem:[%s21444_s1 + $0x334] sm:$0xf0]  ;;  %v12034_v63 = vld [vmem:[%s21444_s1 + $0x340] sm:$0xf] }
 0x2af   : > { %v12027_v56 = vor.u32 %v15053_v31, %v12026_v42 }
 0x2b0   : > { %2414 = vmatmul.bf16.vlgmr.msrb.gmra.mxu0 %v12019_v19 }
 0x2b1   : > { %11982 = vmatmul.msk.bf16.gmra.mxu3 %vm1113_vm1, %v2102_v33  ;;  %2487 = vmatmul.bf16.vlgmr.msrb.gmra.mxu1 %v12023_v1  ;;  %v15054_v33 = vld [vmem:[%s21444_s1 + $0x344] sm:$0xf] }
 0x2b3   : > { %v2059_v59 = vpop.f32.mrf.mxu2 }
 0x2b4   : > { %v2060_v49 = vadd.f32 %v2059_v59, %v1986_v6  ;;  %v12036_v6 = vld [vmem:[%s21444_s1 + $0x348] sm:$0xf0] }
 0x2b5   : > { %v1737_v55 = vpop.f32.mrf.mxu0  ;;  %v12039_v42 = vor.u32 %v15054_v33, %v12036_v6 }
 0x2b6   : > { %v17021_v61 = vadd.f32 %v1737_v55, %v16682_v0  ;;  %v1988_v43 = vpop.f32.mrf.mxu1 }
 0x2bb   : > { %v2061_v0 = vpop.f32.mrf.mxu2 }
 0x2bc   : > { %v2062_v26 = vadd.f32 %v2061_v0, %v1988_v43 }
 0x2bd   : > { %v1740_v54 = vpop.f32.mrf.mxu0 }
 0x2be   : > { %v2103_v38 = vpack.c.bf16 %v2062_v26, %v2060_v49  ;;  %v17036_v45 = vadd.f32 %v1740_v54, %v16700_v14  ;;  %v1991_v46 = vpop.f32.mrf.mxu1  ;;  %v15055_v14 = vld [vmem:[%s21444_s1 + $0x344] sm:$0xf0]  ;;  %v12042_v54 = vld [vmem:[%s21444_s1 + $0x350] sm:$0xf] }
 0x2bf   : > { %v12035_v55 = vor.u32 %v15055_v14, %v12034_v63 }
 0x2c0   : > { %2419 = vmatmul.bf16.gmra.mxu0 %v12027_v56 }
 0x2c1   : > { %11983 = vmatmul.msk.bf16.gmra.mxu3 %vm1113_vm1, %v2103_v38  ;;  %2492 = vmatmul.bf16.gmra.mxu1 %v12031_v48  ;;  %v15056_v38 = vld [vmem:[%s21444_s1 + $0x354] sm:$0xf] }
 0x2c3   : > { %v2064_v21 = vpop.f32.mrf.mxu2 }
 0x2c4   : > { %v2065_v1 = vadd.f32 %v2064_v21, %v1991_v46  ;;  %v12044_v46 = vld [vmem:[%s21444_s1 + $0x358] sm:$0xf0] }
 0x2c5   : > { %v1742_v62 = vpop.f32.mrf.mxu0  ;;  %v12047_v63 = vor.u32 %v15056_v38, %v12044_v46 }
 0x2c6   : > { %v17040_v15 = vadd.f32 %v1742_v62, %v16712_v52  ;;  %v1993_v19 = vpop.f32.mrf.mxu1 }
 0x2cb   : > { %v2066_v52 = vpop.f32.mrf.mxu2 }
 0x2cc   : > { %v2067_v59 = vadd.f32 %v2066_v52, %v1993_v19 }
 0x2cd   : > { %v1745_v43 = vpop.f32.mrf.mxu0 }
 0x2ce   : > { %v2104_v31 = vpack.c.bf16 %v2067_v59, %v2065_v1  ;;  %v17055_v49 = vadd.f32 %v1745_v43, %v16730_v39  ;;  %v1996_v44 = vpop.f32.mrf.mxu1  ;;  %v15057_v39 = vld [vmem:[%s21444_s1 + $0x354] sm:$0xf0]  ;;  %v12050_v43 = vld [vmem:[%s21444_s1 + $0x360] sm:$0xf] }
 0x2cf   : > { %v12043_v62 = vor.u32 %v15057_v39, %v12042_v54 }
 0x2d0   : > { %2424 = vmatmul.bf16.gmra.mxu0 %v12035_v55 }
 0x2d1   : > { %11984 = vmatmul.msk.bf16.gmra.mxu3 %vm1113_vm1, %v2104_v31  ;;  %2497 = vmatmul.bf16.gmra.mxu1 %v12039_v42  ;;  %v15058_v31 = vld [vmem:[%s21444_s1 + $0x364] sm:$0xf] }
 0x2d3   : > { %v2069_v53 = vpop.f32.mrf.mxu2 }
 0x2d4   : > { %v2070_v48 = vadd.f32 %v2069_v53, %v1996_v44  ;;  %v12052_v44 = vld [vmem:[%s21444_s1 + $0x368] sm:$0xf0] }
 0x2d5   : > { %v1747_v0 = vpop.f32.mrf.mxu0  ;;  %v12055_v54 = vor.u32 %v15058_v31, %v12052_v44 }
 0x2d6   : > { %v17059_v26 = vadd.f32 %v1747_v0, %v16740_v9  ;;  %v1998_v56 = vpop.f32.mrf.mxu1 }
 0x2db   : > { %v2071_v9 = vpop.f32.mrf.mxu2 }
 0x2dc   : > { %v2072_v21 = vadd.f32 %v2071_v9, %v1998_v56 }
 0x2dd   : > { %v1750_v19 = vpop.f32.mrf.mxu0 }
 0x2de   : > { %v2105_v14 = vpack.c.bf16 %v2072_v21, %v2070_v48  ;;  %v17074_v1 = vadd.f32 %v1750_v19, %v16756_v25  ;;  %v2001_v33 = vpop.f32.mrf.mxu1  ;;  %v15059_v25 = vld [vmem:[%s21444_s1 + $0x364] sm:$0xf0] }
 0x2df   : > { %v12051_v0 = vor.u32 %v15059_v25, %v12050_v43 }
 0x2e0   : > { %2429 = vmatmul.bf16.gmra.mxu0 %v12043_v62 }
 0x2e1   : > { %11985 = vmatmul.msk.bf16.gmra.mxu3 %vm1113_vm1, %v2105_v14  ;;  %2502 = vmatmul.bf16.gmra.mxu1 %v12047_v63  ;;  %v15061_v14 = vld [vmem:[%s21444_s1 + $0x374] sm:$0xf0] }
 0x2e3   : > { %v2074_v6 = vpop.f32.mrf.mxu2 }
 0x2e4   : > { %v2075_v42 = vadd.f32 %v2074_v6, %v2001_v33  ;;  %v15060_v6 = vld [vmem:[%s21444_s1 + $0x374] sm:$0xf] }
 0x2e5   : > { %v1752_v52 = vpop.f32.mrf.mxu0 }
 0x2e6   : > { %v17078_v59 = vadd.f32 %v1752_v52, %v16766_v32  ;;  %v2003_v55 = vpop.f32.mrf.mxu1 }
 0x2eb   : > { %v2076_v32 = vpop.f32.mrf.mxu2 }
 0x2ec   : > { %v2077_v53 = vadd.f32 %v2076_v32, %v2003_v55 }
 0x2ed   : > { %v1755_v56 = vpop.f32.mrf.mxu0 }
 0x2ee   : > { %v2106_v39 = vpack.c.bf16 %v2077_v53, %v2075_v42  ;;  %v17093_v48 = vadd.f32 %v1755_v56, %v16782_v27  ;;  %v2006_v38 = vpop.f32.mrf.mxu1  ;;  %v12058_v27 = vld [vmem:[%s21444_s1 + $0x370] sm:$0xf] }
 0x2ef   : > { %v12059_v43 = vor.u32 %v15061_v14, %v12058_v27 }
 0x2f0   : > { %2434 = vmatmul.bf16.gmra.mxu0 %v12051_v0 }
 0x2f1   : > { %11986 = vmatmul.msk.bf16.gmra.mxu3 %vm1113_vm1, %v2106_v39  ;;  %2507 = vmatmul.bf16.gmra.mxu1 %v12055_v54 }
 0x2f3   : > { %v2079_v46 = vpop.f32.mrf.mxu2 }
 0x2f4   : > { %v2164_v9 = vpop.f32.mrf.mxu3  ;;  %v2080_v33 = vadd.f32 %v2079_v46, %v2006_v38  ;;  %v15063_v46 = vld [vmem:[%s21444_s1 + $0x384] sm:$0xf0] }
 0x2f5   : > { %v17097_v21 = vadd.f32 %v2164_v9, %v16895_v5  ;;  %v1757_v62 = vpop.f32.mrf.mxu0  ;;  %v12060_v5 = vld [vmem:[%s21444_s1 + $0x378] sm:$0xf0] }
 0x2f6   : > { %v17100_v19 = vadd.f32 %v1757_v62, %v16792_v58  ;;  %v2008_v63 = vpop.f32.mrf.mxu1  ;;  %v12063_v31 = vor.u32 %v15060_v6, %v12060_v5  ;;  %v15062_v62 = vld [vmem:[%s21444_s1 + $0x384] sm:$0xf] }
 0x2fb   : > { %v2081_v58 = vpop.f32.mrf.mxu2 }
 0x2fc   : > { %v2082_v52 = vadd.f32 %v2081_v58, %v2008_v63  ;;  %v2166_v55 = vpop.f32.mrf.mxu3 }
 0x2fd   : > { %v17115_v25 = vadd.f32 %v2166_v55, %v16908_v12  ;;  %v1760_v42 = vpop.f32.mrf.mxu0 }
 0x2fe   : > { %v2107_v44 = vpack.c.bf16 %v2082_v52, %v2080_v33  ;;  %v17118_v32 = vadd.f32 %v1760_v42, %v16808_v2  ;;  %v2011_v53 = vpop.f32.mrf.mxu1  ;;  %v12066_v2 = vld [vmem:[%s21444_s1 + $0x380] sm:$0xf] }
 0x2ff   : > { %v12067_v14 = vor.u32 %v15063_v46, %v12066_v2  ;;  %v15064_v2 = vld [vmem:[%s21444_s1 + $0x394] sm:$0xf]  ;;  %v12076_v46 = vld [vmem:[%s21444_s1 + $0x398] sm:$0xf0] }
 0x300   : > { %2439 = vmatmul.bf16.gmra.mxu0 %v12059_v43 }
 0x301   : > { %11987 = vmatmul.msk.bf16.gmra.mxu3 %vm1113_vm1, %v2107_v44  ;;  %2512 = vmatmul.bf16.gmra.mxu1 %v12063_v31 }
 0x303   : > { %v2084_v0 = vpop.f32.mrf.mxu2 }
 0x304   : > { %v2169_v56 = vpop.f32.mrf.mxu3  ;;  %v2085_v9 = vadd.f32 %v2084_v0, %v2011_v53  ;;  %v21472_v53 = vld [vmem:[#allocation8_spill] sm:$0xff] }
 0x305   : > { %v17122_v54 = vadd.f32 %v2169_v56, %v16925_v4  ;;  %v1762_v39 = vpop.f32.mrf.mxu0  ;;  %v12068_v4 = vld [vmem:[%s21444_s1 + $0x388] sm:$0xf0] }
 0x306   : > { %v17125_v12 = vadd.f32 %v1762_v39, %v16818_v50  ;;  %v2013_v38 = vpop.f32.mrf.mxu1  ;;  %v12071_v5 = vor.u32 %v15062_v62, %v12068_v4  ;;  %v12074_v39 = vld [vmem:[%s21444_s1 + $0x390] sm:$0xf] }
 0x30b   : > { %v2086_v50 = vpop.f32.mrf.mxu2 }
 0x30c   : > { %v2087_v63 = vadd.f32 %v2086_v50, %v2013_v38  ;;  %v2171_v27 = vpop.f32.mrf.mxu3 }
 0x30d   : > { %v17140_v33 = vadd.f32 %v2171_v27, %v16936_v8  ;;  %v1765_v6 = vpop.f32.mrf.mxu0 }
 0x30e   : > { %v2108_v58 = vpack.c.bf16 %v2087_v63, %v2085_v9  ;;  %v17143_v52 = vadd.f32 %v1765_v6, %v16834_v60  ;;  %v2016_v55 = vpop.f32.mrf.mxu1  ;;  %v12112_v60 = vld [vmem:[%s21445_s2 + $0x10] sm:$0xf] }
 0x30f   : > { %v2607_v56 = vsel %vm1153_vm0, %v12112_v60, 0  ;;  %v15066_v60 = vld [vmem:[%s21444_s1 + $0x3a4] sm:$0xf] }
 0x310   : > { %2444 = vmatmul.bf16.gmra.mxu0 %v12067_v14  ;;  %2616 = vmatpush.bf16.msrb.mxu2 %v2607_v56  ;;  %v12079_v14 = vor.u32 %v15064_v2, %v12076_v46 }
 0x311   : > { %11988 = vmatmul.msk.bf16.gmra.mxu3 %vm1113_vm1, %v2108_v58  ;;  %2517 = vmatmul.bf16.gmra.mxu1 %v12071_v5 }
 0x313   : > { %v2089_v43 = vpop.f32.mrf.mxu2 }
 0x314   : > { %v2174_v42 = vpop.f32.mrf.mxu3  ;;  %3314 = vmatpush.bf16.msra.mxu2 %v15775_v3  ;;  %v2090_v38 = vadd.f32 %v2089_v43, %v2016_v55 }
 0x315   : > { %v17147_v31 = vadd.f32 %v2174_v42, %v16953_v36  ;;  %v1767_v44 = vpop.f32.mrf.mxu0  ;;  %v15065_v36 = vld [vmem:[%s21444_s1 + $0x394] sm:$0xf0] }
 0x316   : > { %v17150_v8 = vadd.f32 %v1767_v44, %v21472_v53  ;;  %v2018_v0 = vpop.f32.mrf.mxu1  ;;  %v12075_v50 = vor.u32 %v15065_v36, %v12074_v39 }
 0x318   : > { %3315 = vmatpush.bf16.msra.mxu2 %v15786_v10 }
 0x31b   : > { %v2091_v9 = vpop.f32.mrf.mxu2 }
 0x31c   : > { %v2092_v62 = vadd.f32 %v2091_v9, %v2018_v0  ;;  %v2176_v4 = vpop.f32.mrf.mxu3  ;;  %3316 = vmatpush.bf16.msra.mxu2 %v15798_v16  ;;  %v15067_v0 = vld [vmem:[%s21444_s1 + $0x3a4] sm:$0xf0] }
 0x31d   : > { %v17170_v63 = vadd.f32 %v2176_v4, %v16963_v30  ;;  %v1770_v27 = vpop.f32.mrf.mxu0 }
 0x31e   : > { %v2109_v6 = vpack.c.bf16 %v2092_v62, %v2090_v38  ;;  %v17174_v5 = vadd.f32 %v1770_v27, %v16864_v13  ;;  %v2021_v58 = vpop.f32.mrf.mxu1  ;;  %v12082_v13 = vld [vmem:[%s21444_s1 + $0x3a0] sm:$0xf] }
 0x31f   : > { %v12083_v36 = vor.u32 %v15067_v0, %v12082_v13 }
 0x320   : > { %2449 = vmatmul.bf16.gmra.mxu0 %v12075_v50  ;;  %3317 = vmatpush.bf16.msra.mxu2 %v15810_v22 }
 0x321   : > { %11989 = vmatmul.msk.bf16.gmra.mxu3 %vm1113_vm1, %v2109_v6  ;;  %2522 = vmatmul.bf16.gmra.mxu1 %v12079_v14 }
 0x323   : > { %v2094_v55 = vpop.f32.mrf.mxu2 }
 0x324   : > { %v2179_v43 = vpop.f32.mrf.mxu3  ;;  %v2095_v53 = vadd.f32 %v2094_v55, %v2021_v58  ;;  %3318 = vmatpush.bf16.msra.mxu2 %v15822_v28  ;;  %v12090_v55 = vld [vmem:[%s21444_s1 + $0x3b0] sm:$0xf] }
 0x325   : > { %v17179_v30 = vadd.f32 %v2179_v43, %v16980_v37  ;;  %v1772_v42 = vpop.f32.mrf.mxu0  ;;  %v12084_v37 = vld [vmem:[%s21444_s1 + $0x3a8] sm:$0xf0]  ;;  %v15069_v43 = vld [vmem:[%s21444_s1 + $0x3b4] sm:$0xf0] }
 0x326   : > { %v2023_v44 = vpop.f32.mrf.mxu1  ;;  %v2110_v38 = vpack.c.bf16 %v2095_v53, %v2095_v53  ;;  %v12087_v9 = vor.u32 %v15066_v60, %v12084_v37  ;;  %v12092_v42 = vld [vmem:[%s21444_s1 + $0x3b8] sm:$0xf0]  ;;  %v15075_v53 = vld [vmem:[%s21444_s1 + $0x3ec] sm:$0xf0]  ;;  %v12091_v0 = vor.u32 %v15069_v43, %v12090_v55  ;;  %v15077_v55 = vld [vmem:[%s21444_s1 + $0x3fc] sm:$0xf0] }
 0x327   : > { %v12153_v44 = vld [vmem:[%s21444_s1 + $0x3e8] sm:$0xf] }
 0x328   : > { %3319 = vmatpush.bf16.msra.mxu2 %v15834_v34 }
 0x32b   : > { %v2096_v56 = vpop.f32.mrf.mxu2 }
 0x32c   : > { %v2181_v39 = vpop.f32.mrf.mxu3  ;;  %3320 = vmatpush.bf16.msra.mxu2 %v15846_v40 }
 0x32d   : > { %v17196_v2 = vadd.f32 %v2181_v39, %v16989_v57  ;;  %v2415_v46 = vpop.f32.mrf.mxu0  ;;  %v12154_v39 = vor.u32 %v15075_v53, %v12153_v44 }
 0x32e   : > { %v2488_v62 = vpop.f32.mrf.mxu1 }
 0x32f   : > { %v2489_v57 = vadd.f32 %v2488_v62, %v2415_v46 }
 0x330   : > { %2454 = vmatmul.bf16.gmra.mxu0 %v12083_v36  ;;  %3321 = vmatpush.bf16.msra.mxu2 %v15861_v47 }
 0x331   : > { %11990 = vmatmul.msk.bf16.gmra.mxu3 %vm1113_vm1, %v2110_v38  ;;  %2527 = vmatmul.bf16.gmra.mxu1 %v12087_v9 }
 0x334   : > { %v2184_v4 = vpop.f32.mrf.mxu3 }
 0x335   : > { %v17202_v50 = vadd.f32 %v2184_v4, %v16997_v24  ;;  %v2417_v27 = vpop.f32.mrf.mxu0  ;;  %v15068_v24 = vld [vmem:[%s21444_s1 + $0x3b4] sm:$0xf] }
 0x336   : > { %v2490_v14 = vpop.f32.mrf.mxu1  ;;  %v12095_v56 = vor.u32 %v15068_v24, %v12092_v42 }
 0x337   : > { %v2491_v6 = vadd.f32 %v2490_v14, %v2417_v27  ;;  %v12098_v14 = vld [vmem:[%s21444_s1 + $0x3c0] sm:$0xf] }
 0x339   : > { %v2552_v58 = vpack.c.bf16 %v2491_v6, %v2489_v57  ;;  %v15071_v57 = vld [vmem:[%s21444_s1 + $0x3c4] sm:$0xf0]  ;;  %v12100_v6 = vld [vmem:[%s21444_s1 + $0x3c8] sm:$0xf0] }
 0x33a   : > { %v12099_v24 = vor.u32 %v15071_v57, %v12098_v14  ;;  %v15079_v14 = vld [vmem:[%s21444_s1 + $0x40c] sm:$0xf0] }
 0x33b   : > { %12113 = vmatmul.msk.bf16.vlgmr.msrb.gmra.mxu2 %vm1113_vm1, %v2552_v58  ;;  %v12161_v58 = vld [vmem:[%s21444_s1 + $0x3f8] sm:$0xf] }
 0x33c   : > { %v2186_v13 = vpop.f32.mrf.mxu3  ;;  %3841 = vmatpush.bf16.msrb.mxu2 %v15780_v7 }
 0x33d   : > { %v17226_v60 = vadd.f32 %v2186_v13, %v17002_v20  ;;  %v2420_v37 = vpop.f32.mrf.mxu0  ;;  %v12162_v13 = vor.u32 %v15077_v55, %v12161_v58 }
 0x33e   : > { %v2493_v36 = vpop.f32.mrf.mxu1 }
 0x33f   : > { %v2494_v4 = vadd.f32 %v2493_v36, %v2420_v37 }
 0x340   : > { %2459 = vmatmul.bf16.gmra.mxu0 %v12091_v0  ;;  %3842 = vmatpush.bf16.msrb.mxu2 %v15789_v11 }
 0x341   : > { %2532 = vmatmul.bf16.gmra.mxu1 %v12095_v56  ;;  %2868 = vmatmul.bf16.vlgmr.msrb.gmra.mxu3 %v12154_v39 }
 0x344   : > { %v2189_v38 = vpop.f32.mrf.mxu3  ;;  %3843 = vmatpush.bf16.msrb.mxu2 %v15801_v17 }
 0x345   : > { %v17231_v46 = vadd.f32 %v2189_v38, %v17017_v18  ;;  %v2422_v9 = vpop.f32.mrf.mxu0  ;;  %v15070_v18 = vld [vmem:[%s21444_s1 + $0x3c4] sm:$0xf] }
 0x346   : > { %v2495_v62 = vpop.f32.mrf.mxu1  ;;  %v12103_v53 = vor.u32 %v15070_v18, %v12100_v6 }
 0x347   : > { %v2496_v20 = vadd.f32 %v2495_v62, %v2422_v9  ;;  %v12106_v62 = vld [vmem:[%s21444_s1 + $0x3d0] sm:$0xf] }
 0x348   : > { %3844 = vmatpush.bf16.msrb.mxu2 %v15813_v23 }
 0x349   : > { %v2553_v27 = vpack.c.bf16 %v2496_v20, %v2494_v4  ;;  %v15073_v4 = vld [vmem:[%s21444_s1 + $0x3d4] sm:$0xf0]  ;;  %v12108_v20 = vld [vmem:[%s21444_s1 + $0x3d8] sm:$0xf0] }
 0x34a   : > { %v12107_v18 = vor.u32 %v15073_v4, %v12106_v62 }
 0x34b   : > { %12114 = vmatmul.msk.bf16.gmra.mxu2 %vm1113_vm1, %v2553_v27  ;;  %v12169_v27 = vld [vmem:[%s21444_s1 + $0x408] sm:$0xf] }
 0x34c   : > { %v2191_v43 = vpop.f32.mrf.mxu3  ;;  %3845 = vmatpush.bf16.msrb.mxu2 %v15825_v29 }
 0x34d   : > { %v17255_v42 = vadd.f32 %v2191_v43, %v17021_v61  ;;  %v2425_v44 = vpop.f32.mrf.mxu0  ;;  %v12170_v43 = vor.u32 %v15079_v14, %v12169_v27 }
 0x34e   : > { %v2498_v0 = vpop.f32.mrf.mxu1 }
 0x34f   : > { %v2499_v38 = vadd.f32 %v2498_v0, %v2425_v44  ;;  %v12015_v0 = vld [vmem:[%s21444_s1 + $0x3e0] sm:$0x33] }
 0x350   : > { %2464 = vmatmul.bf16.gmra.mxu0 %v12099_v24  ;;  %3846 = vmatpush.bf16.msrb.mxu2 %v15837_v35 }
 0x351   : > { %2537 = vmatmul.bf16.gmra.mxu1 %v12103_v53  ;;  %2873 = vmatmul.bf16.gmra.mxu3 %v12162_v13 }
 0x354   : > { %v2194_v37 = vpop.f32.mrf.mxu3  ;;  %3847 = vmatpush.bf16.msrb.mxu2 %v15849_v41 }
 0x355   : > { %v17260_v56 = vadd.f32 %v2194_v37, %v17036_v45  ;;  %v2427_v39 = vpop.f32.mrf.mxu0  ;;  %v15072_v45 = vld [vmem:[%s21444_s1 + $0x3d4] sm:$0xf] }
 0x356   : > { %v2500_v36 = vpop.f32.mrf.mxu1  ;;  %v12111_v55 = vor.u32 %v15072_v45, %v12108_v20 }
 0x357   : > { %v2501_v61 = vadd.f32 %v2500_v36, %v2427_v39  ;;  %v2352_v36 = vunpack.c.l.b16 %v12015_v0 }
 0x358   : > { %3848 = vmatpush.bf16.msrb.mxu2 %v15873_v51 }
 0x359   : > { %v2554_v9 = vpack.c.bf16 %v2501_v61, %v2499_v38  ;;  %v2353_v61 = vunpack.c.h.b16 %v12015_v0  ;;  %v2378_v4 = vpack.c.b16 %v2352_v36, %v2352_v36  ;;  %v12155_v0 = vld [vmem:[%s21444_s1 + $0x3f0] sm:$0xf0] }
 0x35b   : > { %12115 = vmatmul.msk.bf16.gmra.mxu2 %vm1113_vm1, %v2554_v9  ;;  %v12177_v9 = vld [vmem:[%s21444_s1 + $0x418] sm:$0xf]  ;;  %v2379_v27 = vpack.c.b16 %v2353_v61, %v2353_v61 }
 0x35c   : > { %v2196_v57 = vpop.f32.mrf.mxu3 }
 0x35d   : > { %v17283_v6 = vadd.f32 %v2196_v57, %v17040_v15  ;;  %v2430_v58 = vpop.f32.mrf.mxu0 }
 0x35e   : > { %v2503_v24 = vpop.f32.mrf.mxu1 }
 0x35f   : > { %v2504_v39 = vadd.f32 %v2503_v24, %v2430_v58 }
 0x360   : > { %2469 = vmatmul.bf16.gmra.mxu0 %v12107_v18 }
 0x361   : > { %2542 = vmatmul.bf16.gmra.mxu1 %v12111_v55  ;;  %2878 = vmatmul.bf16.gmra.mxu3 %v12170_v43 }
 0x364   : > { %v2199_v44 = vpop.f32.mrf.mxu3 }
 0x365   : > { %v17286_v53 = vadd.f32 %v2199_v44, %v17055_v49  ;;  %v2432_v13 = vpop.f32.mrf.mxu0  ;;  %v15081_v49 = vld [vmem:[%s21444_s1 + $0x41c] sm:$0xf0] }
 0x366   : > { %v2505_v37 = vpop.f32.mrf.mxu1  ;;  %v12178_v14 = vor.u32 %v15081_v49, %v12177_v9 }
 0x367   : > { %v2506_v15 = vadd.f32 %v2505_v37, %v2432_v13  ;;  %v12185_v37 = vld [vmem:[%s21444_s1 + $0x428] sm:$0xf] }
 0x369   : > { %v2555_v38 = vpack.c.bf16 %v2506_v15, %v2504_v39 }
 0x36b   : > { %12116 = vmatmul.msk.bf16.gmra.mxu2 %vm1113_vm1, %v2555_v38 }
 0x36c   : > { %v2201_v62 = vpop.f32.mrf.mxu3 }
 0x36d   : > { %v17299_v45 = vadd.f32 %v2201_v62, %v17059_v26  ;;  %v2435_v20 = vpop.f32.mrf.mxu0  ;;  %v15074_v26 = vld [vmem:[%s21444_s1 + $0x3ec] sm:$0xf] }
 0x36e   : > { %v2508_v57 = vpop.f32.mrf.mxu1  ;;  %v12158_v15 = vor.u32 %v15074_v26, %v12155_v0 }
 0x36f   : > { %v2509_v24 = vadd.f32 %v2508_v57, %v2435_v20 }
 0x370   : > { %2474 = vmatmul.bf16.gmra.mxu0 %v2378_v4 }
 0x371   : > { %2547 = vmatmul.bf16.gmra.mxu1 %v2379_v27  ;;  %2883 = vmatmul.bf16.gmra.mxu3 %v12178_v14 }
 0x374   : > { %v2204_v18 = vpop.f32.mrf.mxu3 }
 0x375   : > { %v17302_v58 = vadd.f32 %v2204_v18, %v17074_v1  ;;  %v2437_v55 = vpop.f32.mrf.mxu0  ;;  %v15083_v1 = vld [vmem:[%s21444_s1 + $0x42c] sm:$0xf0]  ;;  %v15076_v18 = vld [vmem:[%s21444_s1 + $0x3fc] sm:$0xf] }
 0x376   : > { %v2510_v43 = vpop.f32.mrf.mxu1  ;;  %v12186_v61 = vor.u32 %v15083_v1, %v12185_v37 }
 0x377   : > { %v2511_v44 = vadd.f32 %v2510_v43, %v2437_v55  ;;  %v12193_v55 = vld [vmem:[%s21444_s1 + $0x438] sm:$0xf] }
 0x379   : > { %v2556_v13 = vpack.c.bf16 %v2511_v44, %v2509_v24 }
 0x37b   : > { %12117 = vmatmul.msk.bf16.gmra.mxu2 %vm1113_vm1, %v2556_v13 }
 0x37c   : > { %v2206_v39 = vpop.f32.mrf.mxu3 }
 0x37d   : > { %v17318_v36 = vadd.f32 %v2206_v39, %v17078_v59  ;;  %v2440_v38 = vpop.f32.mrf.mxu0  ;;  %v12163_v59 = vld [vmem:[%s21444_s1 + $0x400] sm:$0xf0] }
 0x37e   : > { %v2513_v9 = vpop.f32.mrf.mxu1  ;;  %v12166_v24 = vor.u32 %v15076_v18, %v12163_v59 }
 0x37f   : > { %v2514_v27 = vadd.f32 %v2513_v9, %v2440_v38 }
 0x380   : > { %2941 = vmatmul.bf16.vlgmr.msra.gmra.mxu0 %v12158_v15 }
 0x381   : > { %2888 = vmatmul.bf16.gmra.mxu3 %v12186_v61 }
 0x384   : > { %v2209_v49 = vpop.f32.mrf.mxu3 }
 0x385   : > { %v17321_v62 = vadd.f32 %v2209_v49, %v17093_v48  ;;  %v2442_v4 = vpop.f32.mrf.mxu0  ;;  %v15085_v48 = vld [vmem:[%s21444_s1 + $0x43c] sm:$0xf0]  ;;  %v15078_v49 = vld [vmem:[%s21444_s1 + $0x40c] sm:$0xf] }
 0x386   : > { %v2515_v20 = vpop.f32.mrf.mxu1  ;;  %v12194_v26 = vor.u32 %v15085_v48, %v12193_v55 }
 0x387   : > { %v2516_v14 = vadd.f32 %v2515_v20, %v2442_v4  ;;  %v12201_v4 = vld [vmem:[%s21444_s1 + $0x448] sm:$0xf] }
 0x389   : > { %v2557_v57 = vpack.c.bf16 %v2516_v14, %v2514_v27 }
 0x38b   : > { %12118 = vmatmul.msk.bf16.gmra.mxu2 %vm1113_vm1, %v2557_v57 }
 0x38c   : > { %v2211_v43 = vpop.f32.mrf.mxu3 }
 0x38d   : > { %v17337_v44 = vadd.f32 %v2211_v43, %v17100_v19  ;;  %v2445_v13 = vpop.f32.mrf.mxu0  ;;  %v12171_v19 = vld [vmem:[%s21444_s1 + $0x410] sm:$0xf0] }
 0x38e   : > { %v2518_v0 = vpop.f32.mrf.mxu1  ;;  %v12174_v27 = vor.u32 %v15078_v49, %v12171_v19 }
 0x38f   : > { %v2519_v38 = vadd.f32 %v2518_v0, %v2445_v13 }
 0x390   : > { %2946 = vmatmul.bf16.gmra.mxu0 %v12166_v24 }
 0x391   : > { %2893 = vmatmul.bf16.gmra.mxu3 %v12194_v26 }
 0x394   : > { %v2214_v37 = vpop.f32.mrf.mxu3 }
 0x395   : > { %v17340_v1 = vadd.f32 %v2214_v37, %v17118_v32  ;;  %v2447_v39 = vpop.f32.mrf.mxu0  ;;  %v15087_v32 = vld [vmem:[%s21444_s1 + $0x44c] sm:$0xf0]  ;;  %v15080_v37 = vld [vmem:[%s21444_s1 + $0x41c] sm:$0xf] }
 0x396   : > { %v2520_v15 = vpop.f32.mrf.mxu1  ;;  %v12202_v18 = vor.u32 %v15087_v32, %v12201_v4 }
 0x397   : > { %v2521_v61 = vadd.f32 %v2520_v15, %v2447_v39  ;;  %v12209_v39 = vld [vmem:[%s21444_s1 + $0x458] sm:$0xf] }
 0x399   : > { %v2558_v9 = vpack.c.bf16 %v2521_v61, %v2519_v38 }
 0x39b   : > { %12119 = vmatmul.msk.bf16.gmra.mxu2 %vm1113_vm1, %v2558_v9 }
 0x39c   : > { %v2216_v20 = vpop.f32.mrf.mxu3 }
 0x39d   : > { %v17356_v14 = vadd.f32 %v2216_v20, %v17125_v12  ;;  %v2450_v57 = vpop.f32.mrf.mxu0  ;;  %v12179_v12 = vld [vmem:[%s21444_s1 + $0x420] sm:$0xf0] }
 0x39e   : > { %v2523_v59 = vpop.f32.mrf.mxu1  ;;  %v12182_v38 = vor.u32 %v15080_v37, %v12179_v12 }
 0x39f   : > { %v2524_v13 = vadd.f32 %v2523_v59, %v2450_v57 }
 0x3a0   : > { %2951 = vmatmul.bf16.gmra.mxu0 %v12174_v27 }
 0x3a1   : > { %2898 = vmatmul.bf16.gmra.mxu3 %v12202_v18 }
 0x3a4   : > { %v2219_v55 = vpop.f32.mrf.mxu3 }
 0x3a5   : > { %v17359_v48 = vadd.f32 %v2219_v55, %v17143_v52  ;;  %v2452_v43 = vpop.f32.mrf.mxu0  ;;  %v15089_v52 = vld [vmem:[%s21444_s1 + $0x45c] sm:$0xf0]  ;;  %v15082_v55 = vld [vmem:[%s21444_s1 + $0x42c] sm:$0xf] }
 0x3a6   : > { %v2525_v24 = vpop.f32.mrf.mxu1  ;;  %v12210_v49 = vor.u32 %v15089_v52, %v12209_v39 }
 0x3a7   : > { %v2526_v26 = vadd.f32 %v2525_v24, %v2452_v43  ;;  %v12217_v43 = vld [vmem:[%s21444_s1 + $0x468] sm:$0xf] }
 0x3a9   : > { %v2559_v0 = vpack.c.bf16 %v2526_v26, %v2524_v13 }
 0x3ab   : > { %12120 = vmatmul.msk.bf16.gmra.mxu2 %vm1113_vm1, %v2559_v0 }
 0x3ac   : > { %v2221_v15 = vpop.f32.mrf.mxu3 }
 0x3ad   : > { %v17375_v61 = vadd.f32 %v2221_v15, %v17150_v8  ;;  %v2455_v9 = vpop.f32.mrf.mxu0  ;;  %v12187_v8 = vld [vmem:[%s21444_s1 + $0x430] sm:$0xf0] }
 0x3ae   : > { %v2528_v19 = vpop.f32.mrf.mxu1  ;;  %v12190_v13 = vor.u32 %v15082_v55, %v12187_v8  ;;  %v12247_v55 = vld [vmem:[%s21445_s2 + $0x14] sm:$0xf] }
 0x3af   : > { %v2529_v57 = vadd.f32 %v2528_v19, %v2455_v9 }
 0x3b0   : > { %2956 = vmatmul.bf16.gmra.mxu0 %v12182_v38 }
 0x3b1   : > { %2903 = vmatmul.bf16.gmra.mxu3 %v12210_v49 }
 0x3b4   : > { %v2224_v4 = vpop.f32.mrf.mxu3 }
 0x3b5   : > { %v17378_v32 = vadd.f32 %v2224_v4, %v17174_v5  ;;  %v2457_v20 = vpop.f32.mrf.mxu0  ;;  %v15091_v5 = vld [vmem:[%s21444_s1 + $0x46c] sm:$0xf0] }
 0x3b6   : > { %v2530_v27 = vpop.f32.mrf.mxu1  ;;  %v12218_v0 = vor.u32 %v15091_v5, %v12217_v43  ;;  %v3061_v5 = vsel %vm1153_vm0, %v12247_v55, 0 }
 0x3b7   : > { %v2531_v18 = vadd.f32 %v2530_v27, %v2457_v20  ;;  %v15084_v27 = vld [vmem:[%s21444_s1 + $0x43c] sm:$0xf]  ;;  %3070 = vmatpush.bf16.msra.mxu1 %v3061_v5 }
 0x3b9   : > { %v2560_v59 = vpack.c.bf16 %v2531_v18, %v2529_v57  ;;  %v12225_v57 = vld [vmem:[%s21444_s1 + $0x478] sm:$0xf]  ;;  %v15093_v18 = vld [vmem:[%s21444_s1 + $0x47c] sm:$0xf0] }
 0x3ba   : > { %v12226_v43 = vor.u32 %v15093_v18, %v12225_v57 }
 0x3bb   : > { %12121 = vmatmul.msk.bf16.gmra.mxu2 %vm1113_vm1, %v2560_v59  ;;  %3768 = vmatpush.bf16.msrb.mxu1 %v15775_v3 }
 0x3bc   : > { %v2226_v24 = vpop.f32.mrf.mxu3 }
 0x3bd   : > { %v2460_v26 = vpop.f32.mrf.mxu0 }
 0x3be   : > { %v2533_v37 = vpop.f32.mrf.mxu1  ;;  %v2618_v12 = vpop.f32.mrf.mxu2 }
 0x3bf   : > { %v17394_v39 = vadd.f32 %v2618_v12, %v17097_v21  ;;  %v2534_v49 = vadd.f32 %v2533_v37, %v2460_v26  ;;  %v12195_v21 = vld [vmem:[%s21444_s1 + $0x440] sm:$0xf0]  ;;  %3769 = vmatpush.bf16.msrb.mxu1 %v15786_v10 }
 0x3c0   : > { %2961 = vmatmul.bf16.gmra.mxu0 %v12190_v13  ;;  %v12198_v59 = vor.u32 %v15084_v27, %v12195_v21  ;;  %v12233_v27 = vld [vmem:[%s21444_s1 + $0x488] sm:$0xf] }
 0x3c1   : > { %2908 = vmatmul.bf16.gmra.mxu3 %v12218_v0 }
 0x3c3   : > { %3770 = vmatpush.bf16.msrb.mxu1 %v15798_v16 }
 0x3c4   : > { %v17396_v52 = vpop.f32.mrf.mxu3 }
 0x3c5   : > { %v2462_v15 = vpop.f32.mrf.mxu0 }
 0x3c6   : > { %v2535_v38 = vpop.f32.mrf.mxu1  ;;  %v2620_v9 = vpop.f32.mrf.mxu2 }
 0x3c7   : > { %v2536_v19 = vadd.f32 %v2535_v38, %v2462_v15  ;;  %v17399_v4 = vadd.f32 %v2620_v9, %v17115_v25  ;;  %3771 = vmatpush.bf16.msrb.mxu1 %v15810_v22 }
 0x3c9   : > { %v2561_v20 = vpack.c.bf16 %v2536_v19, %v2534_v49  ;;  %v15086_v19 = vld [vmem:[%s21444_s1 + $0x44c] sm:$0xf] }
 0x3cb   : > { %12122 = vmatmul.msk.bf16.gmra.mxu2 %vm1113_vm1, %v2561_v20  ;;  %v12203_v20 = vld [vmem:[%s21444_s1 + $0x450] sm:$0xf0]  ;;  %3772 = vmatpush.bf16.msrb.mxu1 %v15822_v28 }
 0x3cc   : > { %v17414_v25 = vpop.f32.mrf.mxu3  ;;  %v12206_v57 = vor.u32 %v15086_v19, %v12203_v20  ;;  %v12241_v19 = vld [vmem:[%s21444_s1 + $0x498] sm:$0xf] }
 0x3cd   : > { %v2465_v8 = vpop.f32.mrf.mxu0 }
 0x3ce   : > { %v2538_v24 = vpop.f32.mrf.mxu1  ;;  %v2623_v13 = vpop.f32.mrf.mxu2 }
 0x3cf   : > { %v17421_v26 = vadd.f32 %v2623_v13, %v17122_v54  ;;  %v2539_v38 = vadd.f32 %v2538_v24, %v2465_v8  ;;  %3773 = vmatpush.bf16.msrb.mxu1 %v15834_v34 }
 0x3d0   : > { %2966 = vmatmul.bf16.gmra.mxu0 %v12198_v59 }
 0x3d1   : > { %2913 = vmatmul.bf16.gmra.mxu3 %v12226_v43 }
 0x3d3   : > { %3774 = vmatpush.bf16.msrb.mxu1 %v15846_v40 }
 0x3d4   : > { %v17425_v0 = vpop.f32.mrf.mxu3 }
 0x3d5   : > { %v2467_v37 = vpop.f32.mrf.mxu0 }
 0x3d6   : > { %v2540_v12 = vpop.f32.mrf.mxu1  ;;  %v2625_v15 = vpop.f32.mrf.mxu2 }
 0x3d7   : > { %v2541_v9 = vadd.f32 %v2540_v12, %v2467_v37  ;;  %v17428_v49 = vadd.f32 %v2625_v15, %v17140_v33  ;;  %v15095_v33 = vld [vmem:[%s21444_s1 + $0x48c] sm:$0xf0]  ;;  %3775 = vmatpush.bf16.msrb.mxu1 %v15861_v47 }
 0x3d8   : > { %v12234_v59 = vor.u32 %v15095_v33, %v12233_v27 }
 0x3d9   : > { %v2562_v54 = vpack.c.bf16 %v2541_v9, %v2539_v38  ;;  %v15088_v9 = vld [vmem:[%s21444_s1 + $0x45c] sm:$0xf] }
 0x3db   : > { %12123 = vmatmul.msk.bf16.gmra.mxu2 %vm1113_vm1, %v2562_v54  ;;  %v12211_v54 = vld [vmem:[%s21444_s1 + $0x460] sm:$0xf0] }
 0x3dc   : > { %v17445_v21 = vpop.f32.mrf.mxu3  ;;  %v12214_v27 = vor.u32 %v15088_v9, %v12211_v54  ;;  %v15090_v54 = vld [vmem:[%s21444_s1 + $0x46c] sm:$0xf] }
 0x3dd   : > { %v2470_v18 = vpop.f32.mrf.mxu0 }
 0x3de   : > { %v2543_v55 = vpop.f32.mrf.mxu1  ;;  %v2628_v8 = vpop.f32.mrf.mxu2 }
 0x3df   : > { %v17448_v43 = vadd.f32 %v2628_v8, %v17147_v31  ;;  %v2544_v12 = vadd.f32 %v2543_v55, %v2470_v18 }
 0x3e0   : > { %2971 = vmatmul.bf16.gmra.mxu0 %v12206_v57 }
 0x3e1   : > { %2918 = vmatmul.bf16.gmra.mxu3 %v12234_v59 }
 0x3e4   : > { %v17452_v5 = vpop.f32.mrf.mxu3 }
 0x3e5   : > { %v2472_v24 = vpop.f32.mrf.mxu0 }
 0x3e6   : > { %v2545_v13 = vpop.f32.mrf.mxu1  ;;  %v2630_v37 = vpop.f32.mrf.mxu2 }
 0x3e7   : > { %v2546_v15 = vadd.f32 %v2545_v13, %v2472_v24  ;;  %v17455_v38 = vadd.f32 %v2630_v37, %v17170_v63  ;;  %v15097_v63 = vld [vmem:[%s21444_s1 + $0x49c] sm:$0xf0] }
 0x3e8   : > { %v12242_v57 = vor.u32 %v15097_v63, %v12241_v19  ;;  %v12219_v19 = vld [vmem:[%s21444_s1 + $0x470] sm:$0xf0] }
 0x3e9   : > { %v2563_v31 = vpack.c.bf16 %v2546_v15, %v2544_v12  ;;  %v17482_v12 = vld [vmem:[%s21444_s1 + $0x4a8] sm:$0x33] }
 0x3eb   : > { %12124 = vmatmul.msk.bf16.gmra.mxu2 %vm1113_vm1, %v2563_v31 }
 0x3ec   : > { %v17472_v20 = vpop.f32.mrf.mxu3 }
 0x3ed   : > { %v2475_v33 = vpop.f32.mrf.mxu0 }
 0x3ee   : > { %v2548_v18 = vpop.f32.mrf.mxu1  ;;  %v2633_v59 = vpop.f32.mrf.mxu2 }
 0x3ef   : > { %v17475_v55 = vadd.f32 %v2633_v59, %v17179_v30  ;;  %v2549_v24 = vadd.f32 %v2548_v18, %v2475_v33  ;;  %v2806_v30 = vunpack.c.l.b16 %v17482_v12 }
 0x3f0   : > { %2976 = vmatmul.bf16.gmra.mxu0 %v12214_v27  ;;  %v12222_v27 = vor.u32 %v15090_v54, %v12219_v19 }
 0x3f1   : > { %2923 = vmatmul.bf16.gmra.mxu3 %v12242_v57  ;;  %v2564_v9 = vpack.c.bf16 %v2549_v24, %v2549_v24  ;;  %v2832_v57 = vpack.c.b16 %v2806_v30, %v2806_v30  ;;  %v12288_v24 = vld [vmem:[%s21444_s1 + $0x4b0] sm:$0xf] }
 0x3f4   : > { %v17477_v8 = vpop.f32.mrf.mxu3 }
 0x3f5   : > { %v2477_v13 = vpop.f32.mrf.mxu0 }
 0x3f6   : > { %v2635_v37 = vpop.f32.mrf.mxu2  ;;  %v2550_v15 = vpop.f32.mrf.mxu1  ;;  %v15099_v13 = vld [vmem:[%s21444_s1 + $0x4b4] sm:$0xf0] }
 0x3f7   : > { %v17485_v31 = vadd.f32 %v2635_v37, %v17196_v2  ;;  %v12289_v54 = vor.u32 %v15099_v13, %v12288_v24 }
 0x3fb   : > { %12125 = vmatmul.msk.bf16.gmra.mxu2 %vm1113_vm1, %v2564_v9 }
 0x3fc   : > { %v17495_v63 = vpop.f32.mrf.mxu3 }
 0x3fd   : > { %v2942_v33 = vpop.f32.mrf.mxu0 }
 0x3fe   : > { %v2638_v2 = vpop.f32.mrf.mxu2  ;;  %v2943_v15 = vadd.f32 %v2942_v33, %v17396_v52  ;;  %v15098_v52 = vld [vmem:[%s21444_s1 + $0x4b4] sm:$0xf] }
 0x3ff   : > { %v17498_v18 = vadd.f32 %v2638_v2, %v17202_v50 }
 0x400   : > { %2981 = vmatmul.bf16.gmra.mxu0 %v12222_v27  ;;  %v15092_v27 = vld [vmem:[%s21444_s1 + $0x47c] sm:$0xf] }
 0x401   : > { %2928 = vmatmul.bf16.gmra.mxu3 %v2832_v57  ;;  %v12227_v57 = vld [vmem:[%s21444_s1 + $0x480] sm:$0xf0] }
 0x402   : > { %v12230_v33 = vor.u32 %v15092_v27, %v12227_v57  ;;  %v15094_v57 = vld [vmem:[%s21444_s1 + $0x48c] sm:$0xf] }
 0x404   : > { %v17500_v59 = vpop.f32.mrf.mxu3 }
 0x405   : > { %v2944_v37 = vpop.f32.mrf.mxu0 }
 0x406   : > { %v2640_v9 = vpop.f32.mrf.mxu2  ;;  %v2945_v30 = vadd.f32 %v2944_v37, %v17414_v25 }
 0x407   : > { %v17511_v50 = vadd.f32 %v2640_v9, %v17226_v60  ;;  %v12290_v60 = vld [vmem:[%s21444_s1 + $0x4b8] sm:$0xf0]  ;;  %v15101_v9 = vld [vmem:[%s21444_s1 + $0x4c4] sm:$0xf0] }
 0x408   : > { %v3006_v19 = vpack.c.bf16 %v2945_v30, %v2943_v15  ;;  %v12293_v24 = vor.u32 %v15098_v52, %v12290_v60  ;;  %v12235_v52 = vld [vmem:[%s21444_s1 + $0x490] sm:$0xf0] }
 0x40a   : > { %12248 = vmatmul.msk.bf16.vlgmr.msra.gmra.mxu1 %vm1113_vm1, %v3006_v19 }
 0x40b   : > { %3322 = vmatmul.bf16.vlgmr.msra.gmra.mxu2 %v12289_v54  ;;  %4295 = vmatpush.bf16.msra.mxu1 %v15780_v7  ;;  %v12296_v7 = vld [vmem:[%s21444_s1 + $0x4c0] sm:$0xf] }
 0x40c   : > { %v17527_v25 = vpop.f32.mrf.mxu3 }
 0x40d   : > { %v2947_v2 = vpop.f32.mrf.mxu0 }
 0x40e   : > { %v2643_v13 = vpop.f32.mrf.mxu2 }
 0x40f   : > { %v17530_v37 = vadd.f32 %v2643_v13, %v17231_v46  ;;  %4296 = vmatpush.bf16.msra.mxu1 %v15789_v11  ;;  %v2948_v46 = vadd.f32 %v2947_v2, %v17425_v0  ;;  %v15100_v0 = vld [vmem:[%s21444_s1 + $0x4c4] sm:$0xf] }
 0x410   : > { %2986 = vmatmul.bf16.gmra.mxu0 %v12230_v33 }
 0x411   : > { %3395 = vmatmul.bf16.vlgmr.msra.gmra.mxu3 %v12293_v24 }
 0x413   : > { %4297 = vmatpush.bf16.msra.mxu1 %v15801_v17  ;;  %v12297_v17 = vor.u32 %v15101_v9, %v12296_v7  ;;  %v15103_v7 = vld [vmem:[%s21444_s1 + $0x4d4] sm:$0xf0] }
 0x414   : > { %v17534_v15 = vpop.f32.mrf.mxu3 }
 0x415   : > { %v2949_v30 = vpop.f32.mrf.mxu0 }
 0x416   : > { %v2645_v54 = vpop.f32.mrf.mxu2  ;;  %v2950_v11 = vadd.f32 %v2949_v30, %v17445_v21  ;;  %v12238_v21 = vor.u32 %v15094_v57, %v12235_v52 }
 0x417   : > { %v17545_v19 = vadd.f32 %v2645_v54, %v17255_v42  ;;  %4298 = vmatpush.bf16.msra.mxu1 %v15813_v23  ;;  %v12298_v42 = vld [vmem:[%s21444_s1 + $0x4c8] sm:$0xf0] }
 0x418   : > { %v3007_v27 = vpack.c.bf16 %v2950_v11, %v2948_v46  ;;  %v12301_v33 = vor.u32 %v15100_v0, %v12298_v42  ;;  %v15096_v11 = vld [vmem:[%s21444_s1 + $0x49c] sm:$0xf] }
 0x41a   : > { %12249 = vmatmul.msk.bf16.gmra.mxu1 %vm1113_vm1, %v3007_v27 }
 0x41b   : > { %3327 = vmatmul.bf16.gmra.mxu2 %v12297_v17  ;;  %4299 = vmatpush.bf16.msra.mxu1 %v15825_v29  ;;  %v12304_v29 = vld [vmem:[%s21444_s1 + $0x4d0] sm:$0xf]  ;;  %v12243_v17 = vld [vmem:[%s21444_s1 + $0x4a0] sm:$0xf0] }
 0x41c   : > { %v17562_v23 = vpop.f32.mrf.mxu3 }
 0x41d   : > { %v2952_v60 = vpop.f32.mrf.mxu0 }
 0x41e   : > { %v2648_v2 = vpop.f32.mrf.mxu2 }
 0x41f   : > { %v17565_v24 = vadd.f32 %v2648_v2, %v17260_v56  ;;  %4300 = vmatpush.bf16.msra.mxu1 %v15837_v35  ;;  %v2953_v56 = vadd.f32 %v2952_v60, %v17452_v5  ;;  %v15102_v5 = vld [vmem:[%s21444_s1 + $0x4d4] sm:$0xf]  ;;  %v15105_v60 = vld [vmem:[%s21444_s1 + $0x4e4] sm:$0xf0] }
 0x420   : > { %2991 = vmatmul.bf16.gmra.mxu0 %v12238_v21  ;;  %v12312_v21 = vld [vmem:[%s21444_s1 + $0x4e0] sm:$0xf] }
 0x421   : > { %3400 = vmatmul.bf16.gmra.mxu3 %v12301_v33 }
 0x423   : > { %4301 = vmatpush.bf16.msra.mxu1 %v15849_v41  ;;  %v12305_v41 = vor.u32 %v15103_v7, %v12304_v29 }
 0x424   : > { %v17569_v13 = vpop.f32.mrf.mxu3 }
 0x425   : > { %v2954_v9 = vpop.f32.mrf.mxu0 }
 0x426   : > { %v2650_v30 = vpop.f32.mrf.mxu2  ;;  %v2955_v35 = vadd.f32 %v2954_v9, %v17472_v20  ;;  %v12246_v20 = vor.u32 %v15096_v11, %v12243_v17  ;;  %v12313_v9 = vor.u32 %v15105_v60, %v12312_v21 }
 0x427   : > { %v17580_v46 = vadd.f32 %v2650_v30, %v17283_v6  ;;  %4302 = vmatpush.bf16.msra.mxu1 %v15873_v51  ;;  %v12306_v6 = vld [vmem:[%s21444_s1 + $0x4d8] sm:$0xf0]  ;;  %v2807_v30 = vunpack.c.h.b16 %v17482_v12 }
 0x428   : > { %v3008_v54 = vpack.c.bf16 %v2955_v35, %v2953_v56  ;;  %v12309_v57 = vor.u32 %v15102_v5, %v12306_v6  ;;  %v15104_v35 = vld [vmem:[%s21444_s1 + $0x4e4] sm:$0xf]  ;;  %v12320_v5 = vld [vmem:[%s21444_s1 + $0x4f0] sm:$0xf]  ;;  %v15107_v6 = vld [vmem:[%s21444_s1 + $0x4f4] sm:$0xf0] }
 0x429   : > { %v12321_v21 = vor.u32 %v15107_v6, %v12320_v5  ;;  %v15108_v5 = vld [vmem:[%s21444_s1 + $0x504] sm:$0xf]  ;;  %v12330_v6 = vld [vmem:[%s21444_s1 + $0x508] sm:$0xf0] }
 0x42a   : > { %12250 = vmatmul.msk.bf16.gmra.mxu1 %vm1113_vm1, %v3008_v54 }
 0x42b   : > { %3332 = vmatmul.bf16.gmra.mxu2 %v12305_v41 }
 0x42c   : > { %v17596_v51 = vpop.f32.mrf.mxu3 }
 0x42d   : > { %v2957_v27 = vpop.f32.mrf.mxu0 }
 0x42e   : > { %v2653_v52 = vpop.f32.mrf.mxu2  ;;  %v2958_v2 = vadd.f32 %v2957_v27, %v17477_v8  ;;  %v12314_v8 = vld [vmem:[%s21444_s1 + $0x4e8] sm:$0xf0] }
 0x42f   : > { %v17599_v0 = vadd.f32 %v2653_v52, %v17286_v53  ;;  %v12317_v54 = vor.u32 %v15104_v35, %v12314_v8 }
 0x430   : > { %2996 = vmatmul.bf16.gmra.mxu0 %v12246_v20 }
 0x431   : > { %3405 = vmatmul.bf16.gmra.mxu3 %v12309_v57 }
 0x434   : > { %v17601_v42 = vpop.f32.mrf.mxu3 }
 0x435   : > { %v2959_v33 = vpop.f32.mrf.mxu0 }
 0x436   : > { %v2655_v29 = vpop.f32.mrf.mxu2  ;;  %v2960_v7 = vadd.f32 %v2959_v33, %v17495_v63  ;;  %v2833_v63 = vpack.c.b16 %v2807_v30, %v2807_v30  ;;  %v15106_v33 = vld [vmem:[%s21444_s1 + $0x4f4] sm:$0xf]  ;;  %v15109_v30 = vld [vmem:[%s21444_s1 + $0x504] sm:$0xf0] }
 0x437   : > { %v17612_v53 = vadd.f32 %v2655_v29, %v17299_v45 }
 0x438   : > { %v3009_v56 = vpack.c.bf16 %v2960_v7, %v2958_v2  ;;  %v12322_v2 = vld [vmem:[%s21444_s1 + $0x4f8] sm:$0xf0] }
 0x43a   : > { %12251 = vmatmul.msk.bf16.gmra.mxu1 %vm1113_vm1, %v3009_v56  ;;  %v12328_v56 = vld [vmem:[%s21444_s1 + $0x500] sm:$0xf] }
 0x43b   : > { %3337 = vmatmul.bf16.gmra.mxu2 %v12313_v9 }
 0x43c   : > { %v17622_v41 = vpop.f32.mrf.mxu3 }
 0x43d   : > { %v2962_v45 = vpop.f32.mrf.mxu0 }
 0x43e   : > { %v2658_v11 = vpop.f32.mrf.mxu2  ;;  %v2963_v27 = vadd.f32 %v2962_v45, %v17500_v59 }
 0x43f   : > { %v17625_v17 = vadd.f32 %v2658_v11, %v17302_v58 }
 0x440   : > { %3001 = vmatmul.bf16.gmra.mxu0 %v2833_v63 }
 0x441   : > { %3410 = vmatmul.bf16.gmra.mxu3 %v12317_v54  ;;  %v12329_v54 = vor.u32 %v15109_v30, %v12328_v56  ;;  %v15110_v56 = vld [vmem:[%s21444_s1 + $0x514] sm:$0xf]  ;;  %v12338_v30 = vld [vmem:[%s21444_s1 + $0x518] sm:$0xf0] }
 0x444   : > { %v17627_v12 = vpop.f32.mrf.mxu3 }
 0x445   : > { %v2964_v20 = vpop.f32.mrf.mxu0 }
 0x446   : > { %v2660_v57 = vpop.f32.mrf.mxu2  ;;  %v2965_v52 = vadd.f32 %v2964_v20, %v17527_v25  ;;  %v12325_v25 = vor.u32 %v15106_v33, %v12322_v2 }
 0x447   : > { %v17638_v58 = vadd.f32 %v2660_v57, %v17318_v36 }
 0x448   : > { %v3010_v60 = vpack.c.bf16 %v2965_v52, %v2963_v27  ;;  %v12336_v52 = vld [vmem:[%s21444_s1 + $0x510] sm:$0xf] }
 0x44a   : > { %12252 = vmatmul.msk.bf16.gmra.mxu1 %vm1113_vm1, %v3010_v60 }
 0x44b   : > { %3342 = vmatmul.bf16.gmra.mxu2 %v12321_v21  ;;  %v15111_v21 = vld [vmem:[%s21444_s1 + $0x514] sm:$0xf0] }
 0x44c   : > { %v17647_v59 = vpop.f32.mrf.mxu3 }
 0x44d   : > { %v2967_v29 = vpop.f32.mrf.mxu0 }
 0x44e   : > { %v2663_v7 = vpop.f32.mrf.mxu2  ;;  %v2968_v8 = vadd.f32 %v2967_v29, %v17534_v15 }
 0x44f   : > { %v17650_v36 = vadd.f32 %v2663_v7, %v17321_v62 }
 0x451   : > { %3415 = vmatmul.bf16.gmra.mxu3 %v12325_v25  ;;  %v12337_v25 = vor.u32 %v15111_v21, %v12336_v52  ;;  %v15112_v52 = vld [vmem:[%s21444_s1 + $0x524] sm:$0xf]  ;;  %v12346_v21 = vld [vmem:[%s21444_s1 + $0x528] sm:$0xf0] }
 0x454   : > { %v17652_v9 = vpop.f32.mrf.mxu3 }
 0x455   : > { %v2969_v35 = vpop.f32.mrf.mxu0 }
 0x456   : > { %v2665_v63 = vpop.f32.mrf.mxu2  ;;  %v2970_v45 = vadd.f32 %v2969_v35, %v17562_v23  ;;  %v12333_v23 = vor.u32 %v15108_v5, %v12330_v6 }
 0x457   : > { %v17663_v62 = vadd.f32 %v2665_v63, %v17337_v44 }
 0x458   : > { %v3011_v11 = vpack.c.bf16 %v2970_v45, %v2968_v8  ;;  %v12344_v45 = vld [vmem:[%s21444_s1 + $0x520] sm:$0xf] }
 0x45a   : > { %12253 = vmatmul.msk.bf16.gmra.mxu1 %vm1113_vm1, %v3011_v11 }
 0x45b   : > { %3347 = vmatmul.bf16.gmra.mxu2 %v12329_v54  ;;  %v15113_v54 = vld [vmem:[%s21444_s1 + $0x524] sm:$0xf0] }
 0x45c   : > { %v17672_v15 = vpop.f32.mrf.mxu3 }
 0x45d   : > { %v2972_v20 = vpop.f32.mrf.mxu0 }
 0x45e   : > { %v2668_v27 = vpop.f32.mrf.mxu2  ;;  %v2973_v33 = vadd.f32 %v2972_v20, %v17569_v13 }
 0x45f   : > { %v17675_v44 = vadd.f32 %v2668_v27, %v17340_v1 }
 0x461   : > { %3420 = vmatmul.bf16.gmra.mxu3 %v12333_v23  ;;  %v12345_v23 = vor.u32 %v15113_v54, %v12344_v45  ;;  %v15114_v54 = vld [vmem:[%s21444_s1 + $0x534] sm:$0xf] }
 0x464   : > { %v17677_v57 = vpop.f32.mrf.mxu3 }
 0x465   : > { %v2974_v60 = vpop.f32.mrf.mxu0 }
 0x466   : > { %v2670_v2 = vpop.f32.mrf.mxu2  ;;  %v2975_v29 = vadd.f32 %v2974_v60, %v17596_v51  ;;  %v12341_v51 = vor.u32 %v15110_v56, %v12338_v30  ;;  %v12349_v60 = vor.u32 %v15112_v52, %v12346_v21  ;;  %v15115_v56 = vld [vmem:[%s21444_s1 + $0x534] sm:$0xf0] }
 0x467   : > { %v17688_v1 = vadd.f32 %v2670_v2, %v17356_v14 }
 0x468   : > { %v3012_v7 = vpack.c.bf16 %v2975_v29, %v2973_v33 }
 0x46a   : > { %12254 = vmatmul.msk.bf16.gmra.mxu1 %vm1113_vm1, %v3012_v7  ;;  %v12352_v7 = vld [vmem:[%s21444_s1 + $0x530] sm:$0xf] }
 0x46b   : > { %3352 = vmatmul.bf16.gmra.mxu2 %v12337_v25 }
 0x46c   : > { %v17697_v13 = vpop.f32.mrf.mxu3 }
 0x46d   : > { %v2977_v35 = vpop.f32.mrf.mxu0 }
 0x46e   : > { %v2673_v8 = vpop.f32.mrf.mxu2  ;;  %v2978_v5 = vadd.f32 %v2977_v35, %v17601_v42 }
 0x46f   : > { %v17700_v14 = vadd.f32 %v2673_v8, %v17359_v48  ;;  %v12353_v8 = vor.u32 %v15115_v56, %v12352_v7 }
 0x471   : > { %3425 = vmatmul.bf16.gmra.mxu3 %v12341_v51 }
 0x474   : > { %v17702_v63 = vpop.f32.mrf.mxu3 }
 0x475   : > { %v2979_v11 = vpop.f32.mrf.mxu0 }
 0x476   : > { %v2675_v6 = vpop.f32.mrf.mxu2  ;;  %v2980_v20 = vadd.f32 %v2979_v11, %v17622_v41 }
 0x477   : > { %v17713_v48 = vadd.f32 %v2675_v6, %v17375_v61  ;;  %v12382_v61 = vld [vmem:[%s21445_s2 + $0x18] sm:$0xf] }
 0x478   : > { %v3013_v27 = vpack.c.bf16 %v2980_v20, %v2978_v5  ;;  %v3515_v33 = vsel %vm1153_vm0, %v12382_v61, 0 }
 0x479   : > { %3524 = vmatpush.bf16.msrb.mxu0 %v3515_v33 }
 0x47a   : > { %12255 = vmatmul.msk.bf16.gmra.mxu1 %vm1113_vm1, %v3013_v27 }
 0x47b   : > { %3357 = vmatmul.bf16.gmra.mxu2 %v12345_v23  ;;  %v12360_v23 = vld [vmem:[%s21444_s1 + $0x540] sm:$0xf] }
 0x47c   : > { %v17722_v42 = vpop.f32.mrf.mxu3 }
 0x47d   : > { %v2982_v41 = vpop.f32.mrf.mxu0  ;;  %4222 = vmatpush.bf16.msra.mxu0 %v15775_v3 }
 0x47e   : > { %v2678_v2 = vpop.f32.mrf.mxu2  ;;  %v2983_v35 = vadd.f32 %v2982_v41, %v17627_v12  ;;  %v12354_v12 = vld [vmem:[%s21444_s1 + $0x538] sm:$0xf0] }
 0x47f   : > { %v17729_v29 = vadd.f32 %v2678_v2, %v17378_v32 }
 0x481   : > { %3430 = vmatmul.bf16.gmra.mxu3 %v12349_v60  ;;  %4223 = vmatpush.bf16.msra.mxu0 %v15786_v10  ;;  %v15116_v60 = vld [vmem:[%s21444_s1 + $0x544] sm:$0xf] }
 0x484   : > { %v17733_v25 = vpop.f32.mrf.mxu3 }
 0x485   : > { %v2984_v30 = vpop.f32.mrf.mxu0  ;;  %4224 = vmatpush.bf16.msra.mxu0 %v15798_v16  ;;  %v12357_v16 = vor.u32 %v15114_v54, %v12354_v12 }
 0x486   : > { %v2680_v32 = vpop.f32.mrf.mxu2  ;;  %v2985_v51 = vadd.f32 %v2984_v30, %v17647_v59 }
 0x487   : > { %v3072_v3 = vpop.f32.mrf.mxu1 }
 0x488   : > { %v3014_v10 = vpack.c.bf16 %v2985_v51, %v2983_v35  ;;  %v17745_v45 = vadd.f32 %v3072_v3, %v17394_v39  ;;  %v12368_v51 = vld [vmem:[%s21444_s1 + $0x550] sm:$0xf] }
 0x489   : > { %4225 = vmatpush.bf16.msra.mxu0 %v15810_v22  ;;  %v15117_v22 = vld [vmem:[%s21444_s1 + $0x544] sm:$0xf0] }
 0x48a   : > { %12256 = vmatmul.msk.bf16.gmra.mxu1 %vm1113_vm1, %v3014_v10  ;;  %v12361_v61 = vor.u32 %v15117_v22, %v12360_v23 }
 0x48b   : > { %3362 = vmatmul.bf16.gmra.mxu2 %v12353_v8 }
 0x48c   : > { %v2931_v59 = vpop.f32.mrf.mxu3 }
 0x48d   : > { %v2987_v11 = vpop.f32.mrf.mxu0  ;;  %4226 = vmatpush.bf16.msra.mxu0 %v15822_v28 }
 0x48e   : > { %v3323_v5 = vpop.f32.mrf.mxu2  ;;  %v2988_v52 = vadd.f32 %v2987_v11, %v17652_v9  ;;  %v12362_v9 = vld [vmem:[%s21444_s1 + $0x548] sm:$0xf0] }
 0x48f   : > { %v3074_v6 = vpop.f32.mrf.mxu1  ;;  %v12365_v7 = vor.u32 %v15116_v60, %v12362_v9 }
 0x490   : > { %v17757_v39 = vadd.f32 %v3074_v6, %v17399_v4 }
 0x491   : > { %3435 = vmatmul.bf16.gmra.mxu3 %v12357_v16  ;;  %4227 = vmatpush.bf16.msra.mxu0 %v15834_v34  ;;  %v15118_v16 = vld [vmem:[%s21444_s1 + $0x554] sm:$0xf] }
 0x494   : > { %v3396_v20 = vpop.f32.mrf.mxu3 }
 0x495   : > { %v2989_v27 = vpop.f32.mrf.mxu0  ;;  %4228 = vmatpush.bf16.msra.mxu0 %v15846_v40 }
 0x496   : > { %v2990_v28 = vadd.f32 %v2989_v27, %v17672_v15  ;;  %v3325_v21 = vpop.f32.mrf.mxu2  ;;  %v3397_v15 = vadd.f32 %v3396_v20, %v3323_v5  ;;  %v12370_v5 = vld [vmem:[%s21444_s1 + $0x558] sm:$0xf0] }
 0x497   : > { %v3077_v4 = vpop.f32.mrf.mxu1  ;;  %v12373_v23 = vor.u32 %v15118_v16, %v12370_v5 }
 0x498   : > { %v3015_v34 = vpack.c.bf16 %v2990_v28, %v2988_v52  ;;  %v17770_v41 = vadd.f32 %v3077_v4, %v17421_v26  ;;  %v15121_v4 = vld [vmem:[%s21444_s1 + $0x564] sm:$0xf0] }
 0x499   : > { %4229 = vmatpush.bf16.msra.mxu0 %v15861_v47  ;;  %v15119_v47 = vld [vmem:[%s21444_s1 + $0x554] sm:$0xf0] }
 0x49a   : > { %12257 = vmatmul.msk.bf16.gmra.mxu1 %vm1113_vm1, %v3015_v34  ;;  %v12369_v12 = vor.u32 %v15119_v47, %v12368_v51 }
 0x49b   : > { %3367 = vmatmul.bf16.gmra.mxu2 %v12361_v61 }
 0x49c   : > { %v3398_v33 = vpop.f32.mrf.mxu3 }
 0x49d   : > { %v3399_v40 = vadd.f32 %v3398_v33, %v3325_v21  ;;  %v2992_v2 = vpop.f32.mrf.mxu0  ;;  %v12376_v21 = vld [vmem:[%s21444_s1 + $0x560] sm:$0xf] }
 0x49e   : > { %v3328_v26 = vpop.f32.mrf.mxu2  ;;  %v2993_v8 = vadd.f32 %v2992_v2, %v17677_v57  ;;  %v15120_v2 = vld [vmem:[%s21444_s1 + $0x564] sm:$0xf] }
 0x49f   : > { %v3460_v56 = vpack.c.bf16 %v3399_v40, %v3397_v15  ;;  %v3079_v30 = vpop.f32.mrf.mxu1  ;;  %v12377_v15 = vor.u32 %v15121_v4, %v12376_v21  ;;  %v15122_v4 = vld [vmem:[%s21444_s1 + $0x57c] sm:$0xf] }
 0x4a0   : > { %v17781_v35 = vadd.f32 %v3079_v30, %v17428_v49 }
 0x4a1   : > { %3440 = vmatmul.bf16.gmra.mxu3 %v12365_v7  ;;  %12383 = vmatmul.msk.bf16.vlgmr.msrb.gmra.mxu0 %vm1113_vm1, %v3460_v56  ;;  %v12378_v7 = vld [vmem:[%s21444_s1 + $0x568] sm:$0xf0] }
 0x4a2   : > { %v12381_v30 = vor.u32 %v15120_v2, %v12378_v7 }
 0x4a4   : > { %v3401_v32 = vpop.f32.mrf.mxu3 }
 0x4a5   : > { %v2994_v3 = vpop.f32.mrf.mxu0  ;;  %v3402_v57 = vadd.f32 %v3401_v32, %v3328_v26 }
 0x4a6   : > { %v2995_v10 = vadd.f32 %v2994_v3, %v17697_v13  ;;  %v3330_v54 = vpop.f32.mrf.mxu2  ;;  %v12285_v3 = vld [vmem:[%s21444_s1 + $0x570] sm:$0x33] }
 0x4a7   : > { %v3082_v49 = vpop.f32.mrf.mxu1 }
 0x4a8   : > { %v3016_v59 = vpack.c.bf16 %v2995_v10, %v2993_v8  ;;  %v17793_v11 = vadd.f32 %v3082_v49, %v17448_v43  ;;  %v3260_v8 = vunpack.c.l.b16 %v12285_v3 }
 0x4aa   : > { %12258 = vmatmul.msk.bf16.gmra.mxu1 %vm1113_vm1, %v3016_v59  ;;  %v3286_v16 = vpack.c.b16 %v3260_v8, %v3260_v8 }
 0x4ab   : > { %3372 = vmatmul.bf16.gmra.mxu2 %v12369_v12 }
 0x4ac   : > { %v3403_v13 = vpop.f32.mrf.mxu3 }
 0x4ad   : > { %v3404_v6 = vadd.f32 %v3403_v13, %v3330_v54  ;;  %v2997_v20 = vpop.f32.mrf.mxu0 }
 0x4ae   : > { %v3333_v22 = vpop.f32.mrf.mxu2  ;;  %v2998_v34 = vadd.f32 %v2997_v20, %v17702_v63 }
 0x4af   : > { %v3461_v27 = vpack.c.bf16 %v3404_v6, %v3402_v57  ;;  %v3084_v43 = vpop.f32.mrf.mxu1 }
 0x4b0   : > { %v17803_v52 = vadd.f32 %v3084_v43, %v17455_v38 }
 0x4b1   : > { %3445 = vmatmul.bf16.gmra.mxu3 %v12373_v23  ;;  %12384 = vmatmul.msk.bf16.gmra.mxu0 %vm1113_vm1, %v3461_v27 }
 0x4b4   : > { %v3406_v28 = vpop.f32.mrf.mxu3 }
 0x4b5   : > { %v2999_v61 = vpop.f32.mrf.mxu0  ;;  %v3407_v63 = vadd.f32 %v3406_v28, %v3333_v22  ;;  %v15123_v28 = vld [vmem:[%s21444_s1 + $0x57c] sm:$0xf0] }
 0x4b6   : > { %v3000_v60 = vadd.f32 %v2999_v61, %v17722_v42  ;;  %v3335_v9 = vpop.f32.mrf.mxu2 }
 0x4b7   : > { %v3087_v38 = vpop.f32.mrf.mxu1 }
 0x4b8   : > { %v3017_v33 = vpack.c.bf16 %v3000_v60, %v2998_v34  ;;  %v17815_v40 = vadd.f32 %v3087_v38, %v17475_v55 }
 0x4ba   : > { %12259 = vmatmul.msk.bf16.gmra.mxu1 %vm1113_vm1, %v3017_v33 }
 0x4bb   : > { %3377 = vmatmul.bf16.gmra.mxu2 %v12377_v15 }
 0x4bc   : > { %v3408_v42 = vpop.f32.mrf.mxu3 }
 0x4bd   : > { %v3409_v26 = vadd.f32 %v3408_v42, %v3335_v9  ;;  %v3002_v56 = vpop.f32.mrf.mxu0 }
 0x4be   : > { %v3338_v32 = vpop.f32.mrf.mxu2  ;;  %v3003_v10 = vadd.f32 %v3002_v56, %v17733_v25  ;;  %v12431_v56 = vld [vmem:[%s21444_s1 + $0x588] sm:$0xf] }
 0x4bf   : > { %v3462_v51 = vpack.c.bf16 %v3409_v26, %v3407_v63  ;;  %v3089_v55 = vpop.f32.mrf.mxu1 }
 0x4c0   : > { %v17825_v47 = vadd.f32 %v3089_v55, %v17485_v31  ;;  %v3018_v5 = vpack.c.bf16 %v3003_v10, %v3003_v10  ;;  %v3261_v31 = vunpack.c.h.b16 %v12285_v3 }
 0x4c1   : > { %3450 = vmatmul.bf16.gmra.mxu3 %v12381_v30  ;;  %12385 = vmatmul.msk.bf16.gmra.mxu0 %vm1113_vm1, %v3462_v51 }
 0x4c2   : > { %v3287_v23 = vpack.c.b16 %v3261_v31, %v3261_v31 }
 0x4c4   : > { %v3411_v54 = vpop.f32.mrf.mxu3 }
 0x4c5   : > { %v3004_v49 = vpop.f32.mrf.mxu0  ;;  %v3412_v13 = vadd.f32 %v3411_v54, %v3338_v32  ;;  %v15124_v32 = vld [vmem:[%s21444_s1 + $0x58c] sm:$0xf] }
 0x4c6   : > { %v3340_v12 = vpop.f32.mrf.mxu2 }
 0x4c7   : > { %v3092_v59 = vpop.f32.mrf.mxu1 }
 0x4c8   : > { %v17833_v57 = vadd.f32 %v3092_v59, %v17498_v18  ;;  %v12423_v18 = vld [vmem:[%s21444_s1 + $0x578] sm:$0xf] }
 0x4c9   : > { %v12424_v34 = vor.u32 %v15123_v28, %v12423_v18 }
 0x4ca   : > { %12260 = vmatmul.msk.bf16.gmra.mxu1 %vm1113_vm1, %v3018_v5 }
 0x4cb   : > { %3382 = vmatmul.bf16.gmra.mxu2 %v3286_v16 }
 0x4cc   : > { %v3413_v6 = vpop.f32.mrf.mxu3 }
 0x4cd   : > { %v3414_v20 = vadd.f32 %v3413_v6, %v3340_v12 }
 0x4ce   : > { %v3343_v22 = vpop.f32.mrf.mxu2 }
 0x4cf   : > { %v3463_v27 = vpack.c.bf16 %v3414_v20, %v3412_v13  ;;  %v3094_v25 = vpop.f32.mrf.mxu1  ;;  %v12439_v13 = vld [vmem:[%s21444_s1 + $0x598] sm:$0xf]  ;;  %v15126_v20 = vld [vmem:[%s21444_s1 + $0x59c] sm:$0xf] }
 0x4d0   : > { %v17837_v43 = vadd.f32 %v3094_v25, %v17511_v50  ;;  %v12425_v50 = vld [vmem:[%s21444_s1 + $0x580] sm:$0xf0] }
 0x4d1   : > { %12386 = vmatmul.msk.bf16.gmra.mxu0 %vm1113_vm1, %v3463_v27  ;;  %3455 = vmatmul.bf16.gmra.mxu3 %v3287_v23  ;;  %v12428_v9 = vor.u32 %v15122_v4, %v12425_v50 }
 0x4d4   : > { %v3416_v21 = vpop.f32.mrf.mxu3 }
 0x4d5   : > { %v3417_v15 = vadd.f32 %v3416_v21, %v3343_v22 }
 0x4d6   : > { %v3345_v61 = vpop.f32.mrf.mxu2 }
 0x4d7   : > { %v3097_v60 = vpop.f32.mrf.mxu1 }
 0x4d8   : > { %v17853_v38 = vadd.f32 %v3097_v60, %v17530_v37  ;;  %v15125_v37 = vld [vmem:[%s21444_s1 + $0x58c] sm:$0xf0] }
 0x4d9   : > { %v12432_v55 = vor.u32 %v15125_v37, %v12431_v56 }
 0x4da   : > { %3776 = vmatmul.bf16.vlgmr.msrb.gmra.mxu1 %v12424_v34 }
 0x4db   : > { %3849 = vmatmul.bf16.vlgmr.msrb.gmra.mxu2 %v12428_v9  ;;  %v12447_v9 = vld [vmem:[%s21444_s1 + $0x5a8] sm:$0xf] }
 0x4dc   : > { %v3418_v33 = vpop.f32.mrf.mxu3 }
 0x4dd   : > { %v3419_v2 = vadd.f32 %v3418_v33, %v3345_v61  ;;  %v15128_v33 = vld [vmem:[%s21444_s1 + $0x5ac] sm:$0xf] }
 0x4de   : > { %v3348_v7 = vpop.f32.mrf.mxu2 }
 0x4df   : > { %v3464_v63 = vpack.c.bf16 %v3419_v2, %v3417_v15  ;;  %v3099_v42 = vpop.f32.mrf.mxu1 }
 0x4e0   : > { %v17856_v26 = vadd.f32 %v3099_v42, %v17545_v19  ;;  %v12433_v19 = vld [vmem:[%s21444_s1 + $0x590] sm:$0xf0] }
 0x4e1   : > { %12387 = vmatmul.msk.bf16.gmra.mxu0 %vm1113_vm1, %v3464_v63  ;;  %v12436_v8 = vor.u32 %v15124_v32, %v12433_v19 }
 0x4e4   : > { %v3421_v30 = vpop.f32.mrf.mxu3 }
 0x4e5   : > { %v3422_v54 = vadd.f32 %v3421_v30, %v3348_v7 }
 0x4e6   : > { %v3350_v51 = vpop.f32.mrf.mxu2 }
 0x4e7   : > { %v3102_v3 = vpop.f32.mrf.mxu1 }
 0x4e8   : > { %v17872_v10 = vadd.f32 %v3102_v3, %v17565_v24  ;;  %v15127_v24 = vld [vmem:[%s21444_s1 + $0x59c] sm:$0xf0] }
 0x4e9   : > { %v12440_v22 = vor.u32 %v15127_v24, %v12439_v13 }
 0x4ea   : > { %3781 = vmatmul.bf16.gmra.mxu1 %v12432_v55 }
 0x4eb   : > { %3854 = vmatmul.bf16.gmra.mxu2 %v12436_v8  ;;  %v12455_v8 = vld [vmem:[%s21444_s1 + $0x5b8] sm:$0xf] }
 0x4ec   : > { %v3423_v49 = vpop.f32.mrf.mxu3 }
 0x4ed   : > { %v3424_v12 = vadd.f32 %v3423_v49, %v3350_v51  ;;  %v15130_v49 = vld [vmem:[%s21444_s1 + $0x5bc] sm:$0xf] }
 0x4ee   : > { %v3353_v59 = vpop.f32.mrf.mxu2 }
 0x4ef   : > { %v3465_v16 = vpack.c.bf16 %v3424_v12, %v3422_v54  ;;  %v3104_v5 = vpop.f32.mrf.mxu1 }
 0x4f0   : > { %v17875_v31 = vadd.f32 %v3104_v5, %v17580_v46  ;;  %v12441_v46 = vld [vmem:[%s21444_s1 + $0x5a0] sm:$0xf0] }
 0x4f1   : > { %12388 = vmatmul.msk.bf16.gmra.mxu0 %vm1113_vm1, %v3465_v16  ;;  %v12444_v25 = vor.u32 %v15126_v20, %v12441_v46 }
 0x4f4   : > { %v3426_v6 = vpop.f32.mrf.mxu3 }
 0x4f5   : > { %v3427_v28 = vadd.f32 %v3426_v6, %v3353_v59 }
 0x4f6   : > { %v3355_v23 = vpop.f32.mrf.mxu2 }
 0x4f7   : > { %v3107_v27 = vpop.f32.mrf.mxu1 }
 0x4f8   : > { %v17891_v18 = vadd.f32 %v3107_v27, %v17599_v0  ;;  %v15129_v0 = vld [vmem:[%s21444_s1 + $0x5ac] sm:$0xf0] }
 0x4f9   : > { %v12448_v7 = vor.u32 %v15129_v0, %v12447_v9 }
 0x4fa   : > { %3786 = vmatmul.bf16.gmra.mxu1 %v12440_v22 }
 0x4fb   : > { %3859 = vmatmul.bf16.gmra.mxu2 %v12444_v25 }
 0x4fc   : > { %v3428_v21 = vpop.f32.mrf.mxu3 }
 0x4fd   : > { %v3429_v4 = vadd.f32 %v3428_v21, %v3355_v23  ;;  %v15133_v21 = vld [vmem:[%s21444_s1 + $0x5cc] sm:$0xf0] }
 0x4fe   : > { %v3358_v50 = vpop.f32.mrf.mxu2 }
 0x4ff   : > { %v3466_v61 = vpack.c.bf16 %v3429_v4, %v3427_v28  ;;  %v3109_v34 = vpop.f32.mrf.mxu1 }
 0x500   : > { %v17894_v60 = vadd.f32 %v3109_v34, %v17612_v53  ;;  %v12449_v53 = vld [vmem:[%s21444_s1 + $0x5b0] sm:$0xf0] }
 0x501   : > { %12389 = vmatmul.msk.bf16.gmra.mxu0 %vm1113_vm1, %v3466_v61  ;;  %v12452_v42 = vor.u32 %v15128_v33, %v12449_v53 }
 0x504   : > { %v3431_v15 = vpop.f32.mrf.mxu3 }
 0x505   : > { %v3432_v37 = vadd.f32 %v3431_v15, %v3358_v50 }
 0x506   : > { %v3360_v2 = vpop.f32.mrf.mxu2 }
 0x507   : > { %v3112_v63 = vpop.f32.mrf.mxu1 }
 0x508   : > { %v17910_v56 = vadd.f32 %v3112_v63, %v17625_v17  ;;  %v15131_v17 = vld [vmem:[%s21444_s1 + $0x5bc] sm:$0xf0] }
 0x509   : > { %v12456_v59 = vor.u32 %v15131_v17, %v12455_v8 }
 0x50a   : > { %3791 = vmatmul.bf16.gmra.mxu1 %v12448_v7 }
 0x50b   : > { %3864 = vmatmul.bf16.gmra.mxu2 %v12452_v42 }
 0x50c   : > { %v3433_v30 = vpop.f32.mrf.mxu3 }
 0x50d   : > { %v3434_v32 = vadd.f32 %v3433_v30, %v3360_v2 }
 0x50e   : > { %v3363_v19 = vpop.f32.mrf.mxu2 }
 0x50f   : > { %v3467_v51 = vpack.c.bf16 %v3434_v32, %v3432_v37  ;;  %v3114_v55 = vpop.f32.mrf.mxu1 }
 0x510   : > { %v17913_v3 = vadd.f32 %v3114_v55, %v17638_v58  ;;  %v12457_v58 = vld [vmem:[%s21444_s1 + $0x5c0] sm:$0xf0] }
 0x511   : > { %12390 = vmatmul.msk.bf16.gmra.mxu0 %vm1113_vm1, %v3467_v51  ;;  %v12460_v5 = vor.u32 %v15130_v49, %v12457_v58 }
 0x514   : > { %v3436_v54 = vpop.f32.mrf.mxu3 }
 0x515   : > { %v3437_v24 = vadd.f32 %v3436_v54, %v3363_v19  ;;  %v15135_v19 = vld [vmem:[%s21444_s1 + $0x5dc] sm:$0xf0] }
 0x516   : > { %v3365_v12 = vpop.f32.mrf.mxu2 }
 0x517   : > { %v3117_v16 = vpop.f32.mrf.mxu1 }
 0x518   : > { %v17929_v13 = vadd.f32 %v3117_v16, %v17650_v36  ;;  %v12463_v36 = vld [vmem:[%s21444_s1 + $0x5c8] sm:$0xf] }
 0x519   : > { %v12464_v34 = vor.u32 %v15133_v21, %v12463_v36 }
 0x51a   : > { %3796 = vmatmul.bf16.gmra.mxu1 %v12456_v59 }
 0x51b   : > { %3869 = vmatmul.bf16.gmra.mxu2 %v12460_v5 }
 0x51c   : > { %v3438_v6 = vpop.f32.mrf.mxu3 }
 0x51d   : > { %v3439_v20 = vadd.f32 %v3438_v6, %v3365_v12 }
 0x51e   : > { %v3368_v46 = vpop.f32.mrf.mxu2  ;;  %v3526_v23 = vpop.f32.mrf.mxu0 }
 0x51f   : > { %v3468_v22 = vpack.c.bf16 %v3439_v20, %v3437_v24  ;;  %v17932_v27 = vadd.f32 %v3526_v23, %v17745_v45  ;;  %v3119_v25 = vpop.f32.mrf.mxu1  ;;  %v15132_v45 = vld [vmem:[%s21444_s1 + $0x5cc] sm:$0xf] }
 0x520   : > { %v17935_v28 = vadd.f32 %v3119_v25, %v17663_v62  ;;  %v12465_v62 = vld [vmem:[%s21444_s1 + $0x5d0] sm:$0xf0] }
 0x521   : > { %12391 = vmatmul.msk.bf16.gmra.mxu0 %vm1113_vm1, %v3468_v22  ;;  %v12468_v15 = vor.u32 %v15132_v45, %v12465_v62  ;;  %v15137_v22 = vld [vmem:[%s21444_s1 + $0x5ec] sm:$0xf0]  ;;  %v12517_v45 = vld [vmem:[%s21445_s2 + $0x1c] sm:$0xf] }
 0x524   : > { %v3441_v4 = vpop.f32.mrf.mxu3 }
 0x525   : > { %v3442_v53 = vadd.f32 %v3441_v4, %v3368_v46 }
 0x526   : > { %v3370_v50 = vpop.f32.mrf.mxu2  ;;  %v3528_v61 = vpop.f32.mrf.mxu0 }
 0x527   : > { %v17951_v9 = vadd.f32 %v3528_v61, %v17757_v39  ;;  %v3122_v0 = vpop.f32.mrf.mxu1  ;;  %v3969_v61 = vsel %vm1153_vm0, %v12517_v45, 0 }
 0x528   : > { %v17954_v33 = vadd.f32 %v3122_v0, %v17675_v44  ;;  %v12471_v44 = vld [vmem:[%s21444_s1 + $0x5d8] sm:$0xf]  ;;  %3978 = vmatpush.bf16.msrb.mxu3 %v3969_v61 }
 0x529   : > { %v12472_v17 = vor.u32 %v15135_v19, %v12471_v44  ;;  %v15138_v44 = vld [vmem:[%s21444_s1 + $0x5fc] sm:$0xf] }
 0x52a   : > { %3801 = vmatmul.bf16.gmra.mxu1 %v12464_v34 }
 0x52b   : > { %3874 = vmatmul.bf16.gmra.mxu2 %v12468_v15 }
 0x52c   : > { %v3443_v2 = vpop.f32.mrf.mxu3 }
 0x52d   : > { %v3444_v7 = vadd.f32 %v3443_v2, %v3370_v50 }
 0x52e   : > { %v3373_v63 = vpop.f32.mrf.mxu2  ;;  %v3531_v42 = vpop.f32.mrf.mxu0 }
 0x52f   : > { %v3469_v37 = vpack.c.bf16 %v3444_v7, %v3442_v53  ;;  %v17957_v30 = vadd.f32 %v3531_v42, %v17770_v41  ;;  %v3124_v32 = vpop.f32.mrf.mxu1  ;;  %v15134_v41 = vld [vmem:[%s21444_s1 + $0x5dc] sm:$0xf] }
 0x530   : > { %v17960_v39 = vadd.f32 %v3124_v32, %v17688_v1  ;;  %v12473_v1 = vld [vmem:[%s21444_s1 + $0x5e0] sm:$0xf0]  ;;  %v15139_v32 = vld [vmem:[%s21444_s1 + $0x5fc] sm:$0xf0] }
 0x531   : > { %12392 = vmatmul.msk.bf16.gmra.mxu0 %vm1113_vm1, %v3469_v37  ;;  %v12476_v49 = vor.u32 %v15134_v41, %v12473_v1 }
 0x534   : > { %v3446_v51 = vpop.f32.mrf.mxu3 }
 0x535   : > { %v3447_v12 = vadd.f32 %v3446_v51, %v3373_v63 }
 0x536   : > { %v3375_v55 = vpop.f32.mrf.mxu2  ;;  %v17975_v8 = vpop.f32.mrf.mxu0 }
 0x537   : > { %v3127_v54 = vpop.f32.mrf.mxu1 }
 0x538   : > { %v17978_v58 = vadd.f32 %v3127_v54, %v17700_v14  ;;  %v12479_v14 = vld [vmem:[%s21444_s1 + $0x5e8] sm:$0xf] }
 0x539   : > { %v12480_v4 = vor.u32 %v15137_v22, %v12479_v14  ;;  %v15140_v14 = vld [vmem:[%s21444_s1 + $0x60c] sm:$0xf] }
 0x53a   : > { %3806 = vmatmul.bf16.gmra.mxu1 %v12472_v17 }
 0x53b   : > { %3879 = vmatmul.bf16.gmra.mxu2 %v12476_v49 }
 0x53c   : > { %v3448_v59 = vpop.f32.mrf.mxu3 }
 0x53d   : > { %v3449_v16 = vadd.f32 %v3448_v59, %v3375_v55 }
 0x53e   : > { %v3378_v5 = vpop.f32.mrf.mxu2  ;;  %v3536_v24 = vpop.f32.mrf.mxu0 }
 0x53f   : > { %v3470_v6 = vpack.c.bf16 %v3449_v16, %v3447_v12  ;;  %v17981_v20 = vadd.f32 %v3536_v24, %v17793_v11  ;;  %v3129_v46 = vpop.f32.mrf.mxu1  ;;  %v15136_v11 = vld [vmem:[%s21444_s1 + $0x5ec] sm:$0xf] }
 0x540   : > { %v17984_v23 = vadd.f32 %v3129_v46, %v17713_v48  ;;  %v12481_v48 = vld [vmem:[%s21444_s1 + $0x5f0] sm:$0xf0]  ;;  %v15141_v46 = vld [vmem:[%s21444_s1 + $0x60c] sm:$0xf0] }
 0x541   : > { %12393 = vmatmul.msk.bf16.gmra.mxu0 %vm1113_vm1, %v3470_v6  ;;  %v12484_v50 = vor.u32 %v15136_v11, %v12481_v48  ;;  %v12495_v6 = vld [vmem:[%s21444_s1 + $0x608] sm:$0xf] }
 0x542   : > { %21473 = vst [vmem:[#allocation8_spill] sm:$0xff] %v17984_v23  ;;  %v12496_v11 = vor.u32 %v15141_v46, %v12495_v6  ;;  %v12513_v6 = vld [vmem:[%s21444_s1 + $0x630] sm:$0xf0] }
 0x544   : > { %v3451_v25 = vpop.f32.mrf.mxu3 }
 0x545   : > { %v3452_v0 = vadd.f32 %v3451_v25, %v3378_v5 }
 0x546   : > { %v3380_v36 = vpop.f32.mrf.mxu2  ;;  %v17999_v21 = vpop.f32.mrf.mxu0 }
 0x547   : > { %v3132_v62 = vpop.f32.mrf.mxu1 }
 0x548   : > { %v18006_v34 = vadd.f32 %v3132_v62, %v17729_v29  ;;  %v12487_v29 = vld [vmem:[%s21444_s1 + $0x5f8] sm:$0xf] }
 0x549   : > { %v12488_v1 = vor.u32 %v15139_v32, %v12487_v29 }
 0x54a   : > { %3811 = vmatmul.bf16.gmra.mxu1 %v12480_v4 }
 0x54b   : > { %3884 = vmatmul.bf16.gmra.mxu2 %v12484_v50 }
 0x54c   : > { %v3453_v15 = vpop.f32.mrf.mxu3 }
 0x54d   : > { %v3454_v53 = vadd.f32 %v3453_v15, %v3380_v36 }
 0x54e   : > { %v3383_v2 = vpop.f32.mrf.mxu2  ;;  %v3541_v7 = vpop.f32.mrf.mxu0 }
 0x54f   : > { %v3471_v63 = vpack.c.bf16 %v3454_v53, %v3452_v0  ;;  %v18009_v42 = vadd.f32 %v3541_v7, %v17815_v40  ;;  %v3134_v37 = vpop.f32.mrf.mxu1  ;;  %v12489_v40 = vld [vmem:[%s21444_s1 + $0x600] sm:$0xf0]  ;;  %v12503_v53 = vld [vmem:[%s21444_s1 + $0x618] sm:$0xf]  ;;  %v15142_v7 = vld [vmem:[%s21444_s1 + $0x61c] sm:$0xf] }
 0x550   : > { %v12492_v17 = vor.u32 %v15138_v44, %v12489_v40 }
 0x551   : > { %12394 = vmatmul.msk.bf16.gmra.mxu0 %vm1113_vm1, %v3471_v63  ;;  %v12505_v63 = vld [vmem:[%s21444_s1 + $0x620] sm:$0xf0] }
 0x554   : > { %v3456_v19 = vpop.f32.mrf.mxu3 }
 0x555   : > { %v3457_v54 = vadd.f32 %v3456_v19, %v3383_v2  ;;  %v15143_v2 = vld [vmem:[%s21444_s1 + $0x61c] sm:$0xf0]  ;;  %v12508_v19 = vor.u32 %v15142_v7, %v12505_v63 }
 0x556   : > { %v3385_v51 = vpop.f32.mrf.mxu2  ;;  %v18024_v41 = vpop.f32.mrf.mxu0  ;;  %v12504_v29 = vor.u32 %v15143_v2, %v12503_v53  ;;  %v12566_v53 = vld [vmem:[%s21444_s1 + $0x650] sm:$0xf]  ;;  %v15149_v2 = vld [vmem:[%s21444_s1 + $0x654] sm:$0xf0] }
 0x557   : > { %v3777_v55 = vpop.f32.mrf.mxu1  ;;  %v3472_v12 = vpack.c.bf16 %v3457_v54, %v3457_v54  ;;  %v12567_v7 = vor.u32 %v15149_v2, %v12566_v53  ;;  %v15153_v53 = vld [vmem:[%s21444_s1 + $0x674] sm:$0xf0] }
 0x55a   : > { %3816 = vmatmul.bf16.gmra.mxu1 %v12488_v1 }
 0x55b   : > { %3889 = vmatmul.bf16.gmra.mxu2 %v12492_v17 }
 0x55c   : > { %v3458_v49 = vpop.f32.mrf.mxu3 }
 0x55d   : > { %v12558_v49 = vld [vmem:[%s21444_s1 + $0x640] sm:$0xf] }
 0x55e   : > { %v3546_v59 = vpop.f32.mrf.mxu0  ;;  %v3850_v16 = vpop.f32.mrf.mxu2 }
 0x55f   : > { %v18027_v5 = vadd.f32 %v3546_v59, %v17833_v57  ;;  %v3779_v24 = vpop.f32.mrf.mxu1  ;;  %v12497_v57 = vld [vmem:[%s21444_s1 + $0x610] sm:$0xf0]  ;;  %v3851_v48 = vadd.f32 %v3850_v16, %v3777_v55  ;;  %v12511_v16 = vld [vmem:[%s21444_s1 + $0x628] sm:$0xf] }
 0x560   : > { %v12500_v45 = vor.u32 %v15140_v14, %v12497_v57 }
 0x561   : > { %12395 = vmatmul.msk.bf16.gmra.mxu0 %vm1113_vm1, %v3472_v12  ;;  %v15147_v12 = vld [vmem:[%s21444_s1 + $0x644] sm:$0xf0] }
 0x562   : > { %v12559_v59 = vor.u32 %v15147_v12, %v12558_v49 }
 0x566   : > { %v18042_v22 = vpop.f32.mrf.mxu0  ;;  %v3852_v25 = vpop.f32.mrf.mxu2 }
 0x567   : > { %v3853_v36 = vadd.f32 %v3852_v25, %v3779_v24  ;;  %v3782_v4 = vpop.f32.mrf.mxu1  ;;  %v15144_v24 = vld [vmem:[%s21444_s1 + $0x62c] sm:$0xf] }
 0x569   : > { %v3914_v62 = vpack.c.bf16 %v3853_v36, %v3851_v48  ;;  %v12516_v36 = vor.u32 %v15144_v24, %v12513_v6  ;;  %v15146_v24 = vld [vmem:[%s21444_s1 + $0x644] sm:$0xf] }
 0x56a   : > { %3821 = vmatmul.bf16.gmra.mxu1 %v12496_v11 }
 0x56b   : > { %3894 = vmatmul.bf16.gmra.mxu2 %v12500_v45  ;;  %12518 = vmatmul.msk.bf16.vlgmr.msrb.gmra.mxu3 %vm1113_vm1, %v3914_v62 }
 0x56e   : > { %v3551_v50 = vpop.f32.mrf.mxu0  ;;  %v3855_v61 = vpop.f32.mrf.mxu2 }
 0x56f   : > { %v18046_v0 = vadd.f32 %v3551_v50, %v17853_v38  ;;  %v3784_v15 = vpop.f32.mrf.mxu1  ;;  %v3856_v32 = vadd.f32 %v3855_v61, %v3782_v4 }
 0x571   : > { %4230 = vmatmul.bf16.vlgmr.msra.gmra.mxu0 %v12559_v59  ;;  %v12574_v59 = vld [vmem:[%s21444_s1 + $0x660] sm:$0xf] }
 0x576   : > { %v18060_v37 = vpop.f32.mrf.mxu0  ;;  %v3857_v38 = vpop.f32.mrf.mxu2 }
 0x577   : > { %v3858_v44 = vadd.f32 %v3857_v38, %v3784_v15  ;;  %v3787_v40 = vpop.f32.mrf.mxu1  ;;  %v12420_v15 = vld [vmem:[%s21444_s1 + $0x638] sm:$0x33] }
 0x578   : > { %v3714_v63 = vunpack.c.l.b16 %v12420_v15  ;;  %v3715_v38 = vunpack.c.h.b16 %v12420_v15  ;;  %v12582_v15 = vld [vmem:[%s21444_s1 + $0x670] sm:$0xf] }
 0x579   : > { %v3915_v51 = vpack.c.bf16 %v3858_v44, %v3856_v32  ;;  %v12583_v2 = vor.u32 %v15153_v53, %v12582_v15  ;;  %v12598_v15 = vld [vmem:[%s21444_s1 + $0x690] sm:$0xf]  ;;  %v15157_v53 = vld [vmem:[%s21444_s1 + $0x694] sm:$0xf0] }
 0x57a   : > { %3826 = vmatmul.bf16.gmra.mxu1 %v12504_v29  ;;  %v3740_v32 = vpack.c.b16 %v3714_v63, %v3714_v63 }
 0x57b   : > { %3899 = vmatmul.bf16.gmra.mxu2 %v12508_v19  ;;  %12519 = vmatmul.msk.bf16.gmra.mxu3 %vm1113_vm1, %v3915_v51  ;;  %v3741_v51 = vpack.c.b16 %v3715_v38, %v3715_v38 }
 0x57e   : > { %v3556_v1 = vpop.f32.mrf.mxu0  ;;  %v3860_v55 = vpop.f32.mrf.mxu2 }
 0x57f   : > { %v18064_v17 = vadd.f32 %v3556_v1, %v17872_v10  ;;  %v3789_v54 = vpop.f32.mrf.mxu1  ;;  %v15145_v10 = vld [vmem:[%s21444_s1 + $0x62c] sm:$0xf0]  ;;  %v3861_v25 = vadd.f32 %v3860_v55, %v3787_v40 }
 0x580   : > { %v12512_v57 = vor.u32 %v15145_v10, %v12511_v16  ;;  %v15151_v16 = vld [vmem:[%s21444_s1 + $0x664] sm:$0xf0] }
 0x581   : > { %4235 = vmatmul.bf16.gmra.mxu0 %v12567_v7  ;;  %v12575_v10 = vor.u32 %v15151_v16, %v12574_v59  ;;  %v15148_v7 = vld [vmem:[%s21444_s1 + $0x654] sm:$0xf]  ;;  %v15155_v59 = vld [vmem:[%s21444_s1 + $0x684] sm:$0xf0] }
 0x586   : > { %v18084_v46 = vpop.f32.mrf.mxu0  ;;  %v3862_v14 = vpop.f32.mrf.mxu2 }
 0x587   : > { %v3863_v11 = vadd.f32 %v3862_v14, %v3789_v54  ;;  %v3792_v48 = vpop.f32.mrf.mxu1 }
 0x589   : > { %v3916_v4 = vpack.c.bf16 %v3863_v11, %v3861_v25 }
 0x58a   : > { %3831 = vmatmul.bf16.gmra.mxu1 %v12512_v57 }
 0x58b   : > { %3904 = vmatmul.bf16.gmra.mxu2 %v12516_v36  ;;  %12520 = vmatmul.msk.bf16.gmra.mxu3 %vm1113_vm1, %v3916_v4 }
 0x58e   : > { %v3561_v45 = vpop.f32.mrf.mxu0  ;;  %v3865_v62 = vpop.f32.mrf.mxu2 }
 0x58f   : > { %v18088_v50 = vadd.f32 %v3561_v45, %v17891_v18  ;;  %v3794_v61 = vpop.f32.mrf.mxu1  ;;  %v3866_v44 = vadd.f32 %v3865_v62, %v3792_v48 }
 0x591   : > { %4240 = vmatmul.bf16.gmra.mxu0 %v12575_v10  ;;  %v15150_v10 = vld [vmem:[%s21444_s1 + $0x664] sm:$0xf] }
 0x596   : > { %v18099_v29 = vpop.f32.mrf.mxu0  ;;  %v3867_v18 = vpop.f32.mrf.mxu2 }
 0x597   : > { %v3868_v40 = vadd.f32 %v3867_v18, %v3794_v61  ;;  %v3797_v19 = vpop.f32.mrf.mxu1 }
 0x599   : > { %v3917_v1 = vpack.c.bf16 %v3868_v40, %v3866_v44 }
 0x59a   : > { %3836 = vmatmul.bf16.gmra.mxu1 %v3740_v32 }
 0x59b   : > { %3909 = vmatmul.bf16.gmra.mxu2 %v3741_v51  ;;  %12521 = vmatmul.msk.bf16.gmra.mxu3 %vm1113_vm1, %v3917_v1 }
 0x59e   : > { %v3566_v55 = vpop.f32.mrf.mxu0  ;;  %v3870_v54 = vpop.f32.mrf.mxu2 }
 0x59f   : > { %v18103_v49 = vadd.f32 %v3566_v55, %v17910_v56  ;;  %v3799_v12 = vpop.f32.mrf.mxu1  ;;  %v12560_v56 = vld [vmem:[%s21444_s1 + $0x648] sm:$0xf0]  ;;  %v3871_v25 = vadd.f32 %v3870_v54, %v3797_v19 }
 0x5a0   : > { %v12563_v57 = vor.u32 %v15146_v24, %v12560_v56 }
 0x5a1   : > { %4245 = vmatmul.bf16.gmra.mxu0 %v12583_v2  ;;  %v12599_v2 = vor.u32 %v15157_v53, %v12598_v15 }
 0x5a6   : > { %v18117_v6 = vpop.f32.mrf.mxu0  ;;  %v3872_v14 = vpop.f32.mrf.mxu2 }
 0x5a7   : > { %v3873_v11 = vadd.f32 %v3872_v14, %v3799_v12  ;;  %v3802_v48 = vpop.f32.mrf.mxu1  ;;  %v12590_v12 = vld [vmem:[%s21444_s1 + $0x680] sm:$0xf] }
 0x5a8   : > { %v12591_v16 = vor.u32 %v15155_v59, %v12590_v12  ;;  %v12606_v59 = vld [vmem:[%s21444_s1 + $0x6a0] sm:$0xf] }
 0x5a9   : > { %v3918_v36 = vpack.c.bf16 %v3873_v11, %v3871_v25 }
 0x5aa   : > { %4303 = vmatmul.bf16.vlgmr.msra.gmra.mxu1 %v12563_v57 }
 0x5ab   : > { %12522 = vmatmul.msk.bf16.gmra.mxu3 %vm1113_vm1, %v3918_v36 }
 0x5ae   : > { %v3571_v4 = vpop.f32.mrf.mxu0  ;;  %v3875_v45 = vpop.f32.mrf.mxu2 }
 0x5af   : > { %v18121_v62 = vadd.f32 %v3571_v4, %v17929_v13  ;;  %v3804_v61 = vpop.f32.mrf.mxu1  ;;  %v12568_v13 = vld [vmem:[%s21444_s1 + $0x658] sm:$0xf0]  ;;  %v3876_v32 = vadd.f32 %v3875_v45, %v3802_v48 }
 0x5b0   : > { %v12571_v18 = vor.u32 %v15148_v7, %v12568_v13  ;;  %v15152_v7 = vld [vmem:[%s21444_s1 + $0x674] sm:$0xf] }
 0x5b1   : > { %4250 = vmatmul.bf16.gmra.mxu0 %v12591_v16  ;;  %v15159_v16 = vld [vmem:[%s21444_s1 + $0x6a4] sm:$0xf0] }
 0x5b6   : > { %v18135_v63 = vpop.f32.mrf.mxu0  ;;  %v3877_v38 = vpop.f32.mrf.mxu2 }
 0x5b7   : > { %v3878_v44 = vadd.f32 %v3877_v38, %v3804_v61  ;;  %v3807_v40 = vpop.f32.mrf.mxu1 }
 0x5b9   : > { %v3919_v19 = vpack.c.bf16 %v3878_v44, %v3876_v32 }
 0x5ba   : > { %4308 = vmatmul.bf16.gmra.mxu1 %v12571_v18 }
 0x5bb   : > { %12523 = vmatmul.msk.bf16.gmra.mxu3 %vm1113_vm1, %v3919_v19 }
 0x5be   : > { %v3576_v51 = vpop.f32.mrf.mxu0  ;;  %v3880_v1 = vpop.f32.mrf.mxu2 }
 0x5bf   : > { %v18139_v55 = vadd.f32 %v3576_v51, %v17954_v33  ;;  %v3809_v54 = vpop.f32.mrf.mxu1  ;;  %v12576_v33 = vld [vmem:[%s21444_s1 + $0x668] sm:$0xf0]  ;;  %v3881_v57 = vadd.f32 %v3880_v1, %v3807_v40 }
 0x5c0   : > { %v12579_v14 = vor.u32 %v15150_v10, %v12576_v33  ;;  %v12607_v10 = vor.u32 %v15159_v16, %v12606_v59  ;;  %v15154_v33 = vld [vmem:[%s21444_s1 + $0x684] sm:$0xf]  ;;  %v12652_v59 = vld [vmem:[%s21445_s2 + $0x20] sm:$0xf] }
 0x5c1   : > { %4255 = vmatmul.bf16.gmra.mxu0 %v12599_v2  ;;  %v12614_v2 = vld [vmem:[%s21444_s1 + $0x6b0] sm:$0xf]  ;;  %v4423_v16 = vsel %vm1153_vm0, %v12652_v59, 0 }
 0x5c2   : > { %4432 = vmatpush.bf16.msra.mxu2 %v4423_v16 }
 0x5c6   : > { %v18153_v24 = vpop.f32.mrf.mxu0  ;;  %v3882_v56 = vpop.f32.mrf.mxu2 }
 0x5c7   : > { %v3883_v25 = vadd.f32 %v3882_v56, %v3809_v54  ;;  %v3812_v11 = vpop.f32.mrf.mxu1 }
 0x5c9   : > { %v3920_v48 = vpack.c.bf16 %v3883_v25, %v3881_v57 }
 0x5ca   : > { %4313 = vmatmul.bf16.gmra.mxu1 %v12579_v14 }
 0x5cb   : > { %12524 = vmatmul.msk.bf16.gmra.mxu3 %vm1113_vm1, %v3920_v48 }
 0x5ce   : > { %v3581_v36 = vpop.f32.mrf.mxu0  ;;  %v3885_v4 = vpop.f32.mrf.mxu2 }
 0x5cf   : > { %v18157_v45 = vadd.f32 %v3581_v36, %v17978_v58  ;;  %v3814_v61 = vpop.f32.mrf.mxu1  ;;  %v12584_v58 = vld [vmem:[%s21444_s1 + $0x678] sm:$0xf0]  ;;  %v3886_v32 = vadd.f32 %v3885_v4, %v3812_v11 }
 0x5d0   : > { %v12587_v18 = vor.u32 %v15152_v7, %v12584_v58  ;;  %v15161_v7 = vld [vmem:[%s21444_s1 + $0x6b4] sm:$0xf0] }
 0x5d1   : > { %4260 = vmatmul.bf16.gmra.mxu0 %v12607_v10  ;;  %v12615_v58 = vor.u32 %v15161_v7, %v12614_v2  ;;  %v15163_v2 = vld [vmem:[%s21444_s1 + $0x6c4] sm:$0xf0] }
 0x5d6   : > { %v18171_v13 = vpop.f32.mrf.mxu0  ;;  %v3887_v38 = vpop.f32.mrf.mxu2 }
 0x5d7   : > { %21474 = vst [vmem:[#allocation9_spill] sm:$0xff] %v18171_v13  ;;  %v3888_v44 = vadd.f32 %v3887_v38, %v3814_v61  ;;  %v3817_v40 = vpop.f32.mrf.mxu1  ;;  %v15156_v38 = vld [vmem:[%s21444_s1 + $0x694] sm:$0xf] }
 0x5d9   : > { %v3921_v19 = vpack.c.bf16 %v3888_v44, %v3886_v32 }
 0x5da   : > { %4318 = vmatmul.bf16.gmra.mxu1 %v12587_v18 }
 0x5db   : > { %12525 = vmatmul.msk.bf16.gmra.mxu3 %vm1113_vm1, %v3921_v19 }
 0x5de   : > { %v3586_v51 = vpop.f32.mrf.mxu0  ;;  %v3890_v1 = vpop.f32.mrf.mxu2 }
 0x5df   : > { %v18175_v54 = vadd.f32 %v3586_v51, %v18006_v34  ;;  %v3819_v12 = vpop.f32.mrf.mxu1  ;;  %v12592_v34 = vld [vmem:[%s21444_s1 + $0x688] sm:$0xf0]  ;;  %v3891_v25 = vadd.f32 %v3890_v1, %v3817_v40 }
 0x5e0   : > { %v12595_v14 = vor.u32 %v15154_v33, %v12592_v34 }
 0x5e1   : > { %4265 = vmatmul.bf16.gmra.mxu0 %v12615_v58 }
 0x5e6   : > { %v3892_v56 = vpop.f32.mrf.mxu2  ;;  %v3588_v57 = vpop.f32.mrf.mxu0 }
 0x5e7   : > { %v3893_v11 = vadd.f32 %v3892_v56, %v3819_v12  ;;  %v3822_v48 = vpop.f32.mrf.mxu1  ;;  %v12608_v57 = vld [vmem:[%s21444_s1 + $0x6a8] sm:$0xf0] }
 0x5e9   : > { %v3922_v36 = vpack.c.bf16 %v3893_v11, %v3891_v25 }
 0x5ea   : > { %4323 = vmatmul.bf16.gmra.mxu1 %v12595_v14  ;;  %v15158_v14 = vld [vmem:[%s21444_s1 + $0x6a4] sm:$0xf] }
 0x5eb   : > { %12526 = vmatmul.msk.bf16.gmra.mxu3 %vm1113_vm1, %v3922_v36 }
 0x5ee   : > { %v3895_v4 = vpop.f32.mrf.mxu2  ;;  %v3980_v61 = vpop.f32.mrf.mxu3 }
 0x5ef   : > { %v18191_v15 = vadd.f32 %v3980_v61, %v17932_v27  ;;  %v3824_v53 = vpop.f32.mrf.mxu1  ;;  %v12600_v27 = vld [vmem:[%s21444_s1 + $0x698] sm:$0xf0]  ;;  %v3896_v40 = vadd.f32 %v3895_v4, %v3822_v48  ;;  %v12611_v48 = vor.u32 %v15158_v14, %v12608_v57  ;;  %v15165_v14 = vld [vmem:[%s21444_s1 + $0x6d4] sm:$0xf0] }
 0x5f0   : > { %v12603_v44 = vor.u32 %v15156_v38, %v12600_v27 }
 0x5f6   : > { %v3897_v18 = vpop.f32.mrf.mxu2  ;;  %v3982_v32 = vpop.f32.mrf.mxu3 }
 0x5f7   : > { %v3898_v19 = vadd.f32 %v3897_v18, %v3824_v53  ;;  %v18206_v51 = vadd.f32 %v3982_v32, %v17951_v9  ;;  %v3827_v1 = vpop.f32.mrf.mxu1  ;;  %v4231_v9 = vpop.f32.mrf.mxu0 }
 0x5f9   : > { %v3923_v12 = vpack.c.bf16 %v3898_v19, %v3896_v40  ;;  %v15160_v40 = vld [vmem:[%s21444_s1 + $0x6b4] sm:$0xf]  ;;  %v12616_v19 = vld [vmem:[%s21444_s1 + $0x6b8] sm:$0xf0] }
 0x5fa   : > { %4328 = vmatmul.bf16.gmra.mxu1 %v12603_v44  ;;  %v12619_v59 = vor.u32 %v15160_v40, %v12616_v19 }
 0x5fb   : > { %12527 = vmatmul.msk.bf16.gmra.mxu3 %vm1113_vm1, %v3923_v12 }
 0x5fe   : > { %v3900_v10 = vpop.f32.mrf.mxu2  ;;  %v3985_v33 = vpop.f32.mrf.mxu3 }
 0x5ff   : > { %v18214_v34 = vadd.f32 %v3985_v33, %v17957_v30  ;;  %v3829_v56 = vpop.f32.mrf.mxu1  ;;  %v3901_v36 = vadd.f32 %v3900_v10, %v3827_v1  ;;  %v4233_v53 = vpop.f32.mrf.mxu0  ;;  %v12622_v30 = vld [vmem:[%s21444_s1 + $0x6c0] sm:$0xf] }
 0x600   : > { %v12623_v58 = vor.u32 %v15163_v2, %v12622_v30  ;;  %v15162_v2 = vld [vmem:[%s21444_s1 + $0x6c4] sm:$0xf] }
 0x602   : > { %4270 = vmatmul.bf16.gmra.mxu0 %v12623_v58 }
 0x606   : > { %v3902_v25 = vpop.f32.mrf.mxu2  ;;  %v18222_v11 = vpop.f32.mrf.mxu3 }
 0x607   : > { %v3903_v4 = vadd.f32 %v3902_v25, %v3829_v56  ;;  %v3832_v61 = vpop.f32.mrf.mxu1  ;;  %v4236_v44 = vpop.f32.mrf.mxu0 }
 0x609   : > { %v3924_v7 = vpack.c.bf16 %v3903_v4, %v3901_v36 }
 0x60a   : > { %4333 = vmatmul.bf16.gmra.mxu1 %v12611_v48 }
 0x60b   : > { %12528 = vmatmul.msk.bf16.gmra.mxu3 %vm1113_vm1, %v3924_v7  ;;  %v12624_v7 = vld [vmem:[%s21444_s1 + $0x6c8] sm:$0xf0] }
 0x60e   : > { %v3905_v38 = vpop.f32.mrf.mxu2  ;;  %v3990_v27 = vpop.f32.mrf.mxu3 }
 0x60f   : > { %v18232_v18 = vadd.f32 %v3990_v27, %v17981_v20  ;;  %v3834_v32 = vpop.f32.mrf.mxu1  ;;  %v3906_v16 = vadd.f32 %v3905_v38, %v3832_v61  ;;  %v4238_v56 = vpop.f32.mrf.mxu0  ;;  %v12630_v20 = vld [vmem:[%s21444_s1 + $0x6d0] sm:$0xf]  ;;  %v12627_v27 = vor.u32 %v15162_v2, %v12624_v7 }
 0x610   : > { %v12631_v25 = vor.u32 %v15165_v14, %v12630_v20 }
 0x612   : > { %4275 = vmatmul.bf16.gmra.mxu0 %v12631_v25 }
 0x616   : > { %v3907_v1 = vpop.f32.mrf.mxu2  ;;  %v18240_v12 = vpop.f32.mrf.mxu3 }
 0x617   : > { %v3908_v10 = vadd.f32 %v3907_v1, %v3834_v32  ;;  %v3837_v33 = vpop.f32.mrf.mxu1  ;;  %v4241_v30 = vpop.f32.mrf.mxu0  ;;  %v15167_v1 = vld [vmem:[%s21444_s1 + $0x6e4] sm:$0xf0] }
 0x619   : > { %v3925_v57 = vpack.c.bf16 %v3908_v10, %v3906_v16 }
 0x61a   : > { %4338 = vmatmul.bf16.gmra.mxu1 %v12619_v59 }
 0x61b   : > { %12529 = vmatmul.msk.bf16.gmra.mxu3 %vm1113_vm1, %v3925_v57 }
 0x61e   : > { %v3910_v48 = vpop.f32.mrf.mxu2  ;;  %v3995_v36 = vpop.f32.mrf.mxu3 }
 0x61f   : > { %v18250_v4 = vadd.f32 %v3995_v36, %v18009_v42  ;;  %v3839_v61 = vpop.f32.mrf.mxu1  ;;  %v3911_v58 = vadd.f32 %v3910_v48, %v3837_v33  ;;  %v4243_v19 = vpop.f32.mrf.mxu0  ;;  %v12638_v42 = vld [vmem:[%s21444_s1 + $0x6e0] sm:$0xf]  ;;  %v15164_v36 = vld [vmem:[%s21444_s1 + $0x6d4] sm:$0xf] }
 0x620   : > { %v12639_v16 = vor.u32 %v15167_v1, %v12638_v42  ;;  %v12632_v61 = vld [vmem:[%s21444_s1 + $0x6d8] sm:$0xf0] }
 0x621   : > { %v3926_v59 = vpack.c.bf16 %v3911_v58, %v3911_v58  ;;  %v12635_v7 = vor.u32 %v15164_v36, %v12632_v61 }
 0x622   : > { %4280 = vmatmul.bf16.gmra.mxu0 %v12639_v16 }
 0x626   : > { %v18258_v38 = vpop.f32.mrf.mxu3  ;;  %v3912_v32 = vpop.f32.mrf.mxu2 }
 0x627   : > { %v4304_v40 = vpop.f32.mrf.mxu1  ;;  %v4246_v25 = vpop.f32.mrf.mxu0 }
 0x628   : > { %v4305_v14 = vadd.f32 %v4304_v40, %v4231_v9  ;;  %v12646_v9 = vld [vmem:[%s21444_s1 + $0x6f0] sm:$0xf] }
 0x62a   : > { %4343 = vmatmul.bf16.gmra.mxu1 %v12627_v27 }
 0x62b   : > { %12530 = vmatmul.msk.bf16.gmra.mxu3 %vm1113_vm1, %v3926_v59 }
 0x62e   : > { %v4000_v10 = vpop.f32.mrf.mxu3 }
 0x62f   : > { %v18268_v33 = vadd.f32 %v4000_v10, %v18027_v5  ;;  %v4306_v20 = vpop.f32.mrf.mxu1  ;;  %v4248_v58 = vpop.f32.mrf.mxu0 }
 0x630   : > { %v4307_v57 = vadd.f32 %v4306_v20, %v4233_v53  ;;  %v15169_v53 = vld [vmem:[%s21444_s1 + $0x6f4] sm:$0xf0]  ;;  %v15166_v20 = vld [vmem:[%s21444_s1 + $0x6e4] sm:$0xf] }
 0x631   : > { %v12647_v27 = vor.u32 %v15169_v53, %v12646_v9 }
 0x632   : > { %v4368_v48 = vpack.c.bf16 %v4307_v57, %v4305_v14  ;;  %v12640_v14 = vld [vmem:[%s21444_s1 + $0x6e8] sm:$0xf0] }
 0x633   : > { %4285 = vmatmul.bf16.gmra.mxu0 %v12647_v27 }
 0x634   : > { %12653 = vmatmul.msk.bf16.vlgmr.msra.gmra.mxu2 %vm1113_vm1, %v4368_v48  ;;  %v12643_v48 = vor.u32 %v15166_v20, %v12640_v14 }
 0x636   : > { %v18277_v2 = vpop.f32.mrf.mxu3 }
 0x637   : > { %v4309_v5 = vpop.f32.mrf.mxu1  ;;  %v4251_v16 = vpop.f32.mrf.mxu0 }
 0x638   : > { %v4310_v1 = vadd.f32 %v4309_v5, %v4236_v44 }
 0x63a   : > { %4348 = vmatmul.bf16.gmra.mxu1 %v12635_v7 }
 0x63e   : > { %v4005_v32 = vpop.f32.mrf.mxu3 }
 0x63f   : > { %v18286_v40 = vadd.f32 %v4005_v32, %v18046_v0  ;;  %v4311_v42 = vpop.f32.mrf.mxu1  ;;  %v4253_v36 = vpop.f32.mrf.mxu0 }
 0x640   : > { %v4312_v59 = vadd.f32 %v4311_v42, %v4238_v56  ;;  %v12555_v56 = vld [vmem:[%s21444_s1 + $0x700] sm:$0x33] }
 0x641   : > { %v4168_v5 = vunpack.c.l.b16 %v12555_v56 }
 0x642   : > { %v4369_v10 = vpack.c.bf16 %v4312_v59, %v4310_v1  ;;  %v15168_v1 = vld [vmem:[%s21444_s1 + $0x6f4] sm:$0xf]  ;;  %v12648_v59 = vld [vmem:[%s21444_s1 + $0x6f8] sm:$0xf0] }
 0x643   : > { %v4194_v32 = vpack.c.b16 %v4168_v5, %v4168_v5  ;;  %v4169_v5 = vunpack.c.h.b16 %v12555_v56 }
 0x644   : > { %12654 = vmatmul.msk.bf16.gmra.mxu2 %vm1113_vm1, %v4369_v10  ;;  %v12651_v10 = vor.u32 %v15168_v1, %v12648_v59 }
 0x645   : > { %4290 = vmatmul.bf16.gmra.mxu0 %v4194_v32  ;;  %v4195_v32 = vpack.c.b16 %v4169_v5, %v4169_v5 }
 0x646   : > { %v18295_v57 = vpop.f32.mrf.mxu3 }
 0x647   : > { %v4314_v0 = vpop.f32.mrf.mxu1  ;;  %v4256_v27 = vpop.f32.mrf.mxu0 }
 0x648   : > { %v4315_v9 = vadd.f32 %v4314_v0, %v4241_v30 }
 0x64a   : > { %4353 = vmatmul.bf16.gmra.mxu1 %v12643_v48 }
 0x64e   : > { %v4010_v44 = vpop.f32.mrf.mxu3 }
 0x64f   : > { %v18301_v61 = vadd.f32 %v4010_v44, %v18064_v17  ;;  %v4316_v7 = vpop.f32.mrf.mxu1  ;;  %v4258_v30 = vpop.f32.mrf.mxu0 }
 0x650   : > { %v4317_v53 = vadd.f32 %v4316_v7, %v4243_v19 }
 0x652   : > { %v4370_v42 = vpack.c.bf16 %v4317_v53, %v4315_v9 }
 0x654   : > { %12655 = vmatmul.msk.bf16.gmra.mxu2 %vm1113_vm1, %v4370_v42 }
 0x656   : > { %v18310_v17 = vpop.f32.mrf.mxu3 }
 0x657   : > { %v4319_v20 = vpop.f32.mrf.mxu1  ;;  %v4261_v9 = vpop.f32.mrf.mxu0 }
 0x658   : > { %v4320_v0 = vadd.f32 %v4319_v20, %v4246_v25 }
 0x65a   : > { %4358 = vmatmul.bf16.gmra.mxu1 %v12651_v10 }
 0x65e   : > { %v4015_v19 = vpop.f32.mrf.mxu3 }
 0x65f   : > { %v18313_v14 = vadd.f32 %v4015_v19, %v18088_v50  ;;  %v4321_v48 = vpop.f32.mrf.mxu1  ;;  %v4263_v1 = vpop.f32.mrf.mxu0 }
 0x660   : > { %v4322_v44 = vadd.f32 %v4321_v48, %v4248_v58 }
 0x662   : > { %v4371_v7 = vpack.c.bf16 %v4322_v44, %v4320_v0 }
 0x664   : > { %12656 = vmatmul.msk.bf16.gmra.mxu2 %vm1113_vm1, %v4371_v7 }
 0x666   : > { %v18316_v53 = vpop.f32.mrf.mxu3 }
 0x667   : > { %v4324_v42 = vpop.f32.mrf.mxu1  ;;  %v4266_v56 = vpop.f32.mrf.mxu0 }
 0x668   : > { %v4325_v19 = vadd.f32 %v4324_v42, %v4251_v16 }
 0x66a   : > { %4363 = vmatmul.bf16.gmra.mxu1 %v4195_v32 }
 0x66e   : > { %v4020_v59 = vpop.f32.mrf.mxu3 }
 0x66f   : > { %v18319_v10 = vadd.f32 %v4020_v59, %v18103_v49  ;;  %v4326_v50 = vpop.f32.mrf.mxu1  ;;  %v4268_v32 = vpop.f32.mrf.mxu0 }
 0x670   : > { %v4327_v13 = vadd.f32 %v4326_v50, %v4253_v36 }
 0x672   : > { %v4372_v25 = vpack.c.bf16 %v4327_v13, %v4325_v19 }
 0x674   : > { %12657 = vmatmul.msk.bf16.gmra.mxu2 %vm1113_vm1, %v4372_v25 }
 0x676   : > { %v18322_v58 = vpop.f32.mrf.mxu3 }
 0x677   : > { %v4329_v20 = vpop.f32.mrf.mxu1 }
 0x678   : > { %v4330_v7 = vadd.f32 %v4329_v20, %v4256_v27 }
 0x67e   : > { %v4025_v48 = vpop.f32.mrf.mxu3 }
 0x67f   : > { %v18325_v0 = vadd.f32 %v4025_v48, %v18121_v62  ;;  %v4331_v44 = vpop.f32.mrf.mxu1  ;;  %v4271_v36 = vpop.f32.mrf.mxu0 }
 0x680   : > { %v4332_v5 = vadd.f32 %v4331_v44, %v4258_v30 }
 0x682   : > { %v4373_v49 = vpack.c.bf16 %v4332_v5, %v4330_v7 }
 0x684   : > { %12658 = vmatmul.msk.bf16.gmra.mxu2 %vm1113_vm1, %v4373_v49 }
 0x686   : > { %v18328_v16 = vpop.f32.mrf.mxu3 }
 0x687   : > { %v4334_v13 = vpop.f32.mrf.mxu1  ;;  %v4273_v62 = vpop.f32.mrf.mxu0 }
 0x688   : > { %v4335_v19 = vadd.f32 %v4334_v13, %v4261_v9 }
 0x68e   : > { %v4030_v42 = vpop.f32.mrf.mxu3 }
 0x68f   : > { %v18331_v59 = vadd.f32 %v4030_v42, %v18139_v55  ;;  %v4336_v50 = vpop.f32.mrf.mxu1  ;;  %v4276_v20 = vpop.f32.mrf.mxu0 }
 0x690   : > { %v4337_v25 = vadd.f32 %v4336_v50, %v4263_v1 }
 0x692   : > { %v4374_v48 = vpack.c.bf16 %v4337_v25, %v4335_v19 }
 0x694   : > { %12659 = vmatmul.msk.bf16.gmra.mxu2 %vm1113_vm1, %v4374_v48 }
 0x696   : > { %v18334_v27 = vpop.f32.mrf.mxu3 }
 0x697   : > { %21475 = vst [vmem:[#allocation10_spill] sm:$0xff] %v18334_v27  ;;  %v4339_v30 = vpop.f32.mrf.mxu1  ;;  %v4278_v55 = vpop.f32.mrf.mxu0 }
 0x698   : > { %v4340_v49 = vadd.f32 %v4339_v30, %v4266_v56 }
 0x69e   : > { %v4035_v44 = vpop.f32.mrf.mxu3 }
 0x69f   : > { %v18337_v7 = vadd.f32 %v4035_v44, %v18157_v45  ;;  %v4341_v5 = vpop.f32.mrf.mxu1  ;;  %v4281_v13 = vpop.f32.mrf.mxu0 }
 0x6a0   : > { %v4342_v23 = vadd.f32 %v4341_v5, %v4268_v32  ;;  %v18350_v5 = vld [vmem:[%s21446_s3] ss:$0 sm:$0xff] }
 0x6a2   : > { %v4375_v42 = vpack.c.bf16 %v4342_v23, %v4340_v49 }
 0x6a4   : > { %12660 = vmatmul.msk.bf16.gmra.mxu2 %vm1113_vm1, %v4375_v42 }
 0x6a6   : > { %v18340_v9 = vpop.f32.mrf.mxu3 }
 0x6a7   : > { %v4344_v1 = vpop.f32.mrf.mxu1  ;;  %v4283_v56 = vpop.f32.mrf.mxu0 }
 0x6a8   : > { %v4345_v50 = vadd.f32 %v4344_v1, %v4271_v36 }
 0x6ae   : > { %v4040_v19 = vpop.f32.mrf.mxu3 }
 0x6af   : > { %v18343_v25 = vadd.f32 %v4040_v19, %v18175_v54  ;;  %v4346_v48 = vpop.f32.mrf.mxu1 }
 0x6b0   : > { %v4347_v27 = vadd.f32 %v4346_v48, %v4273_v62  ;;  %v4286_v49 = vpop.f32.mrf.mxu0 }
 0x6b2   : > { %v4376_v45 = vpack.c.bf16 %v4347_v27, %v4345_v50 }
 0x6b4   : > { %12661 = vmatmul.msk.bf16.gmra.mxu2 %vm1113_vm1, %v4376_v45 }
 0x6b6   : > { %v4042_v32 = vpop.f32.mrf.mxu3 }
 0x6b7   : > { %v4349_v30 = vpop.f32.mrf.mxu1  ;;  %v4434_v23 = vpop.f32.mrf.mxu2 }
 0x6b8   : > { %v4498_v44 = vadd.f32 %v4434_v23, %v18191_v15  ;;  %v4350_v36 = vadd.f32 %v4349_v30, %v4276_v20 }
 0x6ba   : > { %v4527_v54 = vadd.f32 %v18350_v5, %v4498_v44 }
 0x6bc   : > { %v4577_v50 = vmul.f32 0.01, %v4527_v54  ;;  %vm4552_vm2 = vcmp.ge.f32.partialorder %v4527_v54, 0.0 }
 0x6be   : > { %v4602_v45 = vsel %vm4552_vm2, %v4527_v54, %v4577_v50 }
 0x6bf   : > { %v4351_v42 = vpop.f32.mrf.mxu1  ;;  %v4436_v62 = vpop.f32.mrf.mxu2 }
 0x6c0   : > { %v4352_v27 = vadd.f32 %v4351_v42, %v4278_v55  ;;  %v4499_v1 = vadd.f32 %v4436_v62, %v18206_v51  ;;  %v4288_v55 = vpop.f32.mrf.mxu0  ;;  %v3593_v51 = vadd.f32 %v17975_v8, %v17781_v35 }
 0x6c2   : > { %v4377_v19 = vpack.c.bf16 %v4352_v27, %v4350_v36  ;;  %v4528_v48 = vadd.f32 %v18350_v5, %v4499_v1  ;;  %v4047_v36 = vadd.f32 %v18222_v11, %v3593_v51 }
 0x6c4   : > { %vm4553_vm3 = vcmp.ge.f32.partialorder %v4528_v48, 0.0  ;;  %v4578_v15 = vmul.f32 0.01, %v4528_v48  ;;  %12662 = vmatmul.msk.bf16.gmra.mxu2 %vm1113_vm1, %v4377_v19 }
 0x6c6   : > { %v4603_v32 = vsel %vm4553_vm3, %v4528_v48, %v4578_v15 }
 0x6c7   : > { %v18356_v20 = vpack.c.bf16 %v4603_v32, %v4602_v45  ;;  %v4354_v30 = vpop.f32.mrf.mxu1  ;;  %v4439_v23 = vpop.f32.mrf.mxu2 }
 0x6c8   : > { %v4500_v44 = vadd.f32 %v4439_v23, %v18214_v34  ;;  %v4355_v42 = vadd.f32 %v4354_v30, %v4281_v13  ;;  %v4291_v50 = vpop.f32.mrf.mxu0  ;;  %v3595_v23 = vadd.f32 %v17999_v21, %v17803_v52 }
 0x6ca   : > { %v4529_v62 = vadd.f32 %v18350_v5, %v4500_v44  ;;  %v4049_v44 = vadd.f32 %v18240_v12, %v3595_v23 }
 0x6cc   : > { %v4579_v48 = vmul.f32 0.01, %v4529_v62  ;;  %vm4554_vm4 = vcmp.ge.f32.partialorder %v4529_v62, 0.0 }
 0x6ce   : > { %v4604_v35 = vsel %vm4554_vm4, %v4529_v62, %v4579_v48 }
 0x6cf   : > { %v4356_v27 = vpop.f32.mrf.mxu1  ;;  %v4441_v1 = vpop.f32.mrf.mxu2 }
 0x6d0   : > { %v4357_v19 = vadd.f32 %v4356_v27, %v4283_v56  ;;  %v4501_v54 = vadd.f32 %v4441_v1, %v4047_v36  ;;  %v4293_v56 = vpop.f32.mrf.mxu0 }
 0x6d2   : > { %v4378_v15 = vpack.c.bf16 %v4357_v19, %v4355_v42  ;;  %v4530_v45 = vadd.f32 %v18350_v5, %v4501_v54 }
 0x6d4   : > { %vm4555_vm5 = vcmp.ge.f32.partialorder %v4530_v45, 0.0  ;;  %v4580_v34 = vmul.f32 0.01, %v4530_v45  ;;  %12663 = vmatmul.msk.bf16.gmra.mxu2 %vm1113_vm1, %v4378_v15 }
 0x6d6   : > { %v4605_v8 = vsel %vm4555_vm5, %v4530_v45, %v4580_v34 }
 0x6d7   : > { %v18365_v11 = vpack.c.bf16 %v4605_v8, %v4604_v35  ;;  %v4359_v13 = vpop.f32.mrf.mxu1  ;;  %v4444_v32 = vpop.f32.mrf.mxu2 }
 0x6d8   : > { %v4502_v30 = vadd.f32 %v4444_v32, %v18232_v18  ;;  %v4360_v51 = vadd.f32 %v4359_v13, %v4286_v49 }
 0x6da   : > { %v4531_v36 = vadd.f32 %v18350_v5, %v4502_v30 }
 0x6dc   : > { %v4581_v19 = vmul.f32 0.01, %v4531_v36  ;;  %vm4556_vm6 = vcmp.ge.f32.partialorder %v4531_v36, 0.0 }
 0x6de   : > { %v4606_v15 = vsel %vm4556_vm6, %v4531_v36, %v4581_v19 }
 0x6df   : > { %v4361_v42 = vpop.f32.mrf.mxu1  ;;  %v4446_v27 = vpop.f32.mrf.mxu2 }
 0x6e0   : > { %v4362_v1 = vadd.f32 %v4361_v42, %v4288_v55  ;;  %v4503_v62 = vadd.f32 %v4446_v27, %v4049_v44  ;;  %v3597_v55 = vadd.f32 %v18024_v41, %v17825_v47 }
 0x6e2   : > { %v4379_v54 = vpack.c.bf16 %v4362_v1, %v4360_v51  ;;  %v4532_v48 = vadd.f32 %v18350_v5, %v4503_v62  ;;  %v4051_v35 = vadd.f32 %v18258_v38, %v3597_v55 }
 0x6e4   : > { %vm4557_vm7 = vcmp.ge.f32.partialorder %v4532_v48, 0.0  ;;  %v4582_v18 = vmul.f32 0.01, %v4532_v48  ;;  %12664 = vmatmul.msk.bf16.gmra.mxu2 %vm1113_vm1, %v4379_v54 }
 0x6e6   : > { %v4607_v52 = vsel %vm4557_vm7, %v4532_v48, %v4582_v18 }
 0x6e7   : > { %v18374_v21 = vpack.c.bf16 %v4607_v52, %v4606_v15  ;;  %v4449_v12 = vpop.f32.mrf.mxu2  ;;  %v4364_v49 = vpop.f32.mrf.mxu1 }
 0x6e8   : > { %v4504_v45 = vadd.f32 %v4449_v12, %v18250_v4  ;;  %v4365_v34 = vadd.f32 %v4364_v49, %v4291_v50  ;;  %v3599_v50 = vadd.f32 %v18042_v22, %v17837_v43  ;;  %v3601_v43 = vadd.f32 %v18060_v37, %v17856_v26 }
 0x6e9   : > { %v3603_v26 = vadd.f32 %v18084_v46, %v17875_v31  ;;  %v3605_v31 = vadd.f32 %v18099_v29, %v17894_v60  ;;  %v3607_v60 = vadd.f32 %v18117_v6, %v17913_v3 }
 0x6ea   : > { %v4533_v8 = vadd.f32 %v18350_v5, %v4504_v45  ;;  %v4380_v30 = vpack.c.bf16 %v4365_v34, %v4365_v34  ;;  %v4053_v42 = vadd.f32 %v18277_v2, %v3599_v50  ;;  %v4055_v22 = vadd.f32 %v18295_v57, %v3601_v43 }
 0x6eb   : > { %v4057_v37 = vadd.f32 %v18310_v17, %v3603_v26  ;;  %v4059_v46 = vadd.f32 %v18316_v53, %v3605_v31  ;;  %v4061_v29 = vadd.f32 %v18322_v58, %v3607_v60  ;;  %v21477_v60 = vld [vmem:[#allocation8_spill] sm:$0xff] }
 0x6ec   : > { %v4583_v23 = vmul.f32 0.01, %v4533_v8  ;;  %vm4558_vm8 = vcmp.ge.f32.partialorder %v4533_v8, 0.0 }
 0x6ee   : > { %v4608_v4 = vsel %vm4558_vm8, %v4533_v8, %v4583_v23 }
 0x6ef   : > { %v4451_v13 = vpop.f32.mrf.mxu2  ;;  %v4366_v32 = vpop.f32.mrf.mxu1 }
 0x6f0   : > { %v4505_v56 = vadd.f32 %v4451_v13, %v4051_v35 }
 0x6f2   : > { %v4534_v44 = vadd.f32 %v18350_v5, %v4505_v56 }
 0x6f4   : > { %vm4559_vm9 = vcmp.ge.f32.partialorder %v4534_v44, 0.0  ;;  %v4584_v51 = vmul.f32 0.01, %v4534_v44  ;;  %12665 = vmatmul.msk.bf16.gmra.mxu2 %vm1113_vm1, %v4380_v30 }
 0x6f6   : > { %v4609_v36 = vsel %vm4559_vm9, %v4534_v44, %v4584_v51 }
 0x6f7   : > { %v18383_v47 = vpack.c.bf16 %v4609_v36, %v4608_v4  ;;  %v4454_v41 = vpop.f32.mrf.mxu2 }
 0x6f8   : > { %v4506_v38 = vadd.f32 %v4454_v41, %v18268_v33 }
 0x6fa   : > { %v4535_v27 = vadd.f32 %v18350_v5, %v4506_v38 }
 0x6fc   : > { %v4585_v19 = vmul.f32 0.01, %v4535_v27  ;;  %vm4560_vm10 = vcmp.ge.f32.partialorder %v4535_v27, 0.0 }
 0x6fe   : > { %v4610_v18 = vsel %vm4560_vm10, %v4535_v27, %v4585_v19 }
 0x6ff   : > { %v4456_v1 = vpop.f32.mrf.mxu2 }
 0x700   : > { %v4507_v62 = vadd.f32 %v4456_v1, %v4053_v42 }
 0x702   : > { %v4536_v54 = vadd.f32 %v18350_v5, %v4507_v62 }
 0x704   : > { %vm4561_vm11 = vcmp.ge.f32.partialorder %v4536_v54, 0.0  ;;  %v4586_v48 = vmul.f32 0.01, %v4536_v54 }
 0x706   : > { %v4611_v15 = vsel %vm4561_vm11, %v4536_v54, %v4586_v48 }
 0x707   : > { %v18391_v52 = vpack.c.bf16 %v4611_v15, %v4610_v18  ;;  %v4459_v33 = vpop.f32.mrf.mxu2 }
 0x708   : > { %v4508_v12 = vadd.f32 %v4459_v33, %v18286_v40 }
 0x70a   : > { %v4537_v2 = vadd.f32 %v18350_v5, %v4508_v12 }
 0x70c   : > { %v4587_v55 = vmul.f32 0.01, %v4537_v2  ;;  %vm4562_vm12 = vcmp.ge.f32.partialorder %v4537_v2, 0.0 }
 0x70e   : > { %v4612_v8 = vsel %vm4562_vm12, %v4537_v2, %v4587_v55  ;;  %vm4767_vm12 = vcmask 1041408  }
 0x70f   : > { %v4461_v49 = vpop.f32.mrf.mxu2 }
 0x710   : > { %v4509_v45 = vadd.f32 %v4461_v49, %v4055_v22 }
 0x712   : > { %v4538_v34 = vadd.f32 %v18350_v5, %v4509_v45  ;;  %v3609_v45 = vadd.f32 %v18135_v63, %v17935_v28  ;;  %v15171_v28 = vld [vmem:[%s21447_s4 + $0x4] sm:$0xf0]  ;;  %v12767_v63 = vld [vmem:[%s21447_s4 + $0x90] sm:$0xf] }
 0x714   : > { %vm4563_vm13 = vcmp.ge.f32.partialorder %v4538_v34, 0.0  ;;  %v4588_v35 = vmul.f32 0.01, %v4538_v34  ;;  %v4063_v55 = vadd.f32 %v18328_v16, %v3609_v45 }
 0x716   : > { %v4613_v13 = vsel %vm4563_vm13, %v4538_v34, %v4588_v35  ;;  %vm4739_vm13 = vcmask 556032  }
 0x717   : > { %v18399_v32 = vpack.c.bf16 %v4613_v13, %v4612_v8  ;;  %v4464_v40 = vpop.f32.mrf.mxu2  ;;  %v12668_v13 = vld [vmem:[%s21447_s4] sm:$0xf] }
 0x718   : > { %v4510_v30 = vadd.f32 %v4464_v40, %v18301_v61  ;;  %v12669_v26 = vor.u32 %v15171_v28, %v12668_v13 }
 0x71a   : > { %v4539_v57 = vadd.f32 %v18350_v5, %v4510_v30 }
 0x71c   : > { %v4589_v44 = vmul.f32 0.01, %v4539_v57  ;;  %vm4564_vm14 = vcmp.ge.f32.partialorder %v4539_v57, 0.0 }
 0x71e   : > { %v4614_v36 = vsel %vm4564_vm14, %v4539_v57, %v4589_v44  ;;  %vm5143_vm14 = vcmask 130048  }
 0x71f   : > { %v4466_v56 = vpop.f32.mrf.mxu2 }
 0x720   : > { %v4511_v23 = vadd.f32 %v4466_v56, %v4057_v37 }
 0x722   : > { %v4540_v51 = vadd.f32 %v18350_v5, %v4511_v23 }
 0x724   : > { %vm4565_vm15 = vcmp.ge.f32.partialorder %v4540_v51, 0.0  ;;  %v4590_v4 = vmul.f32 0.01, %v4540_v51 }
 0x726   : > { %v4615_v41 = vsel %vm4565_vm15, %v4540_v51, %v4590_v4  ;;  %v3611_v4 = vadd.f32 %v18153_v24, %v17960_v39  ;;  %v12775_v39 = vld [vmem:[%s21447_s4 + $0xa0] sm:$0xf]  ;;  %v15192_v24 = vld [vmem:[%s21447_s4 + $0xa4] sm:$0xf0] }
 0x727   : > { %v18407_v38 = vpack.c.bf16 %v4615_v41, %v4614_v36  ;;  %v4469_v61 = vpop.f32.mrf.mxu2  ;;  %v21476_v36 = vld [vmem:[#allocation10_spill] sm:$0xff] }
 0x728   : > { %v4512_v50 = vadd.f32 %v4469_v61, %v18313_v14  ;;  %v4065_v41 = vadd.f32 %v21476_v36, %v3611_v4  ;;  %v12769_v4 = vld [vmem:[%s21447_s4 + $0x98] sm:$0xf0]  ;;  %v12700_v36 = vld [vmem:[%s21447_s4 + $0x40] sm:$0xf] }
 0x72a   : > { %v4541_v17 = vadd.f32 %v18350_v5, %v4512_v50 }
 0x72c   : > { %v4591_v1 = vmul.f32 0.01, %v4541_v17  ;;  %vm4566_vm1 = vcmp.ge.f32.partialorder %v4541_v17, 0.0 }
 0x72e   : > { %v4616_v54 = vsel %vm4566_vm1, %v4541_v17, %v4591_v1 }
 0x72f   : > { %v4471_v42 = vpop.f32.mrf.mxu2 }
 0x730   : > { %v4513_v27 = vadd.f32 %v4471_v42, %v4059_v46  ;;  %v12676_v46 = vld [vmem:[%s21447_s4 + $0x10] sm:$0xf] }
 0x732   : > { %v4542_v62 = vadd.f32 %v18350_v5, %v4513_v27 }
 0x734   : > { %vm4567_vm2 = vcmp.ge.f32.partialorder %v4542_v62, 0.0  ;;  %v4592_v19 = vmul.f32 0.01, %v4542_v62 }
 0x736   : > { %v4617_v48 = vsel %vm4567_vm2, %v4542_v62, %v4592_v19  ;;  %v12776_v62 = vor.u32 %v15192_v24, %v12775_v39  ;;  %v15191_v39 = vld [vmem:[%s21447_s4 + $0xa4] sm:$0xf]  ;;  %v12777_v24 = vld [vmem:[%s21447_s4 + $0xa8] sm:$0xf0] }
 0x737   : > { %v18415_v18 = vpack.c.bf16 %v4617_v48, %v4616_v54  ;;  %v4474_v14 = vpop.f32.mrf.mxu2 }
 0x738   : > { %v4514_v15 = vadd.f32 %v4474_v14, %v18319_v10 }
 0x739   : > { %4771 = vmatpush.bf16.msra.mxu3 %v18415_v18  ;;  %5017 = vmatpush.bf16.msrb.mxu0 %v18415_v18 }
 0x73a   : > { %v4543_v53 = vadd.f32 %v18350_v5, %v4514_v15 }
 0x73c   : > { %v4593_v10 = vmul.f32 0.01, %v4543_v53  ;;  %vm4568_vm3 = vcmp.ge.f32.partialorder %v4543_v53, 0.0 }
 0x73d   : > { %4772 = vmatpush.bf16.msra.mxu3 %v18407_v38  ;;  %5018 = vmatpush.bf16.msrb.mxu0 %v18407_v38 }
 0x73e   : > { %v4618_v6 = vsel %vm4568_vm3, %v4543_v53, %v4593_v10 }
 0x73f   : > { %v4476_v33 = vpop.f32.mrf.mxu2 }
 0x740   : > { %v4515_v12 = vadd.f32 %v4476_v33, %v4061_v29  ;;  %v21478_v29 = vld [vmem:[#allocation9_spill] sm:$0xff] }
 0x741   : > { %4773 = vmatpush.bf16.msra.mxu3 %v18399_v32  ;;  %5019 = vmatpush.bf16.msrb.mxu0 %v18399_v32  ;;  %v3613_v53 = vadd.f32 %v21478_v29, %v21477_v60  ;;  %v12716_v60 = vld [vmem:[%s21447_s4 + $0x60] sm:$0xf] }
 0x742   : > { %v4544_v43 = vadd.f32 %v18350_v5, %v4515_v12 }
 0x743   : > { %v4067_v33 = vadd.f32 %v18340_v9, %v3613_v53  ;;  %v15194_v9 = vld [vmem:[%s21447_s4 + $0xb4] sm:$0xf0]  ;;  %v15183_v53 = vld [vmem:[%s21447_s4 + $0x64] sm:$0xf0] }
 0x744   : > { %vm4569_vm4 = vcmp.ge.f32.partialorder %v4544_v43, 0.0  ;;  %v4594_v3 = vmul.f32 0.01, %v4544_v43 }
 0x745   : > { %4774 = vmatpush.bf16.msra.mxu3 %v18391_v52  ;;  %5020 = vmatpush.bf16.msrb.mxu0 %v18391_v52 }
 0x746   : > { %v4619_v58 = vsel %vm4569_vm4, %v4544_v43, %v4594_v3  ;;  %v12684_v3 = vld [vmem:[%s21447_s4 + $0x20] sm:$0xf] }
 0x747   : > { %v18431_v22 = vpack.c.bf16 %v4619_v58, %v4618_v6  ;;  %v4479_v2 = vpop.f32.mrf.mxu2  ;;  %v12783_v6 = vld [vmem:[%s21447_s4 + $0xb0] sm:$0xf] }
 0x748   : > { %v4516_v49 = vadd.f32 %v4479_v2, %v18325_v0  ;;  %v15190_v0 = vld [vmem:[%s21447_s4 + $0x94] sm:$0xf0] }
 0x749   : > { %4775 = vmatpush.bf16.msra.mxu3 %v18383_v47  ;;  %5021 = vmatpush.bf16.msrb.mxu0 %v18383_v47  ;;  %v12768_v37 = vor.u32 %v15190_v0, %v12767_v63 }
 0x74a   : > { %v4545_v34 = vadd.f32 %v18350_v5, %v4516_v49 }
 0x74c   : > { %v4595_v16 = vmul.f32 0.01, %v4545_v34  ;;  %vm4570_vm5 = vcmp.ge.f32.partialorder %v4545_v34, 0.0 }
 0x74d   : > { %4776 = vmatpush.bf16.msra.mxu3 %v18374_v21  ;;  %5022 = vmatpush.bf16.msrb.mxu0 %v18374_v21 }
 0x74e   : > { %v4620_v57 = vsel %vm4570_vm5, %v4545_v34, %v4595_v16 }
 0x74f   : > { %v4481_v35 = vpop.f32.mrf.mxu2 }
 0x750   : > { %v4517_v8 = vadd.f32 %v4481_v35, %v4063_v55  ;;  %v12784_v55 = vor.u32 %v15194_v9, %v12783_v6  ;;  %v12724_v6 = vld [vmem:[%s21447_s4 + $0x70] sm:$0xf] }
 0x751   : > { %4777 = vmatpush.bf16.msra.mxu3 %v18365_v11  ;;  %5023 = vmatpush.bf16.msrb.mxu0 %v18365_v11 }
 0x752   : > { %v4546_v40 = vadd.f32 %v18350_v5, %v4517_v8 }
 0x754   : > { %vm4571_vm6 = vcmp.ge.f32.partialorder %v4546_v40, 0.0  ;;  %v4596_v30 = vmul.f32 0.01, %v4546_v40 }
 0x755   : > { %4778 = vmatpush.bf16.msra.mxu3 %v18356_v20  ;;  %5024 = vmatpush.bf16.msrb.mxu0 %v18356_v20 }
 0x756   : > { %v4621_v56 = vsel %vm4571_vm6, %v4546_v40, %v4596_v30 }
 0x757   : > { %v18460_v23 = vpack.c.bf16 %v4621_v56, %v4620_v57  ;;  %v4484_v44 = vpop.f32.mrf.mxu2 }
 0x758   : > { %4779 = vmatmul.bf16.vlgmr.msra.gmra.mxu3 %v12669_v26  ;;  %5025 = vmatmul.bf16.vlgmr.msrb.gmra.mxu0 %v12768_v37  ;;  %v4518_v51 = vadd.f32 %v4484_v44, %v18331_v59  ;;  %v15173_v59 = vld [vmem:[%s21447_s4 + $0x14] sm:$0xf0]  ;;  %v12692_v26 = vld [vmem:[%s21447_s4 + $0x30] sm:$0xf] }
 0x759   : > { %5439 = vmatpush.bf16.msra.mxu0 %v18415_v18  ;;  %v12677_v1 = vor.u32 %v15173_v59, %v12676_v46  ;;  %v15177_v37 = vld [vmem:[%s21447_s4 + $0x34] sm:$0xf0] }
 0x75a   : > { %v4547_v61 = vadd.f32 %v18350_v5, %v4518_v51  ;;  %v12693_v56 = vor.u32 %v15177_v37, %v12692_v26  ;;  %v15189_v51 = vld [vmem:[%s21447_s4 + $0x94] sm:$0xf] }
 0x75c   : > { %v4597_v17 = vmul.f32 0.01, %v4547_v61  ;;  %vm4572_vm7 = vcmp.ge.f32.partialorder %v4547_v61, 0.0 }
 0x75d   : > { %5440 = vmatpush.bf16.msra.mxu0 %v18407_v38 }
 0x75e   : > { %v4622_v19 = vsel %vm4572_vm7, %v4547_v61, %v4597_v17  ;;  %v15179_v61 = vld [vmem:[%s21447_s4 + $0x44] sm:$0xf0]  ;;  %v12708_v17 = vld [vmem:[%s21447_s4 + $0x50] sm:$0xf] }
 0x75f   : > { %v4486_v50 = vpop.f32.mrf.mxu2  ;;  %v12701_v46 = vor.u32 %v15179_v61, %v12700_v36  ;;  %v15209_v36 = vld [vmem:[%s21447_s4 + $0x124] sm:$0xf0] }
 0x760   : > { %v4519_v31 = vadd.f32 %v4486_v50, %v4065_v41  ;;  %v12772_v41 = vor.u32 %v15189_v51, %v12769_v4  ;;  %v12799_v50 = vld [vmem:[%s21447_s4 + $0xd0] sm:$0xf]  ;;  %v12670_v51 = vld [vmem:[%s21447_s4 + $0x8] sm:$0xf0]  ;;  %v12894_v4 = vld [vmem:[%s21447_s4 + $0x120] sm:$0xf] }
 0x761   : > { %5441 = vmatpush.bf16.msra.mxu0 %v18399_v32 }
 0x762   : > { %v4548_v42 = vadd.f32 %v18350_v5, %v4519_v31  ;;  %v15198_v31 = vld [vmem:[%s21447_s4 + $0xd4] sm:$0xf0] }
 0x763   : > { %v12800_v59 = vor.u32 %v15198_v31, %v12799_v50  ;;  %v12895_v50 = vor.u32 %v15209_v36, %v12894_v4 }
 0x764   : > { %vm4573_vm8 = vcmp.ge.f32.partialorder %v4548_v42, 0.0  ;;  %v4598_v27 = vmul.f32 0.01, %v4548_v42 }
 0x765   : > { %5442 = vmatpush.bf16.msra.mxu0 %v18391_v52 }
 0x766   : > { %v4623_v54 = vsel %vm4573_vm8, %v4548_v42, %v4598_v27  ;;  %v12780_v42 = vor.u32 %v15191_v39, %v12777_v24  ;;  %v15181_v27 = vld [vmem:[%s21447_s4 + $0x54] sm:$0xf0]  ;;  %v15172_v24 = vld [vmem:[%s21447_s4 + $0x14] sm:$0xf] }
 0x767   : > { %v18484_v48 = vpack.c.bf16 %v4623_v54, %v4622_v19  ;;  %v4489_v14 = vpop.f32.mrf.mxu2  ;;  %v12709_v19 = vor.u32 %v15181_v27, %v12708_v17  ;;  %v12902_v27 = vld [vmem:[%s21447_s4 + $0x130] sm:$0xf] }
 0x768   : > { %4784 = vmatmul.bf16.gmra.mxu3 %v12677_v1  ;;  %5030 = vmatmul.bf16.gmra.mxu0 %v12776_v62  ;;  %v4520_v15 = vadd.f32 %v4489_v14, %v18337_v7  ;;  %v15175_v7 = vld [vmem:[%s21447_s4 + $0x24] sm:$0xf0]  ;;  %v12807_v1 = vld [vmem:[%s21447_s4 + $0xe0] sm:$0xf]  ;;  %v15193_v14 = vld [vmem:[%s21447_s4 + $0xb4] sm:$0xf] }
 0x769   : > { %5443 = vmatpush.bf16.msra.mxu0 %v18383_v47  ;;  %v12685_v45 = vor.u32 %v15175_v7, %v12684_v3  ;;  %v15200_v62 = vld [vmem:[%s21447_s4 + $0xe4] sm:$0xf0]  ;;  %v15195_v3 = vld [vmem:[%s21447_s4 + $0xc4] sm:$0xf]  ;;  %v12793_v7 = vld [vmem:[%s21447_s4 + $0xc8] sm:$0xf0] }
 0x76a   : > { %v4549_v12 = vadd.f32 %v18350_v5, %v4520_v15  ;;  %v12808_v54 = vor.u32 %v15200_v62, %v12807_v1  ;;  %v12785_v15 = vld [vmem:[%s21447_s4 + $0xb8] sm:$0xf0]  ;;  %v12796_v9 = vor.u32 %v15195_v3, %v12793_v7  ;;  %v15211_v1 = vld [vmem:[%s21447_s4 + $0x134] sm:$0xf0]  ;;  %v12686_v3 = vld [vmem:[%s21447_s4 + $0x28] sm:$0xf0] }
 0x76b   : > { %v12788_v29 = vor.u32 %v15193_v14, %v12785_v15  ;;  %v15207_v15 = vld [vmem:[%s21448_s5 + $0x8] sm:$0xff]  ;;  %v12910_v7 = vld [vmem:[%s21447_s4 + $0x140] sm:$0xf] }
 0x76c   : > { %v4599_v58 = vmul.f32 0.01, %v4549_v12  ;;  %vm4574_vm9 = vcmp.ge.f32.partialorder %v4549_v12, 0.0  ;;  %5178 = vmatpush.bf16.msrb.mxu2 %v15207_v15 }
 0x76d   : > { %5444 = vmatpush.bf16.msra.mxu0 %v18374_v21 }
 0x76e   : > { %v4624_v34 = vsel %vm4574_vm9, %v4549_v12, %v4599_v58  ;;  %v15202_v12 = vld [vmem:[%s21447_s4 + $0xf4] sm:$0xf0] }
 0x76f   : > { %v4491_v10 = vpop.f32.mrf.mxu2  ;;  %v15185_v58 = vld [vmem:[%s21447_s4 + $0x74] sm:$0xf0] }
 0x770   : > { %v4521_v43 = vadd.f32 %v4491_v10, %v4067_v33  ;;  %v12815_v33 = vld [vmem:[%s21447_s4 + $0xf0] sm:$0xf]  ;;  %v12717_v10 = vor.u32 %v15183_v53, %v12716_v60  ;;  %v15203_v53 = vld [vmem:[%s21447_s4 + $0x104] sm:$0xf] }
 0x771   : > { %5445 = vmatpush.bf16.msra.mxu0 %v18365_v11 }
 0x772   : > { %v4550_v2 = vadd.f32 %v18350_v5, %v4521_v43  ;;  %v12816_v43 = vor.u32 %v15202_v12, %v12815_v33  ;;  %v12825_v33 = vld [vmem:[%s21447_s4 + $0x108] sm:$0xf0]  ;;  %v15174_v12 = vld [vmem:[%s21447_s4 + $0x24] sm:$0xf] }
 0x774   : > { %vm4575_vm10 = vcmp.ge.f32.partialorder %v4550_v2, 0.0  ;;  %v4600_v49 = vmul.f32 0.01, %v4550_v2 }
 0x775   : > { %5446 = vmatpush.bf16.msra.mxu0 %v18356_v20 }
 0x776   : > { %v4625_v35 = vsel %vm4575_vm10, %v4550_v2, %v4600_v49  ;;  %v12823_v2 = vld [vmem:[%s21447_s4 + $0x100] sm:$0xf]  ;;  %v15204_v49 = vld [vmem:[%s21447_s4 + $0x104] sm:$0xf0] }
 0x777   : > { %v18507_v8 = vpack.c.bf16 %v4625_v35, %v4624_v34  ;;  %v4494_v13 = vpop.f32.mrf.mxu2  ;;  %v15188_v34 = vld [vmem:[%s21448_s5] sm:$0xff]  ;;  %v15197_v35 = vld [vmem:[%s21447_s4 + $0xd4] sm:$0xf] }
 0x778   : > { %v4522_v28 = vadd.f32 %v4494_v13, %v18343_v25  ;;  %4789 = vmatmul.bf16.gmra.mxu3 %v12685_v45  ;;  %5035 = vmatmul.bf16.gmra.mxu0 %v12784_v55  ;;  %v12791_v25 = vld [vmem:[%s21447_s4 + $0xc0] sm:$0xf]  ;;  %v12725_v45 = vor.u32 %v15185_v58, %v12724_v6  ;;  %v12824_v55 = vor.u32 %v15204_v49, %v12823_v2  ;;  %v12801_v13 = vld [vmem:[%s21447_s4 + $0xd8] sm:$0xf0]  ;;  %v15213_v6 = vld [vmem:[%s21447_s4 + $0x144] sm:$0xf0] }
 0x779   : > { %v15245_v58 = vld [vmem:[%s21448_s5 + $0x18] sm:$0xff]  ;;  %v12689_v2 = vor.u32 %v15174_v12, %v12686_v3  ;;  %v12911_v49 = vor.u32 %v15213_v6, %v12910_v7  ;;  %v15210_v3 = vld [vmem:[%s21447_s4 + $0x134] sm:$0xf] }
 0x77a   : > { %v4551_v63 = vadd.f32 %v18350_v5, %v4522_v28  ;;  %v15196_v5 = vld [vmem:[%s21447_s4 + $0xc4] sm:$0xf0]  ;;  %v12732_v28 = vld [vmem:[%s21447_s4 + $0x80] sm:$0xf] }
 0x77b   : > { %v12792_v44 = vor.u32 %v15196_v5, %v12791_v25  ;;  %v15199_v25 = vld [vmem:[%s21447_s4 + $0xe4] sm:$0xf]  ;;  %v12809_v5 = vld [vmem:[%s21447_s4 + $0xe8] sm:$0xf0] }
 0x77c   : > { %vm4576_vm11 = vcmp.ge.f32.partialorder %v4551_v63, 0.0  ;;  %v4601_v0 = vmul.f32 0.01, %v4551_v63 }
 0x77e   : > { %v4626_v16 = vsel %vm4576_vm11, %v4551_v63, %v4601_v0  ;;  %v12804_v63 = vor.u32 %v15197_v35, %v12801_v13  ;;  %v15187_v0 = vld [vmem:[%s21447_s4 + $0x84] sm:$0xf0]  ;;  %v12833_v35 = vld [vmem:[%s21447_s4 + $0x118] sm:$0xf0]  ;;  %v15176_v13 = vld [vmem:[%s21447_s4 + $0x34] sm:$0xf] }
 0x77f   : > { %v4639_v40 = vpack.c.bf16 %v4626_v16, %v4626_v16  ;;  %v4496_v30 = vpop.f32.mrf.mxu2  ;;  %v12831_v16 = vld [vmem:[%s21447_s4 + $0x110] sm:$0xf] }
 0x780   : > { %v12733_v30 = vor.u32 %v15187_v0, %v12732_v28  ;;  %v12694_v0 = vld [vmem:[%s21447_s4 + $0x38] sm:$0xf0] }
 0x781   : > { %v18517_v57 = vsel %vm4767_vm12, %v4639_v40, 0  ;;  %v15206_v40 = vld [vmem:[%s21447_s4 + $0x114] sm:$0xf0] }
 0x782   : > { %4828 = vmatpush.bf16.msrb.mxu3 %v18517_v57  ;;  %5074 = vmatpush.bf16.msrb.mxu1 %v18517_v57  ;;  %v12832_v26 = vor.u32 %v15206_v40, %v12831_v16  ;;  %v12918_v16 = vld [vmem:[%s21447_s4 + $0x150] sm:$0xf]  ;;  %v15215_v40 = vld [vmem:[%s21447_s4 + $0x154] sm:$0xf0] }
 0x783   : > { %5848 = vmatpush.bf16.msrb.mxu0 %v18517_v57 }
 0x786   : > { %4829 = vmatpush.bf16.msrb.mxu3 %v18507_v8  ;;  %5075 = vmatpush.bf16.msrb.mxu1 %v18507_v8 }
 0x787   : > { %5849 = vmatpush.bf16.msrb.mxu0 %v18507_v8 }
 0x788   : > { %4794 = vmatmul.bf16.gmra.mxu3 %v12693_v56  ;;  %5040 = vmatmul.bf16.gmra.mxu0 %v12792_v44  ;;  %v15170_v56 = vld [vmem:[%s21447_s4 + $0x4] sm:$0xf]  ;;  %v12812_v44 = vor.u32 %v15199_v25, %v12809_v5  ;;  %v12697_v25 = vor.u32 %v15176_v13, %v12694_v0  ;;  %v12919_v5 = vor.u32 %v15215_v40, %v12918_v16 }
 0x789   : > { %v12673_v61 = vor.u32 %v15170_v56, %v12670_v51 }
 0x78a   : > { %4830 = vmatpush.bf16.msrb.mxu3 %v18484_v48  ;;  %5076 = vmatpush.bf16.msrb.mxu1 %v18484_v48 }
 0x78b   : > { %5850 = vmatpush.bf16.msrb.mxu0 %v18484_v48 }
 0x78e   : > { %4831 = vmatpush.bf16.msrb.mxu3 %v18460_v23  ;;  %5077 = vmatpush.bf16.msrb.mxu1 %v18460_v23 }
 0x78f   : > { %5851 = vmatpush.bf16.msrb.mxu0 %v18460_v23 }
 0x792   : > { %4832 = vmatpush.bf16.msrb.mxu3 %v18431_v22  ;;  %5078 = vmatpush.bf16.msrb.mxu1 %v18431_v22 }
 0x793   : > { %5852 = vmatpush.bf16.msrb.mxu0 %v18431_v22 }
 0x795   : > { %12837 = vmatmul.msk.bf16.vlgmr.msrb.gmra.mxu1 %vm4739_vm13, %v12772_v41 }
 0x796   : > { %5496 = vmatpush.bf16.msra.mxu1 %v18517_v57  ;;  %5265 = vmatpush.bf16.msra.mxu3 %v15188_v34  ;;  %v15205_v34 = vld [vmem:[%s21447_s4 + $0x114] sm:$0xf] }
 0x798   : > { %4799 = vmatmul.bf16.gmra.mxu3 %v12701_v46  ;;  %5045 = vmatmul.bf16.gmra.mxu0 %v12800_v59  ;;  %v15201_v46 = vld [vmem:[%s21447_s4 + $0xf4] sm:$0xf]  ;;  %v12817_v59 = vld [vmem:[%s21447_s4 + $0xf8] sm:$0xf0] }
 0x799   : > { %v12820_v17 = vor.u32 %v15201_v46, %v12817_v59  ;;  %v12896_v46 = vld [vmem:[%s21447_s4 + $0x128] sm:$0xf0] }
 0x79a   : > { %5497 = vmatpush.bf16.msra.mxu1 %v18507_v8 }
 0x79e   : > { %5498 = vmatpush.bf16.msra.mxu1 %v18484_v48 }
 0x7a2   : > { %5499 = vmatpush.bf16.msra.mxu1 %v18460_v23 }
 0x7a5   : > { %12838 = vmatmul.msk.bf16.gmra.mxu1 %vm4739_vm13, %v12780_v42  ;;  %v12678_v42 = vld [vmem:[%s21447_s4 + $0x18] sm:$0xf0] }
 0x7a6   : > { %5500 = vmatpush.bf16.msra.mxu1 %v18431_v22 }
 0x7a8   : > { %4804 = vmatmul.bf16.gmra.mxu3 %v12709_v19  ;;  %5050 = vmatmul.bf16.gmra.mxu0 %v12808_v54  ;;  %v12681_v19 = vor.u32 %v15172_v24, %v12678_v42  ;;  %v12903_v54 = vor.u32 %v15211_v1, %v12902_v27  ;;  %v15178_v24 = vld [vmem:[%s21447_s4 + $0x44] sm:$0xf]  ;;  %v12926_v27 = vld [vmem:[%s21447_s4 + $0x160] sm:$0xf]  ;;  %v15217_v1 = vld [vmem:[%s21447_s4 + $0x164] sm:$0xf0] }
 0x7aa   : > { %5951 = vmatpush.bf16.msrb.mxu1 %v15245_v58  ;;  %v15180_v58 = vld [vmem:[%s21447_s4 + $0x54] sm:$0xf] }
 0x7b5   : > { %12839 = vmatmul.msk.bf16.gmra.mxu1 %vm4739_vm13, %v12788_v29  ;;  %v15226_v29 = vld [vmem:[%s21448_s5 + $0x10] sm:$0xff] }
 0x7b6   : > { %5599 = vmatpush.bf16.msra.mxu2 %v15226_v29 }
 0x7b8   : > { %4809 = vmatmul.bf16.gmra.mxu3 %v12717_v10  ;;  %5055 = vmatmul.bf16.gmra.mxu0 %v12816_v43  ;;  %v12828_v43 = vor.u32 %v15203_v53, %v12825_v33 }
 0x7c5   : > { %12840 = vmatmul.msk.bf16.gmra.mxu1 %vm4739_vm13, %v12796_v9 }
 0x7c8   : > { %4814 = vmatmul.bf16.gmra.mxu3 %v12725_v45  ;;  %5060 = vmatmul.bf16.gmra.mxu0 %v12824_v55 }
 0x7d5   : > { %12841 = vmatmul.msk.bf16.gmra.mxu1 %vm4739_vm13, %v12804_v63  ;;  %v5026_v39 = vpop.f32.mrf.mxu0  ;;  %v12836_v63 = vor.u32 %v15205_v34, %v12833_v35  ;;  %v15219_v34 = vld [vmem:[%s21447_s4 + $0x174] sm:$0xf0] }
 0x7d8   : > { %4819 = vmatmul.bf16.gmra.mxu3 %v12733_v30  ;;  %5065 = vmatmul.bf16.gmra.mxu0 %v12832_v26 }
 0x7db   : > { %v18643_v37 = vpop.f32.mrf.mxu3 }
 0x7dd   : > { %v5028_v14 = vpop.f32.mrf.mxu0 }
 0x7e3   : > { %v18663_v41 = vpop.f32.mrf.mxu3 }
 0x7e5   : > { %12842 = vmatmul.msk.bf16.gmra.mxu1 %vm4739_vm13, %v12812_v44  ;;  %v5031_v10 = vpop.f32.mrf.mxu0 }
 0x7e8   : > { %12738 = vmatmul.msk.bf16.vlgmr.msrb.gmra.mxu3 %vm4739_vm13, %v12673_v61  ;;  %5447 = vmatmul.bf16.vlgmr.msra.gmra.mxu0 %v12895_v50  ;;  %v15208_v50 = vld [vmem:[%s21447_s4 + $0x124] sm:$0xf] }
 0x7e9   : > { %5791 = vmatpush.bf16.msrb.mxu3 %v18415_v18 }
 0x7eb   : > { %v18668_v31 = vpop.f32.mrf.mxu3 }
 0x7ed   : > { %5792 = vmatpush.bf16.msrb.mxu3 %v18407_v38  ;;  %v5033_v45 = vpop.f32.mrf.mxu0 }
 0x7f1   : > { %5793 = vmatpush.bf16.msrb.mxu3 %v18399_v32 }
 0x7f3   : > { %v18690_v62 = vpop.f32.mrf.mxu3 }
 0x7f5   : > { %5794 = vmatpush.bf16.msrb.mxu3 %v18391_v52  ;;  %12843 = vmatmul.msk.bf16.gmra.mxu1 %vm4739_vm13, %v12820_v17  ;;  %v18743_v28 = vpop.f32.mrf.mxu0  ;;  %v12702_v17 = vld [vmem:[%s21447_s4 + $0x48] sm:$0xf0] }
 0x7f8   : > { %12739 = vmatmul.msk.bf16.gmra.mxu3 %vm4739_vm13, %v12681_v19  ;;  %5452 = vmatmul.bf16.gmra.mxu0 %v12903_v54  ;;  %v12705_v54 = vor.u32 %v15178_v24, %v12702_v17 }
 0x7f9   : > { %5795 = vmatpush.bf16.msrb.mxu3 %v18383_v47 }
 0x7fb   : > { %v18699_v60 = vpop.f32.mrf.mxu3 }
 0x7fd   : > { %5796 = vmatpush.bf16.msrb.mxu3 %v18374_v21  ;;  %v5038_v56 = vpop.f32.mrf.mxu0 }
 0x801   : > { %5797 = vmatpush.bf16.msrb.mxu3 %v18365_v11 }
 0x803   : > { %v18724_v9 = vpop.f32.mrf.mxu3 }
 0x805   : > { %5798 = vmatpush.bf16.msrb.mxu3 %v18356_v20  ;;  %12844 = vmatmul.msk.bf16.gmra.mxu1 %vm4739_vm13, %v12828_v43  ;;  %v18768_v59 = vpop.f32.mrf.mxu0 }
 0x808   : > { %12740 = vmatmul.msk.bf16.gmra.mxu3 %vm4739_vm13, %v12689_v2  ;;  %5457 = vmatmul.bf16.gmra.mxu0 %v12911_v49  ;;  %v12710_v2 = vld [vmem:[%s21447_s4 + $0x58] sm:$0xf0] }
 0x809   : > { %v12713_v13 = vor.u32 %v15180_v58, %v12710_v2  ;;  %v12950_v58 = vld [vmem:[%s21447_s4 + $0x190] sm:$0xf]  ;;  %v15223_v2 = vld [vmem:[%s21447_s4 + $0x194] sm:$0xf0] }
 0x80b   : > { %v18732_v55 = vpop.f32.mrf.mxu3 }
 0x80d   : > { %v5043_v15 = vpop.f32.mrf.mxu0 }
 0x812   : > { %v5080_v30 = vpop.f32.mrf.mxu1 }
 0x813   : > { %v18754_v26 = vpop.f32.mrf.mxu3  ;;  %v5081_v44 = vadd.f32 %v5080_v30, %v5026_v39  ;;  %v12899_v39 = vor.u32 %v15208_v50, %v12896_v46  ;;  %v12942_v46 = vld [vmem:[%s21447_s4 + $0x180] sm:$0xf] }
 0x815   : > { %12845 = vmatmul.msk.bf16.gmra.mxu1 %vm4739_vm13, %v12836_v63  ;;  %v18802_v7 = vpop.f32.mrf.mxu0 }
 0x818   : > { %12741 = vmatmul.msk.bf16.gmra.mxu3 %vm4739_vm13, %v12697_v25  ;;  %5462 = vmatmul.bf16.gmra.mxu0 %v12919_v5 }
 0x81a   : > { %v5082_v51 = vpop.f32.mrf.mxu1 }
 0x81b   : > { %v5083_v4 = vadd.f32 %v5082_v51, %v5028_v14  ;;  %v18758_v36 = vpop.f32.mrf.mxu3  ;;  %v12927_v14 = vor.u32 %v15217_v1, %v12926_v27 }
 0x81d   : > { %v5125_v61 = vpack.c.bf16 %v5083_v4, %v5081_v44  ;;  %v5048_v0 = vpop.f32.mrf.mxu0  ;;  %v15212_v44 = vld [vmem:[%s21447_s4 + $0x144] sm:$0xf] }
 0x81f   : > { %12852 = vmatmul.msk.bf16.vlgmr.msrb.gmra.mxu2 %vm5143_vm14, %v5125_v61  ;;  %v12718_v61 = vld [vmem:[%s21447_s4 + $0x68] sm:$0xf0] }
 0x820   : > { %6143 = vmatpush.bf16.msrb.mxu2 %v18415_v18 }
 0x822   : > { %v5085_v42 = vpop.f32.mrf.mxu1 }
 0x823   : > { %v18782_v19 = vpop.f32.mrf.mxu3  ;;  %v5086_v29 = vadd.f32 %v5085_v42, %v5031_v10  ;;  %v12904_v10 = vld [vmem:[%s21447_s4 + $0x138] sm:$0xf0] }
 0x824   : > { %6144 = vmatpush.bf16.msrb.mxu2 %v18407_v38  ;;  %v12907_v6 = vor.u32 %v15210_v3, %v12904_v10 }
 0x825   : > { %12964 = vmatmul.msk.bf16.vlgmr.msra.gmra.mxu1 %vm4739_vm13, %v12899_v39  ;;  %v5051_v51 = vpop.f32.mrf.mxu0  ;;  %v15221_v39 = vld [vmem:[%s21447_s4 + $0x184] sm:$0xf0] }
 0x826   : > { %6495 = vmatpush.bf16.msra.mxu1 %v18415_v18  ;;  %v12943_v42 = vor.u32 %v15221_v39, %v12942_v46  ;;  %v15225_v46 = vld [vmem:[%s21447_s4 + $0x1a4] sm:$0xf0] }
 0x828   : > { %6145 = vmatpush.bf16.msrb.mxu2 %v18399_v32  ;;  %12742 = vmatmul.msk.bf16.gmra.mxu3 %vm4739_vm13, %v12705_v54 }
 0x829   : > { %5467 = vmatmul.bf16.gmra.mxu0 %v12927_v14 }
 0x82a   : > { %6496 = vmatpush.bf16.msra.mxu1 %v18407_v38  ;;  %v5087_v53 = vpop.f32.mrf.mxu1 }
 0x82b   : > { %v5088_v33 = vadd.f32 %v5087_v53, %v5033_v45  ;;  %v18790_v12 = vpop.f32.mrf.mxu3  ;;  %v12934_v45 = vld [vmem:[%s21447_s4 + $0x170] sm:$0xf] }
 0x82c   : > { %6146 = vmatpush.bf16.msrb.mxu2 %v18391_v52  ;;  %v12935_v63 = vor.u32 %v15219_v34, %v12934_v45  ;;  %v12951_v34 = vor.u32 %v15223_v2, %v12950_v58 }
 0x82d   : > { %v5126_v43 = vpack.c.bf16 %v5088_v33, %v5086_v29  ;;  %v5053_v27 = vpop.f32.mrf.mxu0  ;;  %v15214_v33 = vld [vmem:[%s21447_s4 + $0x154] sm:$0xf] }
 0x82e   : > { %6497 = vmatpush.bf16.msra.mxu1 %v18399_v32 }
 0x82f   : > { %12853 = vmatmul.msk.bf16.gmra.mxu2 %vm5143_vm14, %v5126_v43  ;;  %v12920_v43 = vld [vmem:[%s21447_s4 + $0x158] sm:$0xf0] }
 0x830   : > { %6147 = vmatpush.bf16.msrb.mxu2 %v18383_v47  ;;  %v12923_v10 = vor.u32 %v15214_v33, %v12920_v43 }
 0x832   : > { %6498 = vmatpush.bf16.msra.mxu1 %v18391_v52  ;;  %v5090_v49 = vpop.f32.mrf.mxu1 }
 0x833   : > { %v18817_v35 = vpop.f32.mrf.mxu3  ;;  %v5091_v16 = vadd.f32 %v5090_v49, %v18743_v28  ;;  %v12912_v28 = vld [vmem:[%s21447_s4 + $0x148] sm:$0xf0] }
 0x834   : > { %6148 = vmatpush.bf16.msrb.mxu2 %v18374_v21  ;;  %v12915_v4 = vor.u32 %v15212_v44, %v12912_v28  ;;  %v15216_v28 = vld [vmem:[%s21447_s4 + $0x164] sm:$0xf] }
 0x835   : > { %12965 = vmatmul.msk.bf16.gmra.mxu1 %vm4739_vm13, %v12907_v6  ;;  %v5056_v3 = vpop.f32.mrf.mxu0 }
 0x836   : > { %6499 = vmatpush.bf16.msra.mxu1 %v18383_v47 }
 0x838   : > { %6149 = vmatpush.bf16.msrb.mxu2 %v18365_v11  ;;  %12743 = vmatmul.msk.bf16.gmra.mxu3 %vm4739_vm13, %v12713_v13  ;;  %v15264_v13 = vld [vmem:[%s21448_s5 + $0x20] sm:$0xff] }
 0x839   : > { %5472 = vmatmul.bf16.gmra.mxu0 %v12935_v63 }
 0x83a   : > { %6500 = vmatpush.bf16.msra.mxu1 %v18374_v21  ;;  %v5092_v40 = vpop.f32.mrf.mxu1  ;;  %6303 = vmatpush.bf16.msra.mxu0 %v15264_v13 }
 0x83b   : > { %v5093_v30 = vadd.f32 %v5092_v40, %v5038_v56  ;;  %v18826_v25 = vpop.f32.mrf.mxu3  ;;  %v15182_v56 = vld [vmem:[%s21447_s4 + $0x64] sm:$0xf] }
 0x83c   : > { %6150 = vmatpush.bf16.msrb.mxu2 %v18356_v20  ;;  %v12721_v17 = vor.u32 %v15182_v56, %v12718_v61 }
 0x83d   : > { %v5127_v5 = vpack.c.bf16 %v5093_v30, %v5091_v16  ;;  %v5058_v40 = vpop.f32.mrf.mxu0 }
 0x83e   : > { %6501 = vmatpush.bf16.msra.mxu1 %v18365_v11 }
 0x83f   : > { %12854 = vmatmul.msk.bf16.gmra.mxu2 %vm5143_vm14, %v5127_v5 }
 0x842   : > { %6502 = vmatpush.bf16.msra.mxu1 %v18356_v20  ;;  %v5095_v50 = vpop.f32.mrf.mxu1 }
 0x843   : > { %v18850_v24 = vpop.f32.mrf.mxu3  ;;  %v5096_v1 = vadd.f32 %v5095_v50, %v18768_v59  ;;  %v15184_v59 = vld [vmem:[%s21447_s4 + $0x74] sm:$0xf]  ;;  %v12958_v50 = vld [vmem:[%s21447_s4 + $0x1a0] sm:$0xf] }
 0x845   : > { %12966 = vmatmul.msk.bf16.gmra.mxu1 %vm4739_vm13, %v12915_v4  ;;  %v12928_v4 = vld [vmem:[%s21447_s4 + $0x168] sm:$0xf0]  ;;  %v5061_v39 = vpop.f32.mrf.mxu0 }
 0x846   : > { %v12931_v56 = vor.u32 %v15216_v28, %v12928_v4 }
 0x848   : > { %12744 = vmatmul.msk.bf16.gmra.mxu3 %vm4739_vm13, %v12721_v17 }
 0x849   : > { %5477 = vmatmul.bf16.gmra.mxu0 %v12943_v42 }
 0x84a   : > { %v5097_v54 = vpop.f32.mrf.mxu1 }
 0x84b   : > { %v5098_v14 = vadd.f32 %v5097_v54, %v5043_v15  ;;  %v18855_v29 = vpop.f32.mrf.mxu3  ;;  %v12726_v15 = vld [vmem:[%s21447_s4 + $0x78] sm:$0xf0] }
 0x84c   : > { %v12729_v45 = vor.u32 %v15184_v59, %v12726_v15  ;;  %v15218_v59 = vld [vmem:[%s21447_s4 + $0x174] sm:$0xf]  ;;  %v12936_v15 = vld [vmem:[%s21447_s4 + $0x178] sm:$0xf0] }
 0x84d   : > { %v5128_v53 = vpack.c.bf16 %v5098_v14, %v5096_v1  ;;  %v12959_v1 = vor.u32 %v15225_v46, %v12958_v50 }
 0x84f   : > { %12855 = vmatmul.msk.bf16.gmra.mxu2 %vm5143_vm14, %v5128_v53  ;;  %v5063_v53 = vpop.f32.mrf.mxu0 }
 0x852   : > { %v5100_v6 = vpop.f32.mrf.mxu1 }
 0x853   : > { %v18876_v49 = vpop.f32.mrf.mxu3  ;;  %v5101_v63 = vadd.f32 %v5100_v6, %v18802_v7  ;;  %v15186_v7 = vld [vmem:[%s21447_s4 + $0x84] sm:$0xf]  ;;  %v12939_v6 = vor.u32 %v15218_v59, %v12936_v15 }
 0x855   : > { %12967 = vmatmul.msk.bf16.gmra.mxu1 %vm4739_vm13, %v12923_v10 }
 0x857   : > { %v5066_v2 = vpop.f32.mrf.mxu0 }
 0x858   : > { %12745 = vmatmul.msk.bf16.gmra.mxu3 %vm4739_vm13, %v12729_v45 }
 0x859   : > { %5482 = vmatmul.bf16.gmra.mxu0 %v12951_v34 }
 0x85a   : > { %v5102_v16 = vpop.f32.mrf.mxu1 }
 0x85b   : > { %v5103_v30 = vadd.f32 %v5102_v16, %v5048_v0  ;;  %v18884_v5 = vpop.f32.mrf.mxu3  ;;  %v12734_v0 = vld [vmem:[%s21447_s4 + $0x88] sm:$0xf0] }
 0x85c   : > { %v12737_v42 = vor.u32 %v15186_v7, %v12734_v0 }
 0x85d   : > { %v5129_v44 = vpack.c.bf16 %v5103_v30, %v5101_v63 }
 0x85f   : > { %12856 = vmatmul.msk.bf16.gmra.mxu2 %vm5143_vm14, %v5129_v44  ;;  %v5068_v28 = vpop.f32.mrf.mxu0 }
 0x862   : > { %v5105_v61 = vpop.f32.mrf.mxu1 }
 0x863   : > { %v18905_v17 = vpop.f32.mrf.mxu3  ;;  %v5106_v54 = vadd.f32 %v5105_v61, %v5051_v51  ;;  %v15227_v51 = vld [vmem:[%s21447_s4 + $0x1b4] sm:$0xf] }
 0x865   : > { %12968 = vmatmul.msk.bf16.gmra.mxu1 %vm4739_vm13, %v12931_v56 }
 0x867   : > { %v5448_v0 = vpop.f32.mrf.mxu0 }
 0x868   : > { %12746 = vmatmul.msk.bf16.gmra.mxu3 %vm4739_vm13, %v12737_v42 }
 0x869   : > { %5487 = vmatmul.bf16.gmra.mxu0 %v12959_v1 }
 0x86a   : > { %v5107_v14 = vpop.f32.mrf.mxu1 }
 0x86b   : > { %v5108_v33 = vadd.f32 %v5107_v14, %v5053_v27  ;;  %v4834_v43 = vpop.f32.mrf.mxu3  ;;  %v13010_v27 = vld [vmem:[%s21447_s4 + $0x1b8] sm:$0xf0] }
 0x86c   : > { %v4835_v34 = vadd.f32 %v4834_v43, %v18643_v37  ;;  %v13013_v63 = vor.u32 %v15227_v51, %v13010_v27 }
 0x86d   : > { %v5130_v10 = vpack.c.bf16 %v5108_v33, %v5106_v54 }
 0x86f   : > { %12857 = vmatmul.msk.bf16.gmra.mxu2 %vm5143_vm14, %v5130_v10  ;;  %v5450_v14 = vpop.f32.mrf.mxu0  ;;  %v12952_v10 = vld [vmem:[%s21447_s4 + $0x198] sm:$0xf0] }
 0x872   : > { %v5110_v58 = vpop.f32.mrf.mxu1 }
 0x873   : > { %v4836_v45 = vpop.f32.mrf.mxu3  ;;  %v5111_v30 = vadd.f32 %v5110_v58, %v5056_v3  ;;  %v12944_v3 = vld [vmem:[%s21447_s4 + $0x188] sm:$0xf0] }
 0x874   : > { %v4837_v13 = vadd.f32 %v4836_v45, %v18663_v41  ;;  %v15220_v41 = vld [vmem:[%s21447_s4 + $0x184] sm:$0xf] }
 0x875   : > { %12969 = vmatmul.msk.bf16.gmra.mxu1 %vm4739_vm13, %v12939_v6  ;;  %v12947_v7 = vor.u32 %v15220_v41, %v12944_v3 }
 0x876   : > { %v4879_v16 = vpack.c.bf16 %v4837_v13, %v4835_v34 }
 0x877   : > { %v5453_v15 = vpop.f32.mrf.mxu0 }
 0x878   : > { %12865 = vmatmul.msk.bf16.vlgmr.msra.gmra.mxu3 %vm5143_vm14, %v4879_v16 }
 0x879   : > { %13078 = vmatmul.msk.bf16.vlgmr.msrb.gmra.mxu0 %vm4739_vm13, %v13013_v63  ;;  %6200 = vmatpush.bf16.msra.mxu3 %v18517_v57 }
 0x87a   : > { %6847 = vmatpush.bf16.msrb.mxu0 %v18415_v18  ;;  %v5112_v44 = vpop.f32.mrf.mxu1 }
 0x87b   : > { %v5113_v4 = vadd.f32 %v5112_v44, %v5058_v40  ;;  %v4839_v56 = vpop.f32.mrf.mxu3 }
 0x87c   : > { %v4840_v50 = vadd.f32 %v4839_v56, %v18668_v31 }
 0x87d   : > { %v5131_v37 = vpack.c.bf16 %v5113_v4, %v5111_v30  ;;  %6201 = vmatpush.bf16.msra.mxu3 %v18507_v8  ;;  %v15224_v30 = vld [vmem:[%s21447_s4 + $0x1a4] sm:$0xf] }
 0x87e   : > { %6848 = vmatpush.bf16.msrb.mxu0 %v18407_v38 }
 0x87f   : > { %12858 = vmatmul.msk.bf16.gmra.mxu2 %vm5143_vm14, %v5131_v37  ;;  %v5455_v63 = vpop.f32.mrf.mxu0 }
 0x881   : > { %6202 = vmatpush.bf16.msra.mxu3 %v18484_v48 }
 0x882   : > { %6849 = vmatpush.bf16.msrb.mxu0 %v18399_v32  ;;  %v5115_v40 = vpop.f32.mrf.mxu1 }
 0x883   : > { %v4841_v61 = vpop.f32.mrf.mxu3  ;;  %v5116_v1 = vadd.f32 %v5115_v40, %v5061_v39 }
 0x884   : > { %v4842_v46 = vadd.f32 %v4841_v61, %v18690_v62  ;;  %v15222_v62 = vld [vmem:[%s21447_s4 + $0x194] sm:$0xf] }
 0x885   : > { %6203 = vmatpush.bf16.msra.mxu3 %v18460_v23  ;;  %12970 = vmatmul.msk.bf16.gmra.mxu1 %vm4739_vm13, %v12947_v7  ;;  %v12955_v39 = vor.u32 %v15222_v62, %v12952_v10 }
 0x886   : > { %v4880_v42 = vpack.c.bf16 %v4842_v46, %v4840_v50  ;;  %6850 = vmatpush.bf16.msrb.mxu0 %v18391_v52 }
 0x887   : > { %v5458_v37 = vpop.f32.mrf.mxu0 }
 0x888   : > { %12866 = vmatmul.msk.bf16.gmra.mxu3 %vm5143_vm14, %v4880_v42 }
 0x889   : > { %6204 = vmatpush.bf16.msra.mxu3 %v18431_v22 }
 0x88a   : > { %6851 = vmatpush.bf16.msrb.mxu0 %v18383_v47  ;;  %v5117_v54 = vpop.f32.mrf.mxu1 }
 0x88b   : > { %v5118_v33 = vadd.f32 %v5117_v54, %v5063_v53  ;;  %v4844_v31 = vpop.f32.mrf.mxu3 }
 0x88c   : > { %v4845_v6 = vadd.f32 %v4844_v31, %v18699_v60  ;;  %v12960_v60 = vld [vmem:[%s21447_s4 + $0x1a8] sm:$0xf0] }
 0x88d   : > { %v5132_v43 = vpack.c.bf16 %v5118_v33, %v5116_v1 }
 0x88e   : > { %6852 = vmatpush.bf16.msrb.mxu0 %v18374_v21 }
 0x88f   : > { %12859 = vmatmul.msk.bf16.gmra.mxu2 %vm5143_vm14, %v5132_v43  ;;  %v5460_v42 = vpop.f32.mrf.mxu0 }
 0x892   : > { %6853 = vmatpush.bf16.msrb.mxu0 %v18365_v11  ;;  %v5120_v59 = vpop.f32.mrf.mxu1 }
 0x893   : > { %v4846_v53 = vpop.f32.mrf.mxu3  ;;  %v5121_v27 = vadd.f32 %v5120_v59, %v5066_v2 }
 0x894   : > { %v4847_v58 = vadd.f32 %v4846_v53, %v18724_v9  ;;  %v12963_v9 = vor.u32 %v15224_v30, %v12960_v60 }
 0x895   : > { %12971 = vmatmul.msk.bf16.gmra.mxu1 %vm4739_vm13, %v12955_v39 }
 0x896   : > { %v4881_v51 = vpack.c.bf16 %v4847_v58, %v4845_v6  ;;  %6854 = vmatpush.bf16.msrb.mxu0 %v18356_v20 }
 0x897   : > { %v5463_v31 = vpop.f32.mrf.mxu0 }
 0x898   : > { %12867 = vmatmul.msk.bf16.gmra.mxu3 %vm5143_vm14, %v4881_v51 }
 0x89a   : > { %v5122_v45 = vpop.f32.mrf.mxu1 }
 0x89b   : > { %v5123_v34 = vadd.f32 %v5122_v45, %v5068_v28  ;;  %v4849_v13 = vpop.f32.mrf.mxu3 }
 0x89c   : > { %v4850_v28 = vadd.f32 %v4849_v13, %v18732_v55 }
 0x89d   : > { %v5133_v16 = vpack.c.bf16 %v5123_v34, %v5121_v27 }
 0x89f   : > { %12860 = vmatmul.msk.bf16.gmra.mxu2 %vm5143_vm14, %v5133_v16  ;;  %v5465_v6 = vpop.f32.mrf.mxu0 }
 0x8a2   : > { %v18969_v44 = vpop.f32.mrf.mxu2  ;;  %v5502_v4 = vpop.f32.mrf.mxu1 }
 0x8a3   : > { %v4851_v2 = vpop.f32.mrf.mxu3  ;;  %v5503_v3 = vadd.f32 %v5502_v4, %v5448_v0 }
 0x8a4   : > { %v4852_v56 = vadd.f32 %v4851_v2, %v18754_v26 }
 0x8a5   : > { %12972 = vmatmul.msk.bf16.gmra.mxu1 %vm4739_vm13, %v12963_v9 }
 0x8a6   : > { %v4882_v41 = vpack.c.bf16 %v4852_v56, %v4850_v28 }
 0x8a7   : > { %v5468_v30 = vpop.f32.mrf.mxu0 }
 0x8a8   : > { %12868 = vmatmul.msk.bf16.gmra.mxu3 %vm5143_vm14, %v4882_v41 }
 0x8aa   : > { %v18975_v7 = vpop.f32.mrf.mxu2  ;;  %v5504_v40 = vpop.f32.mrf.mxu1 }
 0x8ab   : > { %v5505_v61 = vadd.f32 %v5504_v40, %v5450_v14  ;;  %v4854_v50 = vpop.f32.mrf.mxu3 }
 0x8ac   : > { %v4855_v54 = vadd.f32 %v4854_v50, %v18758_v36 }
 0x8ad   : > { %v5547_v46 = vpack.c.bf16 %v5505_v61, %v5503_v3 }
 0x8af   : > { %12979 = vmatmul.msk.bf16.vlgmr.msra.gmra.mxu2 %vm5143_vm14, %v5547_v46  ;;  %v5470_v28 = vpop.f32.mrf.mxu0 }
 0x8b0   : > { %6552 = vmatpush.bf16.msra.mxu2 %v18517_v57 }
 0x8b2   : > { %v18979_v55 = vpop.f32.mrf.mxu2  ;;  %v5507_v26 = vpop.f32.mrf.mxu1 }
 0x8b3   : > { %v4856_v1 = vpop.f32.mrf.mxu3  ;;  %v5508_v14 = vadd.f32 %v5507_v26, %v5453_v15 }
 0x8b4   : > { %v4857_v33 = vadd.f32 %v4856_v1, %v18782_v19  ;;  %6553 = vmatpush.bf16.msra.mxu2 %v18507_v8 }
 0x8b6   : > { %v4883_v0 = vpack.c.bf16 %v4857_v33, %v4855_v54 }
 0x8b7   : > { %v5473_v50 = vpop.f32.mrf.mxu0 }
 0x8b8   : > { %6554 = vmatpush.bf16.msra.mxu2 %v18484_v48  ;;  %12869 = vmatmul.msk.bf16.gmra.mxu3 %vm5143_vm14, %v4883_v0 }
 0x8ba   : > { %v18986_v43 = vpop.f32.mrf.mxu2  ;;  %v5509_v62 = vpop.f32.mrf.mxu1 }
 0x8bb   : > { %v5510_v10 = vadd.f32 %v5509_v62, %v5455_v63  ;;  %v4859_v39 = vpop.f32.mrf.mxu3 }
 0x8bc   : > { %6555 = vmatpush.bf16.msra.mxu2 %v18460_v23  ;;  %v4860_v15 = vadd.f32 %v4859_v39, %v18790_v12 }
 0x8bd   : > { %v5548_v59 = vpack.c.bf16 %v5510_v10, %v5508_v14 }
 0x8bf   : > { %12980 = vmatmul.msk.bf16.gmra.mxu2 %vm5143_vm14, %v5548_v59  ;;  %v5475_v62 = vpop.f32.mrf.mxu0 }
 0x8c0   : > { %6556 = vmatpush.bf16.msra.mxu2 %v18431_v22 }
 0x8c2   : > { %v18991_v36 = vpop.f32.mrf.mxu2  ;;  %v5512_v19 = vpop.f32.mrf.mxu1 }
 0x8c3   : > { %v4861_v53 = vpop.f32.mrf.mxu3  ;;  %v5513_v27 = vadd.f32 %v5512_v19, %v5458_v37 }
 0x8c4   : > { %v4862_v58 = vadd.f32 %v4861_v53, %v18817_v35 }
 0x8c6   : > { %v4884_v51 = vpack.c.bf16 %v4862_v58, %v4860_v15  ;;  %v13018_v15 = vld [vmem:[%s21447_s4 + $0x1c8] sm:$0xf0] }
 0x8c7   : > { %v5478_v53 = vpop.f32.mrf.mxu0 }
 0x8c8   : > { %12870 = vmatmul.msk.bf16.gmra.mxu3 %vm5143_vm14, %v4884_v51 }
 0x8ca   : > { %v18996_v45 = vpop.f32.mrf.mxu2  ;;  %v5514_v34 = vpop.f32.mrf.mxu1 }
 0x8cb   : > { %v5515_v13 = vadd.f32 %v5514_v34, %v5460_v42  ;;  %v4864_v63 = vpop.f32.mrf.mxu3 }
 0x8cc   : > { %v4865_v12 = vadd.f32 %v4864_v63, %v18826_v25 }
 0x8cd   : > { %v5549_v16 = vpack.c.bf16 %v5515_v13, %v5513_v27 }
 0x8cf   : > { %12981 = vmatmul.msk.bf16.gmra.mxu2 %vm5143_vm14, %v5549_v16  ;;  %v5480_v16 = vpop.f32.mrf.mxu0 }
 0x8d2   : > { %v18999_v60 = vpop.f32.mrf.mxu2  ;;  %v5517_v9 = vpop.f32.mrf.mxu1 }
 0x8d3   : > { %v4866_v4 = vpop.f32.mrf.mxu3  ;;  %v5518_v56 = vadd.f32 %v5517_v9, %v5463_v31  ;;  %v15228_v9 = vld [vmem:[%s21447_s4 + $0x1b4] sm:$0xf0] }
 0x8d4   : > { %v4867_v35 = vadd.f32 %v4866_v4, %v18850_v24 }
 0x8d6   : > { %v4885_v2 = vpack.c.bf16 %v4867_v35, %v4865_v12 }
 0x8d8   : > { %12871 = vmatmul.msk.bf16.gmra.mxu3 %vm5143_vm14, %v4885_v2 }
 0x8da   : > { %v19004_v37 = vpop.f32.mrf.mxu2  ;;  %v5519_v41 = vpop.f32.mrf.mxu1 }
 0x8db   : > { %v5520_v3 = vadd.f32 %v5519_v41, %v5465_v6  ;;  %v4869_v40 = vpop.f32.mrf.mxu3  ;;  %v15229_v6 = vld [vmem:[%s21447_s4 + $0x1c4] sm:$0xf] }
 0x8dc   : > { %v4870_v24 = vadd.f32 %v4869_v40, %v18855_v29  ;;  %v13021_v51 = vor.u32 %v15229_v6, %v13018_v15  ;;  %v5483_v40 = vpop.f32.mrf.mxu0 }
 0x8dd   : > { %v5550_v61 = vpack.c.bf16 %v5520_v3, %v5518_v56  ;;  %v13026_v56 = vld [vmem:[%s21447_s4 + $0x1d8] sm:$0xf0] }
 0x8de   : > { %13079 = vmatmul.msk.bf16.gmra.mxu0 %vm4739_vm13, %v13021_v51 }
 0x8df   : > { %12982 = vmatmul.msk.bf16.gmra.mxu2 %vm5143_vm14, %v5550_v61 }
 0x8e2   : > { %v19007_v46 = vpop.f32.mrf.mxu2  ;;  %v5522_v42 = vpop.f32.mrf.mxu1 }
 0x8e3   : > { %v4871_v25 = vpop.f32.mrf.mxu3  ;;  %v5523_v54 = vadd.f32 %v5522_v42, %v5468_v30  ;;  %v13008_v30 = vld [vmem:[%s21447_s4 + $0x1b0] sm:$0xf] }
 0x8e4   : > { %v4872_v26 = vadd.f32 %v4871_v25, %v18876_v49  ;;  %v13009_v2 = vor.u32 %v15228_v9, %v13008_v30  ;;  %v15235_v9 = vld [vmem:[%s21447_s4 + $0x1f4] sm:$0xf] }
 0x8e6   : > { %v4886_v1 = vpack.c.bf16 %v4872_v26, %v4870_v24  ;;  %v13016_v26 = vld [vmem:[%s21447_s4 + $0x1c0] sm:$0xf] }
 0x8e8   : > { %12872 = vmatmul.msk.bf16.gmra.mxu3 %vm5143_vm14, %v4886_v1  ;;  %v15230_v1 = vld [vmem:[%s21447_s4 + $0x1c4] sm:$0xf0] }
 0x8ea   : > { %v19012_v33 = vpop.f32.mrf.mxu2  ;;  %v5524_v0 = vpop.f32.mrf.mxu1 }
 0x8eb   : > { %v5525_v14 = vadd.f32 %v5524_v0, %v5470_v28  ;;  %v4874_v31 = vpop.f32.mrf.mxu3  ;;  %v15231_v28 = vld [vmem:[%s21447_s4 + $0x1d4] sm:$0xf] }
 0x8ec   : > { %v4875_v29 = vadd.f32 %v4874_v31, %v18884_v5  ;;  %v13029_v41 = vor.u32 %v15231_v28, %v13026_v56  ;;  %v13017_v31 = vor.u32 %v15230_v1, %v13016_v26  ;;  %v13032_v26 = vld [vmem:[%s21447_s4 + $0x1e0] sm:$0xf]  ;;  %v15234_v1 = vld [vmem:[%s21447_s4 + $0x1e4] sm:$0xf0] }
 0x8ed   : > { %v5551_v10 = vpack.c.bf16 %v5525_v14, %v5523_v54 }
 0x8ee   : > { %13080 = vmatmul.msk.bf16.gmra.mxu0 %vm4739_vm13, %v13029_v41 }
 0x8ef   : > { %12983 = vmatmul.msk.bf16.gmra.mxu2 %vm5143_vm14, %v5551_v10  ;;  %v15233_v10 = vld [vmem:[%s21447_s4 + $0x1e4] sm:$0xf] }
 0x8f2   : > { %v19015_v39 = vpop.f32.mrf.mxu2  ;;  %v5527_v59 = vpop.f32.mrf.mxu1 }
 0x8f3   : > { %v4876_v19 = vpop.f32.mrf.mxu3  ;;  %v5528_v27 = vadd.f32 %v5527_v59, %v5473_v50  ;;  %v13034_v59 = vld [vmem:[%s21447_s4 + $0x1e8] sm:$0xf0] }
 0x8f4   : > { %v4877_v49 = vadd.f32 %v4876_v19, %v18905_v17  ;;  %v13037_v19 = vor.u32 %v15233_v10, %v13034_v59  ;;  %v13033_v10 = vor.u32 %v15234_v1, %v13032_v26  ;;  %v15237_v59 = vld [vmem:[%s21447_s4 + $0x204] sm:$0xf] }
 0x8f6   : > { %v4887_v58 = vpack.c.bf16 %v4877_v49, %v4875_v29 }
 0x8f8   : > { %12873 = vmatmul.msk.bf16.gmra.mxu3 %vm5143_vm14, %v4887_v58 }
 0x8fa   : > { %v19027_v34 = vpop.f32.mrf.mxu2  ;;  %v5529_v5 = vpop.f32.mrf.mxu1 }
 0x8fb   : > { %v5530_v17 = vadd.f32 %v5529_v5, %v5475_v62  ;;  %v5267_v13 = vpop.f32.mrf.mxu3  ;;  %v5485_v62 = vpop.f32.mrf.mxu0  ;;  %v15232_v5 = vld [vmem:[%s21447_s4 + $0x1d4] sm:$0xf0] }
 0x8fd   : > { %v5552_v63 = vpack.c.bf16 %v5530_v17, %v5528_v27  ;;  %v13024_v27 = vld [vmem:[%s21447_s4 + $0x1d0] sm:$0xf] }
 0x8fe   : > { %13081 = vmatmul.msk.bf16.gmra.mxu0 %vm4739_vm13, %v13037_v19  ;;  %v13025_v30 = vor.u32 %v15232_v5, %v13024_v27  ;;  %v13122_v19 = vld [vmem:[%s21447_s4 + $0x240] sm:$0xf] }
 0x8ff   : > { %12984 = vmatmul.msk.bf16.gmra.mxu2 %vm5143_vm14, %v5552_v63 }
 0x902   : > { %v19036_v4 = vpop.f32.mrf.mxu2  ;;  %v5532_v12 = vpop.f32.mrf.mxu1 }
 0x903   : > { %v19038_v35 = vpop.f32.mrf.mxu3  ;;  %v5533_v3 = vadd.f32 %v5532_v12, %v5478_v53  ;;  %v5488_v51 = vpop.f32.mrf.mxu0  ;;  %v13042_v12 = vld [vmem:[%s21447_s4 + $0x1f8] sm:$0xf0] }
 0x908   : > { %5799 = vmatmul.bf16.vlgmr.msrb.gmra.mxu3 %v13009_v2  ;;  %v13045_v2 = vor.u32 %v15235_v9, %v13042_v12 }
 0x90a   : > { %v19047_v61 = vpop.f32.mrf.mxu2  ;;  %v5534_v50 = vpop.f32.mrf.mxu1 }
 0x90b   : > { %v5535_v42 = vadd.f32 %v5534_v50, %v5480_v16  ;;  %v5272_v25 = vpop.f32.mrf.mxu3  ;;  %v5490_v28 = vpop.f32.mrf.mxu0 }
 0x90c   : > { %v5273_v5 = vadd.f32 %v5272_v25, %v18979_v55  ;;  %v13058_v55 = vld [vmem:[%s21447_s4 + $0x218] sm:$0xf0] }
 0x90d   : > { %v5553_v24 = vpack.c.bf16 %v5535_v42, %v5533_v3 }
 0x90e   : > { %13082 = vmatmul.msk.bf16.gmra.mxu0 %vm4739_vm13, %v13045_v2  ;;  %v15239_v2 = vld [vmem:[%s21447_s4 + $0x214] sm:$0xf] }
 0x90f   : > { %12985 = vmatmul.msk.bf16.gmra.mxu2 %vm5143_vm14, %v5553_v24  ;;  %v5268_v24 = vadd.f32 %v5267_v13, %v18969_v44  ;;  %v13050_v44 = vld [vmem:[%s21447_s4 + $0x208] sm:$0xf0]  ;;  %v13061_v25 = vor.u32 %v15239_v2, %v13058_v55 }
 0x910   : > { %v13053_v13 = vor.u32 %v15237_v59, %v13050_v44 }
 0x912   : > { %v19056_v54 = vpop.f32.mrf.mxu2  ;;  %v5537_v0 = vpop.f32.mrf.mxu1 }
 0x913   : > { %v19058_v14 = vpop.f32.mrf.mxu3  ;;  %v5538_v29 = vadd.f32 %v5537_v0, %v5483_v40 }
 0x918   : > { %5804 = vmatmul.bf16.gmra.mxu3 %v13017_v31 }
 0x91a   : > { %v19067_v49 = vpop.f32.mrf.mxu2  ;;  %v5539_v53 = vpop.f32.mrf.mxu1 }
 0x91b   : > { %v5540_v6 = vadd.f32 %v5539_v53, %v5485_v62  ;;  %v19069_v15 = vpop.f32.mrf.mxu3  ;;  %v5270_v53 = vadd.f32 %v19038_v35, %v18975_v7 }
 0x91c   : > { %v5278_v1 = vadd.f32 %v19069_v15, %v18991_v36  ;;  %v13066_v36 = vld [vmem:[%s21447_s4 + $0x228] sm:$0xf0] }
 0x91d   : > { %v5554_v58 = vpack.c.bf16 %v5540_v6, %v5538_v29  ;;  %v15247_v29 = vld [vmem:[%s21447_s4 + $0x244] sm:$0xf0] }
 0x91e   : > { %13083 = vmatmul.msk.bf16.gmra.mxu0 %vm4739_vm13, %v13053_v13  ;;  %v13123_v27 = vor.u32 %v15247_v29, %v13122_v19  ;;  %v15241_v13 = vld [vmem:[%s21447_s4 + $0x224] sm:$0xf]  ;;  %v13138_v19 = vld [vmem:[%s21447_s4 + $0x260] sm:$0xf]  ;;  %v15251_v29 = vld [vmem:[%s21447_s4 + $0x264] sm:$0xf0] }
 0x91f   : > { %12986 = vmatmul.msk.bf16.gmra.mxu2 %vm5143_vm14, %v5554_v58  ;;  %v13069_v15 = vor.u32 %v15241_v13, %v13066_v36  ;;  %v15242_v13 = vld [vmem:[%s21447_s4 + $0x224] sm:$0xf0] }
 0x922   : > { %v19078_v17 = vpop.f32.mrf.mxu2  ;;  %v5542_v63 = vpop.f32.mrf.mxu1 }
 0x923   : > { %v19080_v16 = vpop.f32.mrf.mxu3  ;;  %v5543_v56 = vadd.f32 %v5542_v63, %v5488_v51  ;;  %v13040_v63 = vld [vmem:[%s21447_s4 + $0x1f0] sm:$0xf] }
 0x928   : > { %5809 = vmatmul.bf16.gmra.mxu3 %v13025_v30  ;;  %v15236_v30 = vld [vmem:[%s21447_s4 + $0x1f4] sm:$0xf0] }
 0x929   : > { %v13041_v35 = vor.u32 %v15236_v30, %v13040_v63  ;;  %v13139_v63 = vor.u32 %v15251_v29, %v13138_v19  ;;  %v15283_v29 = vld [vmem:[%s21448_s5 + $0x28] sm:$0xff] }
 0x92a   : > { %v19089_v41 = vpop.f32.mrf.mxu2  ;;  %v5544_v3 = vpop.f32.mrf.mxu1  ;;  %6655 = vmatpush.bf16.msrb.mxu3 %v15283_v29 }
 0x92b   : > { %v5545_v40 = vadd.f32 %v5544_v3, %v5490_v28  ;;  %v19091_v50 = vpop.f32.mrf.mxu3  ;;  %v13130_v28 = vld [vmem:[%s21447_s4 + $0x250] sm:$0xf]  ;;  %v5275_v3 = vadd.f32 %v19058_v14, %v18986_v43 }
 0x92c   : > { %v5283_v30 = vadd.f32 %v19091_v50, %v18999_v60  ;;  %v13074_v60 = vld [vmem:[%s21447_s4 + $0x238] sm:$0xf0] }
 0x92d   : > { %v5555_v42 = vpack.c.bf16 %v5545_v40, %v5543_v56  ;;  %v15249_v56 = vld [vmem:[%s21447_s4 + $0x254] sm:$0xf0] }
 0x92e   : > { %13084 = vmatmul.msk.bf16.gmra.mxu0 %vm4739_vm13, %v13061_v25  ;;  %v13131_v26 = vor.u32 %v15249_v56, %v13130_v28  ;;  %v15243_v25 = vld [vmem:[%s21447_s4 + $0x234] sm:$0xf]  ;;  %v13146_v28 = vld [vmem:[%s21447_s4 + $0x270] sm:$0xf]  ;;  %v15253_v56 = vld [vmem:[%s21447_s4 + $0x274] sm:$0xf0] }
 0x92f   : > { %12987 = vmatmul.msk.bf16.gmra.mxu2 %vm5143_vm14, %v5555_v42  ;;  %v13077_v50 = vor.u32 %v15243_v25, %v13074_v60 }
 0x932   : > { %v5601_v0 = vpop.f32.mrf.mxu2 }
 0x933   : > { %v19101_v31 = vadd.f32 %v5601_v0, %v5268_v24  ;;  %v19103_v62 = vpop.f32.mrf.mxu3  ;;  %v13048_v0 = vld [vmem:[%s21447_s4 + $0x200] sm:$0xf] }
 0x938   : > { %5814 = vmatmul.bf16.gmra.mxu3 %v13033_v10  ;;  %v15238_v10 = vld [vmem:[%s21447_s4 + $0x204] sm:$0xf0] }
 0x939   : > { %v13049_v44 = vor.u32 %v15238_v10, %v13048_v0  ;;  %v13147_v10 = vor.u32 %v15253_v56, %v13146_v28 }
 0x93a   : > { %v5603_v6 = vpop.f32.mrf.mxu2 }
 0x93b   : > { %v19120_v58 = vadd.f32 %v5603_v6, %v5270_v53  ;;  %v19122_v51 = vpop.f32.mrf.mxu3  ;;  %v5280_v53 = vadd.f32 %v19080_v16, %v18996_v45 }
 0x93e   : > { %13085 = vmatmul.msk.bf16.gmra.mxu0 %vm4739_vm13, %v13069_v15 }
 0x93f   : > { %6151 = vmatmul.bf16.vlgmr.msrb.gmra.mxu2 %v13123_v27 }
 0x942   : > { %v5606_v9 = vpop.f32.mrf.mxu2 }
 0x943   : > { %v19131_v12 = vadd.f32 %v5606_v9, %v5273_v5  ;;  %v19133_v7 = vpop.f32.mrf.mxu3  ;;  %v13056_v9 = vld [vmem:[%s21447_s4 + $0x210] sm:$0xf] }
 0x948   : > { %5819 = vmatmul.bf16.gmra.mxu3 %v13041_v35  ;;  %v15240_v35 = vld [vmem:[%s21447_s4 + $0x214] sm:$0xf0] }
 0x949   : > { %v13057_v16 = vor.u32 %v15240_v35, %v13056_v9 }
 0x94a   : > { %v5608_v40 = vpop.f32.mrf.mxu2 }
 0x94b   : > { %v19150_v42 = vadd.f32 %v5608_v40, %v5275_v3  ;;  %v19152_v24 = vpop.f32.mrf.mxu3  ;;  %v5285_v3 = vadd.f32 %v19103_v62, %v19004_v37  ;;  %v5854_v40 = vpop.f32.mrf.mxu0 }
 0x94e   : > { %13086 = vmatmul.msk.bf16.gmra.mxu0 %vm4739_vm13, %v13077_v50 }
 0x94f   : > { %6156 = vmatmul.bf16.gmra.mxu2 %v13131_v26 }
 0x952   : > { %v5611_v59 = vpop.f32.mrf.mxu2 }
 0x953   : > { %v19162_v43 = vadd.f32 %v5611_v59, %v5278_v1  ;;  %v19164_v14 = vpop.f32.mrf.mxu3  ;;  %v5288_v59 = vadd.f32 %v19122_v51, %v19007_v46  ;;  %v5856_v15 = vpop.f32.mrf.mxu0  ;;  %v13154_v46 = vld [vmem:[%s21447_s4 + $0x280] sm:$0xf]  ;;  %v15255_v51 = vld [vmem:[%s21447_s4 + $0x284] sm:$0xf0] }
 0x954   : > { %v13155_v9 = vor.u32 %v15255_v51, %v13154_v46  ;;  %v5295_v56 = vadd.f32 %v19164_v14, %v19027_v34 }
 0x958   : > { %5824 = vmatmul.bf16.gmra.mxu3 %v13049_v44  ;;  %v13064_v44 = vld [vmem:[%s21447_s4 + $0x220] sm:$0xf] }
 0x959   : > { %v13065_v19 = vor.u32 %v15242_v13, %v13064_v44  ;;  %v15246_v13 = vld [vmem:[%s21447_s4 + $0x244] sm:$0xf] }
 0x95a   : > { %v5613_v6 = vpop.f32.mrf.mxu2 }
 0x95b   : > { %v19181_v27 = vadd.f32 %v5613_v6, %v5280_v53  ;;  %v5297_v5 = vpop.f32.mrf.mxu3  ;;  %v5290_v53 = vadd.f32 %v19133_v7, %v19012_v33  ;;  %v5859_v35 = vpop.f32.mrf.mxu0  ;;  %v15244_v33 = vld [vmem:[%s21447_s4 + $0x234] sm:$0xf0] }
 0x95c   : > { %v5298_v44 = vadd.f32 %v5297_v5, %v19036_v4  ;;  %v13170_v4 = vld [vmem:[%s21447_s4 + $0x2a0] sm:$0xf]  ;;  %v15259_v5 = vld [vmem:[%s21447_s4 + $0x2a4] sm:$0xf0] }
 0x95f   : > { %6161 = vmatmul.bf16.gmra.mxu2 %v13139_v63 }
 0x962   : > { %v5616_v2 = vpop.f32.mrf.mxu2 }
 0x963   : > { %v19191_v55 = vadd.f32 %v5616_v2, %v5283_v30  ;;  %v19193_v45 = vpop.f32.mrf.mxu3  ;;  %v5293_v2 = vadd.f32 %v19152_v24, %v19015_v39  ;;  %v5861_v28 = vpop.f32.mrf.mxu0  ;;  %v13162_v39 = vld [vmem:[%s21447_s4 + $0x290] sm:$0xf]  ;;  %v15257_v24 = vld [vmem:[%s21447_s4 + $0x294] sm:$0xf0] }
 0x968   : > { %5829 = vmatmul.bf16.gmra.mxu3 %v13057_v16  ;;  %v13072_v16 = vld [vmem:[%s21447_s4 + $0x230] sm:$0xf] }
 0x969   : > { %v13073_v50 = vor.u32 %v15244_v33, %v13072_v16  ;;  %v13171_v16 = vor.u32 %v15259_v5, %v13170_v4 }
 0x96a   : > { %v5618_v26 = vpop.f32.mrf.mxu2 }
 0x96b   : > { %v19210_v1 = vadd.f32 %v5618_v26, %v5285_v3  ;;  %v19212_v0 = vpop.f32.mrf.mxu3 }
 0x96f   : > { %6166 = vmatmul.bf16.gmra.mxu2 %v13147_v10 }
 0x972   : > { %v5621_v37 = vpop.f32.mrf.mxu2 }
 0x973   : > { %v19222_v62 = vadd.f32 %v5621_v37, %v5288_v59  ;;  %v19224_v36 = vpop.f32.mrf.mxu3  ;;  %v13163_v59 = vor.u32 %v15257_v24, %v13162_v39  ;;  %v13124_v37 = vld [vmem:[%s21447_s4 + $0x248] sm:$0xf0] }
 0x978   : > { %5834 = vmatmul.bf16.gmra.mxu3 %v13065_v19  ;;  %v5864_v19 = vpop.f32.mrf.mxu0 }
 0x97a   : > { %v5623_v6 = vpop.f32.mrf.mxu2 }
 0x97b   : > { %v19237_v63 = vadd.f32 %v5623_v6, %v5290_v53  ;;  %v19239_v30 = vpop.f32.mrf.mxu3  ;;  %v13127_v53 = vor.u32 %v15246_v13, %v13124_v37  ;;  %v15302_v37 = vld [vmem:[%s21448_s5 + $0x30] sm:$0xff] }
 0x97c   : > { %7007 = vmatpush.bf16.msrb.mxu2 %v15302_v37  ;;  %v13156_v37 = vld [vmem:[%s21447_s4 + $0x288] sm:$0xf0] }
 0x97f   : > { %6171 = vmatmul.bf16.gmra.mxu2 %v13155_v9  ;;  %v5300_v9 = vadd.f32 %v19193_v45, %v19047_v61  ;;  %v15248_v61 = vld [vmem:[%s21447_s4 + $0x254] sm:$0xf]  ;;  %v13132_v45 = vld [vmem:[%s21447_s4 + $0x258] sm:$0xf0] }
 0x980   : > { %v5866_v33 = vpop.f32.mrf.mxu0 }
 0x982   : > { %v5626_v7 = vpop.f32.mrf.mxu2 }
 0x983   : > { %v19249_v25 = vadd.f32 %v5626_v7, %v5293_v2  ;;  %v19251_v60 = vpop.f32.mrf.mxu3  ;;  %v5303_v7 = vadd.f32 %v19212_v0, %v19056_v54 }
 0x988   : > { %5839 = vmatmul.bf16.gmra.mxu3 %v13073_v50  ;;  %v5869_v54 = vpop.f32.mrf.mxu0 }
 0x98a   : > { %v5628_v3 = vpop.f32.mrf.mxu2 }
 0x98b   : > { %v19261_v26 = vadd.f32 %v5628_v3, %v5295_v56  ;;  %v5800_v10 = vpop.f32.mrf.mxu3 }
 0x98c   : > { %v5855_v14 = vadd.f32 %v5854_v40, %v5800_v10  ;;  %v13135_v10 = vor.u32 %v15248_v61, %v13132_v45  ;;  %v13148_v61 = vld [vmem:[%s21447_s4 + $0x278] sm:$0xf0] }
 0x98f   : > { %6176 = vmatmul.bf16.gmra.mxu2 %v13163_v59  ;;  %v13178_v59 = vld [vmem:[%s21447_s4 + $0x2b0] sm:$0xf] }
 0x992   : > { %v5631_v29 = vpop.f32.mrf.mxu2 }
 0x993   : > { %v19270_v46 = vadd.f32 %v5631_v29, %v5298_v44  ;;  %v5802_v34 = vpop.f32.mrf.mxu3  ;;  %v5871_v29 = vpop.f32.mrf.mxu0 }
 0x994   : > { %v5857_v51 = vadd.f32 %v5856_v15, %v5802_v34  ;;  %v5308_v34 = vadd.f32 %v19239_v30, %v19078_v17  ;;  %v13186_v30 = vld [vmem:[%s21447_s4 + $0x2c0] sm:$0xf] }
 0x996   : > { %v5899_v6 = vpack.c.bf16 %v5857_v51, %v5855_v14  ;;  %v15250_v14 = vld [vmem:[%s21447_s4 + $0x264] sm:$0xf]  ;;  %v13140_v51 = vld [vmem:[%s21447_s4 + $0x268] sm:$0xf0] }
 0x998   : > { %13093 = vmatmul.msk.bf16.vlgmr.msrb.gmra.mxu1 %vm5143_vm14, %v5899_v6  ;;  %13192 = vmatmul.msk.bf16.vlgmr.msra.gmra.mxu3 %vm4739_vm13, %v13127_v53 }
 0x999   : > { %6904 = vmatpush.bf16.msrb.mxu1 %v18517_v57  ;;  %7199 = vmatpush.bf16.msra.mxu3 %v18415_v18 }
 0x99a   : > { %v5633_v40 = vpop.f32.mrf.mxu2 }
 0x99b   : > { %v19284_v15 = vadd.f32 %v5633_v40, %v5300_v9  ;;  %v5805_v2 = vpop.f32.mrf.mxu3  ;;  %v13143_v40 = vor.u32 %v15250_v14, %v13140_v51 }
 0x99c   : > { %v5860_v56 = vadd.f32 %v5859_v35, %v5805_v2  ;;  %v15261_v35 = vld [vmem:[%s21447_s4 + $0x2b4] sm:$0xf0]  ;;  %v15263_v2 = vld [vmem:[%s21447_s4 + $0x2c4] sm:$0xf0] }
 0x99d   : > { %6905 = vmatpush.bf16.msrb.mxu1 %v18507_v8  ;;  %7200 = vmatpush.bf16.msra.mxu3 %v18407_v38  ;;  %v13179_v13 = vor.u32 %v15261_v35, %v13178_v59  ;;  %v13238_v59 = vld [vmem:[%s21447_s4 + $0x2d8] sm:$0xf0] }
 0x99f   : > { %6181 = vmatmul.bf16.gmra.mxu2 %v13171_v16  ;;  %v5874_v16 = vpop.f32.mrf.mxu0 }
 0x9a1   : > { %6906 = vmatpush.bf16.msrb.mxu1 %v18484_v48  ;;  %7201 = vmatpush.bf16.msra.mxu3 %v18399_v32 }
 0x9a2   : > { %v5636_v50 = vpop.f32.mrf.mxu2 }
 0x9a3   : > { %v19298_v39 = vadd.f32 %v5636_v50, %v5303_v7  ;;  %v5807_v24 = vpop.f32.mrf.mxu3 }
 0x9a4   : > { %v5862_v3 = vadd.f32 %v5861_v28, %v5807_v24 }
 0x9a5   : > { %6907 = vmatpush.bf16.msrb.mxu1 %v18460_v23  ;;  %7202 = vmatpush.bf16.msra.mxu3 %v18391_v52 }
 0x9a6   : > { %v5900_v0 = vpack.c.bf16 %v5862_v3, %v5860_v56 }
 0x9a7   : > { %v5876_v50 = vpop.f32.mrf.mxu0 }
 0x9a8   : > { %13094 = vmatmul.msk.bf16.gmra.mxu1 %vm5143_vm14, %v5900_v0  ;;  %13193 = vmatmul.msk.bf16.gmra.mxu3 %vm4739_vm13, %v13135_v10  ;;  %v15265_v0 = vld [vmem:[%s21447_s4 + $0x2d4] sm:$0xf] }
 0x9a9   : > { %6908 = vmatpush.bf16.msrb.mxu1 %v18431_v22  ;;  %7203 = vmatpush.bf16.msra.mxu3 %v18383_v47 }
 0x9aa   : > { %v19312_v28 = vpop.f32.mrf.mxu2 }
 0x9ab   : > { %v5810_v44 = vpop.f32.mrf.mxu3 }
 0x9ac   : > { %v5865_v5 = vadd.f32 %v5864_v19, %v5810_v44  ;;  %v13187_v19 = vor.u32 %v15263_v2, %v13186_v30  ;;  %v13241_v44 = vor.u32 %v15265_v0, %v13238_v59  ;;  %v15260_v0 = vld [vmem:[%s21447_s4 + $0x2b4] sm:$0xf]  ;;  %v13180_v59 = vld [vmem:[%s21447_s4 + $0x2b8] sm:$0xf0] }
 0x9ad   : > { %7204 = vmatpush.bf16.msra.mxu3 %v18374_v21 }
 0x9af   : > { %6186 = vmatmul.bf16.gmra.mxu2 %v13179_v13  ;;  %v5879_v13 = vpop.f32.mrf.mxu0 }
 0x9b1   : > { %7205 = vmatpush.bf16.msra.mxu3 %v18365_v11 }
 0x9b2   : > { %v5641_v53 = vpop.f32.mrf.mxu2 }
 0x9b3   : > { %v19327_v6 = vadd.f32 %v5641_v53, %v5308_v34  ;;  %v5812_v4 = vpop.f32.mrf.mxu3 }
 0x9b4   : > { %v5867_v9 = vadd.f32 %v5866_v33, %v5812_v4  ;;  %v15252_v33 = vld [vmem:[%s21447_s4 + $0x274] sm:$0xf] }
 0x9b5   : > { %7206 = vmatpush.bf16.msra.mxu3 %v18356_v20  ;;  %v13151_v3 = vor.u32 %v15252_v33, %v13148_v61 }
 0x9b6   : > { %v5901_v17 = vpack.c.bf16 %v5867_v9, %v5865_v5  ;;  %v15256_v9 = vld [vmem:[%s21447_s4 + $0x294] sm:$0xf] }
 0x9b7   : > { %v5881_v4 = vpop.f32.mrf.mxu0 }
 0x9b8   : > { %13095 = vmatmul.msk.bf16.gmra.mxu1 %vm5143_vm14, %v5901_v17  ;;  %13194 = vmatmul.msk.bf16.gmra.mxu3 %vm4739_vm13, %v13143_v40 }
 0x9bb   : > { %v5815_v7 = vpop.f32.mrf.mxu3 }
 0x9bc   : > { %v5870_v24 = vadd.f32 %v5869_v54, %v5815_v7  ;;  %v15254_v54 = vld [vmem:[%s21447_s4 + $0x284] sm:$0xf] }
 0x9bd   : > { %v13159_v51 = vor.u32 %v15254_v54, %v13156_v37  ;;  %v13183_v54 = vor.u32 %v15260_v0, %v13180_v59 }
 0x9bf   : > { %6191 = vmatmul.bf16.gmra.mxu2 %v13187_v19  ;;  %v5884_v5 = vpop.f32.mrf.mxu0  ;;  %v15258_v19 = vld [vmem:[%s21447_s4 + $0x2a4] sm:$0xf] }
 0x9c3   : > { %v5817_v45 = vpop.f32.mrf.mxu3 }
 0x9c4   : > { %v5872_v56 = vadd.f32 %v5871_v29, %v5817_v45 }
 0x9c6   : > { %v5902_v10 = vpack.c.bf16 %v5872_v56, %v5870_v24 }
 0x9c8   : > { %13096 = vmatmul.msk.bf16.gmra.mxu1 %vm5143_vm14, %v5902_v10  ;;  %13195 = vmatmul.msk.bf16.gmra.mxu3 %vm4739_vm13, %v13151_v3 }
 0x9cb   : > { %v5820_v35 = vpop.f32.mrf.mxu3 }
 0x9cc   : > { %v5875_v34 = vadd.f32 %v5874_v16, %v5820_v35  ;;  %v19373_v16 = vpop.f32.mrf.mxu2 }
 0x9cf   : > { %13306 = vmatmul.msk.bf16.vlgmr.msra.gmra.mxu2 %vm4739_vm13, %v13241_v44 }
 0x9d0   : > { %7551 = vmatpush.bf16.msra.mxu2 %v18415_v18 }
 0x9d3   : > { %v5822_v29 = vpop.f32.mrf.mxu3 }
 0x9d4   : > { %v5877_v14 = vadd.f32 %v5876_v50, %v5822_v29  ;;  %7552 = vmatpush.bf16.msra.mxu2 %v18407_v38  ;;  %v13164_v38 = vld [vmem:[%s21447_s4 + $0x298] sm:$0xf0]  ;;  %v6152_v7 = vpop.f32.mrf.mxu2 }
 0x9d5   : > { %v13167_v30 = vor.u32 %v15256_v9, %v13164_v38  ;;  %v13188_v9 = vld [vmem:[%s21447_s4 + $0x2c8] sm:$0xf0] }
 0x9d6   : > { %v5903_v53 = vpack.c.bf16 %v5877_v14, %v5875_v34  ;;  %v15267_v14 = vld [vmem:[%s21447_s4 + $0x2e4] sm:$0xf] }
 0x9d8   : > { %7553 = vmatpush.bf16.msra.mxu2 %v18399_v32  ;;  %13097 = vmatmul.msk.bf16.gmra.mxu1 %vm5143_vm14, %v5903_v53 }
 0x9d9   : > { %13196 = vmatmul.msk.bf16.gmra.mxu3 %vm4739_vm13, %v13159_v51  ;;  %v13246_v51 = vld [vmem:[%s21447_s4 + $0x2e8] sm:$0xf0] }
 0x9da   : > { %v13249_v53 = vor.u32 %v15267_v14, %v13246_v51 }
 0x9db   : > { %v5825_v18 = vpop.f32.mrf.mxu3 }
 0x9dc   : > { %7554 = vmatpush.bf16.msra.mxu2 %v18391_v52  ;;  %v5880_v32 = vadd.f32 %v5879_v13, %v5825_v18  ;;  %v5886_v52 = vpop.f32.mrf.mxu0  ;;  %v6154_v56 = vpop.f32.mrf.mxu2 }
 0x9df   : > { %13307 = vmatmul.msk.bf16.gmra.mxu2 %vm4739_vm13, %v13249_v53  ;;  %v13244_v53 = vld [vmem:[%s21447_s4 + $0x2e0] sm:$0xf] }
 0x9e0   : > { %7555 = vmatpush.bf16.msra.mxu2 %v18383_v47 }
 0x9e3   : > { %v5827_v40 = vpop.f32.mrf.mxu3 }
 0x9e4   : > { %v5882_v17 = vadd.f32 %v5881_v4, %v5827_v40  ;;  %7556 = vmatpush.bf16.msra.mxu2 %v18374_v21  ;;  %v13172_v21 = vld [vmem:[%s21447_s4 + $0x2a8] sm:$0xf0]  ;;  %v5889_v50 = vpop.f32.mrf.mxu0  ;;  %v19387_v10 = vpop.f32.mrf.mxu2 }
 0x9e5   : > { %v13175_v45 = vor.u32 %v15258_v19, %v13172_v21  ;;  %v15269_v21 = vld [vmem:[%s21447_s4 + $0x2f4] sm:$0xf] }
 0x9e6   : > { %v5904_v2 = vpack.c.bf16 %v5882_v17, %v5880_v32 }
 0x9e8   : > { %7557 = vmatpush.bf16.msra.mxu2 %v18365_v11  ;;  %13098 = vmatmul.msk.bf16.gmra.mxu1 %vm5143_vm14, %v5904_v2 }
 0x9e9   : > { %13197 = vmatmul.msk.bf16.gmra.mxu3 %vm4739_vm13, %v13167_v30 }
 0x9eb   : > { %v5830_v47 = vpop.f32.mrf.mxu3 }
 0x9ec   : > { %7558 = vmatpush.bf16.msra.mxu2 %v18356_v20  ;;  %v5885_v61 = vadd.f32 %v5884_v5, %v5830_v47  ;;  %v5891_v3 = vpop.f32.mrf.mxu0  ;;  %v6159_v29 = vpop.f32.mrf.mxu2  ;;  %v15262_v5 = vld [vmem:[%s21447_s4 + $0x2c4] sm:$0xf] }
 0x9ed   : > { %v13191_v2 = vor.u32 %v15262_v5, %v13188_v9 }
 0x9f3   : > { %v5832_v33 = vpop.f32.mrf.mxu3 }
 0x9f4   : > { %v5887_v11 = vadd.f32 %v5886_v52, %v5832_v33  ;;  %v5894_v34 = vpop.f32.mrf.mxu0  ;;  %v19404_v18 = vpop.f32.mrf.mxu2  ;;  %v13254_v33 = vld [vmem:[%s21447_s4 + $0x2f8] sm:$0xf0] }
 0x9f6   : > { %v5905_v24 = vpack.c.bf16 %v5887_v11, %v5885_v61  ;;  %v13257_v61 = vor.u32 %v15269_v21, %v13254_v33 }
 0x9f8   : > { %13099 = vmatmul.msk.bf16.gmra.mxu1 %vm5143_vm14, %v5905_v24  ;;  %13308 = vmatmul.msk.bf16.gmra.mxu2 %vm4739_vm13, %v13257_v61  ;;  %v13236_v24 = vld [vmem:[%s21447_s4 + $0x2d0] sm:$0xf] }
 0x9f9   : > { %13198 = vmatmul.msk.bf16.gmra.mxu3 %vm4739_vm13, %v13175_v45  ;;  %v13252_v61 = vld [vmem:[%s21447_s4 + $0x2f0] sm:$0xf] }
 0x9fb   : > { %v5835_v20 = vpop.f32.mrf.mxu3 }
 0x9fc   : > { %v5890_v44 = vadd.f32 %v5889_v50, %v5835_v20  ;;  %v5896_v40 = vpop.f32.mrf.mxu0  ;;  %v6164_v19 = vpop.f32.mrf.mxu2  ;;  %v15266_v20 = vld [vmem:[%s21447_s4 + $0x2d4] sm:$0xf0] }
 0xa03   : > { %v5837_v35 = vpop.f32.mrf.mxu3 }
 0xa04   : > { %v5892_v13 = vadd.f32 %v5891_v3, %v5837_v35  ;;  %v19427_v50 = vpop.f32.mrf.mxu2  ;;  %v13237_v35 = vor.u32 %v15266_v20, %v13236_v24 }
 0xa06   : > { %v5906_v37 = vpack.c.bf16 %v5892_v13, %v5890_v44 }
 0xa08   : > { %13100 = vmatmul.msk.bf16.gmra.mxu1 %vm5143_vm14, %v5906_v37  ;;  %v15271_v37 = vld [vmem:[%s21447_s4 + $0x304] sm:$0xf] }
 0xa09   : > { %13199 = vmatmul.msk.bf16.gmra.mxu3 %vm4739_vm13, %v13183_v54 }
 0xa0b   : > { %v5840_v4 = vpop.f32.mrf.mxu3 }
 0xa0c   : > { %v5895_v32 = vadd.f32 %v5894_v34, %v5840_v4  ;;  %v15268_v4 = vld [vmem:[%s21447_s4 + $0x2e4] sm:$0xf0] }
 0xa13   : > { %v5842_v38 = vpop.f32.mrf.mxu3 }
 0xa14   : > { %v5897_v17 = vadd.f32 %v5896_v40, %v5842_v38  ;;  %v13245_v40 = vor.u32 %v15268_v4, %v13244_v53 }
 0xa15   : > { %v5953_v30 = vpop.f32.mrf.mxu1 }
 0xa16   : > { %v5907_v47 = vpack.c.bf16 %v5897_v17, %v5895_v32  ;;  %v19413_v52 = vadd.f32 %v5953_v30, %v19101_v31 }
 0xa18   : > { %13101 = vmatmul.msk.bf16.gmra.mxu1 %vm5143_vm14, %v5907_v47 }
 0xa19   : > { %13200 = vmatmul.msk.bf16.gmra.mxu3 %vm4739_vm13, %v13191_v2  ;;  %v15273_v2 = vld [vmem:[%s21447_s4 + $0x314] sm:$0xf] }
 0xa1b   : > { %v6206_v11 = vpop.f32.mrf.mxu3 }
 0xa1c   : > { %v6207_v0 = vadd.f32 %v6206_v11, %v6152_v7  ;;  %v13262_v7 = vld [vmem:[%s21447_s4 + $0x308] sm:$0xf0]  ;;  %v15270_v11 = vld [vmem:[%s21447_s4 + $0x2f4] sm:$0xf0] }
 0xa1d   : > { %v5955_v45 = vpop.f32.mrf.mxu1 }
 0xa1e   : > { %v19425_v31 = vadd.f32 %v5955_v45, %v19120_v58  ;;  %v6169_v58 = vpop.f32.mrf.mxu2 }
 0xa23   : > { %v6208_v3 = vpop.f32.mrf.mxu3 }
 0xa24   : > { %v6209_v59 = vadd.f32 %v6208_v3, %v6154_v56  ;;  %v13265_v56 = vor.u32 %v15271_v37, %v13262_v7  ;;  %v13253_v3 = vor.u32 %v15270_v11, %v13252_v61 }
 0xa25   : > { %v5958_v44 = vpop.f32.mrf.mxu1 }
 0xa26   : > { %v6251_v13 = vpack.c.bf16 %v6209_v59, %v6207_v0  ;;  %v19436_v54 = vadd.f32 %v5958_v44, %v19131_v12  ;;  %13309 = vmatmul.msk.bf16.gmra.mxu2 %vm4739_vm13, %v13265_v56  ;;  %v19451_v51 = vpop.f32.mrf.mxu2  ;;  %v15275_v44 = vld [vmem:[%s21447_s4 + $0x324] sm:$0xf]  ;;  %v13260_v56 = vld [vmem:[%s21447_s4 + $0x300] sm:$0xf] }
 0xa28   : > { %13207 = vmatmul.msk.bf16.vlgmr.msra.gmra.mxu0 %vm5143_vm14, %v6251_v13  ;;  %6503 = vmatmul.bf16.vlgmr.msra.gmra.mxu1 %v13237_v35  ;;  %v13278_v13 = vld [vmem:[%s21447_s4 + $0x328] sm:$0xf0] }
 0xa29   : > { %7256 = vmatpush.bf16.msra.mxu0 %v18517_v57 }
 0xa2b   : > { %v6211_v34 = vpop.f32.mrf.mxu3 }
 0xa2c   : > { %v6212_v9 = vadd.f32 %v6211_v34, %v19387_v10  ;;  %v13270_v10 = vld [vmem:[%s21447_s4 + $0x318] sm:$0xf0]  ;;  %v15272_v34 = vld [vmem:[%s21447_s4 + $0x304] sm:$0xf0] }
 0xa2d   : > { %7257 = vmatpush.bf16.msra.mxu0 %v18507_v8  ;;  %v5960_v12 = vpop.f32.mrf.mxu1 }
 0xa2e   : > { %v19449_v14 = vadd.f32 %v5960_v12, %v19150_v42  ;;  %v6174_v30 = vpop.f32.mrf.mxu2 }
 0xa31   : > { %7258 = vmatpush.bf16.msra.mxu0 %v18484_v48 }
 0xa33   : > { %v6213_v5 = vpop.f32.mrf.mxu3 }
 0xa34   : > { %v6214_v38 = vadd.f32 %v6213_v5, %v6159_v29  ;;  %v13273_v29 = vor.u32 %v15273_v2, %v13270_v10  ;;  %v13261_v5 = vor.u32 %v15272_v34, %v13260_v56 }
 0xa35   : > { %7259 = vmatpush.bf16.msra.mxu0 %v18460_v23  ;;  %v5963_v42 = vpop.f32.mrf.mxu1 }
 0xa36   : > { %v6252_v32 = vpack.c.bf16 %v6214_v38, %v6212_v9  ;;  %v19463_v17 = vadd.f32 %v5963_v42, %v19162_v43  ;;  %13310 = vmatmul.msk.bf16.gmra.mxu2 %vm4739_vm13, %v13273_v29  ;;  %v19477_v33 = vpop.f32.mrf.mxu2  ;;  %v15277_v42 = vld [vmem:[%s21447_s4 + $0x334] sm:$0xf]  ;;  %v13268_v29 = vld [vmem:[%s21447_s4 + $0x310] sm:$0xf] }
 0xa38   : > { %13208 = vmatmul.msk.bf16.gmra.mxu0 %vm5143_vm14, %v6252_v32  ;;  %6508 = vmatmul.bf16.gmra.mxu1 %v13245_v40  ;;  %v13286_v32 = vld [vmem:[%s21447_s4 + $0x338] sm:$0xf0] }
 0xa39   : > { %7260 = vmatpush.bf16.msra.mxu0 %v18431_v22 }
 0xa3b   : > { %v6216_v47 = vpop.f32.mrf.mxu3 }
 0xa3c   : > { %v6217_v24 = vadd.f32 %v6216_v47, %v19404_v18  ;;  %v13281_v18 = vor.u32 %v15275_v44, %v13278_v13  ;;  %v15274_v47 = vld [vmem:[%s21447_s4 + $0x314] sm:$0xf0] }
 0xa3d   : > { %v5965_v43 = vpop.f32.mrf.mxu1  ;;  %v13269_v61 = vor.u32 %v15274_v47, %v13268_v29 }
 0xa3e   : > { %v19475_v21 = vadd.f32 %v5965_v43, %v19181_v27  ;;  %v6179_v35 = vpop.f32.mrf.mxu2 }
 0xa43   : > { %v6218_v45 = vpop.f32.mrf.mxu3 }
 0xa44   : > { %v6219_v20 = vadd.f32 %v6218_v45, %v6164_v19 }
 0xa45   : > { %v5968_v0 = vpop.f32.mrf.mxu1 }
 0xa46   : > { %v6253_v59 = vpack.c.bf16 %v6219_v20, %v6217_v24  ;;  %v19487_v27 = vadd.f32 %v5968_v0, %v19191_v55  ;;  %13311 = vmatmul.msk.bf16.gmra.mxu2 %vm4739_vm13, %v13281_v18  ;;  %v19500_v7 = vpop.f32.mrf.mxu2  ;;  %v15279_v0 = vld [vmem:[%s21447_s4 + $0x344] sm:$0xf]  ;;  %v13276_v18 = vld [vmem:[%s21447_s4 + $0x320] sm:$0xf] }
 0xa48   : > { %13209 = vmatmul.msk.bf16.gmra.mxu0 %vm5143_vm14, %v6253_v59  ;;  %6513 = vmatmul.bf16.gmra.mxu1 %v13253_v3  ;;  %v13294_v59 = vld [vmem:[%s21447_s4 + $0x348] sm:$0xf0] }
 0xa49   : > { %v13297_v44 = vor.u32 %v15279_v0, %v13294_v59 }
 0xa4b   : > { %v6221_v19 = vpop.f32.mrf.mxu3 }
 0xa4c   : > { %v6222_v53 = vadd.f32 %v6221_v19, %v19427_v50  ;;  %v13289_v50 = vor.u32 %v15277_v42, %v13286_v32  ;;  %v15276_v19 = vld [vmem:[%s21447_s4 + $0x324] sm:$0xf0]  ;;  %v13284_v32 = vld [vmem:[%s21447_s4 + $0x330] sm:$0xf] }
 0xa4d   : > { %v5970_v37 = vpop.f32.mrf.mxu1  ;;  %v13277_v56 = vor.u32 %v15276_v19, %v13276_v18 }
 0xa4e   : > { %v19498_v55 = vadd.f32 %v5970_v37, %v19210_v1  ;;  %v6184_v40 = vpop.f32.mrf.mxu2 }
 0xa53   : > { %v6223_v12 = vpop.f32.mrf.mxu3 }
 0xa54   : > { %v6224_v4 = vadd.f32 %v6223_v12, %v6169_v58 }
 0xa55   : > { %v5973_v9 = vpop.f32.mrf.mxu1 }
 0xa56   : > { %v6254_v38 = vpack.c.bf16 %v6224_v4, %v6222_v53  ;;  %v19510_v1 = vadd.f32 %v5973_v9, %v19222_v62  ;;  %13312 = vmatmul.msk.bf16.gmra.mxu2 %vm4739_vm13, %v13289_v50  ;;  %v6187_v10 = vpop.f32.mrf.mxu2  ;;  %v15281_v9 = vld [vmem:[%s21447_s4 + $0x354] sm:$0xf]  ;;  %v15278_v50 = vld [vmem:[%s21447_s4 + $0x334] sm:$0xf0] }
 0xa57   : > { %v13285_v29 = vor.u32 %v15278_v50, %v13284_v32 }
 0xa58   : > { %13210 = vmatmul.msk.bf16.gmra.mxu0 %vm5143_vm14, %v6254_v38  ;;  %6518 = vmatmul.bf16.gmra.mxu1 %v13261_v5  ;;  %v13302_v38 = vld [vmem:[%s21447_s4 + $0x358] sm:$0xf0] }
 0xa59   : > { %v13305_v42 = vor.u32 %v15281_v9, %v13302_v38 }
 0xa5c   : > { %v6226_v58 = vpop.f32.mrf.mxu3 }
 0xa5d   : > { %v5975_v2 = vpop.f32.mrf.mxu1  ;;  %v6227_v11 = vadd.f32 %v6226_v58, %v19451_v51 }
 0xa5e   : > { %v19521_v62 = vadd.f32 %v5975_v2, %v19237_v63  ;;  %v6189_v3 = vpop.f32.mrf.mxu2 }
 0xa64   : > { %v6228_v43 = vpop.f32.mrf.mxu3 }
 0xa65   : > { %v6229_v45 = vadd.f32 %v6228_v43, %v6174_v30  ;;  %v5978_v24 = vpop.f32.mrf.mxu1 }
 0xa66   : > { %v19531_v20 = vadd.f32 %v5978_v24, %v19249_v25  ;;  %13313 = vmatmul.msk.bf16.gmra.mxu2 %vm4739_vm13, %v13297_v44  ;;  %v6192_v13 = vpop.f32.mrf.mxu2 }
 0xa67   : > { %v6255_v63 = vpack.c.bf16 %v6229_v45, %v6227_v11  ;;  %v5305_v45 = vadd.f32 %v19224_v36, %v19067_v49 }
 0xa68   : > { %6523 = vmatmul.bf16.gmra.mxu1 %v13269_v61 }
 0xa69   : > { %13211 = vmatmul.msk.bf16.gmra.mxu0 %vm5143_vm14, %v6255_v63  ;;  %v5661_v24 = vadd.f32 %v19312_v28, %v5305_v45 }
 0xa6c   : > { %v6231_v51 = vpop.f32.mrf.mxu3 }
 0xa6d   : > { %v5980_v30 = vpop.f32.mrf.mxu1  ;;  %v6232_v34 = vadd.f32 %v6231_v51, %v19477_v33 }
 0xa6e   : > { %v19542_v25 = vadd.f32 %v5980_v30, %v19261_v26  ;;  %v6194_v5 = vpop.f32.mrf.mxu2 }
 0xa74   : > { %v6233_v37 = vpop.f32.mrf.mxu3 }
 0xa75   : > { %v6234_v12 = vadd.f32 %v6233_v37, %v6179_v35  ;;  %v5983_v53 = vpop.f32.mrf.mxu1  ;;  %v5310_v37 = vadd.f32 %v19251_v60, %v19089_v41 }
 0xa76   : > { %v19552_v4 = vadd.f32 %v5983_v53, %v19270_v46  ;;  %13314 = vmatmul.msk.bf16.gmra.mxu2 %vm4739_vm13, %v13305_v42  ;;  %v6558_v58 = vpop.f32.mrf.mxu2 }
 0xa77   : > { %v6256_v26 = vpack.c.bf16 %v6234_v12, %v6232_v34 }
 0xa78   : > { %6528 = vmatmul.bf16.gmra.mxu1 %v13277_v56  ;;  %v5663_v56 = vadd.f32 %v19373_v16, %v5310_v37 }
 0xa79   : > { %13212 = vmatmul.msk.bf16.gmra.mxu0 %vm5143_vm14, %v6256_v26 }
 0xa7c   : > { %v6236_v33 = vpop.f32.mrf.mxu3 }
 0xa7d   : > { %v5985_v35 = vpop.f32.mrf.mxu1  ;;  %v6237_v47 = vadd.f32 %v6236_v33, %v19500_v7  ;;  %v13292_v7 = vld [vmem:[%s21447_s4 + $0x340] sm:$0xf] }
 0xa7e   : > { %v19563_v46 = vadd.f32 %v5985_v35, %v19284_v15  ;;  %v6560_v0 = vpop.f32.mrf.mxu2 }
 0xa84   : > { %v6238_v2 = vpop.f32.mrf.mxu3 }
 0xa85   : > { %v6239_v43 = vadd.f32 %v6238_v2, %v6184_v40  ;;  %v5988_v61 = vpop.f32.mrf.mxu1 }
 0xa86   : > { %v19573_v11 = vadd.f32 %v5988_v61, %v19298_v39  ;;  %v15280_v39 = vld [vmem:[%s21447_s4 + $0x344] sm:$0xf0]  ;;  %v6563_v28 = vpop.f32.mrf.mxu2 }
 0xa87   : > { %v6257_v15 = vpack.c.bf16 %v6239_v43, %v6237_v47  ;;  %v13293_v51 = vor.u32 %v15280_v39, %v13292_v7 }
 0xa88   : > { %6533 = vmatmul.bf16.gmra.mxu1 %v13285_v29 }
 0xa89   : > { %13213 = vmatmul.msk.bf16.gmra.mxu0 %vm5143_vm14, %v6257_v15 }
 0xa8c   : > { %v6241_v63 = vpop.f32.mrf.mxu3 }
 0xa8d   : > { %v5990_v59 = vpop.f32.mrf.mxu1  ;;  %v6242_v30 = vadd.f32 %v6241_v63, %v6187_v10 }
 0xa8e   : > { %v19579_v44 = vadd.f32 %v5990_v59, %v5661_v24  ;;  %v6565_v10 = vpop.f32.mrf.mxu2 }
 0xa94   : > { %v6243_v40 = vpop.f32.mrf.mxu3 }
 0xa95   : > { %v6244_v18 = vadd.f32 %v6243_v40, %v6189_v3  ;;  %v5993_v49 = vpop.f32.mrf.mxu1  ;;  %v15282_v3 = vld [vmem:[%s21447_s4 + $0x354] sm:$0xf0] }
 0xa96   : > { %v19588_v36 = vadd.f32 %v5993_v49, %v19327_v6  ;;  %v13300_v6 = vld [vmem:[%s21447_s4 + $0x350] sm:$0xf]  ;;  %v6568_v35 = vpop.f32.mrf.mxu2 }
 0xa97   : > { %v6258_v19 = vpack.c.bf16 %v6244_v18, %v6242_v30  ;;  %v13301_v9 = vor.u32 %v15282_v3, %v13300_v6  ;;  %v13366_v3 = vld [vmem:[%s21447_s4 + $0x380] sm:$0xf] }
 0xa98   : > { %6538 = vmatmul.bf16.gmra.mxu1 %v13293_v51 }
 0xa99   : > { %13214 = vmatmul.msk.bf16.gmra.mxu0 %vm5143_vm14, %v6258_v19 }
 0xa9c   : > { %v6246_v34 = vpop.f32.mrf.mxu3 }
 0xa9d   : > { %v5995_v12 = vpop.f32.mrf.mxu1  ;;  %v6247_v38 = vadd.f32 %v6246_v34, %v6192_v13  ;;  %v15284_v13 = vld [vmem:[%s21447_s4 + $0x364] sm:$0xf] }
 0xa9e   : > { %v19594_v53 = vadd.f32 %v5995_v12, %v5663_v56  ;;  %v6570_v61 = vpop.f32.mrf.mxu2 }
 0xaa4   : > { %v6248_v26 = vpop.f32.mrf.mxu3 }
 0xaa5   : > { %v6249_v42 = vadd.f32 %v6248_v26, %v6194_v5  ;;  %v6305_v41 = vpop.f32.mrf.mxu0  ;;  %v6504_v60 = vpop.f32.mrf.mxu1  ;;  %v13350_v5 = vld [vmem:[%s21447_s4 + $0x360] sm:$0xf] }
 0xaa6   : > { %v19603_v16 = vadd.f32 %v6305_v41, %v19413_v52  ;;  %v6559_v2 = vadd.f32 %v6558_v58, %v6504_v60  ;;  %v13352_v52 = vld [vmem:[%s21447_s4 + $0x368] sm:$0xf0] }
 0xaa7   : > { %v6259_v33 = vpack.c.bf16 %v6249_v42, %v6247_v38  ;;  %v13355_v58 = vor.u32 %v15284_v13, %v13352_v52  ;;  %v15290_v13 = vld [vmem:[%s21447_s4 + $0x394] sm:$0xf]  ;;  %v13374_v52 = vld [vmem:[%s21447_s4 + $0x390] sm:$0xf] }
 0xaa8   : > { %6543 = vmatmul.bf16.gmra.mxu1 %v13301_v9 }
 0xaa9   : > { %13215 = vmatmul.msk.bf16.gmra.mxu0 %vm5143_vm14, %v6259_v33  ;;  %v6573_v40 = vpop.f32.mrf.mxu2 }
 0xaad   : > { %v6307_v32 = vpop.f32.mrf.mxu0  ;;  %v6506_v50 = vpop.f32.mrf.mxu1 }
 0xaae   : > { %v19607_v29 = vadd.f32 %v6307_v32, %v19425_v31  ;;  %v6561_v47 = vadd.f32 %v6560_v0, %v6506_v50  ;;  %v15285_v31 = vld [vmem:[%s21447_s4 + $0x364] sm:$0xf0] }
 0xaaf   : > { %v13351_v24 = vor.u32 %v15285_v31, %v13350_v5 }
 0xab0   : > { %v6603_v43 = vpack.c.bf16 %v6561_v47, %v6559_v2 }
 0xab1   : > { %v6575_v19 = vpop.f32.mrf.mxu2 }
 0xab2   : > { %13321 = vmatmul.msk.bf16.vlgmr.msrb.gmra.mxu3 %vm5143_vm14, %v6603_v43 }
 0xab3   : > { %7608 = vmatpush.bf16.msrb.mxu3 %v18517_v57 }
 0xab5   : > { %v6310_v15 = vpop.f32.mrf.mxu0  ;;  %v6509_v45 = vpop.f32.mrf.mxu1 }
 0xab6   : > { %v19624_v63 = vadd.f32 %v6310_v15, %v19436_v54  ;;  %v6564_v7 = vadd.f32 %v6563_v28, %v6509_v45  ;;  %v13360_v54 = vld [vmem:[%s21447_s4 + $0x378] sm:$0xf0] }
 0xab7   : > { %7609 = vmatpush.bf16.msrb.mxu3 %v18507_v8  ;;  %v15286_v8 = vld [vmem:[%s21447_s4 + $0x374] sm:$0xf] }
 0xab8   : > { %13420 = vmatmul.msk.bf16.vlgmr.msrb.gmra.mxu1 %vm4739_vm13, %v13355_v58 }
 0xab9   : > { %6855 = vmatmul.bf16.vlgmr.msrb.gmra.mxu0 %v13351_v24  ;;  %v6578_v26 = vpop.f32.mrf.mxu2 }
 0xabb   : > { %7610 = vmatpush.bf16.msrb.mxu3 %v18484_v48  ;;  %v13358_v48 = vld [vmem:[%s21447_s4 + $0x370] sm:$0xf] }
 0xabd   : > { %v6312_v0 = vpop.f32.mrf.mxu0  ;;  %v6511_v59 = vpop.f32.mrf.mxu1 }
 0xabe   : > { %v19630_v57 = vadd.f32 %v6312_v0, %v19449_v14  ;;  %v6566_v39 = vadd.f32 %v6565_v10, %v6511_v59  ;;  %v15287_v14 = vld [vmem:[%s21447_s4 + $0x374] sm:$0xf0] }
 0xabf   : > { %7611 = vmatpush.bf16.msrb.mxu3 %v18460_v23  ;;  %v13363_v23 = vor.u32 %v15286_v8, %v13360_v54  ;;  %v13359_v49 = vor.u32 %v15287_v14, %v13358_v48  ;;  %v13382_v54 = vld [vmem:[%s21447_s4 + $0x3a0] sm:$0xf] }
 0xac0   : > { %v6604_v51 = vpack.c.bf16 %v6566_v39, %v6564_v7 }
 0xac1   : > { %v6580_v33 = vpop.f32.mrf.mxu2 }
 0xac2   : > { %13322 = vmatmul.msk.bf16.gmra.mxu3 %vm5143_vm14, %v6604_v51  ;;  %v15292_v51 = vld [vmem:[%s21447_s4 + $0x3a4] sm:$0xf] }
 0xac3   : > { %7612 = vmatpush.bf16.msrb.mxu3 %v18431_v22  ;;  %v15288_v22 = vld [vmem:[%s21447_s4 + $0x384] sm:$0xf] }
 0xac5   : > { %v6315_v30 = vpop.f32.mrf.mxu0  ;;  %v6514_v18 = vpop.f32.mrf.mxu1 }
 0xac6   : > { %v19648_v28 = vadd.f32 %v6315_v30, %v19463_v17  ;;  %v6569_v34 = vadd.f32 %v6568_v35, %v6514_v18  ;;  %v13368_v17 = vld [vmem:[%s21447_s4 + $0x388] sm:$0xf0] }
 0xac7   : > { %v13371_v9 = vor.u32 %v15288_v22, %v13368_v17  ;;  %v15294_v22 = vld [vmem:[%s21447_s4 + $0x3b4] sm:$0xf]  ;;  %v13390_v17 = vld [vmem:[%s21447_s4 + $0x3b0] sm:$0xf] }
 0xac8   : > { %13421 = vmatmul.msk.bf16.gmra.mxu1 %vm4739_vm13, %v13363_v23 }
 0xac9   : > { %6860 = vmatmul.bf16.gmra.mxu0 %v13359_v49  ;;  %v6583_v45 = vpop.f32.mrf.mxu2 }
 0xacd   : > { %v6317_v37 = vpop.f32.mrf.mxu0  ;;  %v6516_v56 = vpop.f32.mrf.mxu1 }
 0xace   : > { %v19652_v12 = vadd.f32 %v6317_v37, %v19475_v21  ;;  %v6571_v10 = vadd.f32 %v6570_v61, %v6516_v56  ;;  %v15289_v21 = vld [vmem:[%s21447_s4 + $0x384] sm:$0xf0] }
 0xacf   : > { %v13367_v41 = vor.u32 %v15289_v21, %v13366_v3 }
 0xad0   : > { %v6605_v6 = vpack.c.bf16 %v6571_v10, %v6569_v34 }
 0xad1   : > { %v6585_v8 = vpop.f32.mrf.mxu2 }
 0xad2   : > { %13323 = vmatmul.msk.bf16.gmra.mxu3 %vm5143_vm14, %v6605_v6 }
 0xad5   : > { %v6320_v38 = vpop.f32.mrf.mxu0  ;;  %v6519_v42 = vpop.f32.mrf.mxu1 }
 0xad6   : > { %v19668_v60 = vadd.f32 %v6320_v38, %v19487_v27  ;;  %v6574_v50 = vadd.f32 %v6573_v40, %v6519_v42  ;;  %v13376_v27 = vld [vmem:[%s21447_s4 + $0x398] sm:$0xf0] }
 0xad7   : > { %v13379_v5 = vor.u32 %v15290_v13, %v13376_v27  ;;  %v15296_v13 = vld [vmem:[%s21447_s4 + $0x3c4] sm:$0xf]  ;;  %v13398_v27 = vld [vmem:[%s21447_s4 + $0x3c0] sm:$0xf] }
 0xad8   : > { %13422 = vmatmul.msk.bf16.gmra.mxu1 %vm4739_vm13, %v13371_v9 }
 0xad9   : > { %6865 = vmatmul.bf16.gmra.mxu0 %v13367_v41  ;;  %v6588_v49 = vpop.f32.mrf.mxu2 }
 0xadd   : > { %v6322_v35 = vpop.f32.mrf.mxu0  ;;  %v6521_v32 = vpop.f32.mrf.mxu1 }
 0xade   : > { %v19672_v2 = vadd.f32 %v6322_v35, %v19498_v55  ;;  %v6576_v47 = vadd.f32 %v6575_v19, %v6521_v32  ;;  %v15291_v55 = vld [vmem:[%s21447_s4 + $0x394] sm:$0xf0] }
 0xadf   : > { %v13375_v58 = vor.u32 %v15291_v55, %v13374_v52 }
 0xae0   : > { %v6606_v43 = vpack.c.bf16 %v6576_v47, %v6574_v50 }
 0xae1   : > { %v6590_v9 = vpop.f32.mrf.mxu2 }
 0xae2   : > { %13324 = vmatmul.msk.bf16.gmra.mxu3 %vm5143_vm14, %v6606_v43 }
 0xae5   : > { %v6524_v31 = vpop.f32.mrf.mxu1 }
 0xae6   : > { %v6325_v61 = vpop.f32.mrf.mxu0  ;;  %v6579_v0 = vadd.f32 %v6578_v26, %v6524_v31 }
 0xae7   : > { %v19688_v15 = vadd.f32 %v6325_v61, %v19510_v1  ;;  %v13384_v1 = vld [vmem:[%s21447_s4 + $0x3a8] sm:$0xf0] }
 0xae8   : > { %13423 = vmatmul.msk.bf16.gmra.mxu1 %vm4739_vm13, %v13379_v5  ;;  %v13387_v48 = vor.u32 %v15292_v51, %v13384_v1  ;;  %v15298_v51 = vld [vmem:[%s21447_s4 + $0x3d4] sm:$0xf]  ;;  %v13406_v1 = vld [vmem:[%s21447_s4 + $0x3d0] sm:$0xf] }
 0xae9   : > { %6870 = vmatmul.bf16.gmra.mxu0 %v13375_v58  ;;  %v6593_v47 = vpop.f32.mrf.mxu2 }
 0xaed   : > { %v6526_v24 = vpop.f32.mrf.mxu1 }
 0xaee   : > { %v6327_v59 = vpop.f32.mrf.mxu0  ;;  %v6581_v7 = vadd.f32 %v6580_v33, %v6526_v24 }
 0xaef   : > { %v19692_v39 = vadd.f32 %v6327_v59, %v19521_v62  ;;  %v15293_v62 = vld [vmem:[%s21447_s4 + $0x3a4] sm:$0xf0] }
 0xaf0   : > { %v6607_v40 = vpack.c.bf16 %v6581_v7, %v6579_v0  ;;  %v13383_v23 = vor.u32 %v15293_v62, %v13382_v54 }
 0xaf1   : > { %v6595_v61 = vpop.f32.mrf.mxu2 }
 0xaf2   : > { %13325 = vmatmul.msk.bf16.gmra.mxu3 %vm5143_vm14, %v6607_v40 }
 0xaf5   : > { %v6529_v14 = vpop.f32.mrf.mxu1 }
 0xaf6   : > { %v6330_v30 = vpop.f32.mrf.mxu0  ;;  %v6584_v37 = vadd.f32 %v6583_v45, %v6529_v14 }
 0xaf7   : > { %v19708_v18 = vadd.f32 %v6330_v30, %v19531_v20  ;;  %v13392_v20 = vld [vmem:[%s21447_s4 + $0x3b8] sm:$0xf0] }
 0xaf8   : > { %13424 = vmatmul.msk.bf16.gmra.mxu1 %vm4739_vm13, %v13387_v48  ;;  %v13395_v3 = vor.u32 %v15294_v22, %v13392_v20  ;;  %v15300_v22 = vld [vmem:[%s21447_s4 + $0x3e4] sm:$0xf]  ;;  %v13414_v20 = vld [vmem:[%s21447_s4 + $0x3e0] sm:$0xf] }
 0xaf9   : > { %6875 = vmatmul.bf16.gmra.mxu0 %v13383_v23 }
 0xafd   : > { %v6531_v19 = vpop.f32.mrf.mxu1 }
 0xafe   : > { %v6332_v56 = vpop.f32.mrf.mxu0  ;;  %v6586_v34 = vadd.f32 %v6585_v8, %v6531_v19  ;;  %v6598_v8 = vpop.f32.mrf.mxu2 }
 0xaff   : > { %v19712_v10 = vadd.f32 %v6332_v56, %v19542_v25  ;;  %v15295_v25 = vld [vmem:[%s21447_s4 + $0x3b4] sm:$0xf0] }
 0xb00   : > { %v6608_v6 = vpack.c.bf16 %v6586_v34, %v6584_v37  ;;  %v13391_v26 = vor.u32 %v15295_v25, %v13390_v17 }
 0xb02   : > { %13326 = vmatmul.msk.bf16.gmra.mxu3 %vm5143_vm14, %v6608_v6 }
 0xb05   : > { %v6534_v21 = vpop.f32.mrf.mxu1 }
 0xb06   : > { %v6335_v38 = vpop.f32.mrf.mxu0  ;;  %v6589_v33 = vadd.f32 %v6588_v49, %v6534_v21  ;;  %v6600_v49 = vpop.f32.mrf.mxu2 }
 0xb07   : > { %v19728_v42 = vadd.f32 %v6335_v38, %v19552_v4  ;;  %v13400_v4 = vld [vmem:[%s21447_s4 + $0x3c8] sm:$0xf0]  ;;  %v13464_v38 = vld [vmem:[%s21447_s4 + $0x3f0] sm:$0xf] }
 0xb08   : > { %13425 = vmatmul.msk.bf16.gmra.mxu1 %vm4739_vm13, %v13395_v3  ;;  %v13403_v52 = vor.u32 %v15296_v13, %v13400_v4 }
 0xb09   : > { %6880 = vmatmul.bf16.gmra.mxu0 %v13391_v26 }
 0xb0d   : > { %v6536_v41 = vpop.f32.mrf.mxu1 }
 0xb0e   : > { %v6337_v35 = vpop.f32.mrf.mxu0  ;;  %v6591_v32 = vadd.f32 %v6590_v9, %v6536_v41  ;;  %v15304_v41 = vld [vmem:[%s21447_s4 + $0x3f4] sm:$0xf0] }
 0xb0f   : > { %v19732_v50 = vadd.f32 %v6337_v35, %v19563_v46  ;;  %v15297_v46 = vld [vmem:[%s21447_s4 + $0x3c4] sm:$0xf0] }
 0xb10   : > { %v6609_v43 = vpack.c.bf16 %v6591_v32, %v6589_v33  ;;  %v13399_v5 = vor.u32 %v15297_v46, %v13398_v27  ;;  %v15303_v27 = vld [vmem:[%s21447_s4 + $0x3f4] sm:$0xf]  ;;  %v13466_v46 = vld [vmem:[%s21447_s4 + $0x3f8] sm:$0xf0] }
 0xb12   : > { %13327 = vmatmul.msk.bf16.gmra.mxu3 %vm5143_vm14, %v6609_v43 }
 0xb15   : > { %v6539_v55 = vpop.f32.mrf.mxu1 }
 0xb16   : > { %v6340_v31 = vpop.f32.mrf.mxu0  ;;  %v6594_v24 = vadd.f32 %v6593_v47, %v6539_v55 }
 0xb17   : > { %v19748_v58 = vadd.f32 %v6340_v31, %v19573_v11  ;;  %v13408_v11 = vld [vmem:[%s21447_s4 + $0x3d8] sm:$0xf0] }
 0xb18   : > { %13426 = vmatmul.msk.bf16.gmra.mxu1 %vm4739_vm13, %v13403_v52  ;;  %v13411_v54 = vor.u32 %v15298_v51, %v13408_v11 }
 0xb19   : > { %6885 = vmatmul.bf16.gmra.mxu0 %v13399_v5 }
 0xb1d   : > { %v6541_v45 = vpop.f32.mrf.mxu1 }
 0xb1e   : > { %v6342_v0 = vpop.f32.mrf.mxu0  ;;  %v6596_v59 = vadd.f32 %v6595_v61, %v6541_v45  ;;  %v13472_v61 = vld [vmem:[%s21447_s4 + $0x400] sm:$0xf]  ;;  %v15306_v45 = vld [vmem:[%s21447_s4 + $0x404] sm:$0xf0] }
 0xb1f   : > { %v19752_v7 = vadd.f32 %v6342_v0, %v19579_v44  ;;  %v15299_v44 = vld [vmem:[%s21447_s4 + $0x3d4] sm:$0xf0]  ;;  %v13473_v51 = vor.u32 %v15306_v45, %v13472_v61  ;;  %v13496_v61 = vld [vmem:[%s21447_s4 + $0x430] sm:$0xf] }
 0xb20   : > { %v6610_v40 = vpack.c.bf16 %v6596_v59, %v6594_v24  ;;  %v13407_v48 = vor.u32 %v15299_v44, %v13406_v1  ;;  %v15305_v44 = vld [vmem:[%s21447_s4 + $0x404] sm:$0xf]  ;;  %v15312_v45 = vld [vmem:[%s21447_s4 + $0x434] sm:$0xf0] }
 0xb22   : > { %13328 = vmatmul.msk.bf16.gmra.mxu3 %vm5143_vm14, %v6610_v40 }
 0xb25   : > { %v6544_v62 = vpop.f32.mrf.mxu1 }
 0xb26   : > { %v6345_v14 = vpop.f32.mrf.mxu0  ;;  %v6599_v19 = vadd.f32 %v6598_v8, %v6544_v62  ;;  %v13474_v8 = vld [vmem:[%s21447_s4 + $0x408] sm:$0xf0] }
 0xb27   : > { %v19768_v23 = vadd.f32 %v6345_v14, %v19588_v36  ;;  %v13416_v36 = vld [vmem:[%s21447_s4 + $0x3e8] sm:$0xf0] }
 0xb28   : > { %13427 = vmatmul.msk.bf16.gmra.mxu1 %vm4739_vm13, %v13411_v54  ;;  %v13419_v17 = vor.u32 %v15300_v22, %v13416_v36 }
 0xb29   : > { %6890 = vmatmul.bf16.gmra.mxu0 %v13407_v48 }
 0xb2d   : > { %v6546_v30 = vpop.f32.mrf.mxu1 }
 0xb2e   : > { %v6347_v37 = vpop.f32.mrf.mxu0  ;;  %v6601_v56 = vadd.f32 %v6600_v49, %v6546_v30  ;;  %v13480_v30 = vld [vmem:[%s21447_s4 + $0x410] sm:$0xf]  ;;  %v15308_v49 = vld [vmem:[%s21447_s4 + $0x414] sm:$0xf0] }
 0xb2f   : > { %v19772_v34 = vadd.f32 %v6347_v37, %v19594_v53  ;;  %v15301_v53 = vld [vmem:[%s21447_s4 + $0x3e4] sm:$0xf0]  ;;  %v13481_v22 = vor.u32 %v15308_v49, %v13480_v30  ;;  %v13504_v30 = vld [vmem:[%s21447_s4 + $0x440] sm:$0xf] }
 0xb30   : > { %v6611_v6 = vpack.c.bf16 %v6601_v56, %v6599_v19  ;;  %v13415_v21 = vor.u32 %v15301_v53, %v13414_v20  ;;  %v15307_v53 = vld [vmem:[%s21447_s4 + $0x414] sm:$0xf]  ;;  %v15314_v49 = vld [vmem:[%s21447_s4 + $0x444] sm:$0xf0] }
 0xb32   : > { %13329 = vmatmul.msk.bf16.gmra.mxu3 %vm5143_vm14, %v6611_v6 }
 0xb35   : > { %v6657_v25 = vpop.f32.mrf.mxu3  ;;  %v6910_v3 = vpop.f32.mrf.mxu1 }
 0xb36   : > { %v19788_v26 = vadd.f32 %v6657_v25, %v19603_v16  ;;  %v6856_v9 = vpop.f32.mrf.mxu0  ;;  %v13465_v16 = vor.u32 %v15304_v41, %v13464_v38  ;;  %v13488_v38 = vld [vmem:[%s21447_s4 + $0x420] sm:$0xf]  ;;  %v15310_v41 = vld [vmem:[%s21447_s4 + $0x424] sm:$0xf0] }
 0xb37   : > { %v6911_v43 = vadd.f32 %v6910_v3, %v6856_v9 }
 0xb38   : > { %13428 = vmatmul.msk.bf16.gmra.mxu1 %vm4739_vm13, %v13419_v17  ;;  %v13482_v17 = vld [vmem:[%s21447_s4 + $0x418] sm:$0xf0] }
 0xb39   : > { %6895 = vmatmul.bf16.gmra.mxu0 %v13415_v21 }
 0xb3d   : > { %v6659_v33 = vpop.f32.mrf.mxu3  ;;  %v6912_v35 = vpop.f32.mrf.mxu1 }
 0xb3e   : > { %v19798_v32 = vadd.f32 %v6659_v33, %v19607_v29  ;;  %v6858_v47 = vpop.f32.mrf.mxu0  ;;  %v13469_v29 = vor.u32 %v15303_v27, %v13466_v46  ;;  %v15309_v27 = vld [vmem:[%s21447_s4 + $0x424] sm:$0xf]  ;;  %v13490_v46 = vld [vmem:[%s21447_s4 + $0x428] sm:$0xf0] }
 0xb3f   : > { %v6913_v13 = vadd.f32 %v6912_v35, %v6858_v47 }
 0xb41   : > { %v6955_v4 = vpack.c.bf16 %v6913_v13, %v6911_v43  ;;  %v13489_v43 = vor.u32 %v15310_v41, %v13488_v38  ;;  %v13512_v38 = vld [vmem:[%s21447_s4 + $0x450] sm:$0xf]  ;;  %v15316_v41 = vld [vmem:[%s21447_s4 + $0x454] sm:$0xf0] }
 0xb42   : > { %7207 = vmatmul.bf16.vlgmr.msra.gmra.mxu3 %v13465_v16 }
 0xb43   : > { %13435 = vmatmul.msk.bf16.vlgmr.msrb.gmra.mxu2 %vm5143_vm14, %v6955_v4 }
 0xb45   : > { %v6662_v52 = vpop.f32.mrf.mxu3  ;;  %v6915_v55 = vpop.f32.mrf.mxu1 }
 0xb46   : > { %v19808_v5 = vadd.f32 %v6662_v52, %v19624_v63  ;;  %v6861_v31 = vpop.f32.mrf.mxu0 }
 0xb47   : > { %v6916_v63 = vadd.f32 %v6915_v55, %v6861_v31 }
 0xb49   : > { %13534 = vmatmul.msk.bf16.vlgmr.msra.gmra.mxu0 %vm4739_vm13, %v13469_v29 }
 0xb4d   : > { %v6664_v24 = vpop.f32.mrf.mxu3  ;;  %v6917_v0 = vpop.f32.mrf.mxu1 }
 0xb4e   : > { %v19818_v59 = vadd.f32 %v6664_v24, %v19630_v57  ;;  %v6863_v40 = vpop.f32.mrf.mxu0  ;;  %v13477_v57 = vor.u32 %v15305_v44, %v13474_v8  ;;  %v15311_v44 = vld [vmem:[%s21447_s4 + $0x434] sm:$0xf]  ;;  %v13498_v8 = vld [vmem:[%s21447_s4 + $0x438] sm:$0xf0] }
 0xb4f   : > { %v6918_v11 = vadd.f32 %v6917_v0, %v6863_v40 }
 0xb51   : > { %v6956_v1 = vpack.c.bf16 %v6918_v11, %v6916_v63  ;;  %v13497_v63 = vor.u32 %v15312_v45, %v13496_v61  ;;  %v13520_v61 = vld [vmem:[%s21447_s4 + $0x460] sm:$0xf]  ;;  %v15318_v45 = vld [vmem:[%s21447_s4 + $0x464] sm:$0xf0] }
 0xb52   : > { %7212 = vmatmul.bf16.gmra.mxu3 %v13473_v51 }
 0xb53   : > { %13436 = vmatmul.msk.bf16.gmra.mxu2 %vm5143_vm14, %v6956_v1 }
 0xb55   : > { %v6667_v54 = vpop.f32.mrf.mxu3  ;;  %v6920_v62 = vpop.f32.mrf.mxu1 }
 0xb56   : > { %v19828_v48 = vadd.f32 %v6667_v54, %v19648_v28  ;;  %v6866_v14 = vpop.f32.mrf.mxu0 }
 0xb57   : > { %v6921_v28 = vadd.f32 %v6920_v62, %v6866_v14 }
 0xb59   : > { %13535 = vmatmul.msk.bf16.gmra.mxu0 %vm4739_vm13, %v13477_v57 }
 0xb5d   : > { %v6669_v19 = vpop.f32.mrf.mxu3  ;;  %v6922_v37 = vpop.f32.mrf.mxu1 }
 0xb5e   : > { %v19838_v56 = vadd.f32 %v6669_v19, %v19652_v12  ;;  %v6868_v6 = vpop.f32.mrf.mxu0  ;;  %v13485_v12 = vor.u32 %v15307_v53, %v13482_v17  ;;  %v15313_v53 = vld [vmem:[%s21447_s4 + $0x444] sm:$0xf]  ;;  %v13506_v17 = vld [vmem:[%s21447_s4 + $0x448] sm:$0xf0] }
 0xb5f   : > { %v6923_v36 = vadd.f32 %v6922_v37, %v6868_v6 }
 0xb61   : > { %v6957_v20 = vpack.c.bf16 %v6923_v36, %v6921_v28  ;;  %v13505_v28 = vor.u32 %v15314_v49, %v13504_v30  ;;  %v13528_v49 = vld [vmem:[%s21447_s4 + $0x470] sm:$0xf] }
 0xb62   : > { %7217 = vmatmul.bf16.gmra.mxu3 %v13481_v22 }
 0xb63   : > { %13437 = vmatmul.msk.bf16.gmra.mxu2 %vm5143_vm14, %v6957_v20 }
 0xb65   : > { %v6672_v25 = vpop.f32.mrf.mxu3  ;;  %v6925_v3 = vpop.f32.mrf.mxu1 }
 0xb66   : > { %v19848_v21 = vadd.f32 %v6672_v25, %v19668_v60  ;;  %v6871_v9 = vpop.f32.mrf.mxu0 }
 0xb67   : > { %v6926_v60 = vadd.f32 %v6925_v3, %v6871_v9 }
 0xb69   : > { %13536 = vmatmul.msk.bf16.gmra.mxu0 %vm4739_vm13, %v13485_v12 }
 0xb6d   : > { %v6674_v33 = vpop.f32.mrf.mxu3  ;;  %v6927_v35 = vpop.f32.mrf.mxu1 }
 0xb6e   : > { %v19858_v47 = vadd.f32 %v6674_v33, %v19672_v2  ;;  %v6873_v16 = vpop.f32.mrf.mxu0  ;;  %v13493_v2 = vor.u32 %v15309_v27, %v13490_v46  ;;  %v15315_v27 = vld [vmem:[%s21447_s4 + $0x454] sm:$0xf]  ;;  %v13514_v46 = vld [vmem:[%s21447_s4 + $0x458] sm:$0xf0] }
 0xb6f   : > { %v6928_v13 = vadd.f32 %v6927_v35, %v6873_v16 }
 0xb71   : > { %v6958_v4 = vpack.c.bf16 %v6928_v13, %v6926_v60  ;;  %v13513_v60 = vor.u32 %v15316_v41, %v13512_v38  ;;  %v15322_v41 = vld [vmem:[%s21447_s4 + $0x484] sm:$0xf] }
 0xb72   : > { %7222 = vmatmul.bf16.gmra.mxu3 %v13489_v43 }
 0xb73   : > { %13438 = vmatmul.msk.bf16.gmra.mxu2 %vm5143_vm14, %v6958_v4 }
 0xb75   : > { %v6677_v52 = vpop.f32.mrf.mxu3  ;;  %v6930_v55 = vpop.f32.mrf.mxu1 }
 0xb76   : > { %v19868_v29 = vadd.f32 %v6677_v52, %v19688_v15  ;;  %v6876_v31 = vpop.f32.mrf.mxu0 }
 0xb77   : > { %v6931_v15 = vadd.f32 %v6930_v55, %v6876_v31 }
 0xb79   : > { %13537 = vmatmul.msk.bf16.gmra.mxu0 %vm4739_vm13, %v13493_v2 }
 0xb7d   : > { %v6679_v24 = vpop.f32.mrf.mxu3  ;;  %v6932_v0 = vpop.f32.mrf.mxu1 }
 0xb7e   : > { %v19878_v40 = vadd.f32 %v6679_v24, %v19692_v39  ;;  %v6878_v51 = vpop.f32.mrf.mxu0  ;;  %v13501_v39 = vor.u32 %v15311_v44, %v13498_v8  ;;  %v15317_v8 = vld [vmem:[%s21447_s4 + $0x464] sm:$0xf] }
 0xb7f   : > { %v6933_v11 = vadd.f32 %v6932_v0, %v6878_v51 }
 0xb81   : > { %v6959_v1 = vpack.c.bf16 %v6933_v11, %v6931_v15  ;;  %v13521_v15 = vor.u32 %v15318_v45, %v13520_v61 }
 0xb82   : > { %7227 = vmatmul.bf16.gmra.mxu3 %v13497_v63 }
 0xb83   : > { %13439 = vmatmul.msk.bf16.gmra.mxu2 %vm5143_vm14, %v6959_v1  ;;  %v15321_v1 = vld [vmem:[%s21448_s5 + $0x38] sm:$0xff] }
 0xb84   : > { %7359 = vmatpush.bf16.msra.mxu1 %v15321_v1 }
 0xb85   : > { %v6682_v54 = vpop.f32.mrf.mxu3  ;;  %v6935_v62 = vpop.f32.mrf.mxu1 }
 0xb86   : > { %v19888_v57 = vadd.f32 %v6682_v54, %v19708_v18  ;;  %v6881_v14 = vpop.f32.mrf.mxu0 }
 0xb87   : > { %v6936_v18 = vadd.f32 %v6935_v62, %v6881_v14 }
 0xb89   : > { %13538 = vmatmul.msk.bf16.gmra.mxu0 %vm4739_vm13, %v13501_v39 }
 0xb8d   : > { %v6684_v19 = vpop.f32.mrf.mxu3  ;;  %v6937_v37 = vpop.f32.mrf.mxu1 }
 0xb8e   : > { %v19898_v6 = vadd.f32 %v6684_v19, %v19712_v10  ;;  %v6883_v22 = vpop.f32.mrf.mxu0  ;;  %v13509_v10 = vor.u32 %v15313_v53, %v13506_v17  ;;  %v15320_v19 = vld [vmem:[%s21447_s4 + $0x474] sm:$0xf0]  ;;  %v15319_v17 = vld [vmem:[%s21447_s4 + $0x474] sm:$0xf] }
 0xb8f   : > { %v6938_v36 = vadd.f32 %v6937_v37, %v6883_v22 }
 0xb91   : > { %v6960_v20 = vpack.c.bf16 %v6938_v36, %v6936_v18  ;;  %v13529_v36 = vor.u32 %v15320_v19, %v13528_v49  ;;  %v15326_v19 = vld [vmem:[%s21447_s4 + $0x4a4] sm:$0xf] }
 0xb92   : > { %7232 = vmatmul.bf16.gmra.mxu3 %v13505_v28 }
 0xb93   : > { %13440 = vmatmul.msk.bf16.gmra.mxu2 %vm5143_vm14, %v6960_v20 }
 0xb95   : > { %v6687_v25 = vpop.f32.mrf.mxu3  ;;  %v6940_v3 = vpop.f32.mrf.mxu1 }
 0xb96   : > { %v19908_v12 = vadd.f32 %v6687_v25, %v19728_v42  ;;  %v6886_v9 = vpop.f32.mrf.mxu0  ;;  %v13530_v25 = vld [vmem:[%s21447_s4 + $0x478] sm:$0xf0] }
 0xb97   : > { %v6941_v42 = vadd.f32 %v6940_v3, %v6886_v9 }
 0xb99   : > { %13539 = vmatmul.msk.bf16.gmra.mxu0 %vm4739_vm13, %v13509_v10  ;;  %v13533_v10 = vor.u32 %v15319_v17, %v13530_v25 }
 0xb9d   : > { %v6689_v33 = vpop.f32.mrf.mxu3  ;;  %v6942_v35 = vpop.f32.mrf.mxu1 }
 0xb9e   : > { %v19918_v16 = vadd.f32 %v6689_v33, %v19732_v50  ;;  %v6888_v43 = vpop.f32.mrf.mxu0  ;;  %v13517_v50 = vor.u32 %v15315_v27, %v13514_v46  ;;  %v13580_v33 = vld [vmem:[%s21447_s4 + $0x488] sm:$0xf0] }
 0xb9f   : > { %v6943_v13 = vadd.f32 %v6942_v35, %v6888_v43  ;;  %v13578_v35 = vld [vmem:[%s21447_s4 + $0x480] sm:$0xf]  ;;  %v15323_v43 = vld [vmem:[%s21447_s4 + $0x484] sm:$0xf0] }
 0xba1   : > { %v6961_v4 = vpack.c.bf16 %v6943_v13, %v6941_v42  ;;  %v13583_v13 = vor.u32 %v15322_v41, %v13580_v33  ;;  %v15328_v33 = vld [vmem:[%s21447_s4 + $0x4b4] sm:$0xf] }
 0xba2   : > { %7237 = vmatmul.bf16.gmra.mxu3 %v13513_v60 }
 0xba3   : > { %13441 = vmatmul.msk.bf16.gmra.mxu2 %vm5143_vm14, %v6961_v4 }
 0xba5   : > { %v6692_v52 = vpop.f32.mrf.mxu3  ;;  %v6945_v55 = vpop.f32.mrf.mxu1 }
 0xba6   : > { %v19928_v2 = vadd.f32 %v6692_v52, %v19748_v58  ;;  %v6891_v31 = vpop.f32.mrf.mxu0  ;;  %v13579_v52 = vor.u32 %v15323_v43, %v13578_v35  ;;  %v13602_v35 = vld [vmem:[%s21447_s4 + $0x4b0] sm:$0xf]  ;;  %v15329_v43 = vld [vmem:[%s21447_s4 + $0x4b4] sm:$0xf0] }
 0xba7   : > { %v6946_v58 = vadd.f32 %v6945_v55, %v6891_v31 }
 0xba9   : > { %13540 = vmatmul.msk.bf16.gmra.mxu0 %vm4739_vm13, %v13517_v50 }
 0xbad   : > { %v6694_v24 = vpop.f32.mrf.mxu3  ;;  %v6947_v0 = vpop.f32.mrf.mxu1 }
 0xbae   : > { %v19938_v51 = vadd.f32 %v6694_v24, %v19752_v7  ;;  %v6893_v63 = vpop.f32.mrf.mxu0  ;;  %v13522_v7 = vld [vmem:[%s21447_s4 + $0x468] sm:$0xf0]  ;;  %v15324_v24 = vld [vmem:[%s21447_s4 + $0x494] sm:$0xf] }
 0xbaf   : > { %v6948_v11 = vadd.f32 %v6947_v0, %v6893_v63  ;;  %v13525_v39 = vor.u32 %v15317_v8, %v13522_v7  ;;  %v13586_v0 = vld [vmem:[%s21447_s4 + $0x490] sm:$0xf]  ;;  %v15325_v63 = vld [vmem:[%s21447_s4 + $0x494] sm:$0xf0] }
 0xbb0   : > { %v13587_v7 = vor.u32 %v15325_v63, %v13586_v0  ;;  %v13610_v0 = vld [vmem:[%s21447_s4 + $0x4c0] sm:$0xf]  ;;  %v15331_v63 = vld [vmem:[%s21447_s4 + $0x4c4] sm:$0xf0] }
 0xbb1   : > { %v6962_v44 = vpack.c.bf16 %v6948_v11, %v6946_v58 }
 0xbb2   : > { %7242 = vmatmul.bf16.gmra.mxu3 %v13521_v15 }
 0xbb3   : > { %13442 = vmatmul.msk.bf16.gmra.mxu2 %vm5143_vm14, %v6962_v44 }
 0xbb5   : > { %v6697_v54 = vpop.f32.mrf.mxu3  ;;  %v6950_v62 = vpop.f32.mrf.mxu1 }
 0xbb6   : > { %v19951_v14 = vadd.f32 %v6697_v54, %v19768_v23  ;;  %v6896_v30 = vpop.f32.mrf.mxu0 }
 0xbb7   : > { %v6951_v23 = vadd.f32 %v6950_v62, %v6896_v30 }
 0xbb9   : > { %13541 = vmatmul.msk.bf16.gmra.mxu0 %vm4739_vm13, %v13525_v39 }
 0xbbd   : > { %v6699_v37 = vpop.f32.mrf.mxu3  ;;  %v6952_v22 = vpop.f32.mrf.mxu1 }
 0xbbe   : > { %v19961_v28 = vadd.f32 %v6699_v37, %v19772_v34  ;;  %v6898_v18 = vpop.f32.mrf.mxu0  ;;  %v13594_v37 = vld [vmem:[%s21447_s4 + $0x4a0] sm:$0xf] }
 0xbbf   : > { %v6953_v20 = vadd.f32 %v6952_v22, %v6898_v18  ;;  %v15327_v22 = vld [vmem:[%s21447_s4 + $0x4a4] sm:$0xf0] }
 0xbc0   : > { %v13595_v25 = vor.u32 %v15327_v22, %v13594_v37  ;;  %v13618_v37 = vld [vmem:[%s21447_s4 + $0x4d0] sm:$0xf]  ;;  %v15333_v22 = vld [vmem:[%s21447_s4 + $0x4d4] sm:$0xf0] }
 0xbc1   : > { %v6963_v53 = vpack.c.bf16 %v6953_v20, %v6951_v23 }
 0xbc2   : > { %7247 = vmatmul.bf16.gmra.mxu3 %v13529_v36 }
 0xbc3   : > { %13443 = vmatmul.msk.bf16.gmra.mxu2 %vm5143_vm14, %v6963_v53 }
 0xbc5   : > { %v7208_v3 = vpop.f32.mrf.mxu3 }
 0xbc6   : > { %v7009_v34 = vpop.f32.mrf.mxu2  ;;  %v7262_v9 = vpop.f32.mrf.mxu0 }
 0xbc7   : > { %v19971_v38 = vadd.f32 %v7009_v34, %v19788_v26  ;;  %v7263_v4 = vadd.f32 %v7262_v9, %v7208_v3 }
 0xbc9   : > { %13542 = vmatmul.msk.bf16.gmra.mxu0 %vm4739_vm13, %v13533_v10 }
 0xbcd   : > { %v7210_v26 = vpop.f32.mrf.mxu3 }
 0xbce   : > { %v7011_v60 = vpop.f32.mrf.mxu2  ;;  %v7264_v42 = vpop.f32.mrf.mxu0 }
 0xbcf   : > { %v19987_v27 = vadd.f32 %v7011_v60, %v19798_v32  ;;  %v7265_v46 = vadd.f32 %v7264_v42, %v7210_v26  ;;  %v13588_v32 = vld [vmem:[%s21447_s4 + $0x498] sm:$0xf0] }
 0xbd0   : > { %v13591_v11 = vor.u32 %v15324_v24, %v13588_v32  ;;  %v15330_v32 = vld [vmem:[%s21447_s4 + $0x4c4] sm:$0xf] }
 0xbd1   : > { %v7307_v55 = vpack.c.bf16 %v7265_v46, %v7263_v4 }
 0xbd2   : > { %13648 = vmatmul.msk.bf16.vlgmr.msrb.gmra.mxu3 %vm4739_vm13, %v13583_v13 }
 0xbd3   : > { %13549 = vmatmul.msk.bf16.vlgmr.msra.gmra.mxu1 %vm5143_vm14, %v7307_v55  ;;  %7559 = vmatmul.bf16.vlgmr.msra.gmra.mxu2 %v13579_v52  ;;  %v13603_v52 = vor.u32 %v15329_v43, %v13602_v35  ;;  %v13626_v35 = vld [vmem:[%s21447_s4 + $0x4e0] sm:$0xf]  ;;  %v15335_v43 = vld [vmem:[%s21447_s4 + $0x4e4] sm:$0xf0] }
 0xbd5   : > { %v7213_v50 = vpop.f32.mrf.mxu3 }
 0xbd6   : > { %v7014_v31 = vpop.f32.mrf.mxu2  ;;  %v7267_v61 = vpop.f32.mrf.mxu0 }
 0xbd7   : > { %v19992_v45 = vadd.f32 %v7014_v31, %v19808_v5  ;;  %v7268_v1 = vadd.f32 %v7267_v61, %v7213_v50 }
 0xbdd   : > { %v7215_v15 = vpop.f32.mrf.mxu3 }
 0xbde   : > { %v7016_v58 = vpop.f32.mrf.mxu2  ;;  %v7269_v5 = vpop.f32.mrf.mxu0 }
 0xbdf   : > { %v20007_v44 = vadd.f32 %v7016_v58, %v19818_v59  ;;  %v7270_v8 = vadd.f32 %v7269_v5, %v7215_v15  ;;  %v13596_v59 = vld [vmem:[%s21447_s4 + $0x4a8] sm:$0xf0] }
 0xbe0   : > { %v13599_v23 = vor.u32 %v15326_v19, %v13596_v59  ;;  %v15332_v59 = vld [vmem:[%s21447_s4 + $0x4d4] sm:$0xf] }
 0xbe1   : > { %v7308_v54 = vpack.c.bf16 %v7270_v8, %v7268_v1 }
 0xbe2   : > { %13649 = vmatmul.msk.bf16.gmra.mxu3 %vm4739_vm13, %v13591_v11 }
 0xbe3   : > { %13550 = vmatmul.msk.bf16.gmra.mxu1 %vm5143_vm14, %v7308_v54  ;;  %7564 = vmatmul.bf16.gmra.mxu2 %v13587_v7  ;;  %v13611_v7 = vor.u32 %v15331_v63, %v13610_v0  ;;  %v13634_v0 = vld [vmem:[%s21447_s4 + $0x4f0] sm:$0xf]  ;;  %v15337_v63 = vld [vmem:[%s21447_s4 + $0x4f4] sm:$0xf0] }
 0xbe5   : > { %v7218_v62 = vpop.f32.mrf.mxu3 }
 0xbe6   : > { %v7019_v39 = vpop.f32.mrf.mxu2  ;;  %v7272_v30 = vpop.f32.mrf.mxu0 }
 0xbe7   : > { %v20012_v49 = vadd.f32 %v7019_v39, %v19828_v48  ;;  %v7273_v20 = vadd.f32 %v7272_v30, %v7218_v62 }
 0xbed   : > { %v7220_v18 = vpop.f32.mrf.mxu3 }
 0xbee   : > { %v7021_v36 = vpop.f32.mrf.mxu2  ;;  %v7274_v48 = vpop.f32.mrf.mxu0 }
 0xbef   : > { %v20027_v53 = vadd.f32 %v7021_v36, %v19838_v56  ;;  %v7275_v17 = vadd.f32 %v7274_v48, %v7220_v18  ;;  %v13604_v56 = vld [vmem:[%s21447_s4 + $0x4b8] sm:$0xf0] }
 0xbf0   : > { %v13607_v42 = vor.u32 %v15328_v33, %v13604_v56  ;;  %v15334_v56 = vld [vmem:[%s21447_s4 + $0x4e4] sm:$0xf] }
 0xbf1   : > { %v7309_v3 = vpack.c.bf16 %v7275_v17, %v7273_v20 }
 0xbf2   : > { %13650 = vmatmul.msk.bf16.gmra.mxu3 %vm4739_vm13, %v13599_v23 }
 0xbf3   : > { %13551 = vmatmul.msk.bf16.gmra.mxu1 %vm5143_vm14, %v7309_v3  ;;  %7569 = vmatmul.bf16.gmra.mxu2 %v13595_v25  ;;  %v13619_v25 = vor.u32 %v15333_v22, %v13618_v37  ;;  %v13644_v37 = vld [vmem:[%s21447_s4 + $0x508] sm:$0xf0]  ;;  %v13642_v22 = vld [vmem:[%s21447_s4 + $0x500] sm:$0xf] }
 0xbf5   : > { %v7223_v10 = vpop.f32.mrf.mxu3 }
 0xbf6   : > { %v7024_v34 = vpop.f32.mrf.mxu2  ;;  %v7277_v9 = vpop.f32.mrf.mxu0 }
 0xbf7   : > { %v20032_v41 = vadd.f32 %v7024_v34, %v19848_v21  ;;  %v7278_v13 = vadd.f32 %v7277_v9, %v7223_v10 }
 0xbfd   : > { %v7225_v26 = vpop.f32.mrf.mxu3 }
 0xbfe   : > { %v7026_v60 = vpop.f32.mrf.mxu2  ;;  %v7279_v21 = vpop.f32.mrf.mxu0 }
 0xbff   : > { %v20047_v4 = vadd.f32 %v7026_v60, %v19858_v47  ;;  %v7280_v46 = vadd.f32 %v7279_v21, %v7225_v26  ;;  %v13612_v47 = vld [vmem:[%s21447_s4 + $0x4c8] sm:$0xf0] }
 0xc00   : > { %v13615_v5 = vor.u32 %v15330_v32, %v13612_v47  ;;  %v15336_v32 = vld [vmem:[%s21447_s4 + $0x4f4] sm:$0xf]  ;;  %v13636_v47 = vld [vmem:[%s21447_s4 + $0x4f8] sm:$0xf0] }
 0xc01   : > { %v7310_v55 = vpack.c.bf16 %v7280_v46, %v7278_v13  ;;  %v13627_v46 = vor.u32 %v15335_v43, %v13626_v35 }
 0xc02   : > { %13651 = vmatmul.msk.bf16.gmra.mxu3 %vm4739_vm13, %v13607_v42 }
 0xc03   : > { %13552 = vmatmul.msk.bf16.gmra.mxu1 %vm5143_vm14, %v7310_v55  ;;  %7574 = vmatmul.bf16.gmra.mxu2 %v13603_v52 }
 0xc05   : > { %v7228_v50 = vpop.f32.mrf.mxu3 }
 0xc06   : > { %v7029_v31 = vpop.f32.mrf.mxu2  ;;  %v7282_v61 = vpop.f32.mrf.mxu0 }
 0xc07   : > { %v20052_v24 = vadd.f32 %v7029_v31, %v19868_v29  ;;  %v7283_v11 = vadd.f32 %v7282_v61, %v7228_v50 }
 0xc0d   : > { %v7230_v15 = vpop.f32.mrf.mxu3 }
 0xc0e   : > { %v7031_v58 = vpop.f32.mrf.mxu2  ;;  %v7284_v29 = vpop.f32.mrf.mxu0 }
 0xc0f   : > { %v20067_v1 = vadd.f32 %v7031_v58, %v19878_v40  ;;  %v7285_v8 = vadd.f32 %v7284_v29, %v7230_v15  ;;  %v13620_v40 = vld [vmem:[%s21447_s4 + $0x4d8] sm:$0xf0]  ;;  %v13639_v29 = vor.u32 %v15336_v32, %v13636_v47 }
 0xc10   : > { %v13623_v48 = vor.u32 %v15332_v59, %v13620_v40  ;;  %v15338_v40 = vld [vmem:[%s21447_s4 + $0x504] sm:$0xf] }
 0xc11   : > { %v7311_v54 = vpack.c.bf16 %v7285_v8, %v7283_v11  ;;  %v13635_v8 = vor.u32 %v15337_v63, %v13634_v0 }
 0xc12   : > { %13652 = vmatmul.msk.bf16.gmra.mxu3 %vm4739_vm13, %v13615_v5 }
 0xc13   : > { %13553 = vmatmul.msk.bf16.gmra.mxu1 %vm5143_vm14, %v7311_v54  ;;  %7579 = vmatmul.bf16.gmra.mxu2 %v13611_v7  ;;  %v15340_v7 = vld [vmem:[%s21448_s5 + $0x40] sm:$0xff] }
 0xc14   : > { %7711 = vmatpush.bf16.msrb.mxu0 %v15340_v7 }
 0xc15   : > { %v7233_v62 = vpop.f32.mrf.mxu3 }
 0xc16   : > { %v7034_v39 = vpop.f32.mrf.mxu2  ;;  %v7287_v30 = vpop.f32.mrf.mxu0 }
 0xc17   : > { %v20072_v19 = vadd.f32 %v7034_v39, %v19888_v57  ;;  %v7288_v23 = vadd.f32 %v7287_v30, %v7233_v62 }
 0xc1d   : > { %v7235_v18 = vpop.f32.mrf.mxu3 }
 0xc1e   : > { %v7036_v36 = vpop.f32.mrf.mxu2  ;;  %v7289_v57 = vpop.f32.mrf.mxu0 }
 0xc1f   : > { %v20087_v20 = vadd.f32 %v7036_v36, %v19898_v6  ;;  %v7290_v17 = vadd.f32 %v7289_v57, %v7235_v18  ;;  %v13628_v6 = vld [vmem:[%s21447_s4 + $0x4e8] sm:$0xf0]  ;;  %v15339_v18 = vld [vmem:[%s21447_s4 + $0x504] sm:$0xf0] }
 0xc20   : > { %v13631_v21 = vor.u32 %v15334_v56, %v13628_v6 }
 0xc21   : > { %v7312_v3 = vpack.c.bf16 %v7290_v17, %v7288_v23 }
 0xc22   : > { %13653 = vmatmul.msk.bf16.gmra.mxu3 %vm4739_vm13, %v13623_v48  ;;  %v13647_v48 = vor.u32 %v15338_v40, %v13644_v37 }
 0xc23   : > { %13554 = vmatmul.msk.bf16.gmra.mxu1 %vm5143_vm14, %v7312_v3  ;;  %7584 = vmatmul.bf16.gmra.mxu2 %v13619_v25  ;;  %v13643_v25 = vor.u32 %v15339_v18, %v13642_v22 }
 0xc25   : > { %v7238_v10 = vpop.f32.mrf.mxu3 }
 0xc26   : > { %v7039_v34 = vpop.f32.mrf.mxu2  ;;  %v7292_v9 = vpop.f32.mrf.mxu0 }
 0xc27   : > { %v20092_v33 = vadd.f32 %v7039_v34, %v19908_v12  ;;  %v7293_v42 = vadd.f32 %v7292_v9, %v7238_v10 }
 0xc2d   : > { %v7240_v26 = vpop.f32.mrf.mxu3 }
 0xc2e   : > { %v20106_v60 = vpop.f32.mrf.mxu2  ;;  %v7294_v12 = vpop.f32.mrf.mxu0 }
 0xc2f   : > { %v7295_v13 = vadd.f32 %v7294_v12, %v7240_v26 }
 0xc31   : > { %v7313_v52 = vpack.c.bf16 %v7295_v13, %v7293_v42 }
 0xc32   : > { %13654 = vmatmul.msk.bf16.gmra.mxu3 %vm4739_vm13, %v13631_v21 }
 0xc33   : > { %13555 = vmatmul.msk.bf16.gmra.mxu1 %vm5143_vm14, %v7313_v52  ;;  %7589 = vmatmul.bf16.gmra.mxu2 %v13627_v46 }
 0xc35   : > { %v7243_v55 = vpop.f32.mrf.mxu3 }
 0xc36   : > { %v7044_v50 = vpop.f32.mrf.mxu2  ;;  %v7297_v31 = vpop.f32.mrf.mxu0 }
 0xc37   : > { %v20111_v61 = vadd.f32 %v7044_v50, %v19928_v2  ;;  %v7298_v5 = vadd.f32 %v7297_v31, %v7243_v55 }
 0xc3d   : > { %v7245_v15 = vpop.f32.mrf.mxu3 }
 0xc3e   : > { %v20125_v58 = vpop.f32.mrf.mxu2  ;;  %v7299_v2 = vpop.f32.mrf.mxu0 }
 0xc3f   : > { %v7300_v11 = vadd.f32 %v7299_v2, %v7245_v15 }
 0xc41   : > { %v7314_v54 = vpack.c.bf16 %v7300_v11, %v7298_v5 }
 0xc42   : > { %13655 = vmatmul.msk.bf16.gmra.mxu3 %vm4739_vm13, %v13639_v29 }
 0xc43   : > { %13556 = vmatmul.msk.bf16.gmra.mxu1 %vm5143_vm14, %v7314_v54  ;;  %7594 = vmatmul.bf16.gmra.mxu2 %v13635_v8 }
 0xc45   : > { %v7248_v62 = vpop.f32.mrf.mxu3 }
 0xc46   : > { %v7049_v39 = vpop.f32.mrf.mxu2  ;;  %v7302_v30 = vpop.f32.mrf.mxu0 }
 0xc47   : > { %v20133_v59 = vadd.f32 %v7049_v39, %v19951_v14  ;;  %v7303_v23 = vadd.f32 %v7302_v30, %v7248_v62 }
 0xc4d   : > { %v7250_v36 = vpop.f32.mrf.mxu3 }
 0xc4e   : > { %v20147_v57 = vpop.f32.mrf.mxu2  ;;  %v7304_v14 = vpop.f32.mrf.mxu0 }
 0xc4f   : > { %v7305_v17 = vadd.f32 %v7304_v14, %v7250_v36 }
 0xc50   : > { %v7361_v3 = vpop.f32.mrf.mxu1 }
 0xc51   : > { %v7315_v10 = vpack.c.bf16 %v7305_v17, %v7303_v23  ;;  %v20150_v34 = vadd.f32 %v7361_v3, %v19971_v38 }
 0xc52   : > { %13656 = vmatmul.msk.bf16.gmra.mxu3 %vm4739_vm13, %v13647_v48 }
 0xc53   : > { %13557 = vmatmul.msk.bf16.gmra.mxu1 %vm5143_vm14, %v7315_v10  ;;  %7599 = vmatmul.bf16.gmra.mxu2 %v13643_v25 }
 0xc55   : > { %v7614_v9 = vpop.f32.mrf.mxu3 }
 0xc56   : > { %v7560_v56 = vpop.f32.mrf.mxu2 }
 0xc57   : > { %v7615_v26 = vadd.f32 %v7614_v9, %v7560_v56 }
 0xc58   : > { %v20154_v6 = vpop.f32.mrf.mxu1 }
 0xc5d   : > { %v7616_v35 = vpop.f32.mrf.mxu3 }
 0xc5e   : > { %v7562_v43 = vpop.f32.mrf.mxu2 }
 0xc5f   : > { %v7617_v12 = vadd.f32 %v7616_v35, %v7562_v43 }
 0xc60   : > { %v7366_v21 = vpop.f32.mrf.mxu1 }
 0xc61   : > { %v7659_v42 = vpack.c.bf16 %v7617_v12, %v7615_v26  ;;  %v20157_v13 = vadd.f32 %v7366_v21, %v19992_v45 }
 0xc63   : > { %13663 = vmatmul.msk.bf16.vlgmr.msrb.gmra.mxu0 %vm5143_vm14, %v7659_v42 }
 0xc65   : > { %v7619_v38 = vpop.f32.mrf.mxu3 }
 0xc66   : > { %v7565_v46 = vpop.f32.mrf.mxu2 }
 0xc67   : > { %v7620_v31 = vadd.f32 %v7619_v38, %v7565_v46 }
 0xc68   : > { %v20160_v52 = vpop.f32.mrf.mxu1 }
 0xc6d   : > { %v7621_v55 = vpop.f32.mrf.mxu3 }
 0xc6e   : > { %v7567_v50 = vpop.f32.mrf.mxu2 }
 0xc6f   : > { %v7622_v32 = vadd.f32 %v7621_v55, %v7567_v50 }
 0xc70   : > { %v7371_v47 = vpop.f32.mrf.mxu1 }
 0xc71   : > { %v7660_v0 = vpack.c.bf16 %v7622_v32, %v7620_v31  ;;  %v20163_v63 = vadd.f32 %v7371_v47, %v20012_v49 }
 0xc73   : > { %13664 = vmatmul.msk.bf16.gmra.mxu0 %vm5143_vm14, %v7660_v0 }
 0xc75   : > { %v7624_v15 = vpop.f32.mrf.mxu3 }
 0xc76   : > { %v7570_v45 = vpop.f32.mrf.mxu2 }
 0xc77   : > { %v7625_v11 = vadd.f32 %v7624_v15, %v7570_v45 }
 0xc78   : > { %v20166_v2 = vpop.f32.mrf.mxu1 }
 0xc7d   : > { %v7626_v29 = vpop.f32.mrf.mxu3 }
 0xc7e   : > { %v7572_v5 = vpop.f32.mrf.mxu2 }
 0xc7f   : > { %v7627_v8 = vadd.f32 %v7626_v29, %v7572_v5 }
 0xc80   : > { %v7376_v7 = vpop.f32.mrf.mxu1 }
 0xc81   : > { %v7661_v54 = vpack.c.bf16 %v7627_v8, %v7625_v11  ;;  %v20169_v62 = vadd.f32 %v7376_v7, %v20032_v41 }
 0xc83   : > { %13665 = vmatmul.msk.bf16.gmra.mxu0 %vm5143_vm14, %v7661_v54 }
 0xc85   : > { %v7629_v39 = vpop.f32.mrf.mxu3 }
 0xc86   : > { %v7575_v49 = vpop.f32.mrf.mxu2 }
 0xc87   : > { %v7630_v22 = vadd.f32 %v7629_v39, %v7575_v49 }
 0xc88   : > { %v20172_v30 = vpop.f32.mrf.mxu1 }
 0xc8d   : > { %v7631_v40 = vpop.f32.mrf.mxu3 }
 0xc8e   : > { %v7577_v37 = vpop.f32.mrf.mxu2 }
 0xc8f   : > { %v7632_v18 = vadd.f32 %v7631_v40, %v7577_v37 }
 0xc90   : > { %v7381_v36 = vpop.f32.mrf.mxu1 }
 0xc91   : > { %v7662_v14 = vpack.c.bf16 %v7632_v18, %v7630_v22  ;;  %v20175_v48 = vadd.f32 %v7381_v36, %v20052_v24  ;;  %v20186_v36 = vld [vmem:[%s21449_s6] ss:$0 sm:$0xff] }
 0xc93   : > { %13666 = vmatmul.msk.bf16.gmra.mxu0 %vm5143_vm14, %v7662_v14  ;;  %v7407_v14 = vadd.f32 %v20154_v6, %v19987_v27  ;;  %v7409_v27 = vadd.f32 %v20160_v52, %v20007_v44  ;;  %v7411_v44 = vadd.f32 %v20166_v2, %v20027_v53  ;;  %v7413_v53 = vadd.f32 %v20172_v30, %v20047_v4 }
 0xc95   : > { %v7634_v23 = vpop.f32.mrf.mxu3 }
 0xc96   : > { %v7580_v41 = vpop.f32.mrf.mxu2 }
 0xc97   : > { %v7635_v3 = vadd.f32 %v7634_v23, %v7580_v41 }
 0xc9d   : > { %v7636_v17 = vpop.f32.mrf.mxu3 }
 0xc9e   : > { %v7582_v25 = vpop.f32.mrf.mxu2 }
 0xc9f   : > { %v7637_v10 = vadd.f32 %v7636_v17, %v7582_v25 }
 0xca1   : > { %v7663_v9 = vpack.c.bf16 %v7637_v10, %v7635_v3 }
 0xca3   : > { %13667 = vmatmul.msk.bf16.gmra.mxu0 %vm5143_vm14, %v7663_v9 }
 0xca5   : > { %v7639_v56 = vpop.f32.mrf.mxu3 }
 0xca6   : > { %v7585_v35 = vpop.f32.mrf.mxu2 }
 0xca7   : > { %v7640_v12 = vadd.f32 %v7639_v56, %v7585_v35 }
 0xcad   : > { %v7641_v43 = vpop.f32.mrf.mxu3 }
 0xcae   : > { %v7587_v26 = vpop.f32.mrf.mxu2 }
 0xcaf   : > { %v7642_v21 = vadd.f32 %v7641_v43, %v7587_v26 }
 0xcb1   : > { %v7664_v42 = vpack.c.bf16 %v7642_v21, %v7640_v12 }
 0xcb3   : > { %13668 = vmatmul.msk.bf16.gmra.mxu0 %vm5143_vm14, %v7664_v42 }
 0xcb5   : > { %v7644_v24 = vpop.f32.mrf.mxu3 }
 0xcb6   : > { %v7590_v38 = vpop.f32.mrf.mxu2 }
 0xcb7   : > { %v7645_v50 = vadd.f32 %v7644_v24, %v7590_v38 }
 0xcbd   : > { %v7646_v46 = vpop.f32.mrf.mxu3 }
 0xcbe   : > { %v7592_v55 = vpop.f32.mrf.mxu2 }
 0xcbf   : > { %v7647_v31 = vadd.f32 %v7646_v46, %v7592_v55 }
 0xcc1   : > { %v7665_v32 = vpack.c.bf16 %v7647_v31, %v7645_v50 }
 0xcc3   : > { %13669 = vmatmul.msk.bf16.gmra.mxu0 %vm5143_vm14, %v7665_v32 }
 0xcc5   : > { %v7649_v47 = vpop.f32.mrf.mxu3 }
 0xcc6   : > { %v7595_v0 = vpop.f32.mrf.mxu2 }
 0xcc7   : > { %v7650_v29 = vadd.f32 %v7649_v47, %v7595_v0 }
 0xccd   : > { %v7651_v15 = vpop.f32.mrf.mxu3 }
 0xcce   : > { %v7597_v45 = vpop.f32.mrf.mxu2 }
 0xccf   : > { %v7652_v5 = vadd.f32 %v7651_v15, %v7597_v45 }
 0xcd1   : > { %v7666_v11 = vpack.c.bf16 %v7652_v5, %v7650_v29 }
 0xcd3   : > { %13670 = vmatmul.msk.bf16.gmra.mxu0 %vm5143_vm14, %v7666_v11 }
 0xcd5   : > { %v7654_v8 = vpop.f32.mrf.mxu3 }
 0xcd6   : > { %v7600_v7 = vpop.f32.mrf.mxu2 }
 0xcd7   : > { %v7655_v49 = vadd.f32 %v7654_v8, %v7600_v7  ;;  %v7383_v8 = vpop.f32.mrf.mxu1 }
 0xcd8   : > { %v7415_v4 = vadd.f32 %v7383_v8, %v20067_v1 }
 0xcdd   : > { %v7656_v54 = vpop.f32.mrf.mxu3 }
 0xcde   : > { %v7602_v39 = vpop.f32.mrf.mxu2 }
 0xcdf   : > { %v7657_v40 = vadd.f32 %v7656_v54, %v7602_v39 }
 0xce0   : > { %v7713_v37 = vpop.f32.mrf.mxu0 }
 0xce1   : > { %v7667_v22 = vpack.c.bf16 %v7657_v40, %v7655_v49  ;;  %v7758_v18 = vadd.f32 %v7713_v37, %v20150_v34  ;;  %v7386_v37 = vpop.f32.mrf.mxu1 }
 0xce3   : > { %13671 = vmatmul.msk.bf16.gmra.mxu0 %vm5143_vm14, %v7667_v22  ;;  %v7780_v23 = vadd.f32 %v20186_v36, %v7758_v18 }
 0xce5   : > { %v7816_v25 = vmul.f32 0.01, %v7780_v23  ;;  %vm7798_vm15 = vcmp.ge.f32.partialorder %v7780_v23, 0.0 }
 0xce7   : > { %v7834_v10 = vsel %vm7798_vm15, %v7780_v23, %v7816_v25 }
 0xce8   : > { %v7715_v41 = vpop.f32.mrf.mxu0 }
 0xce9   : > { %v7759_v17 = vadd.f32 %v7715_v41, %v7407_v14  ;;  %v7388_v41 = vpop.f32.mrf.mxu1 }
 0xceb   : > { %v7781_v3 = vadd.f32 %v20186_v36, %v7759_v17 }
 0xced   : > { %vm7799_vm1 = vcmp.ge.f32.partialorder %v7781_v3, 0.0  ;;  %v7817_v34 = vmul.f32 0.01, %v7781_v3 }
 0xcef   : > { %v7835_v9 = vsel %vm7799_vm1, %v7781_v3, %v7817_v34 }
 0xcf0   : > { %v20193_v56 = vpack.c.bf16 %v7835_v9, %v7834_v10  ;;  %v7718_v35 = vpop.f32.mrf.mxu0 }
 0xcf1   : > { %v7760_v43 = vadd.f32 %v7718_v35, %v20157_v13 }
 0xcf3   : > { %v7782_v6 = vadd.f32 %v20186_v36, %v7760_v43 }
 0xcf5   : > { %v7818_v21 = vmul.f32 0.01, %v7782_v6  ;;  %vm7800_vm2 = vcmp.ge.f32.partialorder %v7782_v6, 0.0 }
 0xcf7   : > { %v7836_v38 = vsel %vm7800_vm2, %v7782_v6, %v7818_v21  ;;  %v7391_v6 = vpop.f32.mrf.mxu1 }
 0xcf8   : > { %v7720_v26 = vpop.f32.mrf.mxu0 }
 0xcf9   : > { %v7761_v12 = vadd.f32 %v7720_v26, %v7409_v27  ;;  %v7417_v26 = vadd.f32 %v7388_v41, %v20087_v20  ;;  %v7067_v20 = vadd.f32 %v20106_v60, %v19918_v16 }
 0xcfb   : > { %v7783_v42 = vadd.f32 %v20186_v36, %v7761_v12 }
 0xcfd   : > { %vm7801_vm3 = vcmp.ge.f32.partialorder %v7783_v42, 0.0  ;;  %v7819_v24 = vmul.f32 0.01, %v7783_v42 }
 0xcff   : > { %v7837_v46 = vsel %vm7801_vm3, %v7783_v42, %v7819_v24 }
 0xd00   : > { %v20200_v55 = vpack.c.bf16 %v7837_v46, %v7836_v38  ;;  %v7723_v50 = vpop.f32.mrf.mxu0  ;;  %v7393_v46 = vpop.f32.mrf.mxu1 }
 0xd01   : > { %v7762_v13 = vadd.f32 %v7723_v50, %v20163_v63 }
 0xd03   : > { %v7784_v52 = vadd.f32 %v20186_v36, %v7762_v13 }
 0xd05   : > { %v7820_v47 = vmul.f32 0.01, %v7784_v52  ;;  %vm7802_vm4 = vcmp.ge.f32.partialorder %v7784_v52, 0.0 }
 0xd07   : > { %v7838_v45 = vsel %vm7802_vm4, %v7784_v52, %v7820_v47  ;;  %vm8019_vm4 = vcmask 261120  }
 0xd08   : > { %v7725_v31 = vpop.f32.mrf.mxu0  ;;  %v7396_v47 = vpop.f32.mrf.mxu1 }
 0xd09   : > { %v7763_v32 = vadd.f32 %v7725_v31, %v7411_v44  ;;  %v7418_v31 = vadd.f32 %v7391_v6, %v20092_v33  ;;  %v7420_v16 = vadd.f32 %v7396_v47, %v20111_v61  ;;  %v15381_v47 = vld [vmem:[%s21451_s8 + $0x60] sm:$0xff] }
 0xd0b   : > { %v7785_v0 = vadd.f32 %v20186_v36, %v7763_v32 }
 0xd0d   : > { %vm7803_vm5 = vcmp.ge.f32.partialorder %v7785_v0, 0.0  ;;  %v7821_v15 = vmul.f32 0.01, %v7785_v0 }
 0xd0f   : > { %v7839_v29 = vsel %vm7803_vm5, %v7785_v0, %v7821_v15  ;;  %v7419_v0 = vadd.f32 %v7393_v46, %v7067_v20  ;;  %v15366_v46 = vld [vmem:[%s21450_s7 + $0x84] sm:$0xf0] }
 0xd10   : > { %v20207_v5 = vpack.c.bf16 %v7839_v29, %v7838_v45  ;;  %v7728_v11 = vpop.f32.mrf.mxu0 }
 0xd11   : > { %v7764_v63 = vadd.f32 %v7728_v11, %v20169_v62 }
 0xd13   : > { %v7786_v2 = vadd.f32 %v20186_v36, %v7764_v63 }
 0xd15   : > { %v7822_v39 = vmul.f32 0.01, %v7786_v2  ;;  %vm7804_vm6 = vcmp.ge.f32.partialorder %v7786_v2, 0.0 }
 0xd17   : > { %v7840_v22 = vsel %vm7804_vm6, %v7786_v2, %v7822_v39  ;;  %v7069_v39 = vadd.f32 %v20125_v58, %v19938_v51 }
 0xd18   : > { %v7730_v7 = vpop.f32.mrf.mxu0 }
 0xd19   : > { %v7765_v54 = vadd.f32 %v7730_v7, %v7413_v53  ;;  %v7398_v7 = vpop.f32.mrf.mxu1 }
 0xd1b   : > { %v7787_v49 = vadd.f32 %v20186_v36, %v7765_v54 }
 0xd1d   : > { %vm7805_vm7 = vcmp.ge.f32.partialorder %v7787_v49, 0.0  ;;  %v7823_v40 = vmul.f32 0.01, %v7787_v49 }
 0xd1f   : > { %v7841_v18 = vsel %vm7805_vm7, %v7787_v49, %v7823_v40  ;;  %v7421_v49 = vadd.f32 %v7398_v7, %v7069_v39  ;;  %v15347_v7 = vld [vmem:[%s21450_s7 + $0x24] sm:$0xf]  ;;  %v13696_v39 = vld [vmem:[%s21450_s7 + $0x20] sm:$0xf] }
 0xd20   : > { %v20214_v14 = vpack.c.bf16 %v7841_v18, %v7840_v22  ;;  %v7733_v62 = vpop.f32.mrf.mxu0 }
 0xd21   : > { %v7766_v23 = vadd.f32 %v7733_v62, %v20175_v48  ;;  %v7416_v48 = vadd.f32 %v7386_v37, %v20072_v19  ;;  %v7401_v18 = vpop.f32.mrf.mxu1 }
 0xd23   : > { %v7788_v30 = vadd.f32 %v20186_v36, %v7766_v23 }
 0xd25   : > { %v7824_v3 = vmul.f32 0.01, %v7788_v30  ;;  %vm7806_vm8 = vcmp.ge.f32.partialorder %v7788_v30, 0.0 }
 0xd27   : > { %v7842_v9 = vsel %vm7806_vm8, %v7788_v30, %v7824_v3  ;;  %v7071_v3 = vadd.f32 %v20147_v57, %v19961_v28  ;;  %v15341_v57 = vld [vmem:[%s21450_s7 + $0x4] sm:$0xf] }
 0xd28   : > { %v7735_v17 = vpop.f32.mrf.mxu0 }
 0xd29   : > { %v7767_v25 = vadd.f32 %v7735_v17, %v7415_v4  ;;  %v7403_v58 = vpop.f32.mrf.mxu1 }
 0xd2b   : > { %v7789_v34 = vadd.f32 %v20186_v36, %v7767_v25  ;;  %v7422_v25 = vadd.f32 %v7401_v18, %v20133_v59  ;;  %v13852_v18 = vld [vmem:[%s21450_s7 + $0xa8] sm:$0xf0] }
 0xd2d   : > { %vm7807_vm9 = vcmp.ge.f32.partialorder %v7789_v34, 0.0  ;;  %v7825_v10 = vmul.f32 0.01, %v7789_v34 }
 0xd2f   : > { %v7843_v35 = vsel %vm7807_vm9, %v7789_v34, %v7825_v10  ;;  %v7423_v34 = vadd.f32 %v7403_v58, %v7071_v3  ;;  %v15375_v58 = vld [vmem:[%s21451_s8 + $0x50] sm:$0xff]  ;;  %vm8994_vm9 = vcmask 523264  }
 0xd30   : > { %v20220_v43 = vpack.c.bf16 %v7843_v35, %v7842_v9  ;;  %v7738_v27 = vpop.f32.mrf.mxu0  ;;  %v13704_v3 = vld [vmem:[%s21450_s7 + $0x30] sm:$0xf] }
 0xd31   : > { %v7768_v1 = vadd.f32 %v7738_v27, %v7416_v48  ;;  %v13676_v48 = vld [vmem:[%s21450_s7 + $0x8] sm:$0xf0] }
 0xd33   : > { %v7790_v12 = vadd.f32 %v20186_v36, %v7768_v1 }
 0xd35   : > { %v7826_v24 = vmul.f32 0.01, %v7790_v12  ;;  %vm7808_vm10 = vcmp.ge.f32.partialorder %v7790_v12, 0.0 }
 0xd37   : > { %v7844_v13 = vsel %vm7808_vm10, %v7790_v12, %v7826_v24  ;;  %v13674_v12 = vld [vmem:[%s21450_s7] sm:$0xf]  ;;  %v15354_v24 = vld [vmem:[%s21450_s7 + $0x44] sm:$0xf0] }
 0xd38   : > { %v7740_v21 = vpop.f32.mrf.mxu0 }
 0xd39   : > { %v7769_v42 = vadd.f32 %v7740_v21, %v7417_v26  ;;  %v13679_v26 = vor.u32 %v15341_v57, %v13676_v48  ;;  %v15342_v21 = vld [vmem:[%s21450_s7 + $0x4] sm:$0xf0] }
 0xd3a   : > { %v15346_v48 = vld [vmem:[%s21451_s8 + $0x8] sm:$0xff] }
 0xd3b   : > { %v7791_v38 = vadd.f32 %v20186_v36, %v7769_v42  ;;  %v13742_v42 = vld [vmem:[%s21450_s7 + $0x40] sm:$0xf] }
 0xd3d   : > { %vm7809_vm11 = vcmp.ge.f32.partialorder %v7791_v38, 0.0  ;;  %v7827_v50 = vmul.f32 0.01, %v7791_v38 }
 0xd3f   : > { %v7845_v44 = vsel %vm7809_vm11, %v7791_v38, %v7827_v50  ;;  %v13814_v38 = vld [vmem:[%s21450_s7 + $0x80] sm:$0xf]  ;;  %v13675_v50 = vor.u32 %v15342_v21, %v13674_v12 }
 0xd40   : > { %v20226_v52 = vpack.c.bf16 %v7845_v44, %v7844_v13  ;;  %v7743_v19 = vpop.f32.mrf.mxu0  ;;  %v13743_v13 = vor.u32 %v15354_v24, %v13742_v42  ;;  %v13815_v44 = vor.u32 %v15366_v46, %v13814_v38 }
 0xd41   : > { %v7770_v32 = vadd.f32 %v7743_v19, %v7418_v31  ;;  %v15343_v19 = vld [vmem:[%s21450_s7 + $0x14] sm:$0xf]  ;;  %v13684_v31 = vld [vmem:[%s21450_s7 + $0x18] sm:$0x10] }
 0xd42   : > { %v13687_v20 = vor.u32 %v15343_v19, %v13684_v31 }
 0xd43   : > { %v7792_v15 = vadd.f32 %v20186_v36, %v7770_v32  ;;  %v15382_v32 = vld [vmem:[%s21451_s8 + $0x68] sm:$0xff] }
 0xd45   : > { %v7828_v11 = vmul.f32 0.01, %v7792_v15  ;;  %vm7810_vm12 = vcmp.ge.f32.partialorder %v7792_v15, 0.0 }
 0xd47   : > { %v7846_v53 = vsel %vm7810_vm12, %v7792_v15, %v7828_v11  ;;  %v15344_v15 = vld [vmem:[%s21450_s7 + $0x14] sm:$0x10]  ;;  %v13822_v11 = vld [vmem:[%s21450_s7 + $0x90] sm:$0xf] }
 0xd48   : > { %v7745_v45 = vpop.f32.mrf.mxu0 }
 0xd49   : > { %v7771_v29 = vadd.f32 %v7745_v45, %v7419_v0  ;;  %v13682_v0 = vld [vmem:[%s21450_s7 + $0x10] sm:$0xf] }
 0xd4a   : > { %v13750_v45 = vld [vmem:[%s21450_s7 + $0x50] sm:$0xf] }
 0xd4b   : > { %v7793_v63 = vadd.f32 %v20186_v36, %v7771_v29  ;;  %v15356_v29 = vld [vmem:[%s21450_s7 + $0x54] sm:$0x10] }
 0xd4d   : > { %vm7811_vm13 = vcmp.ge.f32.partialorder %v7793_v63, 0.0  ;;  %v7829_v8 = vmul.f32 0.01, %v7793_v63 }
 0xd4f   : > { %v7847_v2 = vsel %vm7811_vm13, %v7793_v63, %v7829_v8  ;;  %v15368_v63 = vld [vmem:[%s21450_s7 + $0x94] sm:$0x10]  ;;  %v13683_v8 = vor.u32 %v15344_v15, %v13682_v0 }
 0xd50   : > { %v20233_v33 = vpack.c.bf16 %v7847_v2, %v7846_v53  ;;  %v7748_v54 = vpop.f32.mrf.mxu0  ;;  %v13751_v53 = vor.u32 %v15356_v29, %v13750_v45  ;;  %v13823_v2 = vor.u32 %v15368_v63, %v13822_v11 }
 0xd51   : > { %v7772_v60 = vadd.f32 %v7748_v54, %v7420_v16  ;;  %v13698_v54 = vld [vmem:[%s21450_s7 + $0x28] sm:$0xf0] }
 0xd52   : > { %v13701_v16 = vor.u32 %v15347_v7, %v13698_v54 }
 0xd53   : > { %v7794_v40 = vadd.f32 %v20186_v36, %v7772_v60  ;;  %v15352_v60 = vld [vmem:[%s21451_s8 + $0x18] sm:$0xff] }
 0xd55   : > { %v7830_v62 = vmul.f32 0.01, %v7794_v40  ;;  %vm7812_vm15 = vcmp.ge.f32.partialorder %v7794_v40, 0.0 }
 0xd57   : > { %v7848_v30 = vsel %vm7812_vm15, %v7794_v40, %v7830_v62  ;;  %v13778_v40 = vld [vmem:[%s21450_s7 + $0x60] sm:$0xf]  ;;  %v15351_v62 = vld [vmem:[%s21451_s8 + $0x10] sm:$0xff] }
 0xd58   : > { %v7750_v37 = vpop.f32.mrf.mxu0 }
 0xd59   : > { %v7773_v22 = vadd.f32 %v7750_v37, %v7421_v49  ;;  %v15348_v49 = vld [vmem:[%s21450_s7 + $0x24] sm:$0xf0] }
 0xd5a   : > { %v15360_v37 = vld [vmem:[%s21450_s7 + $0x64] sm:$0xf0] }
 0xd5b   : > { %v7795_v23 = vadd.f32 %v20186_v36, %v7773_v22  ;;  %v15371_v22 = vld [vmem:[%s21450_s7 + $0xa4] sm:$0xf] }
 0xd5d   : > { %vm7813_vm1 = vcmp.ge.f32.partialorder %v7795_v23, 0.0  ;;  %v7831_v4 = vmul.f32 0.01, %v7795_v23 }
 0xd5f   : > { %v7849_v41 = vsel %vm7813_vm1, %v7795_v23, %v7831_v4  ;;  %v13697_v23 = vor.u32 %v15348_v49, %v13696_v39  ;;  %v13779_v4 = vor.u32 %v15360_v37, %v13778_v40  ;;  %v15353_v40 = vld [vmem:[%s21450_s7 + $0x44] sm:$0xf]  ;;  %v13744_v37 = vld [vmem:[%s21450_s7 + $0x48] sm:$0xf0] }
 0xd60   : > { %v20240_v17 = vpack.c.bf16 %v7849_v41, %v7848_v30  ;;  %v7753_v61 = vpop.f32.mrf.mxu0  ;;  %v15349_v30 = vld [vmem:[%s21450_s7 + $0x34] sm:$0xf]  ;;  %v13706_v41 = vld [vmem:[%s21450_s7 + $0x38] sm:$0x10] }
 0xd61   : > { %v7774_v51 = vadd.f32 %v7753_v61, %v7422_v25  ;;  %v13855_v61 = vor.u32 %v15371_v22, %v13852_v18  ;;  %v15376_v25 = vld [vmem:[%s21451_s8 + $0x58] sm:$0xff]  ;;  %v13747_v18 = vor.u32 %v15353_v40, %v13744_v37 }
 0xd62   : > { %7889 = vmatpush.bf16.msrb.mxu1 %v20240_v17  ;;  %8111 = vmatpush.bf16.msra.mxu3 %v20240_v17 }
 0xd63   : > { %8341 = vmatpush.bf16.msra.mxu0 %v20240_v17  ;;  %v7796_v10 = vadd.f32 %v20186_v36, %v7774_v51  ;;  %v13709_v51 = vor.u32 %v15349_v30, %v13706_v41  ;;  %v15355_v30 = vld [vmem:[%s21450_s7 + $0x54] sm:$0xf]  ;;  %v13752_v41 = vld [vmem:[%s21450_s7 + $0x58] sm:$0x10] }
 0xd65   : > { %v7832_v35 = vmul.f32 0.01, %v7796_v10  ;;  %vm7814_vm2 = vcmp.ge.f32.partialorder %v7796_v10, 0.0 }
 0xd66   : > { %7890 = vmatpush.bf16.msrb.mxu1 %v20233_v33  ;;  %8112 = vmatpush.bf16.msra.mxu3 %v20233_v33 }
 0xd67   : > { %8342 = vmatpush.bf16.msra.mxu0 %v20233_v33  ;;  %v7850_v6 = vsel %vm7814_vm2, %v7796_v10, %v7832_v35  ;;  %v13786_v10 = vld [vmem:[%s21450_s7 + $0x70] sm:$0xf] }
 0xd68   : > { %v7755_v59 = vpop.f32.mrf.mxu0 }
 0xd69   : > { %v7775_v9 = vadd.f32 %v7755_v59, %v7423_v34  ;;  %v15350_v34 = vld [vmem:[%s21450_s7 + $0x34] sm:$0x10] }
 0xd6a   : > { %7891 = vmatpush.bf16.msrb.mxu1 %v20226_v52  ;;  %8113 = vmatpush.bf16.msra.mxu3 %v20226_v52  ;;  %v15362_v59 = vld [vmem:[%s21450_s7 + $0x74] sm:$0x10] }
 0xd6b   : > { %v7797_v27 = vadd.f32 %v20186_v36, %v7775_v9  ;;  %8343 = vmatpush.bf16.msra.mxu0 %v20226_v52  ;;  %v13705_v9 = vor.u32 %v15350_v34, %v13704_v3  ;;  %v13787_v35 = vor.u32 %v15362_v59, %v13786_v10  ;;  %v15359_v10 = vld [vmem:[%s21450_s7 + $0x64] sm:$0xf]  ;;  %v13780_v59 = vld [vmem:[%s21450_s7 + $0x68] sm:$0xf0] }
 0xd6d   : > { %vm7815_vm3 = vcmp.ge.f32.partialorder %v7797_v27, 0.0  ;;  %v7833_v28 = vmul.f32 0.01, %v7797_v27 }
 0xd6e   : > { %7892 = vmatpush.bf16.msrb.mxu1 %v20220_v43  ;;  %8114 = vmatpush.bf16.msra.mxu3 %v20220_v43 }
 0xd6f   : > { %v7851_v1 = vsel %vm7815_vm3, %v7797_v27, %v7833_v28  ;;  %8344 = vmatpush.bf16.msra.mxu0 %v20220_v43  ;;  %v15365_v27 = vld [vmem:[%s21450_s7 + $0x84] sm:$0xf]  ;;  %v13816_v28 = vld [vmem:[%s21450_s7 + $0x88] sm:$0xf0] }
 0xd70   : > { %v20265_v36 = vpack.c.bf16 %v7851_v1, %v7850_v6  ;;  %v13819_v57 = vor.u32 %v15365_v27, %v13816_v28  ;;  %v15345_v6 = vld [vmem:[%s21451_s8] sm:$0xff]  ;;  %v15361_v27 = vld [vmem:[%s21450_s7 + $0x74] sm:$0xf]  ;;  %v13788_v28 = vld [vmem:[%s21450_s7 + $0x78] sm:$0x10] }
 0xd72   : > { %7893 = vmatpush.bf16.msrb.mxu1 %v20214_v14  ;;  %7915 = vmatpush.bf16.msrb.mxu2 %v20265_v36 }
 0xd73   : > { %8115 = vmatpush.bf16.msra.mxu3 %v20214_v14  ;;  %8345 = vmatpush.bf16.msra.mxu0 %v20214_v14 }
 0xd75   : > { %13688 = vmatmul.msk.bf16.vlgmr.msrb.gmra.mxu2 %vm5143_vm14, %v13679_v26 }
 0xd76   : > { %7988 = vmatpush.bf16.msra.mxu2 %v20265_v36  ;;  %7894 = vmatpush.bf16.msrb.mxu1 %v20207_v5 }
 0xd77   : > { %8116 = vmatpush.bf16.msra.mxu3 %v20207_v5  ;;  %8346 = vmatpush.bf16.msra.mxu0 %v20207_v5 }
 0xd7a   : > { %7895 = vmatpush.bf16.msrb.mxu1 %v20200_v55  ;;  %8069 = vmatpush.bf16.msrb.mxu2 %v15346_v48 }
 0xd7b   : > { %8117 = vmatpush.bf16.msra.mxu3 %v20200_v55  ;;  %8347 = vmatpush.bf16.msra.mxu0 %v20200_v55 }
 0xd7e   : > { %7896 = vmatpush.bf16.msrb.mxu1 %v20193_v56  ;;  %8070 = vmatpush.bf16.msrb.mxu2 %v15345_v6  ;;  %v13791_v6 = vor.u32 %v15361_v27, %v13788_v28  ;;  %v15380_v27 = vld [vmem:[%s21450_s7 + $0xd4] sm:$0x10] }
 0xd7f   : > { %8118 = vmatpush.bf16.msra.mxu3 %v20193_v56  ;;  %8348 = vmatpush.bf16.msra.mxu0 %v20193_v56 }
 0xd81   : > { %7897 = vmatmul.bf16.vlgmr.msrb.gmra.mxu1 %v13675_v50 }
 0xd82   : > { %7962 = vmatpush.bf16.msra.mxu1 %v20240_v17  ;;  %8119 = vmatmul.bf16.vlgmr.msra.gmra.mxu3 %v13743_v13 }
 0xd83   : > { %8226 = vmatpush.bf16.msrb.mxu3 %v20240_v17  ;;  %8482 = vmatpush.bf16.msrb.mxu0 %v20265_v36 }
 0xd84   : > { %8349 = vmatmul.bf16.vlgmr.msra.gmra.mxu0 %v13815_v44 }
 0xd85   : > { %13689 = vmatmul.msk.bf16.gmra.mxu2 %vm5143_vm14, %v13687_v20 }
 0xd86   : > { %7963 = vmatpush.bf16.msra.mxu1 %v20233_v33 }
 0xd87   : > { %8640 = vmatpush.bf16.msra.mxu0 %v15382_v32  ;;  %8227 = vmatpush.bf16.msrb.mxu3 %v20233_v33 }
 0xd8a   : > { %7964 = vmatpush.bf16.msra.mxu1 %v20226_v52 }
 0xd8b   : > { %8641 = vmatpush.bf16.msra.mxu0 %v15381_v47  ;;  %8228 = vmatpush.bf16.msrb.mxu3 %v20226_v52 }
 0xd8e   : > { %7965 = vmatpush.bf16.msra.mxu1 %v20220_v43 }
 0xd8f   : > { %8229 = vmatpush.bf16.msrb.mxu3 %v20220_v43 }
 0xd91   : > { %7902 = vmatmul.bf16.gmra.mxu1 %v13683_v8 }
 0xd92   : > { %7966 = vmatpush.bf16.msra.mxu1 %v20214_v14  ;;  %8124 = vmatmul.bf16.gmra.mxu3 %v13751_v53 }
 0xd93   : > { %8230 = vmatpush.bf16.msrb.mxu3 %v20214_v14 }
 0xd94   : > { %8354 = vmatmul.bf16.gmra.mxu0 %v13823_v2 }
 0xd95   : > { %13710 = vmatmul.msk.bf16.vlgmr.msra.gmra.mxu2 %vm5143_vm14, %v13701_v16 }
 0xd96   : > { %7967 = vmatpush.bf16.msra.mxu1 %v20207_v5 }
 0xd97   : > { %8231 = vmatpush.bf16.msrb.mxu3 %v20207_v5 }
 0xd9a   : > { %7968 = vmatpush.bf16.msra.mxu1 %v20200_v55 }
 0xd9b   : > { %8232 = vmatpush.bf16.msrb.mxu3 %v20200_v55 }
 0xd9e   : > { %7969 = vmatpush.bf16.msra.mxu1 %v20193_v56 }
 0xd9f   : > { %8233 = vmatpush.bf16.msrb.mxu3 %v20193_v56 }
 0xda1   : > { %7970 = vmatmul.bf16.vlgmr.msra.gmra.mxu1 %v13697_v23  ;;  %v15369_v23 = vld [vmem:[%s21451_s8 + $0x40] sm:$0xff] }
 0xda2   : > { %8032 = vmatpush.bf16.msrb.mxu1 %v15352_v60  ;;  %8234 = vmatmul.bf16.vlgmr.msrb.gmra.mxu3 %v13779_v4 }
 0xda3   : > { %8367 = vmatpush.bf16.msra.mxu3 %v20265_v36 }
 0xda4   : > { %13864 = vmatmul.msk.bf16.vlgmr.msrb.gmra.mxu0 %vm5143_vm14, %v13855_v61  ;;  %v13755_v61 = vor.u32 %v15355_v30, %v13752_v41  ;;  %v15373_v30 = vld [vmem:[%s21450_s7 + $0xb4] sm:$0xf] }
 0xda5   : > { %8801 = vmatpush.bf16.msrb.mxu0 %v20240_v17  ;;  %13711 = vmatmul.msk.bf16.gmra.mxu2 %vm5143_vm14, %v13709_v51  ;;  %v15367_v51 = vld [vmem:[%s21450_s7 + $0x94] sm:$0xf] }
 0xda6   : > { %8033 = vmatpush.bf16.msrb.mxu1 %v15351_v62  ;;  %v15370_v62 = vld [vmem:[%s21451_s8 + $0x48] sm:$0xff] }
 0xda7   : > { %8525 = vmatpush.bf16.msrb.mxu3 %v15376_v25 }
 0xda9   : > { %8802 = vmatpush.bf16.msrb.mxu0 %v20233_v33 }
 0xdaa   : > { %8137 = vmatpush.bf16.msra.mxu1 %v20265_v36 }
 0xdab   : > { %8526 = vmatpush.bf16.msrb.mxu3 %v15375_v58  ;;  %v13824_v58 = vld [vmem:[%s21450_s7 + $0x98] sm:$0x10] }
 0xdac   : > { %v13827_v3 = vor.u32 %v15367_v51, %v13824_v58  ;;  %v13886_v58 = vld [vmem:[%s21450_s7 + $0xc0] sm:$0xf] }
 0xdad   : > { %8803 = vmatpush.bf16.msrb.mxu0 %v20226_v52 }
 0xdb1   : > { %8804 = vmatpush.bf16.msrb.mxu0 %v20220_v43  ;;  %7975 = vmatmul.bf16.gmra.mxu1 %v13705_v9  ;;  %v13783_v9 = vor.u32 %v15359_v10, %v13780_v59  ;;  %v13858_v10 = vld [vmem:[%s21450_s7 + $0xb0] sm:$0xf]  ;;  %v15374_v59 = vld [vmem:[%s21450_s7 + $0xb4] sm:$0x10] }
 0xdb2   : > { %8239 = vmatmul.bf16.gmra.mxu3 %v13787_v35 }
 0xdb5   : > { %8805 = vmatpush.bf16.msrb.mxu0 %v20214_v14 }
 0xdb9   : > { %8806 = vmatpush.bf16.msrb.mxu0 %v20207_v5 }
 0xdbd   : > { %8807 = vmatpush.bf16.msrb.mxu0 %v20200_v55 }
 0xdc1   : > { %8808 = vmatpush.bf16.msrb.mxu0 %v20193_v56 }
 0xdc2   : > { %13828 = vmatmul.msk.bf16.vlgmr.msra.gmra.mxu3 %vm5143_vm14, %v13819_v57 }
 0xdc3   : > { %8686 = vmatpush.bf16.msra.mxu3 %v20240_v17 }
 0xdc7   : > { %8687 = vmatpush.bf16.msra.mxu3 %v20233_v33 }
 0xdcb   : > { %8688 = vmatpush.bf16.msra.mxu3 %v20226_v52 }
 0xdcf   : > { %8689 = vmatpush.bf16.msra.mxu3 %v20220_v43 }
 0xdd2   : > { %13829 = vmatmul.msk.bf16.gmra.mxu3 %vm5143_vm14, %v13827_v3  ;;  %v15378_v3 = vld [vmem:[%s21450_s7 + $0xc4] sm:$0xf0] }
 0xdd3   : > { %8690 = vmatpush.bf16.msra.mxu3 %v20214_v14 }
 0xdd7   : > { %8691 = vmatpush.bf16.msra.mxu3 %v20207_v5 }
 0xddb   : > { %8692 = vmatpush.bf16.msra.mxu3 %v20200_v55 }
 0xddf   : > { %8693 = vmatpush.bf16.msra.mxu3 %v20193_v56 }
 0xdf8   : > { %v7917_v1 = vpop.f32.mrf.mxu2 }
 0xdfe   : > { %v7898_v26 = vpop.f32.mrf.mxu1 }
 0xdff   : > { %v7918_v42 = vadd.f32 %v7917_v1, %v7898_v26 }
 0xe00   : > { %v7919_v12 = vpop.f32.mrf.mxu2 }
 0xe01   : > { %v8350_v57 = vpop.f32.mrf.mxu0 }
 0xe05   : > { %v20438_v45 = vpop.f32.mrf.mxu3 }
 0xe06   : > { %v7900_v21 = vpop.f32.mrf.mxu1 }
 0xe07   : > { %v7920_v24 = vadd.f32 %v7919_v12, %v7900_v21 }
 0xe08   : > { %v7922_v38 = vpop.f32.mrf.mxu2 }
 0xe09   : > { %v7927_v46 = vpack.c.bf16 %v7920_v24, %v7918_v42  ;;  %v8352_v1 = vpop.f32.mrf.mxu0 }
 0xe0b   : > { %13734 = vmatmul.msk.bf16.vlgmr.msrb.gmra.mxu2 %vm8019_vm4, %v7927_v46  ;;  %v15358_v46 = vld [vmem:[%s21451_s8 + $0x28] sm:$0xff] }
 0xe0c   : > { %8180 = vmatpush.bf16.msra.mxu2 %v15358_v46 }
 0xe0d   : > { %v20442_v2 = vpop.f32.mrf.mxu3 }
 0xe0e   : > { %v7903_v50 = vpop.f32.mrf.mxu1 }
 0xe0f   : > { %v7923_v19 = vadd.f32 %v7922_v38, %v7903_v50 }
 0xe10   : > { %v7924_v13 = vpop.f32.mrf.mxu2 }
 0xe15   : > { %v20444_v49 = vpop.f32.mrf.mxu3 }
 0xe16   : > { %v7905_v44 = vpop.f32.mrf.mxu1 }
 0xe17   : > { %v7925_v31 = vadd.f32 %v7924_v13, %v7905_v44  ;;  %v15357_v13 = vld [vmem:[%s21451_s8 + $0x20] sm:$0xff] }
 0xe18   : > { %v7990_v20 = vpop.f32.mrf.mxu2  ;;  %8181 = vmatpush.bf16.msra.mxu2 %v15357_v13 }
 0xe19   : > { %v7928_v32 = vpack.c.bf16 %v7925_v31, %v7923_v19  ;;  %v15364_v31 = vld [vmem:[%s21451_s8 + $0x38] sm:$0xff] }
 0xe1b   : > { %13735 = vmatmul.msk.bf16.gmra.mxu2 %vm8019_vm4, %v7928_v32  ;;  %v15363_v32 = vld [vmem:[%s21451_s8 + $0x30] sm:$0xff] }
 0xe1c   : > { %8295 = vmatpush.bf16.msrb.mxu2 %v15364_v31 }
 0xe1d   : > { %v20453_v22 = vpop.f32.mrf.mxu3 }
 0xe1e   : > { %v7971_v47 = vpop.f32.mrf.mxu1 }
 0xe1f   : > { %v7991_v29 = vadd.f32 %v7990_v20, %v7971_v47 }
 0xe20   : > { %v7992_v0 = vpop.f32.mrf.mxu2  ;;  %8296 = vmatpush.bf16.msrb.mxu2 %v15363_v32 }
 0xe25   : > { %v20462_v4 = vpop.f32.mrf.mxu3 }
 0xe26   : > { %v7973_v15 = vpop.f32.mrf.mxu1 }
 0xe27   : > { %v7993_v11 = vadd.f32 %v7992_v0, %v7973_v15 }
 0xe28   : > { %v7995_v8 = vpop.f32.mrf.mxu2 }
 0xe29   : > { %v8000_v63 = vpack.c.bf16 %v7993_v11, %v7991_v29 }
 0xe2b   : > { %13724 = vmatmul.msk.bf16.vlgmr.msrb.gmra.mxu1 %vm8019_vm4, %v8000_v63 }
 0xe2c   : > { %8252 = vmatpush.bf16.msrb.mxu1 %v20265_v36 }
 0xe2d   : > { %v20470_v25 = vpop.f32.mrf.mxu3 }
 0xe2e   : > { %v7976_v53 = vpop.f32.mrf.mxu1 }
 0xe2f   : > { %v7996_v16 = vadd.f32 %v7995_v8, %v7976_v53 }
 0xe30   : > { %v7997_v54 = vpop.f32.mrf.mxu2 }
 0xe35   : > { %v20480_v34 = vpop.f32.mrf.mxu3 }
 0xe36   : > { %v7978_v7 = vpop.f32.mrf.mxu1 }
 0xe37   : > { %v7998_v60 = vadd.f32 %v7997_v54, %v7978_v7 }
 0xe39   : > { %v8001_v39 = vpack.c.bf16 %v7998_v60, %v7996_v16 }
 0xe3b   : > { %13725 = vmatmul.msk.bf16.gmra.mxu1 %vm8019_vm4, %v8001_v39 }
 0xe3d   : > { %v20490_v35 = vpop.f32.mrf.mxu3 }
 0xe45   : > { %v8369_v48 = vpop.f32.mrf.mxu3 }
 0xe46   : > { %v8370_v12 = vadd.f32 %v8369_v48, %v8350_v57  ;;  %v15377_v57 = vld [vmem:[%s21450_s7 + $0xc4] sm:$0xf]  ;;  %v13888_v48 = vld [vmem:[%s21450_s7 + $0xc8] sm:$0xf0] }
 0xe4b   : > { %13756 = vmatmul.msk.bf16.vlgmr.msra.gmra.mxu1 %vm5143_vm14, %v13747_v18 }
 0xe4c   : > { %8410 = vmatpush.bf16.msra.mxu1 %v15370_v62 }
 0xe4d   : > { %v8371_v26 = vpop.f32.mrf.mxu3 }
 0xe4e   : > { %v8372_v21 = vadd.f32 %v8371_v26, %v8352_v1  ;;  %v15379_v1 = vld [vmem:[%s21450_s7 + $0xd4] sm:$0xf]  ;;  %v13896_v26 = vld [vmem:[%s21450_s7 + $0xd8] sm:$0x10] }
 0xe50   : > { %8411 = vmatpush.bf16.msra.mxu1 %v15369_v23  ;;  %v8379_v42 = vpack.c.bf16 %v8372_v21, %v8370_v12  ;;  %v13899_v12 = vor.u32 %v15379_v1, %v13896_v26  ;;  %v15389_v26 = vld [vmem:[%s21450_s7 + $0x104] sm:$0xf] }
 0xe55   : > { %v8374_v39 = vpop.f32.mrf.mxu3 }
 0xe5b   : > { %13757 = vmatmul.msk.bf16.gmra.mxu1 %vm5143_vm14, %v13755_v61  ;;  %v13850_v61 = vld [vmem:[%s21450_s7 + $0xa0] sm:$0xf] }
 0xe6b   : > { %13792 = vmatmul.msk.bf16.vlgmr.msrb.gmra.mxu1 %vm5143_vm14, %v13783_v9  ;;  %v13859_v9 = vor.u32 %v15374_v59, %v13858_v10 }
 0xe6c   : > { %8571 = vmatpush.bf16.msrb.mxu1 %v20240_v17 }
 0xe70   : > { %8572 = vmatpush.bf16.msrb.mxu1 %v20233_v33 }
 0xe74   : > { %8573 = vmatpush.bf16.msrb.mxu1 %v20226_v52 }
 0xe78   : > { %8574 = vmatpush.bf16.msrb.mxu1 %v20220_v43 }
 0xe7b   : > { %13793 = vmatmul.msk.bf16.gmra.mxu1 %vm5143_vm14, %v13791_v6  ;;  %v13891_v6 = vor.u32 %v15377_v57, %v13888_v48 }
 0xe7c   : > { %8575 = vmatpush.bf16.msrb.mxu1 %v20214_v14 }
 0xe80   : > { %8576 = vmatpush.bf16.msrb.mxu1 %v20207_v5 }
 0xe84   : > { %8577 = vmatpush.bf16.msrb.mxu1 %v20200_v55 }
 0xe88   : > { %8578 = vmatpush.bf16.msrb.mxu1 %v20193_v56 }
 0xe8b   : > { %13842 = vmatmul.msk.bf16.vlgmr.msra.gmra.mxu1 %vm8019_vm4, %v8379_v42 }
 0xe8c   : > { %8712 = vmatpush.bf16.msra.mxu1 %v20265_v36 }
 0xe8e   : > { %v8072_v24 = vpop.f32.mrf.mxu2 }
 0xe96   : > { %v20516_v44 = vpop.f32.mrf.mxu2 }
 0xe9e   : > { %v8077_v47 = vpop.f32.mrf.mxu2 }
 0xea6   : > { %v20597_v21 = vpop.f32.mrf.mxu2 }
 0xea8   : > { %v8035_v38 = vpop.f32.mrf.mxu1 }
 0xea9   : > { %v20511_v50 = vadd.f32 %v8072_v24, %v8035_v38 }
 0xeb0   : > { %v20518_v19 = vpop.f32.mrf.mxu1 }
 0xeb8   : > { %v8040_v20 = vpop.f32.mrf.mxu1 }
 0xeb9   : > { %v20526_v0 = vadd.f32 %v8077_v47, %v8040_v20 }
 0xec0   : > { %v20528_v15 = vpop.f32.mrf.mxu1 }
 0xec8   : > { %v8139_v29 = vpop.f32.mrf.mxu1 }
 0xec9   : > { %v8140_v63 = vadd.f32 %v8139_v29, %v20438_v45  ;;  %v8355_v45 = vpop.f32.mrf.mxu0 }
 0xeca   : > { %v8375_v40 = vadd.f32 %v8374_v39, %v8355_v45 }
 0xed0   : > { %v8141_v11 = vpop.f32.mrf.mxu1 }
 0xed1   : > { %v8142_v8 = vadd.f32 %v8141_v11, %v20442_v2 }
 0xed3   : > { %v8149_v53 = vpack.c.bf16 %v8142_v8, %v8140_v63 }
 0xed5   : > { %13770 = vmatmul.msk.bf16.vlgmr.msra.gmra.mxu2 %vm8019_vm4, %v8149_v53 }
 0xed6   : > { %8456 = vmatpush.bf16.msra.mxu2 %v20240_v17 }
 0xed8   : > { %v8144_v7 = vpop.f32.mrf.mxu1 }
 0xed9   : > { %v8145_v16 = vadd.f32 %v8144_v7, %v20444_v49 }
 0xeda   : > { %8457 = vmatpush.bf16.msra.mxu2 %v20233_v33  ;;  %v8357_v33 = vpop.f32.mrf.mxu0 }
 0xede   : > { %8458 = vmatpush.bf16.msra.mxu2 %v20226_v52  ;;  %v8376_v52 = vpop.f32.mrf.mxu3 }
 0xedf   : > { %v8377_v37 = vadd.f32 %v8376_v52, %v8357_v33  ;;  %v15383_v52 = vld [vmem:[%s21450_s7 + $0xe4] sm:$0xf] }
 0xee0   : > { %v8146_v54 = vpop.f32.mrf.mxu1 }
 0xee1   : > { %v8147_v60 = vadd.f32 %v8146_v54, %v20453_v22  ;;  %v8380_v18 = vpack.c.bf16 %v8377_v37, %v8375_v40  ;;  %v13924_v37 = vld [vmem:[%s21450_s7 + $0xe8] sm:$0xf0] }
 0xee2   : > { %8459 = vmatpush.bf16.msra.mxu2 %v20220_v43 }
 0xee3   : > { %v8150_v2 = vpack.c.bf16 %v8147_v60, %v8145_v16  ;;  %13843 = vmatmul.msk.bf16.gmra.mxu1 %vm8019_vm4, %v8380_v18  ;;  %v8484_v16 = vpop.f32.mrf.mxu0 }
 0xee5   : > { %13771 = vmatmul.msk.bf16.gmra.mxu2 %vm8019_vm4, %v8150_v2 }
 0xee6   : > { %8460 = vmatpush.bf16.msra.mxu2 %v20214_v14 }
 0xee8   : > { %v8254_v17 = vpop.f32.mrf.mxu1 }
 0xee9   : > { %v8255_v49 = vadd.f32 %v8254_v17, %v20462_v4  ;;  %v13860_v4 = vld [vmem:[%s21450_s7 + $0xb8] sm:$0x10] }
 0xeea   : > { %8461 = vmatpush.bf16.msra.mxu2 %v20207_v5  ;;  %v13863_v41 = vor.u32 %v15373_v30, %v13860_v4 }
 0xeeb   : > { %v8486_v60 = vpop.f32.mrf.mxu0 }
 0xeec   : > { %13865 = vmatmul.msk.bf16.gmra.mxu0 %vm5143_vm14, %v13863_v41  ;;  %v13922_v41 = vld [vmem:[%s21450_s7 + $0xe0] sm:$0xf] }
 0xeee   : > { %8462 = vmatpush.bf16.msra.mxu2 %v20200_v55 }
 0xef0   : > { %v8256_v43 = vpop.f32.mrf.mxu1 }
 0xef1   : > { %v8257_v22 = vadd.f32 %v8256_v43, %v20470_v25  ;;  %v15372_v25 = vld [vmem:[%s21450_s7 + $0xa4] sm:$0xf0]  ;;  %v13927_v43 = vor.u32 %v15383_v52, %v13924_v37 }
 0xef2   : > { %8463 = vmatpush.bf16.msra.mxu2 %v20193_v56  ;;  %v13851_v51 = vor.u32 %v15372_v25, %v13850_v61  ;;  %v15384_v61 = vld [vmem:[%s21450_s7 + $0xe4] sm:$0xf0] }
 0xef3   : > { %v8264_v14 = vpack.c.bf16 %v8257_v22, %v8255_v49 }
 0xef5   : > { %13806 = vmatmul.msk.bf16.vlgmr.msrb.gmra.mxu2 %vm8019_vm4, %v8264_v14 }
 0xef6   : > { %8597 = vmatpush.bf16.msrb.mxu2 %v20265_v36 }
 0xef8   : > { %v8259_v5 = vpop.f32.mrf.mxu1 }
 0xef9   : > { %v8260_v23 = vadd.f32 %v8259_v5, %v20480_v34  ;;  %v13887_v34 = vor.u32 %v15378_v3, %v13886_v58  ;;  %v13923_v3 = vor.u32 %v15384_v61, %v13922_v41 }
 0xefb   : > { %8579 = vmatmul.bf16.vlgmr.msrb.gmra.mxu1 %v13887_v34 }
 0xf00   : > { %v8261_v62 = vpop.f32.mrf.mxu1 }
 0xf01   : > { %v8262_v55 = vadd.f32 %v8261_v62, %v20490_v35  ;;  %v13894_v35 = vld [vmem:[%s21450_s7 + $0xd0] sm:$0xf] }
 0xf02   : > { %v13895_v28 = vor.u32 %v15380_v27, %v13894_v35  ;;  %v15386_v35 = vld [vmem:[%s21450_s7 + $0xf4] sm:$0x10] }
 0xf03   : > { %v8265_v56 = vpack.c.bf16 %v8262_v55, %v8260_v23  ;;  %v15385_v23 = vld [vmem:[%s21450_s7 + $0xf4] sm:$0xf]  ;;  %v13932_v55 = vld [vmem:[%s21450_s7 + $0xf8] sm:$0x10] }
 0xf04   : > { %v13935_v4 = vor.u32 %v15385_v23, %v13932_v55 }
 0xf05   : > { %13807 = vmatmul.msk.bf16.gmra.mxu2 %vm8019_vm4, %v8265_v56 }
 0xf08   : > { %v8413_v32 = vpop.f32.mrf.mxu1 }
 0xf0b   : > { %8584 = vmatmul.bf16.gmra.mxu1 %v13895_v28 }
 0xf10   : > { %v20607_v11 = vpop.f32.mrf.mxu1 }
 0xf15   : > { %8464 = vmatmul.bf16.vlgmr.msra.gmra.mxu2 %v13851_v51 }
 0xf1b   : > { %13936 = vmatmul.msk.bf16.vlgmr.msra.gmra.mxu1 %vm5143_vm14, %v13927_v43  ;;  %v15394_v43 = vld [vmem:[%s21451_s8 + $0x88] sm:$0xff] }
 0xf1c   : > { %8870 = vmatpush.bf16.msrb.mxu1 %v15394_v43 }
 0xf25   : > { %8469 = vmatmul.bf16.gmra.mxu2 %v13859_v9  ;;  %v13930_v9 = vld [vmem:[%s21450_s7 + $0xf0] sm:$0xf] }
 0xf2b   : > { %13937 = vmatmul.msk.bf16.gmra.mxu1 %vm5143_vm14, %v13935_v4 }
 0xf35   : > { %13900 = vmatmul.msk.bf16.vlgmr.msrb.gmra.mxu2 %vm5143_vm14, %v13891_v6  ;;  %v13931_v6 = vor.u32 %v15386_v35, %v13930_v9 }
 0xf45   : > { %13901 = vmatmul.msk.bf16.gmra.mxu2 %vm5143_vm14, %v13899_v12  ;;  %v13960_v12 = vld [vmem:[%s21450_s7 + $0x108] sm:$0xf0] }
 0xf58   : > { %v8183_v42 = vpop.f32.mrf.mxu2 }
 0xf59   : > { %v8193_v24 = vadd.f32 %v8183_v42, %v20511_v50  ;;  %v13958_v42 = vld [vmem:[%s21450_s7 + $0x100] sm:$0xf] }
 0xf60   : > { %v20600_v38 = vpop.f32.mrf.mxu2  ;;  %v8418_v53 = vpop.f32.mrf.mxu1 }
 0xf68   : > { %v8188_v46 = vpop.f32.mrf.mxu2  ;;  %v20623_v18 = vpop.f32.mrf.mxu1 }
 0xf69   : > { %v8195_v13 = vadd.f32 %v8188_v46, %v20526_v0  ;;  %v8489_v40 = vpop.f32.mrf.mxu0  ;;  %v13963_v46 = vor.u32 %v15389_v26, %v13960_v12 }
 0xf70   : > { %v20603_v31 = vpop.f32.mrf.mxu2 }
 0xf71   : > { %v8491_v22 = vpop.f32.mrf.mxu0 }
 0xf78   : > { %v8298_v20 = vpop.f32.mrf.mxu2 }
 0xf79   : > { %v8308_v47 = vadd.f32 %v8298_v20, %v8193_v24  ;;  %v15390_v24 = vld [vmem:[%s21450_s7 + $0x104] sm:$0xf0]  ;;  %v13968_v20 = vld [vmem:[%s21450_s7 + $0x118] sm:$0x10] }
 0xf7b   : > { %v20605_v29 = vadd.f32 %v8413_v32, %v8308_v47  ;;  %v15391_v32 = vld [vmem:[%s21450_s7 + $0x114] sm:$0xf]  ;;  %v13966_v47 = vld [vmem:[%s21450_s7 + $0x110] sm:$0xf] }
 0xf80   : > { %v20609_v63 = vpop.f32.mrf.mxu2 }
 0xf88   : > { %v8303_v8 = vpop.f32.mrf.mxu2 }
 0xf89   : > { %v8310_v7 = vadd.f32 %v8303_v8, %v8195_v13  ;;  %v13959_v13 = vor.u32 %v15390_v24, %v13958_v42  ;;  %v15392_v8 = vld [vmem:[%s21450_s7 + $0x114] sm:$0x10] }
 0xf8b   : > { %v20611_v50 = vadd.f32 %v8418_v53, %v8310_v7  ;;  %v13971_v53 = vor.u32 %v15391_v32, %v13968_v20  ;;  %v13967_v7 = vor.u32 %v15392_v8, %v13966_v47  ;;  %v8080_v20 = vadd.f32 %v20597_v21, %v20528_v15 }
 0xf90   : > { %v20613_v54 = vpop.f32.mrf.mxu2 }
 0xf98   : > { %v8465_v0 = vpop.f32.mrf.mxu2 }
 0xf99   : > { %v8485_v39 = vadd.f32 %v8484_v16, %v8465_v0 }
 0xfa0   : > { %v8467_v45 = vpop.f32.mrf.mxu2 }
 0xfa1   : > { %v8487_v2 = vadd.f32 %v8486_v60, %v8467_v45  ;;  %v15388_v60 = vld [vmem:[%s21451_s8 + $0x78] sm:$0xff] }
 0xfa2   : > { %8755 = vmatpush.bf16.msra.mxu2 %v15388_v60 }
 0xfa3   : > { %v8494_v17 = vpack.c.bf16 %v8487_v2, %v8485_v39  ;;  %v15387_v39 = vld [vmem:[%s21451_s8 + $0x70] sm:$0xff] }
 0xfa5   : > { %13878 = vmatmul.msk.bf16.vlgmr.msrb.gmra.mxu3 %vm8019_vm4, %v8494_v17 }
 0xfa6   : > { %8827 = vmatpush.bf16.msrb.mxu3 %v20265_v36  ;;  %v8580_v36 = vpop.f32.mrf.mxu1  ;;  %8756 = vmatpush.bf16.msra.mxu2 %v15387_v39 }
 0xfa8   : > { %v8470_v33 = vpop.f32.mrf.mxu2 }
 0xfa9   : > { %v8490_v14 = vadd.f32 %v8489_v40, %v8470_v33 }
 0xfae   : > { %v8582_v56 = vpop.f32.mrf.mxu1 }
 0xfb0   : > { %v8472_v49 = vpop.f32.mrf.mxu2 }
 0xfb1   : > { %v8492_v5 = vadd.f32 %v8491_v22, %v8472_v49 }
 0xfb3   : > { %v8495_v62 = vpack.c.bf16 %v8492_v5, %v8490_v14 }
 0xfb5   : > { %13879 = vmatmul.msk.bf16.gmra.mxu3 %vm8019_vm4, %v8495_v62 }
 0xfb6   : > { %v8585_v10 = vpop.f32.mrf.mxu1 }
 0xfb8   : > { %v8599_v30 = vpop.f32.mrf.mxu2 }
 0xfb9   : > { %v8600_v51 = vadd.f32 %v8599_v30, %v8580_v36 }
 0xfbe   : > { %v8587_v27 = vpop.f32.mrf.mxu1 }
 0xfc0   : > { %v8601_v25 = vpop.f32.mrf.mxu2 }
 0xfc1   : > { %v8602_v58 = vadd.f32 %v8601_v25, %v8582_v56 }
 0xfc3   : > { %v8609_v34 = vpack.c.bf16 %v8602_v58, %v8600_v51 }
 0xfc5   : > { %13914 = vmatmul.msk.bf16.vlgmr.msra.gmra.mxu0 %vm8019_vm4, %v8609_v34  ;;  %8694 = vmatmul.bf16.vlgmr.msra.gmra.mxu3 %v13923_v3 }
 0xfc6   : > { %v8714_v33 = vpop.f32.mrf.mxu1 }
 0xfc8   : > { %v8604_v59 = vpop.f32.mrf.mxu2 }
 0xfc9   : > { %v8605_v57 = vadd.f32 %v8604_v59, %v8585_v10 }
 0xfce   : > { %v8716_v22 = vpop.f32.mrf.mxu1 }
 0xfd0   : > { %v8606_v28 = vpop.f32.mrf.mxu2 }
 0xfd1   : > { %v8607_v48 = vadd.f32 %v8606_v28, %v8587_v27 }
 0xfd3   : > { %v8610_v1 = vpack.c.bf16 %v8607_v48, %v8605_v57 }
 0xfd5   : > { %13915 = vmatmul.msk.bf16.gmra.mxu0 %vm8019_vm4, %v8610_v1  ;;  %8699 = vmatmul.bf16.gmra.mxu3 %v13931_v6 }
 0xfd6   : > { %v8719_v30 = vpop.f32.mrf.mxu1 }
 0xfde   : > { %v8721_v41 = vpop.f32.mrf.mxu1 }
 0xfe5   : > { %13972 = vmatmul.msk.bf16.vlgmr.msrb.gmra.mxu3 %vm5143_vm14, %v13963_v46  ;;  %8809 = vmatmul.bf16.vlgmr.msrb.gmra.mxu0 %v13959_v13  ;;  %v8075_v13 = vadd.f32 %v20516_v44, %v20518_v19 }
 0xfe7   : > { %v8194_v47 = vadd.f32 %v20600_v38, %v8075_v13  ;;  %v15403_v13 = vld [vmem:[%s21454_s11 + $0x40] sm:$0xff] }
 0xff5   : > { %13973 = vmatmul.msk.bf16.gmra.mxu3 %vm5143_vm14, %v13971_v53  ;;  %8814 = vmatmul.bf16.gmra.mxu0 %v13967_v7  ;;  %v8196_v53 = vadd.f32 %v20603_v31, %v8080_v20  ;;  %v8309_v7 = vadd.f32 %v20609_v63, %v8194_v47  ;;  %v15581_v31 = vld [vmem:[%s21452_s9] ss:$0 sm:$0xff]  ;;  %vm8914_vm14 = vcmask 1044480   ;;  %v14411_v20 = vld [vmem:[%s21453_s10 + $0x10] sm:$0x1] }
0x1028   : > { %v8528_v16 = vpop.f32.mrf.mxu3 }
0x1029   : > { %v8538_v0 = vadd.f32 %v8528_v16, %v20605_v29  ;;  %v8311_v16 = vadd.f32 %v20613_v54, %v8196_v53 }
0x102b   : > { %v8426_v39 = vadd.f32 %v20623_v18, %v8311_v16 }
0x1030   : > { %v8530_v45 = vpop.f32.mrf.mxu3 }
0x1038   : > { %v8533_v2 = vpop.f32.mrf.mxu3 }
0x1039   : > { %v8540_v17 = vadd.f32 %v8533_v2, %v20611_v50  ;;  %v15393_v50 = vld [vmem:[%s21451_s8 + $0x80] sm:$0xff] }
0x103a   : > { %8871 = vmatpush.bf16.msrb.mxu1 %v15393_v50 }
0x1040   : > { %v8535_v40 = vpop.f32.mrf.mxu3 }
0x1041   : > { %v8541_v19 = vadd.f32 %v8535_v40, %v8426_v39 }
0x1042   : > { %v8643_v52 = vpop.f32.mrf.mxu0 }
0x1043   : > { %v20682_v37 = vadd.f32 %v8643_v52, %v8538_v0  ;;  %v8424_v0 = vadd.f32 %v20607_v11, %v8309_v7 }
0x1045   : > { %v8539_v2 = vadd.f32 %v8530_v45, %v8424_v0  ;;  %v14060_v0 = vld [vmem:[%s21453_s10 + $0x3] sm:$0x1] }
0x1048   : > { %v8695_v29 = vpop.f32.mrf.mxu3 }
0x1049   : > { %v8715_v5 = vadd.f32 %v8714_v33, %v8695_v29 }
0x104a   : > { %v8645_v49 = vpop.f32.mrf.mxu0 }
0x1050   : > { %v8697_v14 = vpop.f32.mrf.mxu3 }
0x1051   : > { %v8717_v36 = vadd.f32 %v8716_v22, %v8697_v14 }
0x1052   : > { %v8648_v62 = vpop.f32.mrf.mxu0 }
0x1053   : > { %v8724_v23 = vpack.c.bf16 %v8717_v36, %v8715_v5  ;;  %v8655_v55 = vadd.f32 %v8648_v62, %v8540_v17  ;;  %v8654_v17 = vadd.f32 %v8645_v49, %v8539_v2  ;;  %v15646_v49 = vmov 65535  }
0x1054   : > { %v8915_v14 = vsel %vm1153_vm0, 4294967295, %v15646_v49  ;;  %vm8910_vm0 = vcmask 203776   ;;  %v14384_v49 = vld [vmem:[%s21453_s10 + $0xf] sm:$0x1] }
0x1055   : > { %13950 = vmatmul.msk.bf16.vlgmr.msra.gmra.mxu2 %vm8019_vm4, %v8724_v23  ;;  %v8916_v62 = vsel %vm8914_vm14, %v8915_v14, 0  ;;  %v14789_v14 = vld [vmem:[%s21453_s10 + $0x1e] sm:$0x1] }
0x1058   : > { %v8700_v4 = vpop.f32.mrf.mxu3 }
0x1059   : > { %v8720_v25 = vadd.f32 %v8719_v30, %v8700_v4 }
0x105a   : > { %v8650_v56 = vpop.f32.mrf.mxu0 }
0x105b   : > { %v8656_v21 = vadd.f32 %v8650_v56, %v8541_v19  ;;  %v14114_v19 = vld [vmem:[%s21453_s10 + $0x5] sm:$0x1] }
0x1060   : > { %v8702_v61 = vpop.f32.mrf.mxu3 }
0x1061   : > { %v8722_v51 = vadd.f32 %v8721_v41, %v8702_v61  ;;  %v15402_v61 = vld [vmem:[%s21454_s11 + $0x38] sm:$0xff] }
0x1062   : > { %v8810_v58 = vpop.f32.mrf.mxu0 }
0x1063   : > { %v8725_v3 = vpack.c.bf16 %v8722_v51, %v8720_v25  ;;  %v13989_v51 = vld [vmem:[%s21453_s10 + $0x1] sm:$0x1] }
0x1065   : > { %13951 = vmatmul.msk.bf16.gmra.mxu2 %vm8019_vm4, %v8725_v3  ;;  %v15401_v3 = vld [vmem:[%s21454_s11 + $0x30] sm:$0xff] }
0x1068   : > { %v8829_v34 = vpop.f32.mrf.mxu3 }
0x1069   : > { %v8830_v9 = vadd.f32 %v8829_v34, %v8810_v58  ;;  %v8909_v58 = vld [vmem:[%s21453_s10] sm:$0x1]  ;;  %v15400_v34 = vld [vmem:[%s21454_s11 + $0x28] sm:$0xff] }
0x106a   : > { %v8812_v10 = vpop.f32.mrf.mxu0 }
0x1070   : > { %v8831_v59 = vpop.f32.mrf.mxu3 }
0x1071   : > { %v8832_v35 = vadd.f32 %v8831_v59, %v8812_v10  ;;  %v15399_v10 = vld [vmem:[%s21454_s11 + $0x20] sm:$0xff] }
0x1072   : > { %v8815_v28 = vpop.f32.mrf.mxu0  ;;  %v14033_v59 = vld [vmem:[%s21453_s10 + $0x2] sm:$0x1] }
0x1073   : > { %v8839_v27 = vpack.c.bf16 %v8832_v35, %v8830_v9  ;;  %v14087_v9 = vld [vmem:[%s21453_s10 + $0x4] sm:$0x1]  ;;  %v14141_v35 = vld [vmem:[%s21453_s10 + $0x6] sm:$0x1] }
0x1075   : > { %13986 = vmatmul.msk.bf16.vlgmr.msrb.gmra.mxu1 %vm8019_vm4, %v8839_v27  ;;  %v14195_v27 = vld [vmem:[%s21453_s10 + $0x8] sm:$0x1] }
0x1078   : > { %v8834_v57 = vpop.f32.mrf.mxu3 }
0x1079   : > { %v8835_v1 = vadd.f32 %v8834_v57, %v8815_v28  ;;  %v14249_v28 = vld [vmem:[%s21453_s10 + $0xa] sm:$0x1]  ;;  %v15398_v57 = vld [vmem:[%s21454_s11 + $0x18] sm:$0xff] }
0x107a   : > { %v8817_v48 = vpop.f32.mrf.mxu0  ;;  %9042 = vmatpush.bf16.msra.mxu3 %v15398_v57  ;;  %v14492_v57 = vld [vmem:[%s21453_s10 + $0x13] sm:$0x1] }
0x1080   : > { %v8836_v6 = vpop.f32.mrf.mxu3 }
0x1081   : > { %v8837_v26 = vadd.f32 %v8836_v6, %v8817_v48  ;;  %v15397_v48 = vld [vmem:[%s21454_s11 + $0x10] sm:$0xff]  ;;  %v14303_v6 = vld [vmem:[%s21453_s10 + $0xc] sm:$0x1] }
0x1082   : > { %9043 = vmatpush.bf16.msra.mxu3 %v15397_v48 }
0x1083   : > { %v8840_v12 = vpack.c.bf16 %v8837_v26, %v8835_v1  ;;  %v15396_v1 = vld [vmem:[%s21454_s11 + $0x8] sm:$0xff]  ;;  %v15406_v26 = vld [vmem:[%s21454_s11 + $0x58] sm:$0xff] }
0x1084   : > { %9110 = vmatpush.bf16.msra.mxu1 %v15406_v26 }
0x1085   : > { %13987 = vmatmul.msk.bf16.gmra.mxu1 %vm8019_vm4, %v8840_v12  ;;  %v15395_v12 = vld [vmem:[%s21454_s11] sm:$0xff] }
0x1086   : > { %9044 = vmatpush.bf16.msra.mxu3 %v15396_v1 }
0x108a   : > { %9045 = vmatpush.bf16.msra.mxu3 %v15395_v12  ;;  %v15426_v12 = vld [vmem:[%s21454_s11 + $0xf8] sm:$0xff] }
0x10d8   : > { %v8758_v42 = vpop.f32.mrf.mxu2 }
0x10d9   : > { %v8768_v63 = vadd.f32 %v8758_v42, %v20682_v37  ;;  %v15405_v42 = vld [vmem:[%s21454_s11 + $0x50] sm:$0xff] }
0x10da   : > { %9111 = vmatpush.bf16.msra.mxu1 %v15405_v42  ;;  %v15429_v42 = vld [vmem:[%s21454_s11 + $0x110] sm:$0xff] }
0x10e0   : > { %v8760_v24 = vpop.f32.mrf.mxu2 }
0x10e1   : > { %v8769_v38 = vadd.f32 %v8760_v24, %v8654_v17  ;;  %v15404_v24 = vld [vmem:[%s21454_s11 + $0x48] sm:$0xff]  ;;  %v14519_v17 = vld [vmem:[%s21453_s10 + $0x14] sm:$0x1] }
0x10e2   : > { %9112 = vmatpush.bf16.msra.mxu1 %v15404_v24 }
0x10e6   : > { %9113 = vmatpush.bf16.msra.mxu1 %v15403_v13  ;;  %v15425_v13 = vld [vmem:[%s21454_s11 + $0xf0] sm:$0xff] }
0x10e8   : > { %v8763_v8 = vpop.f32.mrf.mxu2 }
0x10e9   : > { %v8770_v44 = vadd.f32 %v8763_v8, %v8655_v55 }
0x10f0   : > { %v8765_v15 = vpop.f32.mrf.mxu2 }
0x10f1   : > { %v8771_v54 = vadd.f32 %v8765_v15, %v8656_v21  ;;  %v14573_v15 = vld [vmem:[%s21453_s10 + $0x16] sm:$0x1] }
0x10f2   : > { %v8873_v46 = vpop.f32.mrf.mxu1 }
0x10f3   : > { %v8883_v43 = vadd.f32 %v8873_v46, %v8768_v63  ;;  %v14357_v46 = vld [vmem:[%s21453_s10 + $0xe] sm:$0x1] }
0x10f5   : > { %v8891_v5 = vadd.f32 %v15581_v31, %v8883_v43  ;;  %v14330_v43 = vld [vmem:[%s21453_s10 + $0xd] sm:$0x1] }
0x10f7   : > { %v8899_v30 = vmul.f32 0.01, %v8891_v5  ;;  %vm8895_vm8 = vcmp.ge.f32.partialorder %v8891_v5, 0.0 }
0x10f9   : > { %v8903_v41 = vsel %vm8895_vm8, %v8891_v5, %v8899_v30  ;;  %v15408_v5 = vld [vmem:[%s21454_s11 + $0x68] sm:$0xff]  ;;  %v15422_v30 = vld [vmem:[%s21454_s11 + $0xd8] sm:$0xff] }
0x10fa   : > { %v8875_v32 = vpop.f32.mrf.mxu1 }
0x10fb   : > { %v8884_v52 = vadd.f32 %v8875_v32, %v8769_v38  ;;  %v14222_v38 = vld [vmem:[%s21453_s10 + $0x9] sm:$0x1] }
0x10fd   : > { %v8892_v45 = vadd.f32 %v15581_v31, %v8884_v52  ;;  %v14276_v52 = vld [vmem:[%s21453_s10 + $0xb] sm:$0x1] }
0x10ff   : > { %v8900_v50 = vmul.f32 0.01, %v8892_v45  ;;  %vm8896_vm7 = vcmp.ge.f32.partialorder %v8892_v45, 0.0 }
0x1101   : > { %v8904_v56 = vsel %vm8896_vm7, %v8892_v45, %v8900_v50  ;;  %v15410_v45 = vld [vmem:[%s21454_s11 + $0x78] sm:$0xff]  ;;  %v15412_v50 = vld [vmem:[%s21454_s11 + $0x88] sm:$0xff] }
0x1102   : > { %v8878_v60 = vpop.f32.mrf.mxu1  ;;  %v20716_v25 = vpack.c.bf16 %v8904_v56, %v8903_v41  ;;  %9179 = vmatpush.bf16.msrb.mxu3 %v15410_v45  ;;  %v14438_v41 = vld [vmem:[%s21453_s10 + $0x11] sm:$0x1] }
0x1103   : > { %v8885_v33 = vadd.f32 %v8878_v60, %v8770_v44  ;;  %v14465_v60 = vld [vmem:[%s21453_s10 + $0x12] sm:$0x1] }
0x1105   : > { %v8893_v11 = vadd.f32 %v15581_v31, %v8885_v33  ;;  %v14168_v33 = vld [vmem:[%s21453_s10 + $0x7] sm:$0x1] }
0x1107   : > { %v8901_v22 = vmul.f32 0.01, %v8893_v11  ;;  %vm8897_vm5 = vcmp.ge.f32.partialorder %v8893_v11, 0.0 }
0x1109   : > { %v8905_v37 = vsel %vm8897_vm5, %v8893_v11, %v8901_v22  ;;  %v14681_v11 = vld [vmem:[%s21453_s10 + $0x1a] sm:$0x1]  ;;  %v15409_v22 = vld [vmem:[%s21454_s11 + $0x70] sm:$0xff] }
0x110a   : > { %v8880_v29 = vpop.f32.mrf.mxu1  ;;  %9180 = vmatpush.bf16.msrb.mxu3 %v15409_v22  ;;  %v15445_v22 = vld [vmem:[%s21454_s11 + $0x190] sm:$0xff] }
0x110b   : > { %v8886_v18 = vadd.f32 %v8880_v29, %v8771_v54 }
0x110d   : > { %v8894_v40 = vadd.f32 %v15581_v31, %v8886_v18  ;;  %v14627_v31 = vld [vmem:[%s21453_s10 + $0x18] sm:$0x1]  ;;  %v14735_v18 = vld [vmem:[%s21453_s10 + $0x1c] sm:$0x1] }
0x110e   : > { %9181 = vmatpush.bf16.msrb.mxu3 %v15408_v5 }
0x110f   : > { %vm8898_vm6 = vcmp.ge.f32.partialorder %v8894_v40, 0.0  ;;  %v8902_v36 = vmul.f32 0.01, %v8894_v40 }
0x1111   : > { %v8906_v23 = vsel %vm8898_vm6, %v8894_v40, %v8902_v36  ;;  %v15414_v40 = vld [vmem:[%s21454_s11 + $0x98] sm:$0xff]  ;;  %v15407_v36 = vld [vmem:[%s21454_s11 + $0x60] sm:$0xff] }
0x1112   : > { %v8908_v55 = vpack.c.bf16 %v8906_v23, %v8905_v37  ;;  %9248 = vmatpush.bf16.msrb.mxu1 %v15414_v40  ;;  %9182 = vmatpush.bf16.msrb.mxu3 %v15407_v36  ;;  %v15418_v37 = vld [vmem:[%s21454_s11 + $0xb8] sm:$0xff]  ;;  %v15411_v23 = vld [vmem:[%s21454_s11 + $0x80] sm:$0xff]  ;;  %v15440_v36 = vld [vmem:[%s21454_s11 + $0x168] sm:$0xff] }
0x1114   : > { %v20709_v4 = vand.u32 %v8916_v62, %v8908_v55  ;;  %v15413_v62 = vld [vmem:[%s21454_s11 + $0x90] sm:$0xff] }
0x1115   : > { %v15417_v55 = vld [vmem:[%s21454_s11 + $0xb0] sm:$0xff] }
0x1116   : > { %8926 = vmatpush.bf16.msrb.mxu2 %v20709_v4  ;;  %8953 = vmatpush.bf16.msra.mxu0 %v20709_v4 }
0x1117   : > { %9249 = vmatpush.bf16.msrb.mxu1 %v15413_v62 }
0x111a   : > { %8927 = vmatpush.bf16.msrb.mxu2 %v20716_v25  ;;  %8954 = vmatpush.bf16.msra.mxu0 %v20716_v25 }
0x111b   : > { %9250 = vmatpush.bf16.msrb.mxu1 %v15412_v50  ;;  %v15443_v50 = vld [vmem:[%s21454_s11 + $0x180] sm:$0xff] }
0x111d   : > { %13990 = vmatmul.msk.bf16.vlgmr.msra.gmra.mxu0 %vm8910_vm0, %v13989_v51  ;;  %13988 = vmatmul.msk.bf16.vlgmr.msrb.gmra.mxu2 %vm8910_vm0, %v8909_v58  ;;  %v15415_v58 = vld [vmem:[%s21454_s11 + $0xa0] sm:$0xff] }
0x111e   : > { %9002 = vmatpush.bf16.msra.mxu2 %v15402_v61  ;;  %9062 = vmatpush.bf16.msrb.mxu0 %v20709_v4  ;;  %v15416_v61 = vld [vmem:[%s21454_s11 + $0xa8] sm:$0xff] }
0x111f   : > { %9251 = vmatpush.bf16.msrb.mxu1 %v15411_v23  ;;  %v14654_v23 = vld [vmem:[%s21453_s10 + $0x19] sm:$0x1] }
0x1122   : > { %9003 = vmatpush.bf16.msra.mxu2 %v15401_v3  ;;  %9063 = vmatpush.bf16.msrb.mxu0 %v20716_v25  ;;  %v15421_v3 = vld [vmem:[%s21454_s11 + $0xd0] sm:$0xff] }
0x1126   : > { %9200 = vmatpush.bf16.msra.mxu0 %v20709_v4  ;;  %9004 = vmatpush.bf16.msra.mxu2 %v15400_v34  ;;  %v15420_v34 = vld [vmem:[%s21454_s11 + $0xc8] sm:$0xff] }
0x112a   : > { %9201 = vmatpush.bf16.msra.mxu0 %v20716_v25  ;;  %9005 = vmatpush.bf16.msra.mxu2 %v15399_v10 }
0x112d   : > { %14034 = vmatmul.msk.bf16.vlgmr.msrb.gmra.mxu0 %vm8910_vm0, %v14033_v59 }
0x112e   : > { %9131 = vmatpush.bf16.msrb.mxu2 %v20709_v4  ;;  %9338 = vmatpush.bf16.msrb.mxu0 %v20709_v4 }
0x1132   : > { %9132 = vmatpush.bf16.msrb.mxu2 %v20716_v25  ;;  %9339 = vmatpush.bf16.msrb.mxu0 %v20716_v25 }
0x113d   : > { %14088 = vmatmul.msk.bf16.vlgmr.msra.gmra.mxu0 %vm8910_vm0, %v14087_v9 }
0x113e   : > { %9476 = vmatpush.bf16.msra.mxu0 %v20709_v4 }
0x1142   : > { %9477 = vmatpush.bf16.msra.mxu0 %v20716_v25 }
0x114d   : > { %14142 = vmatmul.msk.bf16.vlgmr.msrb.gmra.mxu0 %vm8910_vm0, %v14141_v35  ;;  %v15419_v35 = vld [vmem:[%s21454_s11 + $0xc0] sm:$0xff] }
0x114e   : > { %9614 = vmatpush.bf16.msrb.mxu0 %v20709_v4 }
0x1152   : > { %9615 = vmatpush.bf16.msrb.mxu0 %v20716_v25 }
0x115d   : > { %14196 = vmatmul.msk.bf16.vlgmr.msra.gmra.mxu0 %vm8910_vm0, %v14195_v27  ;;  %v15430_v27 = vld [vmem:[%s21454_s11 + $0x118] sm:$0xff] }
0x115e   : > { %9752 = vmatpush.bf16.msra.mxu0 %v20709_v4 }
0x1162   : > { %9753 = vmatpush.bf16.msra.mxu0 %v20716_v25 }
0x116d   : > { %14250 = vmatmul.msk.bf16.vlgmr.msrb.gmra.mxu0 %vm8910_vm0, %v14249_v28 }
0x116e   : > { %9890 = vmatpush.bf16.msrb.mxu0 %v20709_v4 }
0x1172   : > { %9891 = vmatpush.bf16.msrb.mxu0 %v20716_v25 }
0x117d   : > { %14304 = vmatmul.msk.bf16.vlgmr.msra.gmra.mxu0 %vm8910_vm0, %v14303_v6 }
0x117e   : > { %10028 = vmatpush.bf16.msra.mxu0 %v20709_v4 }
0x1182   : > { %10029 = vmatpush.bf16.msra.mxu0 %v20716_v25 }
0x118d   : > { %14358 = vmatmul.msk.bf16.vlgmr.msrb.gmra.mxu0 %vm8910_vm0, %v14357_v46  ;;  %v15428_v46 = vld [vmem:[%s21454_s11 + $0x108] sm:$0xff] }
0x118e   : > { %10166 = vmatpush.bf16.msrb.mxu0 %v20709_v4 }
0x1192   : > { %10167 = vmatpush.bf16.msrb.mxu0 %v20716_v25 }
0x119a   : > { %v8956_v32 = vpop.f32.mrf.mxu0 }
0x119b   : > { %v8960_v47 = vpack.c.bf16 %v8956_v32, %v8956_v32 }
0x119d   : > { %14015 = vmatmul.msk.bf16.vlgmr.msra.gmra.mxu2 %vm8994_vm9, %v8960_v47  ;;  %14412 = vmatmul.msk.bf16.vlgmr.msra.gmra.mxu0 %vm8910_vm0, %v14411_v20  ;;  %v15424_v47 = vld [vmem:[%s21454_s11 + $0xe8] sm:$0xff] }
0x119e   : > { %9269 = vmatpush.bf16.msra.mxu2 %v20709_v4  ;;  %10304 = vmatpush.bf16.msra.mxu0 %v20709_v4 }
0x11a0   : > { %v8929_v8 = vpop.f32.mrf.mxu2 }
0x11a1   : > { %v8933_v53 = vpack.c.bf16 %v8929_v8, %v8929_v8 }
0x11a2   : > { %9270 = vmatpush.bf16.msra.mxu2 %v20716_v25  ;;  %10305 = vmatpush.bf16.msra.mxu0 %v20716_v25  ;;  %v8958_v7 = vpop.f32.mrf.mxu0 }
0x11a3   : > { %14032 = vmatmul.msk.bf16.vlgmr.msra.gmra.mxu3 %vm8994_vm9, %v8933_v53  ;;  %v15427_v53 = vld [vmem:[%s21454_s11 + $0x100] sm:$0xff]  ;;  %v15438_v7 = vld [vmem:[%s21454_s11 + $0x158] sm:$0xff] }
0x11a4   : > { %9317 = vmatpush.bf16.msra.mxu3 %v15418_v37  ;;  %v15454_v37 = vld [vmem:[%s21454_s11 + $0x1d8] sm:$0xff] }
0x11a8   : > { %v8931_v16 = vpop.f32.mrf.mxu2  ;;  %9318 = vmatpush.bf16.msra.mxu3 %v15417_v55 }
0x11a9   : > { %v14546_v16 = vld [vmem:[%s21453_s10 + $0x15] sm:$0x1] }
0x11aa   : > { %v9065_v39 = vpop.f32.mrf.mxu0 }
0x11ab   : > { %v9069_v2 = vpack.c.bf16 %v9065_v39, %v9065_v39 }
0x11ac   : > { %9319 = vmatpush.bf16.msra.mxu3 %v15416_v61 }
0x11ad   : > { %14061 = vmatmul.msk.bf16.vlgmr.msrb.gmra.mxu2 %vm8910_vm0, %v14060_v0  ;;  %14466 = vmatmul.msk.bf16.vlgmr.msrb.gmra.mxu0 %vm8910_vm0, %v14465_v60  ;;  %v15423_v60 = vld [vmem:[%s21454_s11 + $0xe0] sm:$0xff] }
0x11ae   : > { %9407 = vmatpush.bf16.msrb.mxu2 %v20709_v4  ;;  %10442 = vmatpush.bf16.msrb.mxu0 %v20709_v4 }
0x11af   : > { %14059 = vmatmul.msk.bf16.vlgmr.msra.gmra.mxu1 %vm8994_vm9, %v9069_v2  ;;  %v15434_v2 = vld [vmem:[%s21454_s11 + $0x138] sm:$0xff] }
0x11b0   : > { %9386 = vmatpush.bf16.msra.mxu1 %v15422_v30  ;;  %9320 = vmatpush.bf16.msra.mxu3 %v15415_v58  ;;  %v15439_v30 = vld [vmem:[%s21454_s11 + $0x160] sm:$0xff] }
0x11b2   : > { %9408 = vmatpush.bf16.msrb.mxu2 %v20716_v25  ;;  %10443 = vmatpush.bf16.msrb.mxu0 %v20716_v25  ;;  %v9067_v44 = vpop.f32.mrf.mxu0 }
0x11b4   : > { %9387 = vmatpush.bf16.msra.mxu1 %v15421_v3  ;;  %v15452_v3 = vld [vmem:[%s21454_s11 + $0x1c8] sm:$0xff] }
0x11b8   : > { %9388 = vmatpush.bf16.msra.mxu1 %v15420_v34  ;;  %v15449_v34 = vld [vmem:[%s21454_s11 + $0x1b0] sm:$0xff] }
0x11ba   : > { %v20856_v21 = vpop.f32.mrf.mxu0 }
0x11bb   : > { %v9207_v56 = vpack.c.bf16 %v20856_v21, %v20856_v21 }
0x11bc   : > { %9389 = vmatpush.bf16.msra.mxu1 %v15419_v35  ;;  %v15451_v35 = vld [vmem:[%s21454_s11 + $0x1c0] sm:$0xff] }
0x11bd   : > { %14115 = vmatmul.msk.bf16.vlgmr.msra.gmra.mxu2 %vm8910_vm0, %v14114_v19  ;;  %14520 = vmatmul.msk.bf16.vlgmr.msra.gmra.mxu0 %vm8910_vm0, %v14519_v17  ;;  %v15437_v19 = vld [vmem:[%s21454_s11 + $0x150] sm:$0xff] }
0x11be   : > { %9545 = vmatpush.bf16.msra.mxu2 %v20709_v4  ;;  %10580 = vmatpush.bf16.msra.mxu0 %v20709_v4 }
0x11bf   : > { %14113 = vmatmul.msk.bf16.vlgmr.msrb.gmra.mxu1 %vm8994_vm9, %v9207_v56 }
0x11c0   : > { %9524 = vmatpush.bf16.msrb.mxu1 %v15430_v27  ;;  %v15462_v27 = vld [vmem:[%s21454_s11 + $0x218] sm:$0xff] }
0x11c2   : > { %9546 = vmatpush.bf16.msra.mxu2 %v20716_v25  ;;  %10581 = vmatpush.bf16.msra.mxu0 %v20716_v25  ;;  %v9205_v63 = vpop.f32.mrf.mxu0 }
0x11c3   : > { %v15435_v63 = vld [vmem:[%s21454_s11 + $0x140] sm:$0xff] }
0x11c4   : > { %9525 = vmatpush.bf16.msrb.mxu1 %v15429_v42  ;;  %v15461_v42 = vld [vmem:[%s21454_s11 + $0x210] sm:$0xff] }
0x11c8   : > { %9526 = vmatpush.bf16.msrb.mxu1 %v15428_v46  ;;  %v15460_v46 = vld [vmem:[%s21454_s11 + $0x208] sm:$0xff] }
0x11ca   : > { %v20870_v54 = vpop.f32.mrf.mxu0 }
0x11cb   : > { %v9345_v28 = vpack.c.bf16 %v20870_v54, %v20870_v54  ;;  %v15446_v54 = vld [vmem:[%s21454_s11 + $0x198] sm:$0xff] }
0x11cc   : > { %9527 = vmatpush.bf16.msrb.mxu1 %v15427_v53  ;;  %v14843_v53 = vld [vmem:[%s21453_s10 + $0x20] sm:$0x1] }
0x11cd   : > { %14169 = vmatmul.msk.bf16.vlgmr.msrb.gmra.mxu2 %vm8910_vm0, %v14168_v33  ;;  %14574 = vmatmul.msk.bf16.vlgmr.msrb.gmra.mxu0 %vm8910_vm0, %v14573_v15  ;;  %v15436_v33 = vld [vmem:[%s21454_s11 + $0x148] sm:$0xff]  ;;  %v15433_v15 = vld [vmem:[%s21454_s11 + $0x130] sm:$0xff] }
0x11ce   : > { %9683 = vmatpush.bf16.msrb.mxu2 %v20709_v4  ;;  %10718 = vmatpush.bf16.msrb.mxu0 %v20709_v4 }
0x11cf   : > { %14167 = vmatmul.msk.bf16.vlgmr.msra.gmra.mxu1 %vm8994_vm9, %v9345_v28  ;;  %v14708_v28 = vld [vmem:[%s21453_s10 + $0x1b] sm:$0x1] }
0x11d0   : > { %9662 = vmatpush.bf16.msra.mxu1 %v15438_v7  ;;  %v15470_v7 = vld [vmem:[%s21454_s11 + $0x258] sm:$0xff] }
0x11d2   : > { %9684 = vmatpush.bf16.msrb.mxu2 %v20716_v25  ;;  %10719 = vmatpush.bf16.msrb.mxu0 %v20716_v25  ;;  %v9343_v29 = vpop.f32.mrf.mxu0 }
0x11d3   : > { %v15431_v29 = vld [vmem:[%s21454_s11 + $0x120] sm:$0xff] }
0x11d4   : > { %9663 = vmatpush.bf16.msra.mxu1 %v15437_v19  ;;  %v15469_v19 = vld [vmem:[%s21454_s11 + $0x250] sm:$0xff] }
0x11d8   : > { %9664 = vmatpush.bf16.msra.mxu1 %v15436_v33  ;;  %v15468_v33 = vld [vmem:[%s21454_s11 + $0x248] sm:$0xff] }
0x11da   : > { %v9479_v8 = vpop.f32.mrf.mxu0 }
0x11db   : > { %v9483_v0 = vpack.c.bf16 %v9479_v8, %v9479_v8  ;;  %v15459_v8 = vld [vmem:[%s21454_s11 + $0x200] sm:$0xff] }
0x11dc   : > { %9665 = vmatpush.bf16.msra.mxu1 %v15435_v63  ;;  %v15467_v63 = vld [vmem:[%s21454_s11 + $0x240] sm:$0xff] }
0x11dd   : > { %14223 = vmatmul.msk.bf16.vlgmr.msra.gmra.mxu2 %vm8910_vm0, %v14222_v38  ;;  %14628 = vmatmul.msk.bf16.vlgmr.msra.gmra.mxu0 %vm8910_vm0, %v14627_v31  ;;  %v15432_v38 = vld [vmem:[%s21454_s11 + $0x128] sm:$0xff] }
0x11de   : > { %9821 = vmatpush.bf16.msra.mxu2 %v20709_v4  ;;  %10856 = vmatpush.bf16.msra.mxu0 %v20709_v4 }
0x11df   : > { %14221 = vmatmul.msk.bf16.vlgmr.msrb.gmra.mxu1 %vm8994_vm9, %v9483_v0 }
0x11e0   : > { %9800 = vmatpush.bf16.msrb.mxu1 %v15446_v54  ;;  %v14897_v54 = vld [vmem:[%s21453_s10 + $0x22] sm:$0x1] }
0x11e2   : > { %9822 = vmatpush.bf16.msra.mxu2 %v20716_v25  ;;  %10857 = vmatpush.bf16.msra.mxu0 %v20716_v25  ;;  %v9481_v44 = vpop.f32.mrf.mxu0 }
0x11e4   : > { %9801 = vmatpush.bf16.msrb.mxu1 %v15445_v22 }
0x11ea   : > { %v9617_v31 = vpop.f32.mrf.mxu0 }
0x11ed   : > { %14277 = vmatmul.msk.bf16.vlgmr.msrb.gmra.mxu2 %vm8910_vm0, %v14276_v52  ;;  %14682 = vmatmul.msk.bf16.vlgmr.msrb.gmra.mxu0 %vm8910_vm0, %v14681_v11  ;;  %v14600_v52 = vld [vmem:[%s21453_s10 + $0x17] sm:$0x1]  ;;  %v9621_v11 = vpack.c.bf16 %v9617_v31, %v9617_v31 }
0x11ee   : > { %9959 = vmatpush.bf16.msrb.mxu2 %v20709_v4  ;;  %10994 = vmatpush.bf16.msrb.mxu0 %v20709_v4 }
0x11ef   : > { %14275 = vmatmul.msk.bf16.vlgmr.msra.gmra.mxu1 %vm8994_vm9, %v9621_v11  ;;  %v14816_v11 = vld [vmem:[%s21453_s10 + $0x1f] sm:$0x1] }
0x11f2   : > { %9960 = vmatpush.bf16.msrb.mxu2 %v20716_v25  ;;  %10995 = vmatpush.bf16.msrb.mxu0 %v20716_v25  ;;  %v9619_v45 = vpop.f32.mrf.mxu0 }
0x11f3   : > { %v15474_v45 = vld [vmem:[%s21454_s11 + $0x278] sm:$0xff] }
0x11fa   : > { %v9755_v62 = vpop.f32.mrf.mxu0 }
0x11fb   : > { %v9759_v55 = vpack.c.bf16 %v9755_v62, %v9755_v62 }
0x11fd   : > { %14331 = vmatmul.msk.bf16.vlgmr.msra.gmra.mxu2 %vm8910_vm0, %v14330_v43  ;;  %14736 = vmatmul.msk.bf16.vlgmr.msra.gmra.mxu0 %vm8910_vm0, %v14735_v18  ;;  %v15442_v18 = vld [vmem:[%s21454_s11 + $0x178] sm:$0xff] }
0x11fe   : > { %10097 = vmatpush.bf16.msra.mxu2 %v20709_v4  ;;  %11132 = vmatpush.bf16.msra.mxu0 %v20709_v4 }
0x1202   : > { %10098 = vmatpush.bf16.msra.mxu2 %v20716_v25  ;;  %11133 = vmatpush.bf16.msra.mxu0 %v20716_v25  ;;  %v9757_v61 = vpop.f32.mrf.mxu0 }
0x1203   : > { %v15485_v61 = vld [vmem:[%s21454_s11 + $0x2d0] sm:$0xff] }
0x120d   : > { %14385 = vmatmul.msk.bf16.vlgmr.msrb.gmra.mxu2 %vm8910_vm0, %v14384_v49  ;;  %14790 = vmatmul.msk.bf16.vlgmr.msrb.gmra.mxu0 %vm8910_vm0, %v14789_v14  ;;  %v15444_v49 = vld [vmem:[%s21454_s11 + $0x188] sm:$0xff]  ;;  %v15441_v14 = vld [vmem:[%s21454_s11 + $0x170] sm:$0xff] }
0x120e   : > { %10235 = vmatpush.bf16.msrb.mxu2 %v20709_v4  ;;  %11270 = vmatpush.bf16.msrb.mxu0 %v20709_v4 }
0x120f   : > { %9802 = vmatpush.bf16.msrb.mxu1 %v15444_v49 }
0x1212   : > { %10236 = vmatpush.bf16.msrb.mxu2 %v20716_v25  ;;  %11271 = vmatpush.bf16.msrb.mxu0 %v20716_v25 }
0x1213   : > { %9803 = vmatpush.bf16.msrb.mxu1 %v15443_v50  ;;  %v15486_v50 = vld [vmem:[%s21454_s11 + $0x2d8] sm:$0xff] }
0x1216   : > { %14329 = vmatmul.msk.bf16.vlgmr.msrb.gmra.mxu1 %vm8994_vm9, %v9759_v55 }
0x1217   : > { %9938 = vmatpush.bf16.msra.mxu1 %v15454_v37  ;;  %v14870_v37 = vld [vmem:[%s21453_s10 + $0x21] sm:$0x1] }
0x121d   : > { %14439 = vmatmul.msk.bf16.vlgmr.msra.gmra.mxu2 %vm8910_vm0, %v14438_v41  ;;  %v15450_v41 = vld [vmem:[%s21454_s11 + $0x1b8] sm:$0xff]  ;;  %14844 = vmatmul.msk.bf16.vlgmr.msra.gmra.mxu0 %vm8910_vm0, %v14843_v53 }
0x121e   : > { %10373 = vmatpush.bf16.msra.mxu2 %v20709_v4 }
0x1220   : > { %v9007_v51 = vpop.f32.mrf.mxu2 }
0x1222   : > { %10374 = vmatpush.bf16.msra.mxu2 %v20716_v25 }
0x1226   : > { %v9047_v10 = vpop.f32.mrf.mxu3 }
0x1227   : > { %v9048_v59 = vadd.f32 %v9047_v10, %v9007_v51  ;;  %v15453_v51 = vld [vmem:[%s21454_s11 + $0x1d0] sm:$0xff] }
0x1228   : > { %v9009_v9 = vpop.f32.mrf.mxu2  ;;  %9939 = vmatpush.bf16.msra.mxu1 %v15453_v51 }
0x1229   : > { %v9893_v9 = vpop.f32.mrf.mxu0 }
0x122c   : > { %v9115_v48 = vpop.f32.mrf.mxu1  ;;  %9940 = vmatpush.bf16.msra.mxu1 %v15452_v3 }
0x122d   : > { %14493 = vmatmul.msk.bf16.vlgmr.msrb.gmra.mxu2 %vm8910_vm0, %v14492_v57  ;;  %v20974_v6 = vadd.f32 %v9115_v48, %v9048_v59  ;;  %v15448_v59 = vld [vmem:[%s21454_s11 + $0x1a8] sm:$0xff]  ;;  %v9897_v57 = vpack.c.bf16 %v9893_v9, %v9893_v9  ;;  %v15447_v48 = vld [vmem:[%s21454_s11 + $0x1a0] sm:$0xff]  ;;  %14898 = vmatmul.msk.bf16.vlgmr.msrb.gmra.mxu0 %vm8910_vm0, %v14897_v54 }
0x122e   : > { %10511 = vmatpush.bf16.msrb.mxu2 %v20709_v4  ;;  %v9049_v1 = vpop.f32.mrf.mxu3  ;;  %v15480_v9 = vld [vmem:[%s21454_s11 + $0x2a8] sm:$0xff] }
0x122f   : > { %v15500_v54 = vld [vmem:[%s21454_s11 + $0x348] sm:$0xff] }
0x1230   : > { %v9134_v26 = vpop.f32.mrf.mxu2  ;;  %9941 = vmatpush.bf16.msra.mxu1 %v15451_v35  ;;  %v15483_v35 = vld [vmem:[%s21454_s11 + $0x2c0] sm:$0xff] }
0x1231   : > { %v9138_v24 = vpack.c.bf16 %v9134_v26, %v9134_v26  ;;  %v15458_v26 = vld [vmem:[%s21454_s11 + $0x1f8] sm:$0xff] }
0x1232   : > { %10512 = vmatpush.bf16.msrb.mxu2 %v20716_v25 }
0x1233   : > { %14086 = vmatmul.msk.bf16.vlgmr.msrb.gmra.mxu3 %vm8994_vm9, %v9138_v24  ;;  %14383 = vmatmul.msk.bf16.vlgmr.msra.gmra.mxu1 %vm8994_vm9, %v9897_v57  ;;  %v14924_v57 = vld [vmem:[%s21453_s10 + $0x23] sm:$0x1] }
0x1234   : > { %9455 = vmatpush.bf16.msrb.mxu3 %v15426_v12  ;;  %v9117_v32 = vpop.f32.mrf.mxu1  ;;  %10076 = vmatpush.bf16.msrb.mxu1 %v15462_v27  ;;  %v9895_v12 = vpop.f32.mrf.mxu0 }
0x1238   : > { %v9136_v20 = vpop.f32.mrf.mxu2  ;;  %9456 = vmatpush.bf16.msrb.mxu3 %v15425_v13  ;;  %10077 = vmatpush.bf16.msrb.mxu1 %v15461_v42  ;;  %v15457_v13 = vld [vmem:[%s21454_s11 + $0x1f0] sm:$0xff]  ;;  %v15490_v42 = vld [vmem:[%s21454_s11 + $0x2f8] sm:$0xff] }
0x1239   : > { %v15456_v20 = vld [vmem:[%s21454_s11 + $0x1e8] sm:$0xff] }
0x123c   : > { %9457 = vmatpush.bf16.msrb.mxu3 %v15424_v47  ;;  %10078 = vmatpush.bf16.msrb.mxu1 %v15460_v46  ;;  %v10031_v47 = vpop.f32.mrf.mxu0  ;;  %v9253_v55 = vpop.f32.mrf.mxu1 }
0x123d   : > { %14547 = vmatmul.msk.bf16.vlgmr.msra.gmra.mxu2 %vm8910_vm0, %v14546_v16  ;;  %v14762_v16 = vld [vmem:[%s21453_s10 + $0x1d] sm:$0x1]  ;;  %v10035_v0 = vpack.c.bf16 %v10031_v47, %v10031_v47  ;;  %v15489_v47 = vld [vmem:[%s21454_s11 + $0x2f0] sm:$0xff] }
0x123e   : > { %10649 = vmatpush.bf16.msra.mxu2 %v20709_v4 }
0x1240   : > { %v9272_v39 = vpop.f32.mrf.mxu2  ;;  %9458 = vmatpush.bf16.msrb.mxu3 %v15423_v60  ;;  %10079 = vmatpush.bf16.msrb.mxu1 %v15459_v8  ;;  %v15455_v60 = vld [vmem:[%s21454_s11 + $0x1e0] sm:$0xff] }
0x1241   : > { %v9276_v17 = vpack.c.bf16 %v9272_v39, %v9272_v39 }
0x1242   : > { %10650 = vmatpush.bf16.msra.mxu2 %v20716_v25 }
0x1243   : > { %14140 = vmatmul.msk.bf16.vlgmr.msra.gmra.mxu3 %vm8994_vm9, %v9276_v17  ;;  %14437 = vmatmul.msk.bf16.vlgmr.msrb.gmra.mxu1 %vm8994_vm9, %v10035_v0  ;;  %v15491_v0 = vld [vmem:[%s21454_s11 + $0x300] sm:$0xff] }
0x1244   : > { %9593 = vmatpush.bf16.msra.mxu3 %v15434_v2  ;;  %10214 = vmatpush.bf16.msra.mxu1 %v15470_v7  ;;  %v15466_v2 = vld [vmem:[%s21454_s11 + $0x238] sm:$0xff]  ;;  %v10033_v44 = vpop.f32.mrf.mxu0  ;;  %v9255_v3 = vpop.f32.mrf.mxu1 }
0x1245   : > { %v15507_v3 = vld [vmem:[%s21454_s11 + $0x380] sm:$0xff] }
0x1248   : > { %v9274_v21 = vpop.f32.mrf.mxu2  ;;  %9594 = vmatpush.bf16.msra.mxu3 %v15433_v15  ;;  %10215 = vmatpush.bf16.msra.mxu1 %v15469_v19  ;;  %v15465_v15 = vld [vmem:[%s21454_s11 + $0x230] sm:$0xff] }
0x124c   : > { %9595 = vmatpush.bf16.msra.mxu3 %v15432_v38  ;;  %10216 = vmatpush.bf16.msra.mxu1 %v15468_v33  ;;  %v15464_v38 = vld [vmem:[%s21454_s11 + $0x228] sm:$0xff]  ;;  %v10169_v31 = vpop.f32.mrf.mxu0 }
0x124d   : > { %14601 = vmatmul.msk.bf16.vlgmr.msrb.gmra.mxu2 %vm8910_vm0, %v14600_v52  ;;  %v15478_v52 = vld [vmem:[%s21454_s11 + $0x298] sm:$0xff] }
0x124e   : > { %10787 = vmatpush.bf16.msrb.mxu2 %v20709_v4 }
0x1250   : > { %v9410_v43 = vpop.f32.mrf.mxu2  ;;  %9596 = vmatpush.bf16.msra.mxu3 %v15431_v29  ;;  %v10173_v29 = vpack.c.bf16 %v10169_v31, %v10169_v31  ;;  %10217 = vmatpush.bf16.msra.mxu1 %v15467_v63 }
0x1251   : > { %v9414_v40 = vpack.c.bf16 %v9410_v43, %v9410_v43  ;;  %v15463_v43 = vld [vmem:[%s21454_s11 + $0x220] sm:$0xff] }
0x1252   : > { %10788 = vmatpush.bf16.msrb.mxu2 %v20716_v25 }
0x1253   : > { %14194 = vmatmul.msk.bf16.vlgmr.msrb.gmra.mxu3 %vm8994_vm9, %v9414_v40  ;;  %14491 = vmatmul.msk.bf16.vlgmr.msra.gmra.mxu1 %vm8994_vm9, %v10173_v29  ;;  %v15477_v40 = vld [vmem:[%s21454_s11 + $0x290] sm:$0xff] }
0x1254   : > { %9731 = vmatpush.bf16.msrb.mxu3 %v15442_v18  ;;  %10352 = vmatpush.bf16.msrb.mxu1 %v15478_v52  ;;  %v10171_v22 = vpop.f32.mrf.mxu0  ;;  %v15497_v52 = vld [vmem:[%s21454_s11 + $0x330] sm:$0xff] }
0x1258   : > { %v9412_v5 = vpop.f32.mrf.mxu2  ;;  %9732 = vmatpush.bf16.msrb.mxu3 %v15441_v14  ;;  %10353 = vmatpush.bf16.msrb.mxu1 %v15477_v40  ;;  %v15473_v14 = vld [vmem:[%s21454_s11 + $0x270] sm:$0xff] }
0x125c   : > { %9733 = vmatpush.bf16.msrb.mxu3 %v15440_v36  ;;  %v15472_v36 = vld [vmem:[%s21454_s11 + $0x268] sm:$0xff]  ;;  %v10307_v62 = vpop.f32.mrf.mxu0 }
0x125d   : > { %14655 = vmatmul.msk.bf16.vlgmr.msra.gmra.mxu2 %vm8910_vm0, %v14654_v23  ;;  %v10311_v23 = vpack.c.bf16 %v10307_v62, %v10307_v62  ;;  %v15506_v62 = vld [vmem:[%s21454_s11 + $0x378] sm:$0xff] }
0x125e   : > { %10925 = vmatpush.bf16.msra.mxu2 %v20709_v4 }
0x1260   : > { %v9548_v56 = vpop.f32.mrf.mxu2  ;;  %9734 = vmatpush.bf16.msrb.mxu3 %v15439_v30  ;;  %v15471_v30 = vld [vmem:[%s21454_s11 + $0x260] sm:$0xff] }
0x1261   : > { %v9552_v58 = vpack.c.bf16 %v9548_v56, %v9548_v56 }
0x1262   : > { %10926 = vmatpush.bf16.msra.mxu2 %v20716_v25 }
0x1263   : > { %14248 = vmatmul.msk.bf16.vlgmr.msra.gmra.mxu3 %vm8994_vm9, %v9552_v58 }
0x1264   : > { %9869 = vmatpush.bf16.msra.mxu3 %v15450_v41  ;;  %v15482_v41 = vld [vmem:[%s21454_s11 + $0x2b8] sm:$0xff]  ;;  %v10309_v58 = vpop.f32.mrf.mxu0 }
0x1265   : > { %v15504_v58 = vld [vmem:[%s21454_s11 + $0x368] sm:$0xff] }
0x1268   : > { %v9550_v10 = vpop.f32.mrf.mxu2  ;;  %9870 = vmatpush.bf16.msra.mxu3 %v15449_v34  ;;  %v15484_v34 = vld [vmem:[%s21454_s11 + $0x2c8] sm:$0xff] }
0x1269   : > { %v15481_v10 = vld [vmem:[%s21454_s11 + $0x2b0] sm:$0xff] }
0x126c   : > { %9871 = vmatpush.bf16.msra.mxu3 %v15448_v59  ;;  %v10445_v27 = vpop.f32.mrf.mxu0 }
0x126d   : > { %14709 = vmatmul.msk.bf16.vlgmr.msrb.gmra.mxu2 %vm8910_vm0, %v14708_v28  ;;  %v15494_v28 = vld [vmem:[%s21454_s11 + $0x318] sm:$0xff] }
0x126e   : > { %11063 = vmatpush.bf16.msrb.mxu2 %v20709_v4 }
0x1270   : > { %v9686_v1 = vpop.f32.mrf.mxu2  ;;  %9872 = vmatpush.bf16.msra.mxu3 %v15447_v48  ;;  %v10449_v48 = vpack.c.bf16 %v10445_v27, %v10445_v27  ;;  %v15503_v27 = vld [vmem:[%s21454_s11 + $0x360] sm:$0xff] }
0x1271   : > { %v9690_v24 = vpack.c.bf16 %v9686_v1, %v9686_v1  ;;  %v9391_v1 = vpop.f32.mrf.mxu1 }
0x1272   : > { %11064 = vmatpush.bf16.msrb.mxu2 %v20716_v25 }
0x1273   : > { %14302 = vmatmul.msk.bf16.vlgmr.msrb.gmra.mxu3 %vm8994_vm9, %v9690_v24  ;;  %v15493_v24 = vld [vmem:[%s21454_s11 + $0x310] sm:$0xff] }
0x1274   : > { %10007 = vmatpush.bf16.msrb.mxu3 %v15458_v26  ;;  %v15479_v26 = vld [vmem:[%s21454_s11 + $0x2a0] sm:$0xff] }
0x1278   : > { %v9688_v32 = vpop.f32.mrf.mxu2  ;;  %10008 = vmatpush.bf16.msrb.mxu3 %v15457_v13  ;;  %v10447_v13 = vpop.f32.mrf.mxu0 }
0x1279   : > { %v9393_v32 = vpop.f32.mrf.mxu1 }
0x127c   : > { %10009 = vmatpush.bf16.msrb.mxu3 %v15456_v20  ;;  %v15492_v20 = vld [vmem:[%s21454_s11 + $0x308] sm:$0xff] }
0x127d   : > { %14763 = vmatmul.msk.bf16.vlgmr.msra.gmra.mxu2 %vm8910_vm0, %v14762_v16  ;;  %v15488_v16 = vld [vmem:[%s21454_s11 + $0x2e8] sm:$0xff] }
0x127e   : > { %11201 = vmatpush.bf16.msra.mxu2 %v20709_v4 }
0x1280   : > { %v9824_v39 = vpop.f32.mrf.mxu2  ;;  %10010 = vmatpush.bf16.msrb.mxu3 %v15455_v60 }
0x1281   : > { %v9828_v17 = vpack.c.bf16 %v9824_v39, %v9824_v39  ;;  %v10583_v39 = vpop.f32.mrf.mxu0  ;;  %v9529_v19 = vpop.f32.mrf.mxu1 }
0x1282   : > { %11202 = vmatpush.bf16.msra.mxu2 %v20716_v25  ;;  %v10587_v44 = vpack.c.bf16 %v10583_v39, %v10583_v39  ;;  %v15511_v39 = vld [vmem:[%s21454_s11 + $0x3a0] sm:$0xff] }
0x1283   : > { %14356 = vmatmul.msk.bf16.vlgmr.msra.gmra.mxu3 %vm8994_vm9, %v9828_v17 }
0x1284   : > { %10145 = vmatpush.bf16.msra.mxu3 %v15466_v2  ;;  %v15502_v2 = vld [vmem:[%s21454_s11 + $0x358] sm:$0xff] }
0x1288   : > { %v9826_v21 = vpop.f32.mrf.mxu2  ;;  %10146 = vmatpush.bf16.msra.mxu3 %v15465_v15  ;;  %v15498_v15 = vld [vmem:[%s21454_s11 + $0x338] sm:$0xff] }
0x1289   : > { %v15501_v21 = vld [vmem:[%s21454_s11 + $0x350] sm:$0xff]  ;;  %v10585_v31 = vpop.f32.mrf.mxu0  ;;  %v9531_v63 = vpop.f32.mrf.mxu1 }
0x128c   : > { %10147 = vmatpush.bf16.msra.mxu3 %v15464_v38 }
0x128d   : > { %14817 = vmatmul.msk.bf16.vlgmr.msrb.gmra.mxu2 %vm8910_vm0, %v14816_v11 }
0x128e   : > { %11339 = vmatpush.bf16.msrb.mxu2 %v20709_v4  ;;  %v15476_v4 = vld [vmem:[%s21454_s11 + $0x288] sm:$0xff] }
0x128f   : > { %10354 = vmatpush.bf16.msrb.mxu1 %v15476_v4 }
0x1290   : > { %v9962_v18 = vpop.f32.mrf.mxu2  ;;  %10148 = vmatpush.bf16.msra.mxu3 %v15463_v43 }
0x1291   : > { %v9966_v49 = vpack.c.bf16 %v9962_v18, %v9962_v18  ;;  %v15496_v18 = vld [vmem:[%s21454_s11 + $0x328] sm:$0xff]  ;;  %v10721_v40 = vpop.f32.mrf.mxu0 }
0x1292   : > { %11340 = vmatpush.bf16.msrb.mxu2 %v20716_v25  ;;  %v15475_v25 = vld [vmem:[%s21454_s11 + $0x280] sm:$0xff]  ;;  %v10725_v4 = vpack.c.bf16 %v10721_v40, %v10721_v40 }
0x1293   : > { %14410 = vmatmul.msk.bf16.vlgmr.msrb.gmra.mxu3 %vm8994_vm9, %v9966_v49  ;;  %10355 = vmatpush.bf16.msrb.mxu1 %v15475_v25  ;;  %v15510_v49 = vld [vmem:[%s21454_s11 + $0x398] sm:$0xff]  ;;  %v15519_v40 = vld [vmem:[%s21454_s11 + $0x3e0] sm:$0xff] }
0x1294   : > { %10283 = vmatpush.bf16.msrb.mxu3 %v15474_v45  ;;  %v15499_v45 = vld [vmem:[%s21454_s11 + $0x340] sm:$0xff] }
0x1296   : > { %14545 = vmatmul.msk.bf16.vlgmr.msrb.gmra.mxu1 %vm8994_vm9, %v10311_v23 }
0x1297   : > { %10490 = vmatpush.bf16.msra.mxu1 %v15486_v50  ;;  %v15509_v50 = vld [vmem:[%s21454_s11 + $0x390] sm:$0xff] }
0x1298   : > { %v9964_v5 = vpop.f32.mrf.mxu2  ;;  %10284 = vmatpush.bf16.msrb.mxu3 %v15473_v14  ;;  %v9667_v14 = vpop.f32.mrf.mxu1 }
0x1299   : > { %v15495_v5 = vld [vmem:[%s21454_s11 + $0x320] sm:$0xff]  ;;  %v10723_v23 = vpop.f32.mrf.mxu0 }
0x129b   : > { %10491 = vmatpush.bf16.msra.mxu1 %v15485_v61 }
0x129c   : > { %10285 = vmatpush.bf16.msrb.mxu3 %v15472_v36 }
0x129d   : > { %14871 = vmatmul.msk.bf16.vlgmr.msra.gmra.mxu2 %vm8910_vm0, %v14870_v37 }
0x129f   : > { %10492 = vmatpush.bf16.msra.mxu1 %v15484_v34 }
0x12a0   : > { %v10100_v56 = vpop.f32.mrf.mxu2  ;;  %10286 = vmatpush.bf16.msrb.mxu3 %v15471_v30  ;;  %v15508_v30 = vld [vmem:[%s21454_s11 + $0x388] sm:$0xff] }
0x12a1   : > { %v10104_v51 = vpack.c.bf16 %v10100_v56, %v10100_v56  ;;  %v15505_v56 = vld [vmem:[%s21454_s11 + $0x370] sm:$0xff] }
0x12a3   : > { %14464 = vmatmul.msk.bf16.vlgmr.msra.gmra.mxu3 %vm8994_vm9, %v10104_v51  ;;  %10493 = vmatpush.bf16.msra.mxu1 %v15483_v35 }
0x12a4   : > { %10421 = vmatpush.bf16.msra.mxu3 %v15482_v41 }
0x12a6   : > { %14599 = vmatmul.msk.bf16.vlgmr.msra.gmra.mxu1 %vm8994_vm9, %v10449_v48  ;;  %v15514_v48 = vld [vmem:[%s21454_s11 + $0x3b8] sm:$0xff] }
0x12a7   : > { %10628 = vmatpush.bf16.msrb.mxu1 %v15494_v28 }
0x12a8   : > { %v10102_v59 = vpop.f32.mrf.mxu2  ;;  %10422 = vmatpush.bf16.msra.mxu3 %v15481_v10  ;;  %v10859_v10 = vpop.f32.mrf.mxu0 }
0x12a9   : > { %v15518_v59 = vld [vmem:[%s21454_s11 + $0x3d8] sm:$0xff] }
0x12ab   : > { %10629 = vmatpush.bf16.msrb.mxu1 %v15493_v24  ;;  %v15516_v24 = vld [vmem:[%s21454_s11 + $0x3c8] sm:$0xff] }
0x12ac   : > { %10423 = vmatpush.bf16.msra.mxu3 %v15480_v9  ;;  %v10863_v9 = vpack.c.bf16 %v10859_v10, %v10859_v10 }
0x12ad   : > { %14925 = vmatmul.msk.bf16.vlgmr.msrb.gmra.mxu2 %vm8910_vm0, %v14924_v57 }
0x12af   : > { %10630 = vmatpush.bf16.msrb.mxu1 %v15492_v20 }
0x12b0   : > { %v10238_v12 = vpop.f32.mrf.mxu2  ;;  %10424 = vmatpush.bf16.msra.mxu3 %v15479_v26 }
0x12b1   : > { %v10242_v46 = vpack.c.bf16 %v10238_v12, %v10238_v12  ;;  %v10861_v12 = vpop.f32.mrf.mxu0 }
0x12b2   : > { %v15536_v12 = vld [vmem:[%s21454_s11 + $0x468] sm:$0xff] }
0x12b3   : > { %14518 = vmatmul.msk.bf16.vlgmr.msrb.gmra.mxu3 %vm8994_vm9, %v10242_v46  ;;  %10631 = vmatpush.bf16.msrb.mxu1 %v15491_v0  ;;  %v15513_v46 = vld [vmem:[%s21454_s11 + $0x3b0] sm:$0xff] }
0x12b4   : > { %10559 = vmatpush.bf16.msrb.mxu3 %v15490_v42 }
0x12b6   : > { %v9184_v8 = vpop.f32.mrf.mxu3  ;;  %14653 = vmatmul.msk.bf16.vlgmr.msrb.gmra.mxu1 %vm8994_vm9, %v10587_v44 }
0x12b7   : > { %v9188_v53 = vadd.f32 %v9184_v8, %v20974_v6  ;;  %10766 = vmatpush.bf16.msra.mxu1 %v15502_v2  ;;  %v15487_v6 = vld [vmem:[%s21454_s11 + $0x2e0] sm:$0xff] }
0x12b8   : > { %v10240_v7 = vpop.f32.mrf.mxu2  ;;  %10560 = vmatpush.bf16.msrb.mxu3 %v15489_v47  ;;  %v15512_v47 = vld [vmem:[%s21454_s11 + $0x3a8] sm:$0xff]  ;;  %v15515_v8 = vld [vmem:[%s21454_s11 + $0x3c0] sm:$0xff] }
0x12b9   : > { %v9257_v60 = vadd.f32 %v9253_v55, %v9188_v53  ;;  %v9669_v55 = vpop.f32.mrf.mxu1  ;;  %v10997_v7 = vpop.f32.mrf.mxu0 }
0x12ba   : > { %v11001_v0 = vpack.c.bf16 %v10997_v7, %v10997_v7 }
0x12bb   : > { %10767 = vmatpush.bf16.msra.mxu1 %v15501_v21  ;;  %v15524_v21 = vld [vmem:[%s21454_s11 + $0x408] sm:$0xff] }
0x12bc   : > { %10561 = vmatpush.bf16.msrb.mxu3 %v15488_v16  ;;  %v15526_v16 = vld [vmem:[%s21454_s11 + $0x418] sm:$0xff] }
0x12be   : > { %v9186_v17 = vpop.f32.mrf.mxu3 }
0x12bf   : > { %10768 = vmatpush.bf16.msra.mxu1 %v15500_v54 }
0x12c0   : > { %v10376_v33 = vpop.f32.mrf.mxu2  ;;  %10562 = vmatpush.bf16.msrb.mxu3 %v15487_v6  ;;  %v15525_v6 = vld [vmem:[%s21454_s11 + $0x410] sm:$0xff] }
0x12c1   : > { %v10380_v38 = vpack.c.bf16 %v10376_v33, %v10376_v33  ;;  %v9805_v35 = vpop.f32.mrf.mxu1  ;;  %v10999_v33 = vpop.f32.mrf.mxu0 }
0x12c3   : > { %14572 = vmatmul.msk.bf16.vlgmr.msra.gmra.mxu3 %vm8994_vm9, %v10380_v38  ;;  %10769 = vmatpush.bf16.msra.mxu1 %v15499_v45  ;;  %v15521_v38 = vld [vmem:[%s21454_s11 + $0x3f0] sm:$0xff] }
0x12c4   : > { %10697 = vmatpush.bf16.msra.mxu3 %v15498_v15 }
0x12c6   : > { %v9322_v11 = vpop.f32.mrf.mxu3  ;;  %14707 = vmatmul.msk.bf16.vlgmr.msra.gmra.mxu1 %vm8994_vm9, %v10725_v4 }
0x12c7   : > { %v9326_v29 = vadd.f32 %v9322_v11, %v9257_v60  ;;  %10904 = vmatpush.bf16.msrb.mxu1 %v15510_v49  ;;  %v15523_v11 = vld [vmem:[%s21454_s11 + $0x400] sm:$0xff] }
0x12c8   : > { %v10378_v43 = vpop.f32.mrf.mxu2  ;;  %10698 = vmatpush.bf16.msra.mxu3 %v15497_v52  ;;  %v15520_v52 = vld [vmem:[%s21454_s11 + $0x3e8] sm:$0xff] }
0x12c9   : > { %v9395_v22 = vadd.f32 %v9391_v1, %v9326_v29  ;;  %v15517_v1 = vld [vmem:[%s21454_s11 + $0x3d0] sm:$0xff]  ;;  %v9807_v42 = vpop.f32.mrf.mxu1  ;;  %v11135_v43 = vpop.f32.mrf.mxu0 }
0x12ca   : > { %v11139_v45 = vpack.c.bf16 %v11135_v43, %v11135_v43 }
0x12cb   : > { %10905 = vmatpush.bf16.msrb.mxu1 %v15509_v50  ;;  %v15532_v50 = vld [vmem:[%s21454_s11 + $0x448] sm:$0xff] }
0x12cc   : > { %10699 = vmatpush.bf16.msra.mxu3 %v15496_v18  ;;  %v15534_v18 = vld [vmem:[%s21454_s11 + $0x458] sm:$0xff] }
0x12ce   : > { %v9324_v36 = vpop.f32.mrf.mxu3 }
0x12cf   : > { %10906 = vmatpush.bf16.msrb.mxu1 %v15508_v30 }
0x12d0   : > { %v10514_v25 = vpop.f32.mrf.mxu2  ;;  %10700 = vmatpush.bf16.msra.mxu3 %v15495_v5  ;;  %v15533_v5 = vld [vmem:[%s21454_s11 + $0x450] sm:$0xff] }
0x12d1   : > { %v10518_v37 = vpack.c.bf16 %v10514_v25, %v10514_v25  ;;  %v9943_v60 = vpop.f32.mrf.mxu1  ;;  %v11137_v25 = vpop.f32.mrf.mxu0 }
0x12d3   : > { %14626 = vmatmul.msk.bf16.vlgmr.msrb.gmra.mxu3 %vm8994_vm9, %v10518_v37  ;;  %10907 = vmatpush.bf16.msrb.mxu1 %v15507_v3  ;;  %v15529_v37 = vld [vmem:[%s21454_s11 + $0x430] sm:$0xff] }
0x12d4   : > { %10835 = vmatpush.bf16.msrb.mxu3 %v15506_v62 }
0x12d6   : > { %v9460_v41 = vpop.f32.mrf.mxu3  ;;  %14761 = vmatmul.msk.bf16.vlgmr.msrb.gmra.mxu1 %vm8994_vm9, %v10863_v9  ;;  %v15538_v9 = vld [vmem:[%s21454_s11 + $0x478] sm:$0xff] }
0x12d7   : > { %v9464_v61 = vadd.f32 %v9460_v41, %v9395_v22  ;;  %11042 = vmatpush.bf16.msra.mxu1 %v15518_v59  ;;  %v15531_v41 = vld [vmem:[%s21454_s11 + $0x440] sm:$0xff] }
0x12d8   : > { %v10516_v51 = vpop.f32.mrf.mxu2  ;;  %10836 = vmatpush.bf16.msrb.mxu3 %v15505_v56  ;;  %v15528_v56 = vld [vmem:[%s21454_s11 + $0x428] sm:$0xff] }
0x12d9   : > { %v9533_v34 = vadd.f32 %v9529_v19, %v9464_v61  ;;  %v15522_v19 = vld [vmem:[%s21454_s11 + $0x3f8] sm:$0xff]  ;;  %v9945_v15 = vpop.f32.mrf.mxu1  ;;  %v11273_v51 = vpop.f32.mrf.mxu0 }
0x12db   : > { %11043 = vmatpush.bf16.msra.mxu1 %v15517_v1 }
0x12dc   : > { %10837 = vmatpush.bf16.msrb.mxu3 %v15504_v58  ;;  %v11277_v58 = vpack.c.bf16 %v11273_v51, %v11273_v51 }
0x12de   : > { %v9462_v28 = vpop.f32.mrf.mxu3 }
0x12df   : > { %11044 = vmatpush.bf16.msra.mxu1 %v15516_v24 }
0x12e0   : > { %v10652_v57 = vpop.f32.mrf.mxu2  ;;  %10838 = vmatpush.bf16.msrb.mxu3 %v15503_v27 }
0x12e1   : > { %v10656_v26 = vpack.c.bf16 %v10652_v57, %v10652_v57  ;;  %v10081_v22 = vpop.f32.mrf.mxu1  ;;  %v11275_v27 = vpop.f32.mrf.mxu0  ;;  %v15537_v57 = vld [vmem:[%s21454_s11 + $0x470] sm:$0xff] }
0x12e3   : > { %14680 = vmatmul.msk.bf16.vlgmr.msra.gmra.mxu3 %vm8994_vm9, %v10656_v26  ;;  %11045 = vmatpush.bf16.msra.mxu1 %v15515_v8 }
0x12e4   : > { %10973 = vmatpush.bf16.msra.mxu3 %v15514_v48 }
0x12e6   : > { %v9598_v13 = vpop.f32.mrf.mxu3  ;;  %14815 = vmatmul.msk.bf16.vlgmr.msra.gmra.mxu1 %vm8994_vm9, %v11001_v0 }
0x12e7   : > { %v9602_v32 = vadd.f32 %v9598_v13, %v9533_v34  ;;  %11180 = vmatpush.bf16.msrb.mxu1 %v15526_v16  ;;  %v15527_v34 = vld [vmem:[%s21454_s11 + $0x420] sm:$0xff] }
0x12e8   : > { %v10654_v20 = vpop.f32.mrf.mxu2  ;;  %10974 = vmatpush.bf16.msra.mxu3 %v15513_v46  ;;  %v15535_v46 = vld [vmem:[%s21454_s11 + $0x460] sm:$0xff] }
0x12e9   : > { %v9671_v53 = vadd.f32 %v9667_v14, %v9602_v32  ;;  %v15530_v14 = vld [vmem:[%s21454_s11 + $0x438] sm:$0xff]  ;;  %v10083_v62 = vpop.f32.mrf.mxu1 }
0x12eb   : > { %11181 = vmatpush.bf16.msrb.mxu1 %v15525_v6 }
0x12ec   : > { %10975 = vmatpush.bf16.msra.mxu3 %v15512_v47 }
0x12ee   : > { %v9600_v2 = vpop.f32.mrf.mxu3 }
0x12ef   : > { %11182 = vmatpush.bf16.msrb.mxu1 %v15524_v21 }
0x12f0   : > { %v10790_v44 = vpop.f32.mrf.mxu2  ;;  %10976 = vmatpush.bf16.msra.mxu3 %v15511_v39 }
0x12f1   : > { %v10794_v17 = vpack.c.bf16 %v10790_v44, %v10790_v44  ;;  %v10219_v3 = vpop.f32.mrf.mxu1 }
0x12f3   : > { %14734 = vmatmul.msk.bf16.vlgmr.msrb.gmra.mxu3 %vm8994_vm9, %v10794_v17  ;;  %11183 = vmatpush.bf16.msrb.mxu1 %v15523_v11 }
0x12f4   : > { %11111 = vmatpush.bf16.msrb.mxu3 %v15522_v19 }
0x12f6   : > { %v9736_v31 = vpop.f32.mrf.mxu3  ;;  %14869 = vmatmul.msk.bf16.vlgmr.msrb.gmra.mxu1 %vm8994_vm9, %v11139_v45 }
0x12f7   : > { %v9740_v63 = vadd.f32 %v9736_v31, %v9671_v53  ;;  %11318 = vmatpush.bf16.msra.mxu1 %v15534_v18 }
0x12f8   : > { %v10792_v54 = vpop.f32.mrf.mxu2  ;;  %11112 = vmatpush.bf16.msrb.mxu3 %v15521_v38 }
0x12f9   : > { %v9809_v29 = vadd.f32 %v9805_v35, %v9740_v63  ;;  %v10221_v28 = vpop.f32.mrf.mxu1 }
0x12fb   : > { %11319 = vmatpush.bf16.msra.mxu1 %v15533_v5 }
0x12fc   : > { %11113 = vmatpush.bf16.msrb.mxu3 %v15520_v52 }
0x12fe   : > { %v9738_v49 = vpop.f32.mrf.mxu3 }
0x12ff   : > { %11320 = vmatpush.bf16.msra.mxu1 %v15532_v50 }
0x1300   : > { %v10928_v4 = vpop.f32.mrf.mxu2  ;;  %11114 = vmatpush.bf16.msrb.mxu3 %v15519_v40 }
0x1301   : > { %v10932_v36 = vpack.c.bf16 %v10928_v4, %v10928_v4 }
0x1303   : > { %14788 = vmatmul.msk.bf16.vlgmr.msra.gmra.mxu3 %vm8994_vm9, %v10932_v36  ;;  %11321 = vmatpush.bf16.msra.mxu1 %v15531_v41 }
0x1304   : > { %11249 = vmatpush.bf16.msra.mxu3 %v15530_v14 }
0x1306   : > { %v9874_v23 = vpop.f32.mrf.mxu3  ;;  %14923 = vmatmul.msk.bf16.vlgmr.msra.gmra.mxu1 %vm8994_vm9, %v11277_v58 }
0x1307   : > { %v9878_v55 = vadd.f32 %v9874_v23, %v9809_v29 }
0x1308   : > { %v10930_v30 = vpop.f32.mrf.mxu2  ;;  %11250 = vmatpush.bf16.msra.mxu3 %v15529_v37 }
0x1309   : > { %v9947_v61 = vadd.f32 %v9943_v60, %v9878_v55 }
0x130c   : > { %11251 = vmatpush.bf16.msra.mxu3 %v15528_v56 }
0x130e   : > { %v9876_v10 = vpop.f32.mrf.mxu3 }
0x1310   : > { %v11066_v59 = vpop.f32.mrf.mxu2  ;;  %11252 = vmatpush.bf16.msra.mxu3 %v15527_v34 }
0x1311   : > { %v11070_v35 = vpack.c.bf16 %v11066_v59, %v11066_v59 }
0x1313   : > { %14842 = vmatmul.msk.bf16.vlgmr.msrb.gmra.mxu3 %vm8994_vm9, %v11070_v35  ;;  %v10357_v24 = vpop.f32.mrf.mxu1 }
0x1314   : > { %11387 = vmatpush.bf16.msrb.mxu3 %v15538_v9 }
0x1316   : > { %v10012_v48 = vpop.f32.mrf.mxu3 }
0x1317   : > { %v10016_v1 = vadd.f32 %v10012_v48, %v9947_v61 }
0x1318   : > { %v11068_v26 = vpop.f32.mrf.mxu2  ;;  %11388 = vmatpush.bf16.msrb.mxu3 %v15537_v57 }
0x1319   : > { %v10085_v42 = vadd.f32 %v10081_v22, %v10016_v1  ;;  %v11397_v26 = vld [vmem:[%s21455_s12] sm:$0x1] }
0x131b   : > { %v10359_v47 = vpop.f32.mrf.mxu1 }
0x131c   : > { %11389 = vmatpush.bf16.msrb.mxu3 %v15536_v12 }
0x131e   : > { %v10014_v13 = vpop.f32.mrf.mxu3 }
0x1320   : > { %v11204_v32 = vpop.f32.mrf.mxu2  ;;  %11390 = vmatpush.bf16.msrb.mxu3 %v15535_v46 }
0x1321   : > { %v11208_v20 = vpack.c.bf16 %v11204_v32, %v11204_v32 }
0x1323   : > { %14896 = vmatmul.msk.bf16.vlgmr.msra.gmra.mxu3 %vm8994_vm9, %v11208_v20  ;;  %v10495_v0 = vpop.f32.mrf.mxu1 }
0x1326   : > { %v10150_v8 = vpop.f32.mrf.mxu3 }
0x1327   : > { %v10154_v53 = vadd.f32 %v10150_v8, %v10085_v42 }
0x1328   : > { %v11206_v7 = vpop.f32.mrf.mxu2 }
0x1329   : > { %v10223_v16 = vadd.f32 %v10219_v3, %v10154_v53 }
0x132b   : > { %v10497_v44 = vpop.f32.mrf.mxu1 }
0x132e   : > { %v10152_v60 = vpop.f32.mrf.mxu3 }
0x1330   : > { %v11342_v39 = vpop.f32.mrf.mxu2 }
0x1331   : > { %v11346_v2 = vpack.c.bf16 %v11342_v39, %v11342_v39 }
0x1333   : > { %14950 = vmatmul.msk.bf16.vlgmr.msrb.gmra.mxu3 %vm8994_vm9, %v11346_v2  ;;  %v10633_v15 = vpop.f32.mrf.mxu1 }
0x1336   : > { %v10288_v19 = vpop.f32.mrf.mxu3 }
0x1337   : > { %v10292_v6 = vadd.f32 %v10288_v19, %v10223_v16 }
0x1338   : > { %v11344_v17 = vpop.f32.mrf.mxu2 }
0x1339   : > { %v10361_v33 = vadd.f32 %v10357_v24, %v10292_v6 }
0x133b   : > { %v10635_v38 = vpop.f32.mrf.mxu1 }
0x133e   : > { %v10290_v21 = vpop.f32.mrf.mxu3 }
0x1343   : > { %v10771_v52 = vpop.f32.mrf.mxu1 }
0x1346   : > { %v10426_v31 = vpop.f32.mrf.mxu3 }
0x1347   : > { %v10430_v63 = vadd.f32 %v10426_v31, %v10361_v33 }
0x1349   : > { %v10499_v54 = vadd.f32 %v10495_v0, %v10430_v63 }
0x134b   : > { %v10773_v29 = vpop.f32.mrf.mxu1 }
0x134e   : > { %v10428_v11 = vpop.f32.mrf.mxu3 }
0x1353   : > { %v10909_v22 = vpop.f32.mrf.mxu1 }
0x1356   : > { %v10564_v43 = vpop.f32.mrf.mxu3 }
0x1357   : > { %v10568_v18 = vadd.f32 %v10564_v43, %v10499_v54 }
0x1359   : > { %v10637_v45 = vadd.f32 %v10633_v15, %v10568_v18 }
0x135b   : > { %v10911_v49 = vpop.f32.mrf.mxu1 }
0x135e   : > { %v10566_v40 = vpop.f32.mrf.mxu3 }
0x1363   : > { %v11047_v36 = vpop.f32.mrf.mxu1 }
0x1366   : > { %v10702_v4 = vpop.f32.mrf.mxu3 }
0x1367   : > { %v10706_v14 = vadd.f32 %v10702_v4, %v10637_v45 }
0x1369   : > { %v10775_v5 = vadd.f32 %v10771_v52, %v10706_v14 }
0x136b   : > { %v11049_v62 = vpop.f32.mrf.mxu1 }
0x136e   : > { %v10704_v25 = vpop.f32.mrf.mxu3 }
0x1373   : > { %v11185_v55 = vpop.f32.mrf.mxu1 }
0x1376   : > { %v10840_v50 = vpop.f32.mrf.mxu3 }
0x1377   : > { %v10844_v37 = vadd.f32 %v10840_v50, %v10775_v5 }
0x1379   : > { %v10913_v23 = vadd.f32 %v10909_v22, %v10844_v37 }
0x137b   : > { %v11187_v56 = vpop.f32.mrf.mxu1 }
0x137e   : > { %v10842_v30 = vpop.f32.mrf.mxu3 }
0x1383   : > { %v11323_v58 = vpop.f32.mrf.mxu1 }
0x1386   : > { %v10978_v41 = vpop.f32.mrf.mxu3 }
0x1387   : > { %v10982_v61 = vadd.f32 %v10978_v41, %v10913_v23 }
0x1389   : > { %v11051_v51 = vadd.f32 %v11047_v36, %v10982_v61 }
0x138b   : > { %v11325_v34 = vpop.f32.mrf.mxu1 }
0x138e   : > { %v10980_v3 = vpop.f32.mrf.mxu3 }
0x1396   : > { %v11116_v10 = vpop.f32.mrf.mxu3 }
0x1397   : > { %v11120_v35 = vadd.f32 %v11116_v10, %v11051_v51 }
0x1399   : > { %v11189_v28 = vadd.f32 %v11185_v55, %v11120_v35 }
0x139e   : > { %v11118_v59 = vpop.f32.mrf.mxu3 }
0x13a6   : > { %v11254_v9 = vpop.f32.mrf.mxu3 }
0x13a7   : > { %v11258_v57 = vadd.f32 %v11254_v9, %v11189_v28 }
0x13a9   : > { %v11327_v48 = vadd.f32 %v11323_v58, %v11258_v57 }
0x13ae   : > { %v11256_v27 = vpop.f32.mrf.mxu3 }
0x13b6   : > { %v11392_v1 = vpop.f32.mrf.mxu3 }
0x13b7   : > { %v11396_v12 = vadd.f32 %v11392_v1, %v11327_v48 }
0x13b9   : > { %v11398_v42 = vadd.f32 %v11397_v26, %v11396_v12 }
0x13bb   : > { %v11400_v24 = vmul.f32 0.01, %v11398_v42  ;;  %vm11399_vm10 = vcmp.ge.f32.partialorder %v11398_v42, 0.0 }
0x13bd   : > { %v11401_v46 = vsel %vm11399_vm10, %v11398_v42, %v11400_v24 }
0x13be   : > { %v11394_v13 = vpop.f32.mrf.mxu3  ;;  %11402 = vst [vmem:[%s432_s21] sm:$0x1] %v11401_v46 }
0x13bf   : > { %15609 = shalt.err (!%p15606_p3)
}
0x13c0   : > { %15539 = dma.vmem_to_hbm [thread:$0]  (%p15755_p5), %s11415_s22, 16, %s11417_s23, %s11404_s24  }
0x13c1 PF: > { %p15545_p4 = scmp.ge.s32.totalorder %s15644_s28, 2  ;;  %s11428_s0 = sand.u32 1, %s15632_s25  }
0x13c2   : > { %s11429_s20 = scalar_lea.sflag [#allocation3], %s11428_s0 }
0x13c3   : > { %p15542_p7 = pnand %p15545_p4, %p15759_p6 }
0x13c5   : > { %p15543_p8 = pneg %p15542_p7 }
0x13c7   : > { %15627 = dma.done.wait (%p15543_p8), %s11429_s20, 16  }
0x13c8   : > { %15629 = vsyncadd (%p15543_p8), %s11429_s20, 4294967280  ;;  %s21479_s28 = sld [smem:[#allocation6_spill]]  ;;  %s21482_s25 = smov %s15636_s26 }
0x13c9   : > { %s21480_s21 = sld [smem:[#allocation5_spill]] }
0x13ca   : > { %s21481_s27 = sld [smem:[#allocation7_spill]] }
0x13ce   : > { %p23_p9 = scmp.ge.s32.totalorder %s21479_s28, 4  }
0x13cf   : > { %s21483_s26 = smov %s21480_s21 }
0x13d0   :  { %25 = sbr.rel (!%p23_p9) target bundleno = 5 (0x5), region = 225 }
0x13d5   :  { %11434 = vsyncpa [#allocation3], 1 }
0x13d6   :  { %11436 = vsyncpa [#allocation3 + $0x1], 1 }

</bundles_post_ra>
